<compile_context>
chip_gen: v6e
topology: v6e:2x2x1
jax: 0.10.0
libtpu: 0.0.40
codegen_flags: <defaults>
</compile_context>

<pallas_src>
import jax
import jax.numpy as jnp
import numpy as np
from jax.experimental import pallas as pl
from jax.experimental.pallas import tpu as pltpu


IN_FEATURES = 28 * 28          # 784
HIDDEN = 1200
CLASSES = 10

# Lane/sublane-padded sizes (multiples of 128).  Zero padding is a mathematical
# no-op: padded W1 columns + zero bias give relu(0)=0 hidden activations, and
# padded W2/W3 rows are zero, so they contribute nothing.
IN_P = 896                     # 7 * 128   (784 -> 896)
HIDDEN_P = 1280                # 10 * 128  (1200 -> 1280)
OUT_P = 128                    # logits padded 10 -> 128

_LAYER_PADS = [(IN_P, HIDDEN_P), (HIDDEN_P, HIDDEN_P), (HIDDEN_P, OUT_P)]


# ----------------------------- Pallas kernel ------------------------------- #

def _fused_mlp_kernel(x_ref, w1_ref, b1_ref, w2_ref, b2_ref, w3_ref, b3_ref,
                      o_ref):
    """One (sample s, batch-tile i) grid step, entirely on-chip:

        out[s, i] = relu(relu(x[i]@W1[s]+b1[s])@W2[s]+b2[s])@W3[s] + b3[s]

    x: (TB, IN_P) f32, Wk: (1, K, N) bf16, bk: (1, 1, N) f32, out: (1, TB, 128) f32.
    Matmuls run on the MXU with f32 accumulation; hidden activations stay in
    VMEM/vregs and never touch HBM.
    """
    x = x_ref[...].astype(jnp.bfloat16)                          # (TB, IN_P)
    h1 = jnp.dot(x, w1_ref[0], preferred_element_type=jnp.float32)
    h1 = jnp.maximum(h1 + b1_ref[0], 0.0)
    h2 = jnp.dot(h1.astype(jnp.bfloat16), w2_ref[0],
                 preferred_element_type=jnp.float32)
    h2 = jnp.maximum(h2 + b2_ref[0], 0.0)
    h3 = jnp.dot(h2.astype(jnp.bfloat16), w3_ref[0],
                 preferred_element_type=jnp.float32)
    o_ref[0] = (h3 + b3_ref[0]).astype(o_ref.dtype)


def fused_mlp_pallas(x, w1, b1, w2, b2, w3, b3, *, tb=256):
    """x: (B, 784) f32.  Weights stacked over samples:
         w1 (S, IN_P, HIDDEN_P) bf16, b1 (S, 1, HIDDEN_P) f32, etc.
       Returns (S, B, OUT_P) f32 padded logits."""
    B = x.shape[0]
    S = w1.shape[0]
    assert x.shape[1] == IN_FEATURES
    assert w1.shape[1:] == (IN_P, HIDDEN_P)
    assert w2.shape[1:] == (HIDDEN_P, HIDDEN_P)
    assert w3.shape[1:] == (HIDDEN_P, OUT_P)

    # Batch tile: 256 rows (MXU-friendly) for large batches, otherwise a single
    # sublane-aligned tile.  (On v5e prefer tb=128.)
    TB = tb if B >= tb else max(8, ((B + 7) // 8) * 8)
    B_pad = ((B + TB - 1) // TB) * TB
    nb = B_pad // TB

    # Zero-pad features 784 -> 896 and batch B -> B_pad (padded rows sliced off).
    x = jnp.pad(x, ((0, B_pad - B), (0, IN_P - IN_FEATURES)))

    # Sample axis outermost: weights stay resident across all batch tiles of a
    # sample, and the next sample's weights prefetch behind the current compute.
    grid = (S, nb)

    flops = 2 * S * B_pad * (IN_P * HIDDEN_P + HIDDEN_P * HIDDEN_P
                             + HIDDEN_P * OUT_P)
    bytes_accessed = (2 * S * (IN_P * HIDDEN_P + HIDDEN_P * HIDDEN_P
                               + HIDDEN_P * OUT_P)            # bf16 weights
                      + 4 * B_pad * IN_P                      # x
                      + 4 * S * B_pad * OUT_P                 # logits
                      + 4 * S * (2 * HIDDEN_P + OUT_P))       # biases

    dims = (
        "parallel" if (S > 1 or nb > 1) else "arbitrary",
        "parallel" if nb > 1 else "arbitrary",
    )

    out = pl.pallas_call(
        _fused_mlp_kernel,
        out_shape=jax.ShapeDtypeStruct((S, B_pad, OUT_P), jnp.float32),
        grid=grid,
        in_specs=[
            pl.BlockSpec((TB, IN_P), lambda s, i: (i, 0)),
            pl.BlockSpec((1, IN_P, HIDDEN_P), lambda s, i: (s, 0, 0)),
            pl.BlockSpec((1, 1, HIDDEN_P), lambda s, i: (s, 0, 0)),
            pl.BlockSpec((1, HIDDEN_P, HIDDEN_P), lambda s, i: (s, 0, 0)),
            pl.BlockSpec((1, 1, HIDDEN_P), lambda s, i: (s, 0, 0)),
            pl.BlockSpec((1, HIDDEN_P, OUT_P), lambda s, i: (s, 0, 0)),
            pl.BlockSpec((1, 1, OUT_P), lambda s, i: (s, 0, 0)),
        ],
        out_specs=pl.BlockSpec((1, TB, OUT_P), lambda s, i: (s, i, 0)),
        compiler_params=pltpu.CompilerParams(
            dimension_semantics=dims,
            # ~5.9 MB bf16 weights (x2 double-buffered) + x/out tiles + spilled
            # hidden activations ≈ 18 MB at TB=256 — fits 32 MiB, which fits
            # even v7x's 64 MiB physical VMEM per TensorCore.
            vmem_limit_bytes=32 * 1024 * 1024,
        ),
        cost_estimate=pl.CostEstimate(flops=flops, transcendentals=0,
                                      bytes_accessed=bytes_accessed),
    )(x, w1, b1, w2, b2, w3, b3)
    return out[:, :B, :]


# --------------------------- Parameter handling ----------------------------- #

def _init_bayesian_linear(key, in_f, out_f):
    k1, k2, k3, k4 = jax.random.split(key, 4)
    return {
        "weight_mu": jax.random.uniform(k1, (out_f, in_f), jnp.float32, -0.2, 0.2),
        "weight_rho": jax.random.uniform(k2, (out_f, in_f), jnp.float32, -5.0, -4.0),
        "bias_mu": jax.random.uniform(k3, (out_f,), jnp.float32, -0.2, 0.2),
        "bias_rho": jax.random.uniform(k4, (out_f,), jnp.float32, -5.0, -4.0),
    }


def init_params(key):
    k1, k2, k3 = jax.random.split(key, 3)
    return [
        _init_bayesian_linear(k1, IN_FEATURES, HIDDEN),
        _init_bayesian_linear(k2, HIDDEN, HIDDEN),
        _init_bayesian_linear(k3, HIDDEN, CLASSES),
    ]


def pack_mean_weights(params):
    """One-time eval-path prep: transpose to (in,out), pad, bf16-cast, add S=1."""
    flat = []
    for p, (in_pad, out_pad) in zip(params, _LAYER_PADS):
        out_f, in_f = p["weight_mu"].shape
        w = jnp.zeros((in_pad, out_pad), jnp.bfloat16)
        w = w.at[:in_f, :out_f].set(p["weight_mu"].T.astype(jnp.bfloat16))
        b = jnp.zeros((1, out_pad), jnp.float32).at[0, :out_f].set(p["bias_mu"])
        flat.extend([w[None], b[None]])            # (1, K, N), (1, 1, N)
    return tuple(flat)


def pack_posterior(params):
    """One-time sample-path prep: mu/rho pre-transposed+padded into the kernel's
    (in_pad, out_pad) f32 layout.  Padded rho is -100 so softplus(rho) ~ 0 and
    sampled padding stays (numerically) zero."""
    packed = []
    for p, (in_pad, out_pad) in zip(params, _LAYER_PADS):
        out_f, in_f = p["weight_mu"].shape
        w_mu = jnp.zeros((in_pad, out_pad), jnp.float32)
        w_mu = w_mu.at[:in_f, :out_f].set(p["weight_mu"].T)
        w_rho = jnp.full((in_pad, out_pad), -100.0, jnp.float32)
        w_rho = w_rho.at[:in_f, :out_f].set(p["weight_rho"].T)
        b_mu = jnp.zeros((out_pad,), jnp.float32).at[:out_f].set(p["bias_mu"])
        b_rho = jnp.full((out_pad,), -100.0, jnp.float32).at[:out_f].set(p["bias_rho"])
        packed.append({"w_mu": w_mu, "w_rho": w_rho, "b_mu": b_mu, "b_rho": b_rho})
    return packed


def _sample_gaussian(key, mu, rho, prune=None):
    sigma = jax.nn.softplus(rho)                   # log1p(exp(rho))
    eps = jax.random.normal(key, mu.shape, dtype=mu.dtype)
    sample = mu + sigma * eps
    if prune is not None:
        snr = jnp.abs(mu) / sigma
        sample = sample * (snr >= prune).astype(sample.dtype)
    return sample


def sample_packed_weights(key, posterior, num_samples=1, prune=None):
    """Draw num_samples reparameterized weight sets already in kernel layout:
    stacked (S, in_pad, out_pad) bf16 weights / (S, 1, out_pad) f32 biases.
    Purely elementwise per sample (no transposes, no scatters)."""
    def one(k):
        flat = []
        for layer in posterior:
            k, kw, kb = jax.random.split(k, 3)
            w = _sample_gaussian(kw, layer["w_mu"], layer["w_rho"], prune)
            b = _sample_gaussian(kb, layer["b_mu"], layer["b_rho"], prune)
            # TODO(synk): bf16 storage quantizes the sigma*eps perturbation
            # (~1% of mu); keep f32 weights here if posterior fidelity matters.
            flat.extend([w.astype(jnp.bfloat16), b.reshape(1, -1)])
        return tuple(flat)
    return jax.vmap(one)(jax.random.split(key, num_samples))


# ------------------------------ Forward pass -------------------------------- #

def bayesian_network_forward(x, params=None, packed_mu=None, packed_posterior=None,
                             sample=False, key=None, prune=None, num_samples=1,
                             tb=256):
    """Equivalent of BayesianNetwork.forward.

    sample=False: mean (mu) weights.  Pass packed_mu (pack_mean_weights) so the
      transpose/pad/cast happens once.  Returns (B, 10).
    sample=True: reparameterized weights.  Pass packed_posterior
      (pack_posterior).  num_samples > 1 runs all Monte-Carlo samples
      (sample_elbo's loop) through ONE pipelined pallas_call; returns (S, B, 10)
      (or (B, 10) for num_samples=1).
    """
    B = x.shape[0]
    h = x.reshape(B, IN_FEATURES).astype(jnp.float32)
    if sample:
        if packed_posterior is None:
            packed_posterior = pack_posterior(params)
        packed = sample_packed_weights(key, packed_posterior, num_samples, prune)
    else:
        packed = packed_mu if packed_mu is not None else pack_mean_weights(params)
    out = fused_mlp_pallas(h, *packed, tb=tb)[..., :CLASSES]   # (S, B, 10)
    if (not sample) or num_samples == 1:
        out = out[0]
    return out


def _reference_forward(x, params):
    B = x.shape[0]
    h = x.reshape(B, IN_FEATURES).astype(jnp.float32)
    for li, p in enumerate(params):
        h = h @ p["weight_mu"].T + p["bias_mu"]
        if li < 2:
            h = jnp.maximum(h, 0.0)
    return h


def _reference_forward_packed(x, packed):
    """Plain-JAX f32 forward using the SAME (bf16-stored) sampled weights."""
    w1, b1, w2, b2, w3, b3 = packed
    B = x.shape[0]
    h = x.reshape(B, IN_FEATURES).astype(jnp.float32)
    h = jnp.pad(h, ((0, 0), (0, IN_P - IN_FEATURES)))

    def one(w1, b1, w2, b2, w3, b3):
        h1 = jnp.maximum(h @ w1.astype(jnp.float32) + b1, 0.0)
        h2 = jnp.maximum(h1 @ w2.astype(jnp.float32) + b2, 0.0)
        return h2 @ w3.astype(jnp.float32) + b3

    return jax.vmap(one)(w1, b1, w2, b2, w3, b3)[..., :CLASSES]


# ---------------------------------- Main ------------------------------------ #

if __name__ == "__main__":
    root = jax.random.PRNGKey(0)
    k_param, k_data = jax.random.split(root)

    params = init_params(k_param)

    # One-time weight prep (transpose to (in,out), pad to lane multiples, cast).
    packed_mu = jax.block_until_ready(pack_mean_weights(params))
    packed_post = jax.block_until_ready(pack_posterior(params))

    # Small MNIST-shaped batch (NCHW, as in PyTorch).
    batch = 8
    x = jax.random.normal(k_data, (batch, 1, 28, 28), dtype=jnp.float32)

    # Deterministic (eval / mu-weights) forward through the fused Pallas kernel.
    out = jax.block_until_ready(
        bayesian_network_forward(x, packed_mu=packed_mu, sample=False))
    assert out.shape == (batch, CLASSES), out.shape

    # Correctness vs. plain-JAX f32 reference (kernel uses bf16 weights and
    # activation casts with f32 MXU accumulation -> ~1% logit error allowed).
    ref = jax.block_until_ready(_reference_forward(x, params))
    np.testing.assert_allclose(np.asarray(out), np.asarray(ref),
                               rtol=5e-2, atol=5e-1)

    # Stochastic path: 2 Monte-Carlo samples (as in sample_elbo, SAMPLES=2) run
    # through ONE pipelined pallas_call; compare against a plain-JAX forward
    # built from the identical sampled weights.
    S = 2
    k_sample = jax.random.PRNGKey(42)
    out_s = jax.block_until_ready(
        bayesian_network_forward(x, packed_posterior=packed_post, sample=True,
                                 key=k_sample, num_samples=S))
    assert out_s.shape == (S, batch, CLASSES), out_s.shape

    packed_s = sample_packed_weights(k_sample, packed_post, num_samples=S)
    ref_s = jax.block_until_ready(_reference_forward_packed(x, packed_s))
    np.testing.assert_allclose(np.asarray(out_s), np.asarray(ref_s),
                               rtol=5e-2, atol=5e-1)

    print("KERNEL_OK")
</pallas_src>

<mosaic_0001>
module attributes {stable_mosaic.version = 11 : i64} {
  func.func @_fused_mlp_kernel(%arg0: i32, %arg1: i32, %arg2: memref<8x896xf32, #tpu.memory_space<vmem>>, %arg3: memref<1x896x1280xbf16, #tpu.memory_space<vmem>>, %arg4: memref<1x1x1280xf32, #tpu.memory_space<vmem>>, %arg5: memref<1x1280x1280xbf16, #tpu.memory_space<vmem>>, %arg6: memref<1x1x1280xf32, #tpu.memory_space<vmem>>, %arg7: memref<1x1280x128xbf16, #tpu.memory_space<vmem>>, %arg8: memref<1x1x128xf32, #tpu.memory_space<vmem>>, %arg9: memref<1x8x128xf32, #tpu.memory_space<vmem>>) attributes {dimension_semantics = [#tpu.dimension_semantics<arbitrary>, #tpu.dimension_semantics<arbitrary>], iteration_bounds = array<i64: 1, 1>, scalar_prefetch = 0 : i64, scratch_operands = 0 : i64, tpu.core_type = #tpu.core_type<tc>, window_params = [{transform_indices = @transform_0, window_bounds = array<i64: 8, 896>}, {transform_indices = @transform_1, window_bounds = array<i64: 1, 896, 1280>}, {transform_indices = @transform_2, window_bounds = array<i64: 1, 1, 1280>}, {transform_indices = @transform_3, window_bounds = array<i64: 1, 1280, 1280>}, {transform_indices = @transform_4, window_bounds = array<i64: 1, 1, 1280>}, {transform_indices = @transform_5, window_bounds = array<i64: 1, 1280, 128>}, {transform_indices = @transform_6, window_bounds = array<i64: 1, 1, 128>}, {transform_indices = @transform_7, window_bounds = array<i64: 1, 8, 128>}]} {
    %c0 = arith.constant 0 : index
    %c0_0 = arith.constant 0 : index
    %0 = vector.load %arg2[%c0, %c0_0] : memref<8x896xf32, #tpu.memory_space<vmem>>, vector<8x896xf32>
    %1 = arith.truncf %0 : vector<8x896xf32> to vector<8x896xbf16>
    %c0_1 = arith.constant 0 : index
    %c0_2 = arith.constant 0 : index
    %c0_3 = arith.constant 0 : index
    %2 = vector.load %arg3[%c0_1, %c0_2, %c0_3] : memref<1x896x1280xbf16, #tpu.memory_space<vmem>>, vector<1x896x1280xbf16>
    %3 = vector.shape_cast %2 : vector<1x896x1280xbf16> to vector<896x1280xbf16>
    %cst = arith.constant dense<0.000000e+00> : vector<8x1280xf32>
    %4 = tpu.matmul %1, %3, %cst {dimension_numbers = #tpu.dot_dimension_numbers<[1], [0], [0], [1], [0, 0, 1, 1], [], []>} : vector<8x896xbf16>, vector<896x1280xbf16>, vector<8x1280xf32> -> vector<8x1280xf32>
    %c0_4 = arith.constant 0 : index
    %c0_5 = arith.constant 0 : index
    %c0_6 = arith.constant 0 : index
    %5 = vector.load %arg4[%c0_4, %c0_5, %c0_6] : memref<1x1x1280xf32, #tpu.memory_space<vmem>>, vector<1x1x1280xf32>
    %6 = vector.shape_cast %5 : vector<1x1x1280xf32> to vector<1x1280xf32>
    %7 = vector.broadcast %6 : vector<1x1280xf32> to vector<8x1280xf32>
    %8 = arith.addf %4, %7 : vector<8x1280xf32>
    %cst_7 = arith.constant 0.000000e+00 : f32
    %9 = vector.broadcast %cst_7 : f32 to vector<8x1280xf32>
    %10 = arith.maximumf %8, %9 : vector<8x1280xf32>
    %11 = arith.truncf %10 : vector<8x1280xf32> to vector<8x1280xbf16>
    %c0_8 = arith.constant 0 : index
    %c0_9 = arith.constant 0 : index
    %c0_10 = arith.constant 0 : index
    %12 = vector.load %arg5[%c0_8, %c0_9, %c0_10] : memref<1x1280x1280xbf16, #tpu.memory_space<vmem>>, vector<1x1280x1280xbf16>
    %13 = vector.shape_cast %12 : vector<1x1280x1280xbf16> to vector<1280x1280xbf16>
    %cst_11 = arith.constant dense<0.000000e+00> : vector<8x1280xf32>
    %14 = tpu.matmul %11, %13, %cst_11 {dimension_numbers = #tpu.dot_dimension_numbers<[1], [0], [0], [1], [0, 0, 1, 1], [], []>} : vector<8x1280xbf16>, vector<1280x1280xbf16>, vector<8x1280xf32> -> vector<8x1280xf32>
    %c0_12 = arith.constant 0 : index
    %c0_13 = arith.constant 0 : index
    %c0_14 = arith.constant 0 : index
    %15 = vector.load %arg6[%c0_12, %c0_13, %c0_14] : memref<1x1x1280xf32, #tpu.memory_space<vmem>>, vector<1x1x1280xf32>
    %16 = vector.shape_cast %15 : vector<1x1x1280xf32> to vector<1x1280xf32>
    %17 = vector.broadcast %16 : vector<1x1280xf32> to vector<8x1280xf32>
    %18 = arith.addf %14, %17 : vector<8x1280xf32>
    %cst_15 = arith.constant 0.000000e+00 : f32
    %19 = vector.broadcast %cst_15 : f32 to vector<8x1280xf32>
    %20 = arith.maximumf %18, %19 : vector<8x1280xf32>
    %21 = arith.truncf %20 : vector<8x1280xf32> to vector<8x1280xbf16>
    %c0_16 = arith.constant 0 : index
    %c0_17 = arith.constant 0 : index
    %c0_18 = arith.constant 0 : index
    %22 = vector.load %arg7[%c0_16, %c0_17, %c0_18] : memref<1x1280x128xbf16, #tpu.memory_space<vmem>>, vector<1x1280x128xbf16>
    %23 = vector.shape_cast %22 : vector<1x1280x128xbf16> to vector<1280x128xbf16>
    %cst_19 = arith.constant dense<0.000000e+00> : vector<8x128xf32>
    %24 = tpu.matmul %21, %23, %cst_19 {dimension_numbers = #tpu.dot_dimension_numbers<[1], [0], [0], [1], [0, 0, 1, 1], [], []>} : vector<8x1280xbf16>, vector<1280x128xbf16>, vector<8x128xf32> -> vector<8x128xf32>
    %c0_20 = arith.constant 0 : index
    %c0_21 = arith.constant 0 : index
    %c0_22 = arith.constant 0 : index
    %25 = vector.load %arg8[%c0_20, %c0_21, %c0_22] : memref<1x1x128xf32, #tpu.memory_space<vmem>>, vector<1x1x128xf32>
    %26 = vector.shape_cast %25 : vector<1x1x128xf32> to vector<1x128xf32>
    %27 = vector.broadcast %26 : vector<1x128xf32> to vector<8x128xf32>
    %28 = arith.addf %24, %27 : vector<8x128xf32>
    %c0_23 = arith.constant 0 : index
    %c0_24 = arith.constant 0 : index
    %c0_25 = arith.constant 0 : index
    %29 = vector.load %arg9[%c0_23, %c0_24, %c0_25] : memref<1x8x128xf32, #tpu.memory_space<vmem>>, vector<1x8x128xf32>
    %30 = vector.shape_cast %29 : vector<1x8x128xf32> to vector<8x128xf32>
    %31 = vector.shape_cast %28 : vector<8x128xf32> to vector<1x8x128xf32>
    tpu.vector_store %arg9[%c0_23, %c0_24, %c0_25], %31 {strides = array<i32>} : memref<1x8x128xf32, #tpu.memory_space<vmem>>, vector<1x8x128xf32>,
    return
  }
  func.func @transform_0(%arg0: i32, %arg1: i32) -> (i32, i32) {
    %c0_i32 = arith.constant 0 : i32
    %c0_i32_0 = arith.constant 0 : i32
    return %arg1, %c0_i32 : i32, i32
  }
  func.func @transform_1(%arg0: i32, %arg1: i32) -> (i32, i32, i32) {
    %c0_i32 = arith.constant 0 : i32
    %c0_i32_0 = arith.constant 0 : i32
    %c0_i32_1 = arith.constant 0 : i32
    return %arg0, %c0_i32, %c0_i32_0 : i32, i32, i32
  }
  func.func @transform_2(%arg0: i32, %arg1: i32) -> (i32, i32, i32) {
    %c0_i32 = arith.constant 0 : i32
    %c0_i32_0 = arith.constant 0 : i32
    %c0_i32_1 = arith.constant 0 : i32
    return %arg0, %c0_i32, %c0_i32_0 : i32, i32, i32
  }
  func.func @transform_3(%arg0: i32, %arg1: i32) -> (i32, i32, i32) {
    %c0_i32 = arith.constant 0 : i32
    %c0_i32_0 = arith.constant 0 : i32
    %c0_i32_1 = arith.constant 0 : i32
    return %arg0, %c0_i32, %c0_i32_0 : i32, i32, i32
  }
  func.func @transform_4(%arg0: i32, %arg1: i32) -> (i32, i32, i32) {
    %c0_i32 = arith.constant 0 : i32
    %c0_i32_0 = arith.constant 0 : i32
    %c0_i32_1 = arith.constant 0 : i32
    return %arg0, %c0_i32, %c0_i32_0 : i32, i32, i32
  }
  func.func @transform_5(%arg0: i32, %arg1: i32) -> (i32, i32, i32) {
    %c0_i32 = arith.constant 0 : i32
    %c0_i32_0 = arith.constant 0 : i32
    %c0_i32_1 = arith.constant 0 : i32
    return %arg0, %c0_i32, %c0_i32_0 : i32, i32, i32
  }
  func.func @transform_6(%arg0: i32, %arg1: i32) -> (i32, i32, i32) {
    %c0_i32 = arith.constant 0 : i32
    %c0_i32_0 = arith.constant 0 : i32
    %c0_i32_1 = arith.constant 0 : i32
    return %arg0, %c0_i32, %c0_i32_0 : i32, i32, i32
  }
  func.func @transform_7(%arg0: i32, %arg1: i32) -> (i32, i32, i32) {
    %c0_i32 = arith.constant 0 : i32
    %c0_i32_0 = arith.constant 0 : i32
    return %arg0, %arg1, %c0_i32 : i32, i32, i32
  }
}

</mosaic_0001>

<bundles_post_ra>
// kernel: tpu_custom_call.1
= control target key start
LH: loop header
LB: loop body
LE: loop exit
PB: predicated region body
PF: predicated region fallthrough
CT: control target
= control target key end

     0   :  { %12 = vsyncpa [#allocation3], 0  ;;  %s15436_s0 = inlined_call_operand.hbm [shape: f32[8,896], index: 0, kind: input, shape index: {}]   ;;  %s15437_s1 = inlined_call_operand.hbm [shape: bf16[1,896,1280], index: 1, kind: input, shape index: {}]   ;;  %s15438_s2 = inlined_call_operand.hbm [shape: f32[1,1,1280], index: 2, kind: input, shape index: {}]   ;;  %s15439_s3 = inlined_call_operand.hbm [shape: bf16[1,1280,1280], index: 3, kind: input, shape index: {}]   ;;  %s15440_s4 = inlined_call_operand.hbm [shape: f32[1,1,1280], index: 4, kind: input, shape index: {}]   ;;  %s15441_s5 = inlined_call_operand.hbm [shape: bf16[1,1280,128], index: 5, kind: input, shape index: {}]   ;;  %s15442_s6 = inlined_call_operand.hbm [shape: f32[1,1,128], index: 6, kind: input, shape index: {}]   ;;  %s15443_s7 = inlined_call_operand.hbm [shape: f32[1,8,128], index: 7, kind: output, shape index: {}]  }
   0x1   :  { %13 = vsyncpa [#allocation6], 0 }
   0x2   :  { %14 = vsyncpa [#allocation9], 0 }
   0x3   :  { %15 = vsyncpa [#allocation12], 0 }
   0x4   :  { %16 = vsyncpa [#allocation4], 0  ;;  %s15005_s24 = smov [#allocation5]  }
   0x5   :  { %s32_s25 = sshll.u32 %s15005_s24, 4  ;;  %s33_s25 = int_to_ptr.vmem [resolvable:$true] %s32_s25 }
   0x6   :  { %s14843_s26 = scalar_lea.vmem %s33_s25, 71680  ;;  %p14848_p1 = scmp.lt.s32.totalorder %s33_s25, %s33_s25 }
   0x7   :  { %p14844_p0 = scmp.ne.s32.totalorder %s33_s25, %s14843_s26  ;;  %p14849_p2 = scmp.lt.s32.totalorder %s14843_s26, %s14843_s26 }
   0x9   :  { %p14850_p3 = por %p14849_p2, %p14848_p1 }
   0xb   :  { %p14851_p4 = pnand %p14850_p3, %p14844_p0 }
   0xd   :  { %14854 = shalt.err (!%p14851_p4)
}
   0xe   :  { %s15006_s27 = smov 640   ;;  %s15007_s28 = smov 40  }
   0xf   :  { %38 = dma.hbm_to_vmem [thread:$0]  %s15437_s1, 71680, %s33_s25, [#allocation6], %s15006_s27, %s15006_s27, %s15007_s28  }
  0x10   :  { %s15008_s8 = smov [#allocation8]   ;;  %s15009_s10 = smov [#allocation11]  }
  0x11   :  { %s54_s9 = sshll.u32 %s15008_s8, 4  ;;  %s76_s11 = sshll.u32 %s15009_s10, 4  ;;  %s55_s9 = int_to_ptr.vmem [resolvable:$true] %s54_s9  ;;  %s77_s11 = int_to_ptr.vmem [resolvable:$true] %s76_s11 }
  0x12   :  { %s14863_s12 = scalar_lea.vmem %s55_s9, 102400  ;;  %p14868_p6 = scmp.lt.s32.totalorder %s55_s9, %s55_s9 }
  0x13   :  { %p14864_p5 = scmp.ne.s32.totalorder %s55_s9, %s14863_s12  ;;  %p14869_p7 = scmp.lt.s32.totalorder %s14863_s12, %s14863_s12 }
  0x15   :  { %p14870_p8 = por %p14869_p7, %p14868_p6 }
  0x17   :  { %p14871_p9 = pnand %p14870_p8, %p14864_p5 }
  0x19   :  { %14874 = shalt.err (!%p14871_p9)
}
  0x1a   :  { %60 = dma.hbm_to_vmem [thread:$0]  %s15439_s3, 102400, %s55_s9, [#allocation9], %s15006_s27, %s15006_s27, %s15007_s28  }
  0x1b   :  { %s14883_s15 = scalar_lea.vmem %s77_s11, 10240  ;;  %p14888_p11 = scmp.lt.s32.totalorder %s77_s11, %s77_s11 }
  0x1c   :  { %p14884_p10 = scmp.ne.s32.totalorder %s77_s11, %s14883_s15  ;;  %p14889_p12 = scmp.lt.s32.totalorder %s14883_s15, %s14883_s15 }
  0x1e   :  { %p14890_p13 = por %p14889_p12, %p14888_p11 }
  0x20   :  { %p14891_p0 = pnand %p14890_p13, %p14884_p10 }
  0x22   :  { %14894 = shalt.err (!%p14891_p0)
}
  0x23   :  { %s15010_s1 = smov 64   ;;  %s15011_s16 = smov 4  }
  0x24   :  { %82 = dma.hbm_to_vmem [thread:$0]  %s15441_s5, 10240, %s77_s11, [#allocation12], %s15010_s1, %s15010_s1, %s15011_s16  }
  0x25   :  { %s15012_s19 = smov [#allocation2]   ;;  %s15013_s21 = smov [#allocation7]  }
  0x26   :  { %s23_s20 = sshll.u32 %s15012_s19, 4  ;;  %s45_s22 = sshll.u32 %s15013_s21, 4  ;;  %s24_s20 = int_to_ptr.vmem [resolvable:$true] %s23_s20  ;;  %s46_s22 = int_to_ptr.vmem [resolvable:$true] %s45_s22 }
  0x27   :  { %s14903_s3 = scalar_lea.vmem %s24_s20, 896  ;;  %p14908_p2 = scmp.lt.s32.totalorder %s24_s20, %s24_s20 }
  0x28   :  { %p14904_p1 = scmp.ne.s32.totalorder %s24_s20, %s14903_s3  ;;  %p14909_p3 = scmp.lt.s32.totalorder %s14903_s3, %s14903_s3 }
  0x2a   :  { %p14910_p4 = por %p14909_p3, %p14908_p2 }
  0x2c   :  { %p14911_p5 = pnand %p14910_p4, %p14904_p1 }
  0x2e   :  { %14914 = shalt.err (!%p14911_p5)
}
  0x2f   :  { %26 = dma.hbm_to_vmem [thread:$0]  %s15436_s0, 896, %s24_s20, [#allocation3]  }
  0x30   :  { %s14923_s25 = scalar_lea.vmem %s46_s22, 160  ;;  %p14928_p7 = scmp.lt.s32.totalorder %s46_s22, %s46_s22 }
  0x31   :  { %p14924_p6 = scmp.ne.s32.totalorder %s46_s22, %s14923_s25  ;;  %p14929_p8 = scmp.lt.s32.totalorder %s14923_s25, %s14923_s25 }
  0x33   :  { %p14930_p9 = por %p14929_p8, %p14928_p7 }
  0x35   :  { %p14931_p10 = pnand %p14930_p9, %p14924_p6 }
  0x37   :  { %14934 = shalt.err (!%p14931_p10)
}
  0x38   :  { %48 = dma.hbm_to_vmem [thread:$0]  %s15438_s2, 160, %s46_s22, [#allocation6]  }
  0x39   :  { %s15014_s27 = smov [#allocation10]   ;;  %s15015_s29 = smov [#allocation13]  }
  0x3a   :  { %s67_s28 = sshll.u32 %s15014_s27, 4  ;;  %s89_s30 = sshll.u32 %s15015_s29, 4  ;;  %s68_s28 = int_to_ptr.vmem [resolvable:$true] %s67_s28  ;;  %s90_s30 = int_to_ptr.vmem [resolvable:$true] %s89_s30 }
  0x3b   :  { %s14943_s8 = scalar_lea.vmem %s68_s28, 160  ;;  %p14948_p12 = scmp.lt.s32.totalorder %s68_s28, %s68_s28 }
  0x3c   :  { %p14944_p11 = scmp.ne.s32.totalorder %s68_s28, %s14943_s8  ;;  %p14949_p13 = scmp.lt.s32.totalorder %s14943_s8, %s14943_s8 }
  0x3e   :  { %p14950_p0 = por %p14949_p13, %p14948_p12 }
  0x40   :  { %p14951_p1 = pnand %p14950_p0, %p14944_p11 }
  0x42   :  { %14954 = shalt.err (!%p14951_p1)
}
  0x43   :  { %70 = dma.hbm_to_vmem [thread:$0]  %s15440_s4, 160, %s68_s28, [#allocation9]  }
  0x44   :  { %s14963_s10 = scalar_lea.vmem %s90_s30, 16  ;;  %s14967_s2 = scalar_lea.vmem %s90_s30, 32 }
  0x45   :  { %p14964_p2 = scmp.ne.s32.totalorder %s90_s30, %s14963_s10  ;;  %p14968_p3 = scmp.lt.s32.totalorder %s90_s30, %s90_s30 }
  0x46   :  { %p14969_p4 = scmp.lt.s32.totalorder %s14967_s2, %s14963_s10 }
  0x48   :  { %p14970_p5 = por %p14969_p4, %p14968_p3 }
  0x4a   :  { %p14971_p6 = pnand %p14970_p5, %p14964_p2 }
  0x4c   :  { %14974 = shalt.err (!%p14971_p6)
}
  0x4d   :  { %92 = dma.hbm_to_vmem [thread:$0]  %s15442_s6, 16, %s90_s30, [#allocation12]  }
  0x4e   :  { %14995 = dma.done.wait [#allocation3], 896  }
  0x4f   :  { %14996 = vsyncadd [#allocation3], 4294966400 }
  0x50   :  { %14997 = dma.done.wait [#allocation6], 71840  }
  0x51   :  { %14998 = vsyncadd [#allocation6], 4294895456 }
  0x52   :  { %14999 = dma.done.wait [#allocation9], 102560  }
  0x53   :  { %15000 = vsyncadd [#allocation9], 4294864736 }
  0x54   :  { %15001 = dma.done.wait [#allocation12], 10256  }
  0x55   :  { %15002 = vsyncadd [#allocation12], 4294957040  ;;  %v12712_v0 = vld [vmem:[#allocation5 + $0x234] ss:$40 sps:$4 sm:$0xff]   ;;  %v12716_v2 = vld [vmem:[#allocation5 + $0x230] ss:$40 sps:$4 sm:$0xff]  }
  0x56   :  { %v12714_v1 = vld [vmem:[#allocation5 + $0x734] ss:$40 sps:$4 sm:$0xff]   ;;  %3543 = vmatprep.subr.bf16.mxu0 %v12712_v0  ;;  %v12717_v3 = vld [vmem:[#allocation5 + $0x730] ss:$40 sps:$4 sm:$0xff]   ;;  %v12718_v4 = vld [vmem:[#allocation5 + $0x1e4] ss:$40 sps:$4 sm:$0xff]  }
  0x57   :  { %3584 = vmatprep.subr.bf16.mxu1 %v12714_v1  ;;  %3544 = vmatpush1.bf16.msra.mxu0 %v12716_v2  ;;  %v12720_v5 = vld [vmem:[#allocation5 + $0x6e4] ss:$40 sps:$4 sm:$0xff]   ;;  %v12722_v6 = vld [vmem:[#allocation5 + $0x1e0] ss:$40 sps:$4 sm:$0xff]   ;;  %v12724_v8 = vld [vmem:[#allocation5 + $0x194] ss:$40 sps:$4 sm:$0xff]  }
  0x58   :  { %3585 = vmatpush1.bf16.msra.mxu1 %v12717_v3  ;;  %3545 = vmatprep.subr.bf16.mxu0 %v12718_v4  ;;  %v12723_v7 = vld [vmem:[#allocation5 + $0x6e0] ss:$40 sps:$4 sm:$0xff]   ;;  %v12726_v9 = vld [vmem:[#allocation5 + $0x694] ss:$40 sps:$4 sm:$0xff]   ;;  %v12728_v10 = vld [vmem:[#allocation5 + $0x190] ss:$40 sps:$4 sm:$0xff]  }
  0x59   :  { %3586 = vmatprep.subr.bf16.mxu1 %v12720_v5  ;;  %v12729_v11 = vld [vmem:[#allocation5 + $0x690] ss:$40 sps:$4 sm:$0xff]   ;;  %v12730_v12 = vld [vmem:[#allocation5 + $0x144] ss:$40 sps:$4 sm:$0xff]   ;;  %v12734_v14 = vld [vmem:[#allocation5 + $0x140] ss:$40 sps:$4 sm:$0xff]  }
  0x5a   :  { %v12732_v13 = vld [vmem:[#allocation5 + $0x644] ss:$40 sps:$4 sm:$0xff]   ;;  %v12735_v15 = vld [vmem:[#allocation5 + $0x640] ss:$40 sps:$4 sm:$0xff]   ;;  %v12736_v16 = vld [vmem:[#allocation5 + $0xf4] ss:$40 sps:$4 sm:$0xff]  }
  0x5b   :  { %3546 = vmatpush1.bf16.msra.mxu0 %v12722_v6  ;;  %v12738_v17 = vld [vmem:[#allocation5 + $0x5f4] ss:$40 sps:$4 sm:$0xff]   ;;  %v12740_v18 = vld [vmem:[#allocation5 + $0xf0] ss:$40 sps:$4 sm:$0xff]   ;;  %v12742_v20 = vld [vmem:[#allocation5 + $0xa4] ss:$40 sps:$4 sm:$0xff]  }
  0x5c   :  { %3587 = vmatpush1.bf16.msra.mxu1 %v12723_v7  ;;  %3547 = vmatprep.subr.bf16.mxu0 %v12724_v8  ;;  %v12741_v19 = vld [vmem:[#allocation5 + $0x5f0] ss:$40 sps:$4 sm:$0xff]   ;;  %v12744_v21 = vld [vmem:[#allocation5 + $0x5a4] ss:$40 sps:$4 sm:$0xff]   ;;  %v12746_v22 = vld [vmem:[#allocation5 + $0xa0] ss:$40 sps:$4 sm:$0xff]  }
  0x5d   :  { %3588 = vmatprep.subr.bf16.mxu1 %v12726_v9  ;;  %v12747_v23 = vld [vmem:[#allocation5 + $0x5a0] ss:$40 sps:$4 sm:$0xff]   ;;  %v12748_v24 = vld [vmem:[#allocation5 + $0x54] ss:$40 sps:$4 sm:$0xff]   ;;  %v12752_v26 = vld [vmem:[#allocation5 + $0x50] ss:$40 sps:$4 sm:$0xff]  }
  0x5e   :  { %v12750_v25 = vld [vmem:[#allocation5 + $0x554] ss:$40 sps:$4 sm:$0xff]   ;;  %v12753_v27 = vld [vmem:[#allocation5 + $0x550] ss:$40 sps:$4 sm:$0xff]   ;;  %v12754_v28 = vld [vmem:[#allocation5 + $0x4] ss:$40 sps:$4 sm:$0xff]  }
  0x5f   :  { %3548 = vmatpush1.bf16.msra.mxu0 %v12728_v10  ;;  %v12756_v29 = vld [vmem:[#allocation5 + $0x504] ss:$40 sps:$4 sm:$0xff]   ;;  %v12758_v30 = vld [vmem:[#allocation5] ss:$40 sps:$4 sm:$0xff]   ;;  %v12760_v32 = vld [vmem:[#allocation5 + $0x4b4] ss:$40 sps:$4 sm:$0xff]  }
  0x60   :  { %3589 = vmatpush1.bf16.msra.mxu1 %v12729_v11  ;;  %3549 = vmatprep.subr.bf16.mxu0 %v12730_v12  ;;  %v12759_v31 = vld [vmem:[#allocation5 + $0x500] ss:$40 sps:$4 sm:$0xff]   ;;  %v12762_v33 = vld [vmem:[#allocation5 + $0x9b4] ss:$40 sps:$4 sm:$0xff]   ;;  %v12764_v34 = vld [vmem:[#allocation5 + $0x4b0] ss:$40 sps:$4 sm:$0xff]  }
  0x61   :  { %3590 = vmatprep.subr.bf16.mxu1 %v12732_v13  ;;  %v12765_v35 = vld [vmem:[#allocation5 + $0x9b0] ss:$40 sps:$4 sm:$0xff]   ;;  %v12766_v36 = vld [vmem:[#allocation5 + $0x464] ss:$40 sps:$4 sm:$0xff]   ;;  %v12770_v38 = vld [vmem:[#allocation5 + $0x460] ss:$40 sps:$4 sm:$0xff]  }
  0x62   :  { %v12768_v37 = vld [vmem:[#allocation5 + $0x964] ss:$40 sps:$4 sm:$0xff]   ;;  %v12771_v39 = vld [vmem:[#allocation5 + $0x960] ss:$40 sps:$4 sm:$0xff]   ;;  %v12772_v40 = vld [vmem:[#allocation5 + $0x414] ss:$40 sps:$4 sm:$0xff]  }
  0x63   :  { %3550 = vmatpush1.bf16.msra.mxu0 %v12734_v14  ;;  %v12774_v41 = vld [vmem:[#allocation5 + $0x914] ss:$40 sps:$4 sm:$0xff]   ;;  %v12776_v42 = vld [vmem:[#allocation5 + $0x410] ss:$40 sps:$4 sm:$0xff]   ;;  %v12778_v44 = vld [vmem:[#allocation5 + $0x3c4] ss:$40 sps:$4 sm:$0xff]  }
  0x64   :  { %3591 = vmatpush1.bf16.msra.mxu1 %v12735_v15  ;;  %3551 = vmatprep.subr.bf16.mxu0 %v12736_v16  ;;  %v12777_v43 = vld [vmem:[#allocation5 + $0x910] ss:$40 sps:$4 sm:$0xff]   ;;  %v12780_v45 = vld [vmem:[#allocation5 + $0x8c4] ss:$40 sps:$4 sm:$0xff]   ;;  %v12782_v47 = vld [vmem:[#allocation5 + $0x3c0] ss:$40 sps:$4 sm:$0xff]  }
  0x65   :  { %3592 = vmatprep.subr.bf16.mxu1 %v12738_v17  ;;  %v116_v46 = vld [vmem:[#allocation2 + $0x8] sm:$0xff]  ;;  %v118_v49 = vld [vmem:[#allocation2 + $0x18] sm:$0xff]  ;;  %v115_v4 = vld [vmem:[#allocation2] sm:$0xff]  ;;  %s15017_s4 = smov [#allocation14]  }
  0x66   :  { %v15079_v48 = vpack.c.bf16 %v116_v46, %v116_v46  ;;  %v12783_v50 = vld [vmem:[#allocation5 + $0x8c0] ss:$40 sps:$4 sm:$0xff]   ;;  %v12784_v51 = vld [vmem:[#allocation5 + $0x374] ss:$40 sps:$4 sm:$0xff]   ;;  %v15081_v52 = vpack.c.bf16 %v118_v49, %v118_v49  ;;  %v12788_v54 = vld [vmem:[#allocation5 + $0x370] ss:$40 sps:$4 sm:$0xff]   ;;  %v15085_v8 = vpack.c.bf16 %v115_v4, %v115_v4 }
  0x67   :  { %3552 = vmatpush1.bf16.msra.mxu0 %v12740_v18  ;;  %v12786_v53 = vld [vmem:[#allocation5 + $0x874] ss:$40 sps:$4 sm:$0xff]   ;;  %v12789_v55 = vld [vmem:[#allocation5 + $0x870] ss:$40 sps:$4 sm:$0xff]   ;;  %v12790_v56 = vld [vmem:[#allocation5 + $0x324] ss:$40 sps:$4 sm:$0xff]  }
  0x68   :  { %3593 = vmatpush1.bf16.msra.mxu1 %v12741_v19  ;;  %3553 = vmatprep.subr.bf16.mxu0 %v12742_v20  ;;  %v12792_v57 = vld [vmem:[#allocation5 + $0x824] ss:$40 sps:$4 sm:$0xff]   ;;  %v12794_v58 = vld [vmem:[#allocation5 + $0x320] ss:$40 sps:$4 sm:$0xff]   ;;  %v12796_v60 = vld [vmem:[#allocation5 + $0x2d4] ss:$40 sps:$4 sm:$0xff]  }
  0x69   :  { %3594 = vmatprep.subr.bf16.mxu1 %v12744_v21  ;;  %3575 = vmatprep.mubr.bf16.mxu0 %v15079_v48  ;;  %v12795_v59 = vld [vmem:[#allocation5 + $0x820] ss:$40 sps:$4 sm:$0xff]   ;;  %v12798_v61 = vld [vmem:[#allocation5 + $0x7d4] ss:$40 sps:$4 sm:$0xff]   ;;  %v12800_v62 = vld [vmem:[#allocation5 + $0x2d0] ss:$40 sps:$4 sm:$0xff]  }
  0x6a   :  { %3616 = vmatprep.mubr.bf16.mxu1 %v15081_v52  ;;  %v12801_v63 = vld [vmem:[#allocation5 + $0x7d0] ss:$40 sps:$4 sm:$0xff]   ;;  %v12802_v0 = vld [vmem:[#allocation5 + $0x284] ss:$40 sps:$4 sm:$0xff]   ;;  %v12806_v2 = vld [vmem:[#allocation5 + $0x280] ss:$40 sps:$4 sm:$0xff]  }
  0x6b   :  { %3554 = vmatpush1.bf16.msra.mxu0 %v12746_v22  ;;  %v12804_v1 = vld [vmem:[#allocation5 + $0x784] ss:$40 sps:$4 sm:$0xff]   ;;  %v12807_v3 = vld [vmem:[#allocation5 + $0x780] ss:$40 sps:$4 sm:$0xff]   ;;  %v12810_v5 = vld [vmem:[#allocation5 + $0xc34] ss:$40 sps:$4 sm:$0xff]  }
  0x6c   :  { %3595 = vmatpush1.bf16.msra.mxu1 %v12747_v23  ;;  %3555 = vmatprep.subr.bf16.mxu0 %v12748_v24  ;;  %v117_v6 = vld [vmem:[#allocation2 + $0x10] sm:$0xff]  ;;  %v12816_v12 = vld [vmem:[#allocation5 + $0xbe4] ss:$40 sps:$4 sm:$0xff]   ;;  %v12814_v14 = vld [vmem:[#allocation5 + $0xbe0] ss:$40 sps:$4 sm:$0xff]   ;;  %v15016_v18 = vmov 0  }
  0x6d   :  { %3596 = vmatprep.subr.bf16.mxu1 %v12750_v25  ;;  %v12813_v7 = vld [vmem:[#allocation5 + $0x1134] ss:$40 sps:$4 sm:$0xff]   ;;  %v12808_v9 = vld [vmem:[#allocation5 + $0xc30] ss:$40 sps:$4 sm:$0xff]   ;;  %v15087_v11 = vpack.c.bf16 %v117_v6, %v117_v6  ;;  %v12819_v13 = vld [vmem:[#allocation5 + $0x10e4] ss:$40 sps:$4 sm:$0xff]  }
  0x6e   :  { %v12811_v10 = vld [vmem:[#allocation5 + $0x1130] ss:$40 sps:$4 sm:$0xff]   ;;  %v12817_v15 = vld [vmem:[#allocation5 + $0x10e0] ss:$40 sps:$4 sm:$0xff]   ;;  %v12822_v16 = vld [vmem:[#allocation5 + $0xb94] ss:$40 sps:$4 sm:$0xff]  }
  0x6f   :  { %3556 = vmatpush1.bf16.msra.mxu0 %v12752_v26  ;;  %v12825_v17 = vld [vmem:[#allocation5 + $0x1094] ss:$40 sps:$4 sm:$0xff]   ;;  %v12820_v19 = vld [vmem:[#allocation5 + $0xb90] ss:$40 sps:$4 sm:$0xff]   ;;  %v12828_v21 = vld [vmem:[#allocation5 + $0xb44] ss:$40 sps:$4 sm:$0xff]  }
  0x70   :  { %3597 = vmatpush1.bf16.msra.mxu1 %v12753_v27  ;;  %3557 = vmatprep.subr.bf16.mxu0 %v12754_v28  ;;  %v12823_v20 = vld [vmem:[#allocation5 + $0x1090] ss:$40 sps:$4 sm:$0xff]   ;;  %v12831_v22 = vld [vmem:[#allocation5 + $0x1044] ss:$40 sps:$4 sm:$0xff]   ;;  %v12826_v23 = vld [vmem:[#allocation5 + $0xb40] ss:$40 sps:$4 sm:$0xff]  }
  0x71   :  { %3598 = vmatprep.subr.bf16.mxu1 %v12756_v29  ;;  %v12829_v24 = vld [vmem:[#allocation5 + $0x1040] ss:$40 sps:$4 sm:$0xff]   ;;  %v12834_v25 = vld [vmem:[#allocation5 + $0xaf4] ss:$40 sps:$4 sm:$0xff]   ;;  %v12832_v27 = vld [vmem:[#allocation5 + $0xaf0] ss:$40 sps:$4 sm:$0xff]  }
  0x72   :  { %v12837_v26 = vld [vmem:[#allocation5 + $0xff4] ss:$40 sps:$4 sm:$0xff]   ;;  %v12835_v28 = vld [vmem:[#allocation5 + $0xff0] ss:$40 sps:$4 sm:$0xff]   ;;  %v12840_v29 = vld [vmem:[#allocation5 + $0xaa4] ss:$40 sps:$4 sm:$0xff]  }
  0x73   :  { %3558 = vmatpush1.bf16.msra.mxu0 %v12758_v30  ;;  %v12843_v30 = vld [vmem:[#allocation5 + $0xfa4] ss:$40 sps:$4 sm:$0xff]   ;;  %v12856_v46 = vld [vmem:[#allocation5 + $0xeb0] ss:$40 sps:$4 sm:$0xff]   ;;  %s11136_s6 = sshll.u32 %s15017_s4, 4  ;;  %s11137_s6 = int_to_ptr.vmem [resolvable:$true] %s11136_s6 }
  0x74   :  { %3599 = vmatpush1.bf16.msra.mxu1 %v12759_v31  ;;  %3559 = vmatprep.subr.bf16.mxu0 %v12760_v32  ;;  %v12838_v31 = vld [vmem:[#allocation5 + $0xaa0] ss:$40 sps:$4 sm:$0xff]   ;;  %v12891_v4 = vld [vmem:[#allocation5 + $0xac] ss:$40 sps:$4 sm:$0xff]   ;;  %s14975_s13 = scalar_lea.vmem %s11137_s6, 128  ;;  %p14980_p8 = scmp.lt.s32.totalorder %s11137_s6, %s11137_s6 }
  0x75   :  { %3600 = vmatprep.subr.bf16.mxu1 %v12762_v33  ;;  %v12841_v32 = vld [vmem:[#allocation5 + $0xfa0] ss:$40 sps:$4 sm:$0xff]   ;;  %v12846_v33 = vld [vmem:[#allocation5 + $0xa54] ss:$40 sps:$4 sm:$0xff]   ;;  %p14976_p7 = scmp.ne.s32.totalorder %s11137_s6, %s14975_s13  ;;  %p14981_p9 = scmp.lt.s32.totalorder %s14975_s13, %s14975_s13 }
  0x76   :  { %v12859_v49 = vld [vmem:[#allocation5 + $0x238] ss:$40 sps:$4 sm:$0xff]   ;;  %v12889_v6 = vld [vmem:[#allocation5 + $0xa8] ss:$40 sps:$4 sm:$0xff]  }
  0x77   :  { %3560 = vmatpush2.bf16.msra.mxu0 %v12764_v34  ;;  %v12849_v34 = vld [vmem:[#allocation5 + $0xf54] ss:$40 sps:$4 sm:$0xff]   ;;  %p14982_p10 = por %p14981_p9, %p14980_p8 }
  0x78   :  { %3601 = vmatpush2.bf16.msra.mxu1 %v12765_v35  ;;  %3561 = vmatprep.subr.bf16.mxu0 %v12766_v36  ;;  %v12844_v35 = vld [vmem:[#allocation5 + $0xa50] ss:$40 sps:$4 sm:$0xff]  }
  0x79   :  { %3602 = vmatprep.subr.bf16.mxu1 %v12768_v37  ;;  %v120_v36 = vld [vmem:[#allocation2 + $0x28] sm:$0xff]  ;;  %p14983_p11 = pnand %p14982_p10, %p14976_p7 }
  0x7a   :  { %v12847_v37 = vld [vmem:[#allocation5 + $0xf50] ss:$40 sps:$4 sm:$0xff]  }
  0x7b   :  { %3562 = vmatpush2.bf16.msra.mxu0 %v12770_v38  ;;  %v12852_v38 = vld [vmem:[#allocation5 + $0xa04] ss:$40 sps:$4 sm:$0xff]  }
  0x7c   :  { %3603 = vmatpush2.bf16.msra.mxu1 %v12771_v39  ;;  %3563 = vmatprep.subr.bf16.mxu0 %v12772_v40  ;;  %v15092_v39 = vpack.c.bf16 %v120_v36, %v120_v36  ;;  %v12855_v40 = vld [vmem:[#allocation5 + $0xf04] ss:$40 sps:$4 sm:$0xff]  }
  0x7d   :  { %3604 = vmatprep.subr.bf16.mxu1 %v12774_v41  ;;  %v12850_v41 = vld [vmem:[#allocation5 + $0xa00] ss:$40 sps:$4 sm:$0xff]   ;;  %v12930_v36 = vld [vmem:[#allocation5 + $0x37c] ss:$40 sps:$4 sm:$0xff]  }
  0x7f   :  { %3564 = vmatpush2.bf16.msra.mxu0 %v12776_v42  ;;  %v12853_v42 = vld [vmem:[#allocation5 + $0xf00] ss:$40 sps:$4 sm:$0xff]  }
  0x80   :  { %3605 = vmatpush2.bf16.msra.mxu1 %v12777_v43  ;;  %3565 = vmatprep.subr.bf16.mxu0 %v12778_v44  ;;  %v12858_v43 = vld [vmem:[#allocation5 + $0xeb4] ss:$40 sps:$4 sm:$0xff]  }
  0x81   :  { %3606 = vmatprep.subr.bf16.mxu1 %v12780_v45  ;;  %v121_v44 = vld [vmem:[#allocation2 + $0x30] sm:$0xff] }
  0x82   :  { %v12861_v45 = vld [vmem:[#allocation5 + $0x23c] ss:$40 sps:$4 sm:$0xff]  }
  0x83   :  { %3566 = vmatpush2.bf16.msra.mxu0 %v12782_v47  ;;  %v15095_v47 = vpack.c.bf16 %v121_v44, %v121_v44  ;;  %v12937_v44 = vld [vmem:[#allocation5 + $0x5a8] ss:$40 sps:$4 sm:$0xff]  }
  0x84   :  { %3607 = vmatpush2.bf16.msra.mxu1 %v12783_v50  ;;  %3567 = vmatprep.subr.bf16.mxu0 %v12784_v51  ;;  %v12864_v50 = vld [vmem:[#allocation5 + $0xe64] ss:$40 sps:$4 sm:$0xff]  }
  0x85   :  { %3608 = vmatprep.subr.bf16.mxu1 %v12786_v53  ;;  %v12867_v51 = vld [vmem:[#allocation5 + $0x1ec] ss:$40 sps:$4 sm:$0xff]   ;;  %v12862_v53 = vld [vmem:[#allocation5 + $0xe60] ss:$40 sps:$4 sm:$0xff]  }
  0x87   :  { %3568 = vmatpush2.bf16.msra.mxu0 %v12788_v54  ;;  %v12865_v54 = vld [vmem:[#allocation5 + $0x1e8] ss:$40 sps:$4 sm:$0xff]  }
  0x88   :  { %3609 = vmatpush2.bf16.msra.mxu1 %v12789_v55  ;;  %3569 = vmatprep.subr.bf16.mxu0 %v12790_v56  ;;  %v12870_v55 = vld [vmem:[#allocation5 + $0xe14] ss:$40 sps:$4 sm:$0xff]  }
  0x89   :  { %3610 = vmatprep.subr.bf16.mxu1 %v12792_v57  ;;  %v12873_v56 = vld [vmem:[#allocation5 + $0x19c] ss:$40 sps:$4 sm:$0xff]   ;;  %v12868_v57 = vld [vmem:[#allocation5 + $0xe10] ss:$40 sps:$4 sm:$0xff]  }
  0x8b   :  { %3570 = vmatpush2.bf16.msra.mxu0 %v12794_v58  ;;  %v12871_v58 = vld [vmem:[#allocation5 + $0x198] ss:$40 sps:$4 sm:$0xff]  }
  0x8c   :  { %3611 = vmatpush2.bf16.msra.mxu1 %v12795_v59  ;;  %3571 = vmatprep.subr.bf16.mxu0 %v12796_v60  ;;  %v12876_v59 = vld [vmem:[#allocation5 + $0xdc4] ss:$40 sps:$4 sm:$0xff]  }
  0x8d   :  { %3612 = vmatprep.subr.bf16.mxu1 %v12798_v61  ;;  %v12879_v60 = vld [vmem:[#allocation5 + $0x14c] ss:$40 sps:$4 sm:$0xff]   ;;  %v12874_v61 = vld [vmem:[#allocation5 + $0xdc0] ss:$40 sps:$4 sm:$0xff]  }
  0x8f   :  { %3572 = vmatpush2.bf16.msra.mxu0 %v12800_v62  ;;  %v12877_v62 = vld [vmem:[#allocation5 + $0x148] ss:$40 sps:$4 sm:$0xff]  }
  0x90   :  { %3613 = vmatpush2.bf16.msra.mxu1 %v12801_v63  ;;  %3573 = vmatprep.subr.bf16.mxu0 %v12802_v0  ;;  %v12882_v63 = vld [vmem:[#allocation5 + $0xd74] ss:$40 sps:$4 sm:$0xff]  }
  0x91   :  { %3614 = vmatprep.subr.bf16.mxu1 %v12804_v1  ;;  %v12885_v0 = vld [vmem:[#allocation5 + $0xfc] ss:$40 sps:$4 sm:$0xff]   ;;  %v12880_v1 = vld [vmem:[#allocation5 + $0xd70] ss:$40 sps:$4 sm:$0xff]  }
  0x93   :  { %3574 = vmatpush2.bf16.msra.mxu0 %v12806_v2  ;;  %v12883_v2 = vld [vmem:[#allocation5 + $0xf8] ss:$40 sps:$4 sm:$0xff]  }
  0x94   :  { %3615 = vmatpush2.bf16.msra.mxu1 %v12807_v3  ;;  %3625 = vmatprep.subr.bf16.mxu0 %v12810_v5  ;;  %v12888_v3 = vld [vmem:[#allocation5 + $0xd24] ss:$40 sps:$4 sm:$0xff]   ;;  %v12886_v5 = vld [vmem:[#allocation5 + $0xd20] ss:$40 sps:$4 sm:$0xff]  }
  0x95   :  { %3666 = vmatprep.subr.bf16.mxu1 %v12813_v7  ;;  %v12894_v7 = vld [vmem:[#allocation5 + $0xcd4] ss:$40 sps:$4 sm:$0xff]  }
  0x96   :  { %3576 = vmatmul.mubr.bf16.vlgmr.msra.gmra.mxu0 %v15085_v8 }
  0x97   :  { %3617 = vmatmul.mubr.bf16.vlgmr.msra.gmra.mxu1 %v15087_v11  ;;  %3626 = vmatpush1.bf16.msra.mxu0 %v12808_v9  ;;  %v12897_v9 = vld [vmem:[#allocation5 + $0x5c] ss:$40 sps:$4 sm:$0xff]  }
  0x98   :  { %3667 = vmatpush1.bf16.msra.mxu1 %v12811_v10  ;;  %3627 = vmatprep.subr.bf16.mxu0 %v12816_v12  ;;  %v12892_v10 = vld [vmem:[#allocation5 + $0xcd0] ss:$40 sps:$4 sm:$0xff]  }
  0x99   :  { %3668 = vmatprep.subr.bf16.mxu1 %v12819_v13  ;;  %3698 = vmatprep.mubr.bf16.mxu1 %v15016_v18  ;;  %v12895_v12 = vld [vmem:[#allocation5 + $0x58] ss:$40 sps:$4 sm:$0xff]   ;;  %v12900_v13 = vld [vmem:[#allocation5 + $0xc84] ss:$40 sps:$4 sm:$0xff]  }
  0x9a   :  { %3657 = vmatprep.mubr.bf16.mxu0 %v15092_v39 }
  0x9b   :  { %3628 = vmatpush1.bf16.msra.mxu0 %v12814_v14  ;;  %v12903_v14 = vld [vmem:[#allocation5 + $0xc] ss:$40 sps:$4 sm:$0xff]  }
  0x9c   :  { %3669 = vmatpush1.bf16.msra.mxu1 %v12817_v15  ;;  %3629 = vmatprep.subr.bf16.mxu0 %v12822_v16  ;;  %v12898_v15 = vld [vmem:[#allocation5 + $0xc80] ss:$40 sps:$4 sm:$0xff]  }
  0x9d   :  { %3670 = vmatprep.subr.bf16.mxu1 %v12825_v17  ;;  %v12901_v16 = vld [vmem:[#allocation5 + $0x8] ss:$40 sps:$4 sm:$0xff]  }
  0x9e   :  { %v119_v17 = vld [vmem:[#allocation2 + $0x20] sm:$0xff] }
  0x9f   :  { %3630 = vmatpush1.bf16.msra.mxu0 %v12820_v19  ;;  %v12906_v19 = vld [vmem:[#allocation5 + $0x4bc] ss:$40 sps:$4 sm:$0xff]  }
  0xa0   :  { %3671 = vmatpush1.bf16.msra.mxu1 %v12823_v20  ;;  %3631 = vmatprep.subr.bf16.mxu0 %v12828_v21  ;;  %v12909_v20 = vld [vmem:[#allocation5 + $0x73c] ss:$40 sps:$4 sm:$0xff]   ;;  %v15099_v21 = vpack.c.bf16 %v119_v17, %v119_v17  ;;  %v12985_v17 = vld [vmem:[#allocation5 + $0xaa8] ss:$40 sps:$4 sm:$0xff]  }
  0xa1   :  { %3672 = vmatprep.subr.bf16.mxu1 %v12831_v22  ;;  %v12904_v22 = vld [vmem:[#allocation5 + $0x4b8] ss:$40 sps:$4 sm:$0xff]  }
  0xa3   :  { %3632 = vmatpush1.bf16.msra.mxu0 %v12826_v23  ;;  %v12907_v23 = vld [vmem:[#allocation5 + $0x738] ss:$40 sps:$4 sm:$0xff]  }
  0xa4   :  { %3673 = vmatpush1.bf16.msra.mxu1 %v12829_v24  ;;  %3633 = vmatprep.subr.bf16.mxu0 %v12834_v25  ;;  %v12912_v24 = vld [vmem:[#allocation5 + $0x46c] ss:$40 sps:$4 sm:$0xff]  }
  0xa5   :  { %3674 = vmatprep.subr.bf16.mxu1 %v12837_v26  ;;  %v12915_v25 = vld [vmem:[#allocation5 + $0x6ec] ss:$40 sps:$4 sm:$0xff]   ;;  %v12910_v26 = vld [vmem:[#allocation5 + $0x468] ss:$40 sps:$4 sm:$0xff]  }
  0xa7   :  { %3634 = vmatpush1.bf16.msra.mxu0 %v12832_v27  ;;  %v12913_v27 = vld [vmem:[#allocation5 + $0x6e8] ss:$40 sps:$4 sm:$0xff]  }
  0xa8   :  { %3675 = vmatpush1.bf16.msra.mxu1 %v12835_v28  ;;  %3635 = vmatprep.subr.bf16.mxu0 %v12840_v29  ;;  %v12918_v28 = vld [vmem:[#allocation5 + $0x41c] ss:$40 sps:$4 sm:$0xff]  }
  0xa9   :  { %3676 = vmatprep.subr.bf16.mxu1 %v12843_v30  ;;  %v12921_v29 = vld [vmem:[#allocation5 + $0x69c] ss:$40 sps:$4 sm:$0xff]   ;;  %v12916_v30 = vld [vmem:[#allocation5 + $0x418] ss:$40 sps:$4 sm:$0xff]  }
  0xab   :  { %3636 = vmatpush1.bf16.msra.mxu0 %v12838_v31  ;;  %v12919_v31 = vld [vmem:[#allocation5 + $0x698] ss:$40 sps:$4 sm:$0xff]  }
  0xac   :  { %3677 = vmatpush1.bf16.msra.mxu1 %v12841_v32  ;;  %3637 = vmatprep.subr.bf16.mxu0 %v12846_v33  ;;  %v12924_v32 = vld [vmem:[#allocation5 + $0x3cc] ss:$40 sps:$4 sm:$0xff]  }
  0xad   :  { %3678 = vmatprep.subr.bf16.mxu1 %v12849_v34  ;;  %v12927_v33 = vld [vmem:[#allocation5 + $0x64c] ss:$40 sps:$4 sm:$0xff]   ;;  %v12922_v34 = vld [vmem:[#allocation5 + $0x3c8] ss:$40 sps:$4 sm:$0xff]  }
  0xaf   :  { %3638 = vmatpush1.bf16.msra.mxu0 %v12844_v35  ;;  %v12925_v35 = vld [vmem:[#allocation5 + $0x648] ss:$40 sps:$4 sm:$0xff]  }
  0xb0   :  { %3679 = vmatpush1.bf16.msra.mxu1 %v12847_v37  ;;  %3639 = vmatprep.subr.bf16.mxu0 %v12852_v38  ;;  %v12933_v37 = vld [vmem:[#allocation5 + $0x5fc] ss:$40 sps:$4 sm:$0xff]   ;;  %v12928_v38 = vld [vmem:[#allocation5 + $0x378] ss:$40 sps:$4 sm:$0xff]  }
  0xb1   :  { %3680 = vmatprep.subr.bf16.mxu1 %v12855_v40  ;;  %v12931_v40 = vld [vmem:[#allocation5 + $0x5f8] ss:$40 sps:$4 sm:$0xff]  }
  0xb3   :  { %3640 = vmatpush1.bf16.msra.mxu0 %v12850_v41  ;;  %v12936_v41 = vld [vmem:[#allocation5 + $0x32c] ss:$40 sps:$4 sm:$0xff]  }
  0xb4   :  { %3681 = vmatpush1.bf16.msra.mxu1 %v12853_v42  ;;  %3641 = vmatprep.subr.bf16.mxu0 %v12858_v43  ;;  %v12939_v42 = vld [vmem:[#allocation5 + $0x5ac] ss:$40 sps:$4 sm:$0xff]   ;;  %v12934_v43 = vld [vmem:[#allocation5 + $0x328] ss:$40 sps:$4 sm:$0xff]  }
  0xb5   :  { %3707 = vmatprep.subr.bf16.mxu1 %v12861_v45  ;;  %v12942_v45 = vld [vmem:[#allocation5 + $0x2dc] ss:$40 sps:$4 sm:$0xff]  }
  0xb7   :  { %3699 = vmatmul.mubr.bf16.vlgmr.msra.gmra.mxu1 %v15095_v47  ;;  %3642 = vmatpush2.bf16.msra.mxu0 %v12856_v46  ;;  %v12945_v46 = vld [vmem:[#allocation5 + $0x55c] ss:$40 sps:$4 sm:$0xff]  }
  0xb8   :  { %3708 = vmatpush1.bf16.msra.mxu1 %v12859_v49  ;;  %3643 = vmatprep.subr.bf16.mxu0 %v12864_v50  ;;  %v12940_v49 = vld [vmem:[#allocation5 + $0x2d8] ss:$40 sps:$4 sm:$0xff]  }
  0xb9   :  { %3709 = vmatprep.subr.bf16.mxu1 %v12867_v51  ;;  %3739 = vmatprep.mubr.bf16.mxu1 %v15079_v48  ;;  %v12943_v50 = vld [vmem:[#allocation5 + $0x558] ss:$40 sps:$4 sm:$0xff]   ;;  %v12948_v51 = vld [vmem:[#allocation5 + $0x28c] ss:$40 sps:$4 sm:$0xff]  }
  0xbb   :  { %3644 = vmatpush2.bf16.msra.mxu0 %v12862_v53  ;;  %v12951_v53 = vld [vmem:[#allocation5 + $0x50c] ss:$40 sps:$4 sm:$0xff]  }
  0xbc   :  { %3710 = vmatpush1.bf16.msra.mxu1 %v12865_v54  ;;  %3645 = vmatprep.subr.bf16.mxu0 %v12870_v55  ;;  %v12946_v54 = vld [vmem:[#allocation5 + $0x288] ss:$40 sps:$4 sm:$0xff]  }
  0xbd   :  { %3711 = vmatprep.subr.bf16.mxu1 %v12873_v56  ;;  %v12949_v55 = vld [vmem:[#allocation5 + $0x508] ss:$40 sps:$4 sm:$0xff]   ;;  %v12954_v56 = vld [vmem:[#allocation5 + $0x9bc] ss:$40 sps:$4 sm:$0xff]  }
  0xbf   :  { %3646 = vmatpush2.bf16.msra.mxu0 %v12868_v57  ;;  %v12957_v57 = vld [vmem:[#allocation5 + $0xc3c] ss:$40 sps:$4 sm:$0xff]  }
  0xc0   :  { %3712 = vmatpush1.bf16.msra.mxu1 %v12871_v58  ;;  %3647 = vmatprep.subr.bf16.mxu0 %v12876_v59  ;;  %v12952_v58 = vld [vmem:[#allocation5 + $0x9b8] ss:$40 sps:$4 sm:$0xff]  }
  0xc1   :  { %3713 = vmatprep.subr.bf16.mxu1 %v12879_v60  ;;  %v12955_v59 = vld [vmem:[#allocation5 + $0xc38] ss:$40 sps:$4 sm:$0xff]   ;;  %v12960_v60 = vld [vmem:[#allocation5 + $0x96c] ss:$40 sps:$4 sm:$0xff]  }
  0xc3   :  { %3648 = vmatpush2.bf16.msra.mxu0 %v12874_v61  ;;  %v12963_v61 = vld [vmem:[#allocation5 + $0xbec] ss:$40 sps:$4 sm:$0xff]  }
  0xc4   :  { %3714 = vmatpush1.bf16.msra.mxu1 %v12877_v62  ;;  %3649 = vmatprep.subr.bf16.mxu0 %v12882_v63  ;;  %v12958_v62 = vld [vmem:[#allocation5 + $0x968] ss:$40 sps:$4 sm:$0xff]  }
  0xc5   :  { %3715 = vmatprep.subr.bf16.mxu1 %v12885_v0  ;;  %v12961_v63 = vld [vmem:[#allocation5 + $0xbe8] ss:$40 sps:$4 sm:$0xff]   ;;  %v12966_v0 = vld [vmem:[#allocation5 + $0x91c] ss:$40 sps:$4 sm:$0xff]  }
  0xc7   :  { %3650 = vmatpush2.bf16.msra.mxu0 %v12880_v1  ;;  %v12969_v1 = vld [vmem:[#allocation5 + $0xb9c] ss:$40 sps:$4 sm:$0xff]  }
  0xc8   :  { %3716 = vmatpush1.bf16.msra.mxu1 %v12883_v2  ;;  %3651 = vmatprep.subr.bf16.mxu0 %v12888_v3  ;;  %v12964_v2 = vld [vmem:[#allocation5 + $0x918] ss:$40 sps:$4 sm:$0xff]  }
  0xc9   :  { %3717 = vmatprep.subr.bf16.mxu1 %v12891_v4  ;;  %v12967_v3 = vld [vmem:[#allocation5 + $0xb98] ss:$40 sps:$4 sm:$0xff]   ;;  %v12972_v4 = vld [vmem:[#allocation5 + $0x8cc] ss:$40 sps:$4 sm:$0xff]  }
  0xcb   :  { %3652 = vmatpush2.bf16.msra.mxu0 %v12886_v5  ;;  %v12975_v5 = vld [vmem:[#allocation5 + $0xb4c] ss:$40 sps:$4 sm:$0xff]  }
  0xcc   :  { %3718 = vmatpush1.bf16.msra.mxu1 %v12889_v6  ;;  %3653 = vmatprep.subr.bf16.mxu0 %v12894_v7  ;;  %v12970_v6 = vld [vmem:[#allocation5 + $0x8c8] ss:$40 sps:$4 sm:$0xff]  }
  0xcd   :  { %3719 = vmatprep.subr.bf16.mxu1 %v12897_v9  ;;  %v12973_v7 = vld [vmem:[#allocation5 + $0xb48] ss:$40 sps:$4 sm:$0xff]   ;;  %v12978_v9 = vld [vmem:[#allocation5 + $0x87c] ss:$40 sps:$4 sm:$0xff]  }
  0xcf   :  { %3654 = vmatpush2.bf16.msra.mxu0 %v12892_v10  ;;  %v12981_v10 = vld [vmem:[#allocation5 + $0xafc] ss:$40 sps:$4 sm:$0xff]  }
  0xd0   :  { %3720 = vmatpush1.bf16.msra.mxu1 %v12895_v12  ;;  %3655 = vmatprep.subr.bf16.mxu0 %v12900_v13  ;;  %v12976_v12 = vld [vmem:[#allocation5 + $0x878] ss:$40 sps:$4 sm:$0xff]  }
  0xd1   :  { %3721 = vmatprep.subr.bf16.mxu1 %v12903_v14  ;;  %v12979_v13 = vld [vmem:[#allocation5 + $0xaf8] ss:$40 sps:$4 sm:$0xff]   ;;  %v12984_v14 = vld [vmem:[#allocation5 + $0x82c] ss:$40 sps:$4 sm:$0xff]  }
  0xd3   :  { %3656 = vmatpush2.bf16.msra.mxu0 %v12898_v15  ;;  %v12987_v15 = vld [vmem:[#allocation5 + $0xaac] ss:$40 sps:$4 sm:$0xff]  }
  0xd4   :  { %3722 = vmatpush1.bf16.msra.mxu1 %v12901_v16  ;;  %3748 = vmatprep.subr.bf16.mxu0 %v12909_v20  ;;  %v12982_v16 = vld [vmem:[#allocation5 + $0x828] ss:$40 sps:$4 sm:$0xff]   ;;  %v12993_v20 = vld [vmem:[#allocation5 + $0xa5c] ss:$40 sps:$4 sm:$0xff]  }
  0xd5   :  { %3723 = vmatprep.subr.bf16.mxu1 %v12906_v19  ;;  %v12990_v19 = vld [vmem:[#allocation5 + $0x7dc] ss:$40 sps:$4 sm:$0xff]  }
  0xd6   :  { %3658 = vmatmul.mubr.bf16.vlgmr.msra.gmra.mxu0 %v15099_v21 }
  0xd7   :  { %3749 = vmatpush1.bf16.msra.mxu0 %v12907_v23  ;;  %3780 = vmatprep.mubr.bf16.mxu0 %v15081_v52  ;;  %v12991_v23 = vld [vmem:[#allocation5 + $0xa58] ss:$40 sps:$4 sm:$0xff]  }
  0xd8   :  { %3724 = vmatpush2.bf16.msra.mxu1 %v12904_v22  ;;  %3750 = vmatprep.subr.bf16.mxu0 %v12915_v25  ;;  %v12988_v22 = vld [vmem:[#allocation5 + $0x7d8] ss:$40 sps:$4 sm:$0xff]   ;;  %v12999_v25 = vld [vmem:[#allocation5 + $0xa0c] ss:$40 sps:$4 sm:$0xff]  }
  0xd9   :  { %3725 = vmatprep.subr.bf16.mxu1 %v12912_v24  ;;  %v12996_v24 = vld [vmem:[#allocation5 + $0x78c] ss:$40 sps:$4 sm:$0xff]  }
  0xdb   :  { %3751 = vmatpush1.bf16.msra.mxu0 %v12913_v27  ;;  %v12997_v27 = vld [vmem:[#allocation5 + $0xa08] ss:$40 sps:$4 sm:$0xff]  }
  0xdc   :  { %3726 = vmatpush2.bf16.msra.mxu1 %v12910_v26  ;;  %3752 = vmatprep.subr.bf16.mxu0 %v12921_v29  ;;  %v12994_v26 = vld [vmem:[#allocation5 + $0x788] ss:$40 sps:$4 sm:$0xff]   ;;  %v13005_v29 = vld [vmem:[#allocation5 + $0x113c] ss:$40 sps:$4 sm:$0xff]  }
  0xdd   :  { %3727 = vmatprep.subr.bf16.mxu1 %v12918_v28  ;;  %v13002_v28 = vld [vmem:[#allocation5 + $0xebc] ss:$40 sps:$4 sm:$0xff]  }
  0xdf   :  { %3753 = vmatpush1.bf16.msra.mxu0 %v12919_v31  ;;  %v13003_v31 = vld [vmem:[#allocation5 + $0x1138] ss:$40 sps:$4 sm:$0xff]  }
  0xe0   :  { %3728 = vmatpush2.bf16.msra.mxu1 %v12916_v30  ;;  %3754 = vmatprep.subr.bf16.mxu0 %v12927_v33  ;;  %v13000_v30 = vld [vmem:[#allocation5 + $0xeb8] ss:$40 sps:$4 sm:$0xff]   ;;  %v13011_v33 = vld [vmem:[#allocation5 + $0x10ec] ss:$40 sps:$4 sm:$0xff]  }
  0xe1   :  { %3729 = vmatprep.subr.bf16.mxu1 %v12924_v32  ;;  %v13008_v32 = vld [vmem:[#allocation5 + $0xe6c] ss:$40 sps:$4 sm:$0xff]  }
  0xe3   :  { %3755 = vmatpush1.bf16.msra.mxu0 %v12925_v35  ;;  %v13009_v35 = vld [vmem:[#allocation5 + $0x10e8] ss:$40 sps:$4 sm:$0xff]  }
  0xe4   :  { %3730 = vmatpush2.bf16.msra.mxu1 %v12922_v34  ;;  %3756 = vmatprep.subr.bf16.mxu0 %v12933_v37  ;;  %v13006_v34 = vld [vmem:[#allocation5 + $0xe68] ss:$40 sps:$4 sm:$0xff]   ;;  %v13017_v37 = vld [vmem:[#allocation5 + $0x109c] ss:$40 sps:$4 sm:$0xff]  }
  0xe5   :  { %3731 = vmatprep.subr.bf16.mxu1 %v12930_v36  ;;  %v13014_v36 = vld [vmem:[#allocation5 + $0xe1c] ss:$40 sps:$4 sm:$0xff]  }
  0xe7   :  { %3757 = vmatpush1.bf16.msra.mxu0 %v12931_v40  ;;  %v13015_v40 = vld [vmem:[#allocation5 + $0x1098] ss:$40 sps:$4 sm:$0xff]  }
  0xe8   :  { %3732 = vmatpush2.bf16.msra.mxu1 %v12928_v38  ;;  %3758 = vmatprep.subr.bf16.mxu0 %v12939_v42  ;;  %v13012_v38 = vld [vmem:[#allocation5 + $0xe18] ss:$40 sps:$4 sm:$0xff]   ;;  %v13023_v42 = vld [vmem:[#allocation5 + $0x104c] ss:$40 sps:$4 sm:$0xff]  }
  0xe9   :  { %3733 = vmatprep.subr.bf16.mxu1 %v12936_v41  ;;  %v13020_v41 = vld [vmem:[#allocation5 + $0xdcc] ss:$40 sps:$4 sm:$0xff]  }
  0xeb   :  { %3759 = vmatpush1.bf16.msra.mxu0 %v12937_v44  ;;  %v13021_v44 = vld [vmem:[#allocation5 + $0x1048] ss:$40 sps:$4 sm:$0xff]  }
  0xec   :  { %3734 = vmatpush2.bf16.msra.mxu1 %v12934_v43  ;;  %3760 = vmatprep.subr.bf16.mxu0 %v12945_v46  ;;  %v13018_v43 = vld [vmem:[#allocation5 + $0xdc8] ss:$40 sps:$4 sm:$0xff]   ;;  %v13029_v46 = vld [vmem:[#allocation5 + $0xffc] ss:$40 sps:$4 sm:$0xff]  }
  0xed   :  { %3735 = vmatprep.subr.bf16.mxu1 %v12942_v45  ;;  %v13026_v45 = vld [vmem:[#allocation5 + $0xd7c] ss:$40 sps:$4 sm:$0xff]  }
  0xef   :  { %3761 = vmatpush1.bf16.msra.mxu0 %v12943_v50  ;;  %v13027_v50 = vld [vmem:[#allocation5 + $0xff8] ss:$40 sps:$4 sm:$0xff]  }
  0xf0   :  { %3736 = vmatpush2.bf16.msra.mxu1 %v12940_v49  ;;  %3762 = vmatprep.subr.bf16.mxu0 %v12951_v53  ;;  %v13024_v49 = vld [vmem:[#allocation5 + $0xd78] ss:$40 sps:$4 sm:$0xff]   ;;  %v13035_v53 = vld [vmem:[#allocation5 + $0xfac] ss:$40 sps:$4 sm:$0xff]  }
  0xf1   :  { %3737 = vmatprep.subr.bf16.mxu1 %v12948_v51  ;;  %v13032_v51 = vld [vmem:[#allocation5 + $0xd2c] ss:$40 sps:$4 sm:$0xff]  }
  0xf3   :  { %3763 = vmatpush1.bf16.msra.mxu0 %v12949_v55  ;;  %v13033_v55 = vld [vmem:[#allocation5 + $0xfa8] ss:$40 sps:$4 sm:$0xff]  }
  0xf4   :  { %3738 = vmatpush2.bf16.msra.mxu1 %v12946_v54  ;;  %3764 = vmatprep.subr.bf16.mxu0 %v12954_v56  ;;  %v13030_v54 = vld [vmem:[#allocation5 + $0xd28] ss:$40 sps:$4 sm:$0xff]   ;;  %v13038_v56 = vld [vmem:[#allocation5 + $0xcdc] ss:$40 sps:$4 sm:$0xff]  }
  0xf5   :  { %3789 = vmatprep.subr.bf16.mxu1 %v12957_v57  ;;  %v13041_v57 = vld [vmem:[#allocation5 + $0xf5c] ss:$40 sps:$4 sm:$0xff]  }
  0xf7   :  { %3740 = vmatmul.mubr.bf16.vlgmr.msra.gmra.mxu1 %v15085_v8  ;;  %3765 = vmatpush2.bf16.msra.mxu0 %v12952_v58  ;;  %v13036_v58 = vld [vmem:[#allocation5 + $0xcd8] ss:$40 sps:$4 sm:$0xff]  }
  0xf8   :  { %3790 = vmatpush1.bf16.msra.mxu1 %v12955_v59  ;;  %3766 = vmatprep.subr.bf16.mxu0 %v12960_v60  ;;  %v13039_v59 = vld [vmem:[#allocation5 + $0xf58] ss:$40 sps:$4 sm:$0xff]   ;;  %v13044_v60 = vld [vmem:[#allocation5 + $0xc8c] ss:$40 sps:$4 sm:$0xff]  }
  0xf9   :  { %3791 = vmatprep.subr.bf16.mxu1 %v12963_v61  ;;  %3821 = vmatprep.mubr.bf16.mxu1 %v15092_v39  ;;  %v13047_v61 = vld [vmem:[#allocation5 + $0xf0c] ss:$40 sps:$4 sm:$0xff]  }
  0xfb   :  { %3767 = vmatpush2.bf16.msra.mxu0 %v12958_v62  ;;  %v13042_v62 = vld [vmem:[#allocation5 + $0xc88] ss:$40 sps:$4 sm:$0xff]  }
  0xfc   :  { %3792 = vmatpush1.bf16.msra.mxu1 %v12961_v63  ;;  %3768 = vmatprep.subr.bf16.mxu0 %v12966_v0  ;;  %v13045_v63 = vld [vmem:[#allocation5 + $0xf08] ss:$40 sps:$4 sm:$0xff]   ;;  %v13050_v0 = vld [vmem:[#allocation5 + $0x244] ss:$40 sps:$4 sm:$0xff]  }
  0xfd   :  { %3793 = vmatprep.subr.bf16.mxu1 %v12969_v1  ;;  %v13053_v1 = vld [vmem:[#allocation5 + $0x744] ss:$40 sps:$4 sm:$0xff]  }
  0xff   :  { %3769 = vmatpush2.bf16.msra.mxu0 %v12964_v2  ;;  %v13048_v2 = vld [vmem:[#allocation5 + $0x240] ss:$40 sps:$4 sm:$0xff]  }
 0x100   :  { %3794 = vmatpush1.bf16.msra.mxu1 %v12967_v3  ;;  %3770 = vmatprep.subr.bf16.mxu0 %v12972_v4  ;;  %v13051_v3 = vld [vmem:[#allocation5 + $0x740] ss:$40 sps:$4 sm:$0xff]   ;;  %v13056_v4 = vld [vmem:[#allocation5 + $0x1f4] ss:$40 sps:$4 sm:$0xff]  }
 0x101   :  { %3795 = vmatprep.subr.bf16.mxu1 %v12975_v5  ;;  %v13059_v5 = vld [vmem:[#allocation5 + $0x6f4] ss:$40 sps:$4 sm:$0xff]  }
 0x103   :  { %3771 = vmatpush2.bf16.msra.mxu0 %v12970_v6  ;;  %v13054_v6 = vld [vmem:[#allocation5 + $0x1f0] ss:$40 sps:$4 sm:$0xff]  }
 0x104   :  { %3796 = vmatpush1.bf16.msra.mxu1 %v12973_v7  ;;  %3772 = vmatprep.subr.bf16.mxu0 %v12978_v9  ;;  %v13057_v7 = vld [vmem:[#allocation5 + $0x6f0] ss:$40 sps:$4 sm:$0xff]   ;;  %v13062_v9 = vld [vmem:[#allocation5 + $0x1a4] ss:$40 sps:$4 sm:$0xff]  }
 0x105   :  { %3797 = vmatprep.subr.bf16.mxu1 %v12981_v10  ;;  %v13065_v10 = vld [vmem:[#allocation5 + $0x6a4] ss:$40 sps:$4 sm:$0xff]  }
 0x107   :  { %3773 = vmatpush2.bf16.msra.mxu0 %v12976_v12  ;;  %v13060_v12 = vld [vmem:[#allocation5 + $0x1a0] ss:$40 sps:$4 sm:$0xff]  }
 0x108   :  { %3798 = vmatpush1.bf16.msra.mxu1 %v12979_v13  ;;  %3774 = vmatprep.subr.bf16.mxu0 %v12984_v14  ;;  %v13063_v13 = vld [vmem:[#allocation5 + $0x6a0] ss:$40 sps:$4 sm:$0xff]   ;;  %v13068_v14 = vld [vmem:[#allocation5 + $0x154] ss:$40 sps:$4 sm:$0xff]  }
 0x109   :  { %3799 = vmatprep.subr.bf16.mxu1 %v12987_v15  ;;  %v13071_v15 = vld [vmem:[#allocation5 + $0x654] ss:$40 sps:$4 sm:$0xff]  }
 0x10b   :  { %3775 = vmatpush2.bf16.msra.mxu0 %v12982_v16  ;;  %v13066_v16 = vld [vmem:[#allocation5 + $0x150] ss:$40 sps:$4 sm:$0xff]  }
 0x10c   :  { %3800 = vmatpush1.bf16.msra.mxu1 %v12985_v17  ;;  %3776 = vmatprep.subr.bf16.mxu0 %v12990_v19  ;;  %v13069_v17 = vld [vmem:[#allocation5 + $0x650] ss:$40 sps:$4 sm:$0xff]   ;;  %v13074_v19 = vld [vmem:[#allocation5 + $0x104] ss:$40 sps:$4 sm:$0xff]  }
 0x10d   :  { %3801 = vmatprep.subr.bf16.mxu1 %v12993_v20  ;;  %v13077_v20 = vld [vmem:[#allocation5 + $0x604] ss:$40 sps:$4 sm:$0xff]  }
 0x10f   :  { %3777 = vmatpush2.bf16.msra.mxu0 %v12988_v22  ;;  %v13072_v22 = vld [vmem:[#allocation5 + $0x100] ss:$40 sps:$4 sm:$0xff]  }
 0x110   :  { %3802 = vmatpush1.bf16.msra.mxu1 %v12991_v23  ;;  %3778 = vmatprep.subr.bf16.mxu0 %v12996_v24  ;;  %v13075_v23 = vld [vmem:[#allocation5 + $0x600] ss:$40 sps:$4 sm:$0xff]   ;;  %v13080_v24 = vld [vmem:[#allocation5 + $0xb4] ss:$40 sps:$4 sm:$0xff]  }
 0x111   :  { %3803 = vmatprep.subr.bf16.mxu1 %v12999_v25  ;;  %v13083_v25 = vld [vmem:[#allocation5 + $0x5b4] ss:$40 sps:$4 sm:$0xff]  }
 0x113   :  { %3779 = vmatpush2.bf16.msra.mxu0 %v12994_v26  ;;  %v13078_v26 = vld [vmem:[#allocation5 + $0xb0] ss:$40 sps:$4 sm:$0xff]  }
 0x114   :  { %3804 = vmatpush1.bf16.msra.mxu1 %v12997_v27  ;;  %3830 = vmatprep.subr.bf16.mxu0 %v13005_v29  ;;  %v13081_v27 = vld [vmem:[#allocation5 + $0x5b0] ss:$40 sps:$4 sm:$0xff]   ;;  %v693_v29 = vlaneseq }
 0x115   :  { %3805 = vmatprep.subr.bf16.mxu1 %v13002_v28  ;;  %v13086_v28 = vld [vmem:[#allocation5 + $0x64] ss:$40 sps:$4 sm:$0xff]  }
 0x116   :  { %3781 = vmatmul.mubr.bf16.vlgmr.msra.gmra.mxu0 %v15087_v11 }
 0x117   :  { %3831 = vmatpush1.bf16.msra.mxu0 %v13003_v31  ;;  %3862 = vmatprep.mubr.bf16.mxu0 %v15016_v18  ;;  %v13084_v31 = vld [vmem:[#allocation5 + $0x60] ss:$40 sps:$4 sm:$0xff]  }
 0x118   :  { %3806 = vmatpush2.bf16.msra.mxu1 %v13000_v30  ;;  %3832 = vmatprep.subr.bf16.mxu0 %v13011_v33  ;;  %v13089_v30 = vld [vmem:[#allocation5 + $0x564] ss:$40 sps:$4 sm:$0xff]   ;;  %v13092_v33 = vld [vmem:[#allocation5 + $0x14] ss:$40 sps:$4 sm:$0xff]  }
 0x119   :  { %3807 = vmatprep.subr.bf16.mxu1 %v13008_v32  ;;  %v13087_v32 = vld [vmem:[#allocation5 + $0x560] ss:$40 sps:$4 sm:$0xff]  }
 0x11b   :  { %3833 = vmatpush1.bf16.msra.mxu0 %v13009_v35  ;;  %v13095_v35 = vld [vmem:[#allocation5 + $0x514] ss:$40 sps:$4 sm:$0xff]  }
 0x11c   :  { %3808 = vmatpush2.bf16.msra.mxu1 %v13006_v34  ;;  %3834 = vmatprep.subr.bf16.mxu0 %v13017_v37  ;;  %v15111_v34 = vshrl.u32 %v693_v29, 7  ;;  %v13093_v37 = vld [vmem:[#allocation5 + $0x510] ss:$40 sps:$4 sm:$0xff]  }
 0x11d   :  { %3809 = vmatprep.subr.bf16.mxu1 %v13014_v36  ;;  %v13090_v36 = vld [vmem:[#allocation5 + $0x10] ss:$40 sps:$4 sm:$0xff]  }
 0x11e   :  { %v13138_v29 = vld [vmem:[#allocation5 + $0x290] ss:$40 sps:$4 sm:$0xff]  }
 0x11f   :  { %3835 = vmatpush1.bf16.msra.mxu0 %v13015_v40  ;;  %v15114_v40 = vsub.s32 0, %v15111_v34 }
 0x120   :  { %3810 = vmatpush2.bf16.msra.mxu1 %v13012_v38  ;;  %3836 = vmatprep.subr.bf16.mxu0 %v13023_v42  ;;  %v689_v38 = vld [vmem:[#allocation7] sm:$0xff] }
 0x121   :  { %3811 = vmatprep.subr.bf16.mxu1 %v13020_v41  ;;  %v13098_v41 = vld [vmem:[#allocation5 + $0x4c4] ss:$40 sps:$4 sm:$0xff]  }
 0x122   :  { %v13101_v42 = vld [vmem:[#allocation5 + $0x9c4] ss:$40 sps:$4 sm:$0xff]  }
 0x123   :  { %3837 = vmatpush1.bf16.msra.mxu0 %v13021_v44  ;;  %v13096_v44 = vld [vmem:[#allocation5 + $0x4c0] ss:$40 sps:$4 sm:$0xff]  }
 0x124   :  { %3812 = vmatpush2.bf16.msra.mxu1 %v13018_v43  ;;  %3838 = vmatprep.subr.bf16.mxu0 %v13029_v46  ;;  %v15117_v43 = vsub.s32 1, %v15111_v34  ;;  %v696_v46 = vrot.slane %v689_v38, %v15114_v40 }
 0x125   :  { %3813 = vmatprep.subr.bf16.mxu1 %v13026_v45  ;;  %v13099_v45 = vld [vmem:[#allocation5 + $0x9c0] ss:$40 sps:$4 sm:$0xff]  }
 0x127   :  { %3839 = vmatpush1.bf16.msra.mxu0 %v13027_v50  ;;  %v13107_v50 = vld [vmem:[#allocation5 + $0x974] ss:$40 sps:$4 sm:$0xff]  }
 0x128   :  { %3814 = vmatpush2.bf16.msra.mxu1 %v13024_v49  ;;  %3840 = vmatprep.subr.bf16.mxu0 %v13035_v53  ;;  %v13104_v49 = vld [vmem:[#allocation5 + $0x474] ss:$40 sps:$4 sm:$0xff]  }
 0x129   :  { %3815 = vmatprep.subr.bf16.mxu1 %v13032_v51  ;;  %v700_v51 = vrot.slane %v689_v38, %v15117_v43  ;;  %v13150_v38 = vld [vmem:[#allocation5 + $0xbf0] ss:$40 sps:$4 sm:$0xff]  }
 0x12b   :  { %3841 = vmatpush1.bf16.msra.mxu0 %v13033_v55  ;;  %v13102_v55 = vld [vmem:[#allocation5 + $0x470] ss:$40 sps:$4 sm:$0xff]  }
 0x12c   :  { %3816 = vmatpush2.bf16.msra.mxu1 %v13030_v54  ;;  %3842 = vmatprep.subr.bf16.mxu0 %v13041_v57 }
 0x12d   :  { %3817 = vmatprep.subr.bf16.mxu1 %v13038_v56  ;;  %v13105_v56 = vld [vmem:[#allocation5 + $0x970] ss:$40 sps:$4 sm:$0xff]  }
 0x12f   :  { %3843 = vmatpush1.bf16.msra.mxu0 %v13039_v59 }
 0x130   :  { %3818 = vmatpush2.bf16.msra.mxu1 %v13036_v58  ;;  %3844 = vmatprep.subr.bf16.mxu0 %v13047_v61  ;;  %v13110_v58 = vld [vmem:[#allocation5 + $0x424] ss:$40 sps:$4 sm:$0xff]  }
 0x131   :  { %3819 = vmatprep.subr.bf16.mxu1 %v13044_v60  ;;  %v13113_v61 = vld [vmem:[#allocation5 + $0x924] ss:$40 sps:$4 sm:$0xff]  }
 0x133   :  { %3845 = vmatpush1.bf16.msra.mxu0 %v13045_v63 }
 0x134   :  { %3820 = vmatpush2.bf16.msra.mxu1 %v13042_v62  ;;  %3871 = vmatprep.subr.bf16.mxu0 %v13050_v0 }
 0x135   :  { %3912 = vmatprep.subr.bf16.mxu1 %v13053_v1  ;;  %v13108_v1 = vld [vmem:[#allocation5 + $0x420] ss:$40 sps:$4 sm:$0xff]  }
 0x136   :  { %3863 = vmatmul.mubr.bf16.vlgmr.msra.gmra.mxu0 %v15095_v47 }
 0x137   :  { %3822 = vmatmul.mubr.bf16.vlgmr.msra.gmra.mxu1 %v15099_v21  ;;  %3872 = vmatpush1.bf16.msra.mxu0 %v13048_v2  ;;  %v13111_v2 = vld [vmem:[#allocation5 + $0x920] ss:$40 sps:$4 sm:$0xff]  }
 0x138   :  { %3913 = vmatpush1.bf16.msra.mxu1 %v13051_v3  ;;  %3873 = vmatprep.subr.bf16.mxu0 %v13056_v4 }
 0x139   :  { %3914 = vmatprep.subr.bf16.mxu1 %v13059_v5  ;;  %3903 = vmatprep.mubr.bf16.mxu0 %v15079_v48 }
 0x13a   :  { %3944 = vmatprep.mubr.bf16.mxu1 %v15081_v52 }
 0x13b   :  { %3874 = vmatpush1.bf16.msra.mxu0 %v13054_v6  ;;  %v13116_v6 = vld [vmem:[#allocation5 + $0x3d4] ss:$40 sps:$4 sm:$0xff]  }
 0x13c   :  { %3915 = vmatpush1.bf16.msra.mxu1 %v13057_v7  ;;  %3875 = vmatprep.subr.bf16.mxu0 %v13062_v9  ;;  %v13119_v7 = vld [vmem:[#allocation5 + $0x8d4] ss:$40 sps:$4 sm:$0xff]  }
 0x13d   :  { %3916 = vmatprep.subr.bf16.mxu1 %v13065_v10  ;;  %v13114_v10 = vld [vmem:[#allocation5 + $0x3d0] ss:$40 sps:$4 sm:$0xff]  }
 0x13f   :  { %3876 = vmatpush1.bf16.msra.mxu0 %v13060_v12  ;;  %v13117_v12 = vld [vmem:[#allocation5 + $0x8d0] ss:$40 sps:$4 sm:$0xff]  }
 0x140   :  { %3917 = vmatpush1.bf16.msra.mxu1 %v13063_v13  ;;  %3877 = vmatprep.subr.bf16.mxu0 %v13068_v14  ;;  %v13122_v13 = vld [vmem:[#allocation5 + $0x384] ss:$40 sps:$4 sm:$0xff]  }
 0x141   :  { %3918 = vmatprep.subr.bf16.mxu1 %v13071_v15  ;;  %v13125_v14 = vld [vmem:[#allocation5 + $0x884] ss:$40 sps:$4 sm:$0xff]   ;;  %v13120_v15 = vld [vmem:[#allocation5 + $0x380] ss:$40 sps:$4 sm:$0xff]  }
 0x143   :  { %3878 = vmatpush1.bf16.msra.mxu0 %v13066_v16  ;;  %v13123_v16 = vld [vmem:[#allocation5 + $0x880] ss:$40 sps:$4 sm:$0xff]  }
 0x144   :  { %3919 = vmatpush1.bf16.msra.mxu1 %v13069_v17  ;;  %3879 = vmatprep.subr.bf16.mxu0 %v13074_v19  ;;  %v13128_v17 = vld [vmem:[#allocation5 + $0x334] ss:$40 sps:$4 sm:$0xff]  }
 0x145   :  { %3920 = vmatprep.subr.bf16.mxu1 %v13077_v20  ;;  %v13131_v19 = vld [vmem:[#allocation5 + $0x834] ss:$40 sps:$4 sm:$0xff]   ;;  %v13126_v20 = vld [vmem:[#allocation5 + $0x330] ss:$40 sps:$4 sm:$0xff]  }
 0x147   :  { %3880 = vmatpush1.bf16.msra.mxu0 %v13072_v22  ;;  %v13129_v22 = vld [vmem:[#allocation5 + $0x830] ss:$40 sps:$4 sm:$0xff]  }
 0x148   :  { %3921 = vmatpush1.bf16.msra.mxu1 %v13075_v23  ;;  %3881 = vmatprep.subr.bf16.mxu0 %v13080_v24  ;;  %v13134_v23 = vld [vmem:[#allocation5 + $0x2e4] ss:$40 sps:$4 sm:$0xff]  }
 0x149   :  { %3922 = vmatprep.subr.bf16.mxu1 %v13083_v25  ;;  %v13137_v24 = vld [vmem:[#allocation5 + $0x7e4] ss:$40 sps:$4 sm:$0xff]   ;;  %v13132_v25 = vld [vmem:[#allocation5 + $0x2e0] ss:$40 sps:$4 sm:$0xff]  }
 0x14b   :  { %3882 = vmatpush1.bf16.msra.mxu0 %v13078_v26  ;;  %v13135_v26 = vld [vmem:[#allocation5 + $0x7e0] ss:$40 sps:$4 sm:$0xff]  }
 0x14c   :  { %3923 = vmatpush1.bf16.msra.mxu1 %v13081_v27  ;;  %3883 = vmatprep.subr.bf16.mxu0 %v13086_v28  ;;  %v13140_v27 = vld [vmem:[#allocation5 + $0x294] ss:$40 sps:$4 sm:$0xff]  }
 0x14d   :  { %3924 = vmatprep.subr.bf16.mxu1 %v13089_v30  ;;  %v13143_v28 = vld [vmem:[#allocation5 + $0x794] ss:$40 sps:$4 sm:$0xff]   ;;  %v13141_v30 = vld [vmem:[#allocation5 + $0x790] ss:$40 sps:$4 sm:$0xff]  }
 0x14f   :  { %3884 = vmatpush1.bf16.msra.mxu0 %v13084_v31  ;;  %v13146_v31 = vld [vmem:[#allocation5 + $0xc44] ss:$40 sps:$4 sm:$0xff]  }
 0x150   :  { %3925 = vmatpush1.bf16.msra.mxu1 %v13087_v32  ;;  %3885 = vmatprep.subr.bf16.mxu0 %v13092_v33  ;;  %v13149_v32 = vld [vmem:[#allocation5 + $0x1144] ss:$40 sps:$4 sm:$0xff]   ;;  %v13144_v33 = vld [vmem:[#allocation5 + $0xc40] ss:$40 sps:$4 sm:$0xff]  }
 0x151   :  { %3926 = vmatprep.subr.bf16.mxu1 %v13095_v35  ;;  %v13147_v35 = vld [vmem:[#allocation5 + $0x1140] ss:$40 sps:$4 sm:$0xff]  }
 0x153   :  { %3886 = vmatpush1.bf16.msra.mxu0 %v13090_v36  ;;  %v13152_v36 = vld [vmem:[#allocation5 + $0xbf4] ss:$40 sps:$4 sm:$0xff]  }
 0x154   :  { %3927 = vmatpush1.bf16.msra.mxu1 %v13093_v37  ;;  %3887 = vmatprep.subr.bf16.mxu0 %v13098_v41  ;;  %v13155_v37 = vld [vmem:[#allocation5 + $0x10f4] ss:$40 sps:$4 sm:$0xff]   ;;  %v13153_v41 = vld [vmem:[#allocation5 + $0x10f0] ss:$40 sps:$4 sm:$0xff]  }
 0x155   :  { %3928 = vmatprep.subr.bf16.mxu1 %v13101_v42 }
 0x156   :  { %v3577_v53 = vpop.f32.mrf.mxu0 }
 0x157   :  { %v3618_v54 = vpop.f32.mrf.mxu1  ;;  %v3578_v57 = vadd.f32 %v3577_v53, %v696_v46  ;;  %3888 = vmatpush2.bf16.msra.mxu0 %v13096_v44  ;;  %v13158_v44 = vld [vmem:[#allocation5 + $0xba4] ss:$40 sps:$4 sm:$0xff]   ;;  %v13164_v53 = vld [vmem:[#allocation5 + $0xb54] ss:$40 sps:$4 sm:$0xff]  }
 0x158   :  { %3929 = vmatpush2.bf16.msra.mxu1 %v13099_v45  ;;  %v3579_v59 = vpop.f32.mrf.mxu0  ;;  %3889 = vmatprep.subr.bf16.mxu0 %v13104_v49  ;;  %v13161_v45 = vld [vmem:[#allocation5 + $0x10a4] ss:$40 sps:$4 sm:$0xff]   ;;  %v13156_v49 = vld [vmem:[#allocation5 + $0xba0] ss:$40 sps:$4 sm:$0xff]  }
 0x159   :  { %v3620_v60 = vpop.f32.mrf.mxu1  ;;  %3930 = vmatprep.subr.bf16.mxu1 %v13107_v50  ;;  %v3580_v62 = vadd.f32 %v3579_v59, %v700_v51  ;;  %v15121_v63 = vadd.f32 %v3618_v54, %v3578_v57  ;;  %v13159_v50 = vld [vmem:[#allocation5 + $0x10a0] ss:$40 sps:$4 sm:$0xff]   ;;  %v13167_v54 = vld [vmem:[#allocation5 + $0x1054] ss:$40 sps:$4 sm:$0xff]   ;;  %v13165_v57 = vld [vmem:[#allocation5 + $0x1050] ss:$40 sps:$4 sm:$0xff]  }
 0x15a   :  { %v3581_v0 = vpop.f32.mrf.mxu0  ;;  %v13173_v59 = vld [vmem:[#allocation5 + $0x1004] ss:$40 sps:$4 sm:$0xff]  }
 0x15b   :  { %v3622_v3 = vpop.f32.mrf.mxu1  ;;  %v15123_v4 = vadd.f32 %v3620_v60, %v3580_v62  ;;  %3890 = vmatpush2.bf16.msra.mxu0 %v13102_v55  ;;  %v13168_v60 = vld [vmem:[#allocation5 + $0xb00] ss:$40 sps:$4 sm:$0xff]   ;;  %v13176_v62 = vld [vmem:[#allocation5 + $0xab4] ss:$40 sps:$4 sm:$0xff]  }
 0x15c   :  { %3931 = vmatpush2.bf16.msra.mxu1 %v13105_v56  ;;  %v3582_v5 = vpop.f32.mrf.mxu0  ;;  %3891 = vmatprep.subr.bf16.mxu0 %v13110_v58  ;;  %v13162_v56 = vld [vmem:[#allocation5 + $0xb50] ss:$40 sps:$4 sm:$0xff]   ;;  %v13170_v58 = vld [vmem:[#allocation5 + $0xb04] ss:$40 sps:$4 sm:$0xff]   ;;  %v13179_v0 = vld [vmem:[#allocation5 + $0xfb4] ss:$40 sps:$4 sm:$0xff]  }
 0x15d   :  { %3932 = vmatprep.subr.bf16.mxu1 %v13113_v61  ;;  %v3623_v9 = vpop.f32.mrf.mxu1  ;;  %v13171_v61 = vld [vmem:[#allocation5 + $0x1000] ss:$40 sps:$4 sm:$0xff]   ;;  %v13182_v3 = vld [vmem:[#allocation5 + $0xa64] ss:$40 sps:$4 sm:$0xff]  }
 0x15e   :  { %v13185_v5 = vld [vmem:[#allocation5 + $0xf64] ss:$40 sps:$4 sm:$0xff]   ;;  %v13188_v9 = vld [vmem:[#allocation5 + $0xa14] ss:$40 sps:$4 sm:$0xff]  }
 0x15f   :  { %3892 = vmatpush2.bf16.msra.mxu0 %v13108_v1  ;;  %v13174_v1 = vld [vmem:[#allocation5 + $0xab0] ss:$40 sps:$4 sm:$0xff]  }
 0x160   :  { %3933 = vmatpush2.bf16.msra.mxu1 %v13111_v2  ;;  %3893 = vmatprep.subr.bf16.mxu0 %v13116_v6  ;;  %v13177_v2 = vld [vmem:[#allocation5 + $0xfb0] ss:$40 sps:$4 sm:$0xff]   ;;  %v13180_v6 = vld [vmem:[#allocation5 + $0xa60] ss:$40 sps:$4 sm:$0xff]  }
 0x161   :  { %3934 = vmatprep.subr.bf16.mxu1 %v13119_v7  ;;  %v13183_v7 = vld [vmem:[#allocation5 + $0xf60] ss:$40 sps:$4 sm:$0xff]  }
 0x163   :  { %3894 = vmatpush2.bf16.msra.mxu0 %v13114_v10  ;;  %v13191_v10 = vld [vmem:[#allocation5 + $0xf14] ss:$40 sps:$4 sm:$0xff]  }
 0x164   :  { %3935 = vmatpush2.bf16.msra.mxu1 %v13117_v12  ;;  %3895 = vmatprep.subr.bf16.mxu0 %v13122_v13  ;;  %v13186_v12 = vld [vmem:[#allocation5 + $0xa10] ss:$40 sps:$4 sm:$0xff]  }
 0x165   :  { %3936 = vmatprep.subr.bf16.mxu1 %v13125_v14  ;;  %v13189_v13 = vld [vmem:[#allocation5 + $0xf10] ss:$40 sps:$4 sm:$0xff]   ;;  %v13194_v14 = vld [vmem:[#allocation5 + $0xec4] ss:$40 sps:$4 sm:$0xff]  }
 0x167   :  { %3896 = vmatpush2.bf16.msra.mxu0 %v13120_v15  ;;  %v13197_v15 = vld [vmem:[#allocation5 + $0x24c] ss:$40 sps:$4 sm:$0xff]  }
 0x168   :  { %3937 = vmatpush2.bf16.msra.mxu1 %v13123_v16  ;;  %3897 = vmatprep.subr.bf16.mxu0 %v13128_v17  ;;  %v13192_v16 = vld [vmem:[#allocation5 + $0xec0] ss:$40 sps:$4 sm:$0xff]  }
 0x169   :  { %3938 = vmatprep.subr.bf16.mxu1 %v13131_v19  ;;  %v13195_v17 = vld [vmem:[#allocation5 + $0x248] ss:$40 sps:$4 sm:$0xff]   ;;  %v13200_v19 = vld [vmem:[#allocation5 + $0xe74] ss:$40 sps:$4 sm:$0xff]  }
 0x16b   :  { %3898 = vmatpush2.bf16.msra.mxu0 %v13126_v20  ;;  %v13203_v20 = vld [vmem:[#allocation5 + $0x1fc] ss:$40 sps:$4 sm:$0xff]  }
 0x16c   :  { %3939 = vmatpush2.bf16.msra.mxu1 %v13129_v22  ;;  %3899 = vmatprep.subr.bf16.mxu0 %v13134_v23 }
 0x16d   :  { %3940 = vmatprep.subr.bf16.mxu1 %v13137_v24  ;;  %v13198_v24 = vld [vmem:[#allocation5 + $0xe70] ss:$40 sps:$4 sm:$0xff]  }
 0x16f   :  { %3900 = vmatpush2.bf16.msra.mxu0 %v13132_v25  ;;  %v13201_v25 = vld [vmem:[#allocation5 + $0x1f8] ss:$40 sps:$4 sm:$0xff]  }
 0x170   :  { %3941 = vmatpush2.bf16.msra.mxu1 %v13135_v26  ;;  %3901 = vmatprep.subr.bf16.mxu0 %v13140_v27  ;;  %v13206_v27 = vld [vmem:[#allocation5 + $0xe24] ss:$40 sps:$4 sm:$0xff]  }
 0x171   :  { %3942 = vmatprep.subr.bf16.mxu1 %v13143_v28  ;;  %v13209_v28 = vld [vmem:[#allocation5 + $0x1ac] ss:$40 sps:$4 sm:$0xff]  }
 0x173   :  { %3902 = vmatpush2.bf16.msra.mxu0 %v13138_v29 }
 0x174   :  { %3943 = vmatpush2.bf16.msra.mxu1 %v13141_v30  ;;  %3953 = vmatprep.subr.bf16.mxu0 %v13146_v31 }
 0x175   :  { %3994 = vmatprep.subr.bf16.mxu1 %v13149_v32 }
 0x176   :  { %3904 = vmatmul.mubr.bf16.vlgmr.msra.gmra.mxu0 %v15085_v8 }
 0x177   :  { %3945 = vmatmul.mubr.bf16.vlgmr.msra.gmra.mxu1 %v15087_v11  ;;  %v15127_v42 = vpop.f32.mrf.mxu1  ;;  %3954 = vmatpush1.bf16.msra.mxu0 %v13144_v33  ;;  %v13207_v33 = vld [vmem:[#allocation5 + $0x1a8] ss:$40 sps:$4 sm:$0xff]  }
 0x178   :  { %3995 = vmatpush1.bf16.msra.mxu1 %v13147_v35  ;;  %3955 = vmatprep.subr.bf16.mxu0 %v13152_v36  ;;  %v13212_v36 = vld [vmem:[#allocation5 + $0xdd4] ss:$40 sps:$4 sm:$0xff]  }
 0x179   :  { %3996 = vmatprep.subr.bf16.mxu1 %v13155_v37  ;;  %v15129_v46 = vpop.f32.mrf.mxu1  ;;  %4026 = vmatprep.mubr.bf16.mxu1 %v15016_v18  ;;  %v13215_v37 = vld [vmem:[#allocation5 + $0x15c] ss:$40 sps:$4 sm:$0xff]  }
 0x17a   :  { %3985 = vmatprep.mubr.bf16.mxu0 %v15092_v39 }
 0x17b   :  { %v3704_v51 = vpop.f32.mrf.mxu1  ;;  %3956 = vmatpush1.bf16.msra.mxu0 %v13150_v38  ;;  %v13210_v38 = vld [vmem:[#allocation5 + $0xdd0] ss:$40 sps:$4 sm:$0xff]  }
 0x17c   :  { %3997 = vmatpush1.bf16.msra.mxu1 %v13153_v41  ;;  %3957 = vmatprep.subr.bf16.mxu0 %v13158_v44  ;;  %v13213_v41 = vld [vmem:[#allocation5 + $0x158] ss:$40 sps:$4 sm:$0xff]  }
 0x17d   :  { %3998 = vmatprep.subr.bf16.mxu1 %v13161_v45  ;;  %v3705_v55 = vpop.f32.mrf.mxu1  ;;  %v13216_v44 = vld [vmem:[#allocation5 + $0xd80] ss:$40 sps:$4 sm:$0xff]  }
 0x17e   :  { %v13219_v45 = vld [vmem:[#allocation5 + $0x108] ss:$40 sps:$4 sm:$0xff]   ;;  %v13225_v51 = vld [vmem:[#allocation5 + $0xb8] ss:$40 sps:$4 sm:$0xff]  }
 0x17f   :  { %3958 = vmatpush1.bf16.msra.mxu0 %v13156_v49  ;;  %v13227_v49 = vld [vmem:[#allocation5 + $0xbc] ss:$40 sps:$4 sm:$0xff]   ;;  %v13228_v55 = vld [vmem:[#allocation5 + $0xce0] ss:$40 sps:$4 sm:$0xff]  }
 0x180   :  { %3999 = vmatpush1.bf16.msra.mxu1 %v13159_v50  ;;  %3959 = vmatprep.subr.bf16.mxu0 %v13164_v53  ;;  %v13222_v50 = vld [vmem:[#allocation5 + $0xd30] ss:$40 sps:$4 sm:$0xff]   ;;  %v13230_v53 = vld [vmem:[#allocation5 + $0xce4] ss:$40 sps:$4 sm:$0xff]  }
 0x181   :  { %4000 = vmatprep.subr.bf16.mxu1 %v13167_v54  ;;  %v13233_v54 = vld [vmem:[#allocation5 + $0x6c] ss:$40 sps:$4 sm:$0xff]  }
 0x183   :  { %3960 = vmatpush1.bf16.msra.mxu0 %v13162_v56  ;;  %v13231_v56 = vld [vmem:[#allocation5 + $0x68] ss:$40 sps:$4 sm:$0xff]  }
 0x184   :  { %4001 = vmatpush1.bf16.msra.mxu1 %v13165_v57  ;;  %3961 = vmatprep.subr.bf16.mxu0 %v13170_v58  ;;  %v13236_v57 = vld [vmem:[#allocation5 + $0xc94] ss:$40 sps:$4 sm:$0xff]  }
 0x185   :  { %4002 = vmatprep.subr.bf16.mxu1 %v13173_v59  ;;  %v13239_v58 = vld [vmem:[#allocation5 + $0x1c] ss:$40 sps:$4 sm:$0xff]   ;;  %v13234_v59 = vld [vmem:[#allocation5 + $0xc90] ss:$40 sps:$4 sm:$0xff]  }
 0x187   :  { %3962 = vmatpush1.bf16.msra.mxu0 %v13168_v60  ;;  %v13237_v60 = vld [vmem:[#allocation5 + $0x18] ss:$40 sps:$4 sm:$0xff]  }
 0x188   :  { %4003 = vmatpush1.bf16.msra.mxu1 %v13171_v61  ;;  %3963 = vmatprep.subr.bf16.mxu0 %v13176_v62  ;;  %v13242_v61 = vld [vmem:[#allocation5 + $0x4cc] ss:$40 sps:$4 sm:$0xff]  }
 0x189   :  { %4004 = vmatprep.subr.bf16.mxu1 %v13179_v0  ;;  %v13245_v62 = vld [vmem:[#allocation5 + $0x74c] ss:$40 sps:$4 sm:$0xff]   ;;  %v13240_v0 = vld [vmem:[#allocation5 + $0x4c8] ss:$40 sps:$4 sm:$0xff]  }
 0x18b   :  { %3964 = vmatpush1.bf16.msra.mxu0 %v13174_v1  ;;  %v13243_v1 = vld [vmem:[#allocation5 + $0x748] ss:$40 sps:$4 sm:$0xff]  }
 0x18c   :  { %4005 = vmatpush1.bf16.msra.mxu1 %v13177_v2  ;;  %3965 = vmatprep.subr.bf16.mxu0 %v13182_v3  ;;  %v13248_v2 = vld [vmem:[#allocation5 + $0x47c] ss:$40 sps:$4 sm:$0xff]  }
 0x18d   :  { %4006 = vmatprep.subr.bf16.mxu1 %v13185_v5  ;;  %v13251_v3 = vld [vmem:[#allocation5 + $0x6fc] ss:$40 sps:$4 sm:$0xff]   ;;  %v13246_v5 = vld [vmem:[#allocation5 + $0x478] ss:$40 sps:$4 sm:$0xff]  }
 0x18f   :  { %3966 = vmatpush1.bf16.msra.mxu0 %v13180_v6  ;;  %v13249_v6 = vld [vmem:[#allocation5 + $0x6f8] ss:$40 sps:$4 sm:$0xff]  }
 0x190   :  { %4007 = vmatpush1.bf16.msra.mxu1 %v13183_v7  ;;  %3967 = vmatprep.subr.bf16.mxu0 %v13188_v9  ;;  %v13254_v9 = vld [vmem:[#allocation5 + $0x42c] ss:$40 sps:$4 sm:$0xff]  }
 0x191   :  { %4008 = vmatprep.subr.bf16.mxu1 %v13191_v10  ;;  %v13257_v10 = vld [vmem:[#allocation5 + $0x6ac] ss:$40 sps:$4 sm:$0xff]  }
 0x193   :  { %3968 = vmatpush1.bf16.msra.mxu0 %v13186_v12 }
 0x194   :  { %4009 = vmatpush1.bf16.msra.mxu1 %v13189_v13  ;;  %3969 = vmatprep.subr.bf16.mxu0 %v13194_v14  ;;  %v13252_v13 = vld [vmem:[#allocation5 + $0x428] ss:$40 sps:$4 sm:$0xff]  }
 0x195   :  { %4035 = vmatprep.subr.bf16.mxu1 %v13197_v15  ;;  %v13255_v14 = vld [vmem:[#allocation5 + $0x6a8] ss:$40 sps:$4 sm:$0xff]  }
 0x196   :  { %v3659_v22 = vpop.f32.mrf.mxu0 }
 0x197   :  { %4027 = vmatmul.mubr.bf16.vlgmr.msra.gmra.mxu1 %v15095_v47  ;;  %v3660_v23 = vadd.f32 %v3659_v22, %v15121_v63  ;;  %3970 = vmatpush2.bf16.msra.mxu0 %v13192_v16  ;;  %v13204_v63 = vld [vmem:[#allocation5 + $0xe20] ss:$40 sps:$4 sm:$0xff]   ;;  %v13260_v16 = vld [vmem:[#allocation5 + $0x3dc] ss:$40 sps:$4 sm:$0xff]  }
 0x198   :  { %4036 = vmatpush1.bf16.msra.mxu1 %v13195_v17  ;;  %v3661_v26 = vpop.f32.mrf.mxu0  ;;  %3971 = vmatprep.subr.bf16.mxu0 %v13200_v19  ;;  %v13263_v17 = vld [vmem:[#allocation5 + $0x65c] ss:$40 sps:$4 sm:$0xff]   ;;  %v13261_v22 = vld [vmem:[#allocation5 + $0x658] ss:$40 sps:$4 sm:$0xff]  }
 0x199   :  { %4037 = vmatprep.subr.bf16.mxu1 %v13203_v20  ;;  %v15136_v29 = vadd.f32 %v15127_v42, %v3660_v23  ;;  %v3662_v30 = vadd.f32 %v3661_v26, %v15123_v4  ;;  %4067 = vmatprep.mubr.bf16.mxu1 %v15079_v48  ;;  %v13218_v4 = vld [vmem:[#allocation5 + $0xd84] ss:$40 sps:$4 sm:$0xff]   ;;  %v13258_v20 = vld [vmem:[#allocation5 + $0x3d8] ss:$40 sps:$4 sm:$0xff]   ;;  %v13267_v26 = vld [vmem:[#allocation5 + $0x608] ss:$40 sps:$4 sm:$0xff]  }
 0x19a   :  { %v3663_v31 = vpop.f32.mrf.mxu0  ;;  %v13221_v42 = vld [vmem:[#allocation5 + $0x10c] ss:$40 sps:$4 sm:$0xff]  }
 0x19b   :  { %v15141_v32 = vadd.f32 %v15129_v46, %v3662_v30  ;;  %3972 = vmatpush2.bf16.msra.mxu0 %v13198_v24  ;;  %v13224_v46 = vld [vmem:[#allocation5 + $0xd34] ss:$40 sps:$4 sm:$0xff]   ;;  %v13270_v30 = vld [vmem:[#allocation5 + $0x338] ss:$40 sps:$4 sm:$0xff]  }
 0x19c   :  { %4038 = vmatpush1.bf16.msra.mxu1 %v13201_v25  ;;  %v3664_v35 = vpop.f32.mrf.mxu0  ;;  %3973 = vmatprep.subr.bf16.mxu0 %v13206_v27  ;;  %v13266_v23 = vld [vmem:[#allocation5 + $0x38c] ss:$40 sps:$4 sm:$0xff]   ;;  %v13264_v25 = vld [vmem:[#allocation5 + $0x388] ss:$40 sps:$4 sm:$0xff]   ;;  %v13272_v27 = vld [vmem:[#allocation5 + $0x33c] ss:$40 sps:$4 sm:$0xff]  }
 0x19d   :  { %4039 = vmatprep.subr.bf16.mxu1 %v13209_v28  ;;  %v13269_v24 = vld [vmem:[#allocation5 + $0x60c] ss:$40 sps:$4 sm:$0xff]   ;;  %v13275_v28 = vld [vmem:[#allocation5 + $0x5bc] ss:$40 sps:$4 sm:$0xff]   ;;  %v13273_v31 = vld [vmem:[#allocation5 + $0x5b8] ss:$40 sps:$4 sm:$0xff]  }
 0x19e   :  { %v13276_v35 = vld [vmem:[#allocation5 + $0x2e8] ss:$40 sps:$4 sm:$0xff]  }
 0x19f   :  { %3974 = vmatpush2.bf16.msra.mxu0 %v13204_v63  ;;  %v13278_v63 = vld [vmem:[#allocation5 + $0x2ec] ss:$40 sps:$4 sm:$0xff]  }
 0x1a0   :  { %4040 = vmatpush1.bf16.msra.mxu1 %v13207_v33  ;;  %3975 = vmatprep.subr.bf16.mxu0 %v13212_v36  ;;  %v13281_v33 = vld [vmem:[#allocation5 + $0x56c] ss:$40 sps:$4 sm:$0xff]   ;;  %v13279_v36 = vld [vmem:[#allocation5 + $0x568] ss:$40 sps:$4 sm:$0xff]  }
 0x1a1   :  { %4041 = vmatprep.subr.bf16.mxu1 %v13215_v37  ;;  %v703_v37 = vsub.s32 2, %v15111_v34 }
 0x1a3   :  { %3976 = vmatpush2.bf16.msra.mxu0 %v13210_v38  ;;  %v13284_v38 = vld [vmem:[#allocation5 + $0x29c] ss:$40 sps:$4 sm:$0xff]  }
 0x1a4   :  { %4042 = vmatpush1.bf16.msra.mxu1 %v13213_v41  ;;  %3977 = vmatprep.subr.bf16.mxu0 %v13218_v4  ;;  %v13287_v41 = vld [vmem:[#allocation5 + $0x51c] ss:$40 sps:$4 sm:$0xff]   ;;  %v707_v4 = vsub.s32 3, %v15111_v34 }
 0x1a5   :  { %4043 = vmatprep.subr.bf16.mxu1 %v13221_v42  ;;  %v13282_v42 = vld [vmem:[#allocation5 + $0x298] ss:$40 sps:$4 sm:$0xff]  }
 0x1a7   :  { %3978 = vmatpush2.bf16.msra.mxu0 %v13216_v44  ;;  %v13285_v44 = vld [vmem:[#allocation5 + $0x518] ss:$40 sps:$4 sm:$0xff]  }
 0x1a8   :  { %4044 = vmatpush1.bf16.msra.mxu1 %v13219_v45  ;;  %3979 = vmatprep.subr.bf16.mxu0 %v13224_v46  ;;  %v15151_v45 = vld [vmem:[#allocation7] sm:$0xff] }
 0x1a9   :  { %4045 = vmatprep.subr.bf16.mxu1 %v13227_v49  ;;  %v704_v46 = vrot.slane %v15151_v45, %v703_v37  ;;  %v13290_v49 = vld [vmem:[#allocation5 + $0x9cc] ss:$40 sps:$4 sm:$0xff]  }
 0x1ab   :  { %3980 = vmatpush2.bf16.msra.mxu0 %v13222_v50  ;;  %v13293_v50 = vld [vmem:[#allocation5 + $0xc4c] ss:$40 sps:$4 sm:$0xff]  }
 0x1ac   :  { %4046 = vmatpush1.bf16.msra.mxu1 %v13225_v51  ;;  %3981 = vmatprep.subr.bf16.mxu0 %v13230_v53  ;;  %v708_v51 = vrot.slane %v15151_v45, %v707_v4  ;;  %v13288_v53 = vld [vmem:[#allocation5 + $0x9c8] ss:$40 sps:$4 sm:$0xff]  }
 0x1ad   :  { %4047 = vmatprep.subr.bf16.mxu1 %v13233_v54  ;;  %v13291_v54 = vld [vmem:[#allocation5 + $0xc48] ss:$40 sps:$4 sm:$0xff]  }
 0x1af   :  { %3982 = vmatpush2.bf16.msra.mxu0 %v13228_v55 }
 0x1b0   :  { %4048 = vmatpush1.bf16.msra.mxu1 %v13231_v56  ;;  %3983 = vmatprep.subr.bf16.mxu0 %v13236_v57  ;;  %v13296_v56 = vld [vmem:[#allocation5 + $0x97c] ss:$40 sps:$4 sm:$0xff]  }
 0x1b1   :  { %4049 = vmatprep.subr.bf16.mxu1 %v13239_v58  ;;  %v13299_v57 = vld [vmem:[#allocation5 + $0xbfc] ss:$40 sps:$4 sm:$0xff]  }
 0x1b3   :  { %3984 = vmatpush2.bf16.msra.mxu0 %v13234_v59 }
 0x1b4   :  { %4050 = vmatpush1.bf16.msra.mxu1 %v13237_v60  ;;  %4076 = vmatprep.subr.bf16.mxu0 %v13245_v62  ;;  %v13297_v62 = vld [vmem:[#allocation5 + $0xbf8] ss:$40 sps:$4 sm:$0xff]  }
 0x1b5   :  { %4051 = vmatprep.subr.bf16.mxu1 %v13242_v61  ;;  %v13294_v61 = vld [vmem:[#allocation5 + $0x978] ss:$40 sps:$4 sm:$0xff]  }
 0x1b6   :  { %3986 = vmatmul.mubr.bf16.vlgmr.msra.gmra.mxu0 %v15099_v21 }
 0x1b7   :  { %v15144_v7 = vpop.f32.mrf.mxu1  ;;  %4077 = vmatpush1.bf16.msra.mxu0 %v13243_v1  ;;  %4108 = vmatprep.mubr.bf16.mxu0 %v15081_v52  ;;  %v13302_v1 = vld [vmem:[#allocation5 + $0x92c] ss:$40 sps:$4 sm:$0xff]  }
 0x1b8   :  { %4052 = vmatpush2.bf16.msra.mxu1 %v13240_v0  ;;  %4078 = vmatprep.subr.bf16.mxu0 %v13251_v3  ;;  %v3742_v55 = vadd.f32 %v15144_v7, %v704_v46  ;;  %v13303_v7 = vld [vmem:[#allocation5 + $0xba8] ss:$40 sps:$4 sm:$0xff]   ;;  %v13342_v46 = vld [vmem:[#allocation5 + $0xe78] ss:$40 sps:$4 sm:$0xff]  }
 0x1b9   :  { %4053 = vmatprep.subr.bf16.mxu1 %v13248_v2  ;;  %v15146_v12 = vpop.f32.mrf.mxu1  ;;  %v13305_v2 = vld [vmem:[#allocation5 + $0xbac] ss:$40 sps:$4 sm:$0xff]  }
 0x1ba   :  { %v3744_v58 = vadd.f32 %v15146_v12, %v708_v51  ;;  %v13311_v12 = vld [vmem:[#allocation5 + $0xb5c] ss:$40 sps:$4 sm:$0xff]  }
 0x1bb   :  { %v3745_v15 = vpop.f32.mrf.mxu1  ;;  %4079 = vmatpush1.bf16.msra.mxu0 %v13249_v6  ;;  %v13300_v6 = vld [vmem:[#allocation5 + $0x928] ss:$40 sps:$4 sm:$0xff]  }
 0x1bc   :  { %4054 = vmatpush2.bf16.msra.mxu1 %v13246_v5  ;;  %4080 = vmatprep.subr.bf16.mxu0 %v13257_v10  ;;  %v13308_v10 = vld [vmem:[#allocation5 + $0x8dc] ss:$40 sps:$4 sm:$0xff]   ;;  %v13314_v15 = vld [vmem:[#allocation5 + $0x88c] ss:$40 sps:$4 sm:$0xff]  }
 0x1bd   :  { %4055 = vmatprep.subr.bf16.mxu1 %v13254_v9  ;;  %v3746_v19 = vpop.f32.mrf.mxu1 }
 0x1be   :  { %v13315_v19 = vld [vmem:[#allocation5 + $0xb08] ss:$40 sps:$4 sm:$0xff]  }
 0x1bf   :  { %4081 = vmatpush1.bf16.msra.mxu0 %v13255_v14  ;;  %v13309_v14 = vld [vmem:[#allocation5 + $0xb58] ss:$40 sps:$4 sm:$0xff]  }
 0x1c0   :  { %4056 = vmatpush2.bf16.msra.mxu1 %v13252_v13  ;;  %4082 = vmatprep.subr.bf16.mxu0 %v13263_v17  ;;  %v13306_v13 = vld [vmem:[#allocation5 + $0x8d8] ss:$40 sps:$4 sm:$0xff]   ;;  %v13312_v17 = vld [vmem:[#allocation5 + $0x888] ss:$40 sps:$4 sm:$0xff]  }
 0x1c1   :  { %4057 = vmatprep.subr.bf16.mxu1 %v13260_v16  ;;  %v13317_v16 = vld [vmem:[#allocation5 + $0xb0c] ss:$40 sps:$4 sm:$0xff]  }
 0x1c3   :  { %4083 = vmatpush1.bf16.msra.mxu0 %v13261_v22  ;;  %v13323_v22 = vld [vmem:[#allocation5 + $0xabc] ss:$40 sps:$4 sm:$0xff]  }
 0x1c4   :  { %4058 = vmatpush2.bf16.msra.mxu1 %v13258_v20  ;;  %4084 = vmatprep.subr.bf16.mxu0 %v13269_v24  ;;  %v13320_v20 = vld [vmem:[#allocation5 + $0x83c] ss:$40 sps:$4 sm:$0xff]   ;;  %v13321_v24 = vld [vmem:[#allocation5 + $0xab8] ss:$40 sps:$4 sm:$0xff]  }
 0x1c5   :  { %4059 = vmatprep.subr.bf16.mxu1 %v13266_v23  ;;  %v13318_v23 = vld [vmem:[#allocation5 + $0x838] ss:$40 sps:$4 sm:$0xff]  }
 0x1c7   :  { %4085 = vmatpush1.bf16.msra.mxu0 %v13267_v26  ;;  %v13329_v26 = vld [vmem:[#allocation5 + $0xa6c] ss:$40 sps:$4 sm:$0xff]  }
 0x1c8   :  { %4060 = vmatpush2.bf16.msra.mxu1 %v13264_v25  ;;  %4086 = vmatprep.subr.bf16.mxu0 %v13275_v28  ;;  %v13326_v25 = vld [vmem:[#allocation5 + $0x7ec] ss:$40 sps:$4 sm:$0xff]   ;;  %v13327_v28 = vld [vmem:[#allocation5 + $0xa68] ss:$40 sps:$4 sm:$0xff]  }
 0x1c9   :  { %4061 = vmatprep.subr.bf16.mxu1 %v13272_v27  ;;  %v13324_v27 = vld [vmem:[#allocation5 + $0x7e8] ss:$40 sps:$4 sm:$0xff]  }
 0x1cb   :  { %4087 = vmatpush1.bf16.msra.mxu0 %v13273_v31  ;;  %v13335_v31 = vld [vmem:[#allocation5 + $0xa1c] ss:$40 sps:$4 sm:$0xff]  }
 0x1cc   :  { %4062 = vmatpush2.bf16.msra.mxu1 %v13270_v30  ;;  %4088 = vmatprep.subr.bf16.mxu0 %v13281_v33  ;;  %v13332_v30 = vld [vmem:[#allocation5 + $0x79c] ss:$40 sps:$4 sm:$0xff]   ;;  %v13333_v33 = vld [vmem:[#allocation5 + $0xa18] ss:$40 sps:$4 sm:$0xff]  }
 0x1cd   :  { %4063 = vmatprep.subr.bf16.mxu1 %v13278_v63  ;;  %v13330_v63 = vld [vmem:[#allocation5 + $0x798] ss:$40 sps:$4 sm:$0xff]  }
 0x1cf   :  { %4089 = vmatpush1.bf16.msra.mxu0 %v13279_v36  ;;  %v13341_v36 = vld [vmem:[#allocation5 + $0x114c] ss:$40 sps:$4 sm:$0xff]  }
 0x1d0   :  { %4064 = vmatpush2.bf16.msra.mxu1 %v13276_v35  ;;  %4090 = vmatprep.subr.bf16.mxu0 %v13287_v41  ;;  %v13338_v35 = vld [vmem:[#allocation5 + $0xecc] ss:$40 sps:$4 sm:$0xff]   ;;  %v13339_v41 = vld [vmem:[#allocation5 + $0x1148] ss:$40 sps:$4 sm:$0xff]  }
 0x1d1   :  { %4065 = vmatprep.subr.bf16.mxu1 %v13284_v38  ;;  %v13336_v38 = vld [vmem:[#allocation5 + $0xec8] ss:$40 sps:$4 sm:$0xff]  }
 0x1d3   :  { %4091 = vmatpush1.bf16.msra.mxu0 %v13285_v44  ;;  %v13347_v44 = vld [vmem:[#allocation5 + $0x10fc] ss:$40 sps:$4 sm:$0xff]  }
 0x1d4   :  { %4066 = vmatpush2.bf16.msra.mxu1 %v13282_v42  ;;  %4092 = vmatprep.subr.bf16.mxu0 %v13290_v49  ;;  %v13344_v42 = vld [vmem:[#allocation5 + $0xe7c] ss:$40 sps:$4 sm:$0xff]   ;;  %v13345_v49 = vld [vmem:[#allocation5 + $0x10f8] ss:$40 sps:$4 sm:$0xff]  }
 0x1d5   :  { %4117 = vmatprep.subr.bf16.mxu1 %v13293_v50 }
 0x1d6   :  { %v3782_v59 = vpop.f32.mrf.mxu0 }
 0x1d7   :  { %4068 = vmatmul.mubr.bf16.vlgmr.msra.gmra.mxu1 %v15085_v8  ;;  %v15162_v60 = vadd.f32 %v3782_v59, %v3742_v55  ;;  %4093 = vmatpush2.bf16.msra.mxu0 %v13288_v53  ;;  %v13350_v53 = vld [vmem:[#allocation5 + $0xe2c] ss:$40 sps:$4 sm:$0xff]  }
 0x1d8   :  { %4118 = vmatpush1.bf16.msra.mxu1 %v13291_v54  ;;  %v3784_v0 = vpop.f32.mrf.mxu0  ;;  %4094 = vmatprep.subr.bf16.mxu0 %v13296_v56  ;;  %v13353_v54 = vld [vmem:[#allocation5 + $0x10ac] ss:$40 sps:$4 sm:$0xff]  }
 0x1d9   :  { %4119 = vmatprep.subr.bf16.mxu1 %v13299_v57  ;;  %v15164_v3 = vadd.f32 %v3784_v0, %v3744_v58  ;;  %4149 = vmatprep.mubr.bf16.mxu1 %v15092_v39 }
 0x1da   :  { %v3786_v5 = vpop.f32.mrf.mxu0 }
 0x1db   :  { %4095 = vmatpush2.bf16.msra.mxu0 %v13294_v61  ;;  %v13348_v61 = vld [vmem:[#allocation5 + $0xe28] ss:$40 sps:$4 sm:$0xff]  }
 0x1dc   :  { %4120 = vmatpush1.bf16.msra.mxu1 %v13297_v62  ;;  %v3787_v9 = vpop.f32.mrf.mxu0  ;;  %4096 = vmatprep.subr.bf16.mxu0 %v13302_v1  ;;  %v13351_v62 = vld [vmem:[#allocation5 + $0x10a8] ss:$40 sps:$4 sm:$0xff]   ;;  %v13356_v1 = vld [vmem:[#allocation5 + $0xddc] ss:$40 sps:$4 sm:$0xff]  }
 0x1dd   :  { %4121 = vmatprep.subr.bf16.mxu1 %v13305_v2  ;;  %v13359_v2 = vld [vmem:[#allocation5 + $0x105c] ss:$40 sps:$4 sm:$0xff]   ;;  %v13354_v9 = vld [vmem:[#allocation5 + $0xdd8] ss:$40 sps:$4 sm:$0xff]  }
 0x1df   :  { %4097 = vmatpush2.bf16.msra.mxu0 %v13300_v6 }
 0x1e0   :  { %4122 = vmatpush1.bf16.msra.mxu1 %v13303_v7  ;;  %4098 = vmatprep.subr.bf16.mxu0 %v13308_v10  ;;  %v13362_v10 = vld [vmem:[#allocation5 + $0xd8c] ss:$40 sps:$4 sm:$0xff]  }
 0x1e1   :  { %4123 = vmatprep.subr.bf16.mxu1 %v13311_v12  ;;  %v13365_v12 = vld [vmem:[#allocation5 + $0x100c] ss:$40 sps:$4 sm:$0xff]  }
 0x1e3   :  { %4099 = vmatpush2.bf16.msra.mxu0 %v13306_v13  ;;  %v13360_v13 = vld [vmem:[#allocation5 + $0xd88] ss:$40 sps:$4 sm:$0xff]  }
 0x1e4   :  { %4124 = vmatpush1.bf16.msra.mxu1 %v13309_v14  ;;  %4100 = vmatprep.subr.bf16.mxu0 %v13314_v15  ;;  %v13363_v14 = vld [vmem:[#allocation5 + $0x1008] ss:$40 sps:$4 sm:$0xff]   ;;  %v13368_v15 = vld [vmem:[#allocation5 + $0xd3c] ss:$40 sps:$4 sm:$0xff]  }
 0x1e5   :  { %4125 = vmatprep.subr.bf16.mxu1 %v13317_v16  ;;  %v13371_v16 = vld [vmem:[#allocation5 + $0xfbc] ss:$40 sps:$4 sm:$0xff]  }
 0x1e7   :  { %4101 = vmatpush2.bf16.msra.mxu0 %v13312_v17  ;;  %v13366_v17 = vld [vmem:[#allocation5 + $0xd38] ss:$40 sps:$4 sm:$0xff]  }
 0x1e8   :  { %4126 = vmatpush1.bf16.msra.mxu1 %v13315_v19  ;;  %4102 = vmatprep.subr.bf16.mxu0 %v13320_v20  ;;  %v13369_v19 = vld [vmem:[#allocation5 + $0xfb8] ss:$40 sps:$4 sm:$0xff]   ;;  %v13374_v20 = vld [vmem:[#allocation5 + $0xcec] ss:$40 sps:$4 sm:$0xff]  }
 0x1e9   :  { %4127 = vmatprep.subr.bf16.mxu1 %v13323_v22  ;;  %v13377_v22 = vld [vmem:[#allocation5 + $0xf6c] ss:$40 sps:$4 sm:$0xff]  }
 0x1eb   :  { %4103 = vmatpush2.bf16.msra.mxu0 %v13318_v23  ;;  %v13372_v23 = vld [vmem:[#allocation5 + $0xce8] ss:$40 sps:$4 sm:$0xff]  }
 0x1ec   :  { %4128 = vmatpush1.bf16.msra.mxu1 %v13321_v24  ;;  %4104 = vmatprep.subr.bf16.mxu0 %v13326_v25  ;;  %v13375_v24 = vld [vmem:[#allocation5 + $0xf68] ss:$40 sps:$4 sm:$0xff]   ;;  %v13380_v25 = vld [vmem:[#allocation5 + $0xc9c] ss:$40 sps:$4 sm:$0xff]  }
 0x1ed   :  { %4129 = vmatprep.subr.bf16.mxu1 %v13329_v26  ;;  %v13383_v26 = vld [vmem:[#allocation5 + $0xf1c] ss:$40 sps:$4 sm:$0xff]  }
 0x1ef   :  { %4105 = vmatpush2.bf16.msra.mxu0 %v13324_v27  ;;  %v13378_v27 = vld [vmem:[#allocation5 + $0xc98] ss:$40 sps:$4 sm:$0xff]  }
 0x1f0   :  { %4130 = vmatpush1.bf16.msra.mxu1 %v13327_v28  ;;  %4106 = vmatprep.subr.bf16.mxu0 %v13332_v30  ;;  %v13381_v28 = vld [vmem:[#allocation5 + $0xf18] ss:$40 sps:$4 sm:$0xff]   ;;  %v13386_v30 = vld [vmem:[#allocation5 + $0x254] ss:$40 sps:$4 sm:$0xff]  }
 0x1f1   :  { %4131 = vmatprep.subr.bf16.mxu1 %v13335_v31  ;;  %v13389_v31 = vld [vmem:[#allocation5 + $0x754] ss:$40 sps:$4 sm:$0xff]  }
 0x1f3   :  { %4107 = vmatpush2.bf16.msra.mxu0 %v13330_v63  ;;  %v13384_v63 = vld [vmem:[#allocation5 + $0x250] ss:$40 sps:$4 sm:$0xff]  }
 0x1f4   :  { %4132 = vmatpush1.bf16.msra.mxu1 %v13333_v33  ;;  %4158 = vmatprep.subr.bf16.mxu0 %v13341_v36  ;;  %v13387_v33 = vld [vmem:[#allocation5 + $0x750] ss:$40 sps:$4 sm:$0xff]   ;;  %v13395_v36 = vld [vmem:[#allocation5 + $0x704] ss:$40 sps:$4 sm:$0xff]  }
 0x1f5   :  { %4133 = vmatprep.subr.bf16.mxu1 %v13338_v35  ;;  %v13392_v35 = vld [vmem:[#allocation5 + $0x204] ss:$40 sps:$4 sm:$0xff]  }
 0x1f6   :  { %v3864_v51 = vpop.f32.mrf.mxu0  ;;  %4109 = vmatmul.mubr.bf16.vlgmr.msra.gmra.mxu0 %v15087_v11 }
 0x1f7   :  { %v3823_v50 = vpop.f32.mrf.mxu1  ;;  %4159 = vmatpush1.bf16.msra.mxu0 %v13339_v41  ;;  %4190 = vmatprep.mubr.bf16.mxu0 %v15016_v18  ;;  %v13393_v41 = vld [vmem:[#allocation5 + $0x700] ss:$40 sps:$4 sm:$0xff]  }
 0x1f8   :  { %v3824_v55 = vadd.f32 %v3823_v50, %v15162_v60  ;;  %4134 = vmatpush2.bf16.msra.mxu1 %v13336_v38  ;;  %v3866_v57 = vpop.f32.mrf.mxu0  ;;  %4160 = vmatprep.subr.bf16.mxu0 %v13347_v44  ;;  %v13390_v38 = vld [vmem:[#allocation5 + $0x200] ss:$40 sps:$4 sm:$0xff]   ;;  %v13401_v44 = vld [vmem:[#allocation5 + $0x6b4] ss:$40 sps:$4 sm:$0xff]   ;;  %v13404_v50 = vld [vmem:[#allocation5 + $0x164] ss:$40 sps:$4 sm:$0xff]  }
 0x1f9   :  { %v3825_v56 = vpop.f32.mrf.mxu1  ;;  %4135 = vmatprep.subr.bf16.mxu1 %v13344_v42  ;;  %v13398_v42 = vld [vmem:[#allocation5 + $0x1b4] ss:$40 sps:$4 sm:$0xff]  }
 0x1fa   :  { %v15169_v58 = vadd.f32 %v3864_v51, %v3824_v55  ;;  %v3826_v59 = vadd.f32 %v3825_v56, %v15164_v3  ;;  %v3868_v0 = vpop.f32.mrf.mxu0  ;;  %v13357_v3 = vld [vmem:[#allocation5 + $0x1058] ss:$40 sps:$4 sm:$0xff]   ;;  %v13407_v51 = vld [vmem:[#allocation5 + $0x664] ss:$40 sps:$4 sm:$0xff]   ;;  %v13410_v55 = vld [vmem:[#allocation5 + $0x114] ss:$40 sps:$4 sm:$0xff]  }
 0x1fb   :  { %v3827_v5 = vpop.f32.mrf.mxu1  ;;  %4161 = vmatpush1.bf16.msra.mxu0 %v13345_v49  ;;  %v13399_v49 = vld [vmem:[#allocation5 + $0x6b0] ss:$40 sps:$4 sm:$0xff]   ;;  %v13413_v56 = vld [vmem:[#allocation5 + $0x614] ss:$40 sps:$4 sm:$0xff]  }
 0x1fc   :  { %v15173_v6 = vadd.f32 %v3866_v57, %v3826_v59  ;;  %4136 = vmatpush2.bf16.msra.mxu1 %v13342_v46  ;;  %v3869_v60 = vpop.f32.mrf.mxu0  ;;  %4162 = vmatprep.subr.bf16.mxu0 %v13353_v54  ;;  %v13396_v46 = vld [vmem:[#allocation5 + $0x1b0] ss:$40 sps:$4 sm:$0xff]   ;;  %v13405_v54 = vld [vmem:[#allocation5 + $0x660] ss:$40 sps:$4 sm:$0xff]   ;;  %v13416_v57 = vld [vmem:[#allocation5 + $0xc4] ss:$40 sps:$4 sm:$0xff]  }
 0x1fd   :  { %4137 = vmatprep.subr.bf16.mxu1 %v13350_v53  ;;  %v3828_v7 = vpop.f32.mrf.mxu1  ;;  %v13402_v53 = vld [vmem:[#allocation5 + $0x160] ss:$40 sps:$4 sm:$0xff]   ;;  %v13419_v59 = vld [vmem:[#allocation5 + $0x5c4] ss:$40 sps:$4 sm:$0xff]   ;;  %v13422_v0 = vld [vmem:[#allocation5 + $0x74] ss:$40 sps:$4 sm:$0xff]  }
 0x1fe   :  { %v13423_v5 = vld [vmem:[#allocation5 + $0x570] ss:$40 sps:$4 sm:$0xff]   ;;  %v13428_v60 = vld [vmem:[#allocation5 + $0x24] ss:$40 sps:$4 sm:$0xff]  }
 0x1ff   :  { %4163 = vmatpush1.bf16.msra.mxu0 %v13351_v62  ;;  %v13417_v62 = vld [vmem:[#allocation5 + $0x5c0] ss:$40 sps:$4 sm:$0xff]   ;;  %v13431_v7 = vld [vmem:[#allocation5 + $0x524] ss:$40 sps:$4 sm:$0xff]  }
 0x200   :  { %4138 = vmatpush2.bf16.msra.mxu1 %v13348_v61  ;;  %4164 = vmatprep.subr.bf16.mxu0 %v13359_v2  ;;  %v13414_v61 = vld [vmem:[#allocation5 + $0xc0] ss:$40 sps:$4 sm:$0xff]   ;;  %v13420_v2 = vld [vmem:[#allocation5 + $0x70] ss:$40 sps:$4 sm:$0xff]  }
 0x201   :  { %4139 = vmatprep.subr.bf16.mxu1 %v13356_v1  ;;  %v13425_v1 = vld [vmem:[#allocation5 + $0x574] ss:$40 sps:$4 sm:$0xff]  }
 0x203   :  { %4165 = vmatpush1.bf16.msra.mxu0 %v13357_v3  ;;  %v13429_v3 = vld [vmem:[#allocation5 + $0x520] ss:$40 sps:$4 sm:$0xff]  }
 0x204   :  { %4140 = vmatpush2.bf16.msra.mxu1 %v13354_v9  ;;  %4166 = vmatprep.subr.bf16.mxu0 %v13365_v12  ;;  %v13426_v9 = vld [vmem:[#allocation5 + $0x20] ss:$40 sps:$4 sm:$0xff]   ;;  %v13434_v12 = vld [vmem:[#allocation5 + $0x4d4] ss:$40 sps:$4 sm:$0xff]  }
 0x205   :  { %4141 = vmatprep.subr.bf16.mxu1 %v13362_v10  ;;  %v711_v10 = vsub.s32 4, %v15111_v34 }
 0x207   :  { %4167 = vmatpush1.bf16.msra.mxu0 %v13363_v14  ;;  %v13432_v14 = vld [vmem:[#allocation5 + $0x4d0] ss:$40 sps:$4 sm:$0xff]  }
 0x208   :  { %4142 = vmatpush2.bf16.msra.mxu1 %v13360_v13  ;;  %4168 = vmatprep.subr.bf16.mxu0 %v13371_v16  ;;  %v13437_v13 = vld [vmem:[#allocation5 + $0x9d4] ss:$40 sps:$4 sm:$0xff]   ;;  %v715_v16 = vsub.s32 5, %v15111_v34 }
 0x209   :  { %4143 = vmatprep.subr.bf16.mxu1 %v13368_v15  ;;  %v13435_v15 = vld [vmem:[#allocation5 + $0x9d0] ss:$40 sps:$4 sm:$0xff]  }
 0x20b   :  { %4169 = vmatpush1.bf16.msra.mxu0 %v13369_v19  ;;  %v13443_v19 = vld [vmem:[#allocation5 + $0x984] ss:$40 sps:$4 sm:$0xff]  }
 0x20c   :  { %4144 = vmatpush2.bf16.msra.mxu1 %v13366_v17  ;;  %4170 = vmatprep.subr.bf16.mxu0 %v13377_v22  ;;  %v13440_v17 = vld [vmem:[#allocation5 + $0x484] ss:$40 sps:$4 sm:$0xff]   ;;  %v716_v22 = vrot.slane %v15151_v45, %v715_v16 }
 0x20d   :  { %4145 = vmatprep.subr.bf16.mxu1 %v13374_v20  ;;  %v712_v20 = vrot.slane %v15151_v45, %v711_v10 }
 0x20f   :  { %4171 = vmatpush1.bf16.msra.mxu0 %v13375_v24  ;;  %v13441_v24 = vld [vmem:[#allocation5 + $0x980] ss:$40 sps:$4 sm:$0xff]  }
 0x210   :  { %4146 = vmatpush2.bf16.msra.mxu1 %v13372_v23  ;;  %4172 = vmatprep.subr.bf16.mxu0 %v13383_v26  ;;  %v13438_v23 = vld [vmem:[#allocation5 + $0x480] ss:$40 sps:$4 sm:$0xff]  }
 0x211   :  { %4147 = vmatprep.subr.bf16.mxu1 %v13380_v25 }
 0x213   :  { %4173 = vmatpush1.bf16.msra.mxu0 %v13381_v28  ;;  %v13449_v28 = vld [vmem:[#allocation5 + $0x934] ss:$40 sps:$4 sm:$0xff]  }
 0x214   :  { %4148 = vmatpush2.bf16.msra.mxu1 %v13378_v27  ;;  %4199 = vmatprep.subr.bf16.mxu0 %v13386_v30  ;;  %v13446_v27 = vld [vmem:[#allocation5 + $0x434] ss:$40 sps:$4 sm:$0xff]  }
 0x215   :  { %4240 = vmatprep.subr.bf16.mxu1 %v13389_v31 }
 0x216   :  { %4191 = vmatmul.mubr.bf16.vlgmr.msra.gmra.mxu0 %v15095_v47 }
 0x217   :  { %4150 = vmatmul.mubr.bf16.vlgmr.msra.gmra.mxu1 %v15099_v21  ;;  %4200 = vmatpush1.bf16.msra.mxu0 %v13384_v63 }
 0x218   :  { %4241 = vmatpush1.bf16.msra.mxu1 %v13387_v33  ;;  %4201 = vmatprep.subr.bf16.mxu0 %v13392_v35 }
 0x219   :  { %4242 = vmatprep.subr.bf16.mxu1 %v13395_v36  ;;  %4231 = vmatprep.mubr.bf16.mxu0 %v15079_v48  ;;  %v13408_v48 = vld [vmem:[#allocation5 + $0x110] ss:$40 sps:$4 sm:$0xff]  }
 0x21a   :  { %4272 = vmatprep.mubr.bf16.mxu1 %v15081_v52  ;;  %v13411_v52 = vld [vmem:[#allocation5 + $0x610] ss:$40 sps:$4 sm:$0xff]  }
 0x21b   :  { %4202 = vmatpush1.bf16.msra.mxu0 %v13390_v38  ;;  %v13444_v38 = vld [vmem:[#allocation5 + $0x430] ss:$40 sps:$4 sm:$0xff]  }
 0x21c   :  { %4243 = vmatpush1.bf16.msra.mxu1 %v13393_v41  ;;  %4203 = vmatprep.subr.bf16.mxu0 %v13398_v42  ;;  %v13447_v41 = vld [vmem:[#allocation5 + $0x930] ss:$40 sps:$4 sm:$0xff]  }
 0x21d   :  { %4244 = vmatprep.subr.bf16.mxu1 %v13401_v44 }
 0x21f   :  { %4204 = vmatpush1.bf16.msra.mxu0 %v13396_v46  ;;  %v13452_v46 = vld [vmem:[#allocation5 + $0x3e4] ss:$40 sps:$4 sm:$0xff]  }
 0x220   :  { %4245 = vmatpush1.bf16.msra.mxu1 %v13399_v49  ;;  %4205 = vmatprep.subr.bf16.mxu0 %v13404_v50  ;;  %v13455_v49 = vld [vmem:[#allocation5 + $0x8e4] ss:$40 sps:$4 sm:$0xff]  }
 0x221   :  { %4246 = vmatprep.subr.bf16.mxu1 %v13407_v51  ;;  %v13450_v51 = vld [vmem:[#allocation5 + $0x3e0] ss:$40 sps:$4 sm:$0xff]  }
 0x223   :  { %4206 = vmatpush1.bf16.msra.mxu0 %v13402_v53  ;;  %v13453_v53 = vld [vmem:[#allocation5 + $0x8e0] ss:$40 sps:$4 sm:$0xff]  }
 0x224   :  { %4247 = vmatpush1.bf16.msra.mxu1 %v13405_v54  ;;  %4207 = vmatprep.subr.bf16.mxu0 %v13410_v55  ;;  %v13458_v54 = vld [vmem:[#allocation5 + $0x394] ss:$40 sps:$4 sm:$0xff]  }
 0x225   :  { %4248 = vmatprep.subr.bf16.mxu1 %v13413_v56  ;;  %v13461_v55 = vld [vmem:[#allocation5 + $0x894] ss:$40 sps:$4 sm:$0xff]   ;;  %v13456_v56 = vld [vmem:[#allocation5 + $0x390] ss:$40 sps:$4 sm:$0xff]  }
 0x227   :  { %4208 = vmatpush1.bf16.msra.mxu0 %v13408_v48  ;;  %v13459_v48 = vld [vmem:[#allocation5 + $0x890] ss:$40 sps:$4 sm:$0xff]  }
 0x228   :  { %4249 = vmatpush1.bf16.msra.mxu1 %v13411_v52  ;;  %4209 = vmatprep.subr.bf16.mxu0 %v13416_v57  ;;  %v13464_v52 = vld [vmem:[#allocation5 + $0x344] ss:$40 sps:$4 sm:$0xff]  }
 0x229   :  { %4250 = vmatprep.subr.bf16.mxu1 %v13419_v59  ;;  %v13467_v57 = vld [vmem:[#allocation5 + $0x844] ss:$40 sps:$4 sm:$0xff]   ;;  %v13462_v59 = vld [vmem:[#allocation5 + $0x340] ss:$40 sps:$4 sm:$0xff]  }
 0x22b   :  { %4210 = vmatpush1.bf16.msra.mxu0 %v13414_v61  ;;  %v13465_v61 = vld [vmem:[#allocation5 + $0x840] ss:$40 sps:$4 sm:$0xff]  }
 0x22c   :  { %4251 = vmatpush1.bf16.msra.mxu1 %v13417_v62  ;;  %4211 = vmatprep.subr.bf16.mxu0 %v13422_v0  ;;  %v13470_v62 = vld [vmem:[#allocation5 + $0x2f4] ss:$40 sps:$4 sm:$0xff]  }
 0x22d   :  { %4252 = vmatprep.subr.bf16.mxu1 %v13425_v1  ;;  %v13473_v0 = vld [vmem:[#allocation5 + $0x7f4] ss:$40 sps:$4 sm:$0xff]   ;;  %v13468_v1 = vld [vmem:[#allocation5 + $0x2f0] ss:$40 sps:$4 sm:$0xff]  }
 0x22f   :  { %4212 = vmatpush1.bf16.msra.mxu0 %v13420_v2  ;;  %v13471_v2 = vld [vmem:[#allocation5 + $0x7f0] ss:$40 sps:$4 sm:$0xff]  }
 0x230   :  { %4253 = vmatpush1.bf16.msra.mxu1 %v13423_v5  ;;  %4213 = vmatprep.subr.bf16.mxu0 %v13428_v60  ;;  %v13476_v5 = vld [vmem:[#allocation5 + $0x2a4] ss:$40 sps:$4 sm:$0xff]  }
 0x231   :  { %4254 = vmatprep.subr.bf16.mxu1 %v13431_v7  ;;  %v13479_v60 = vld [vmem:[#allocation5 + $0x7a4] ss:$40 sps:$4 sm:$0xff]   ;;  %v13474_v7 = vld [vmem:[#allocation5 + $0x2a0] ss:$40 sps:$4 sm:$0xff]  }
 0x233   :  { %4214 = vmatpush1.bf16.msra.mxu0 %v13426_v9  ;;  %v13477_v9 = vld [vmem:[#allocation5 + $0x7a0] ss:$40 sps:$4 sm:$0xff]  }
 0x234   :  { %4255 = vmatpush1.bf16.msra.mxu1 %v13429_v3  ;;  %4215 = vmatprep.subr.bf16.mxu0 %v13434_v12  ;;  %v13482_v3 = vld [vmem:[#allocation5 + $0xc54] ss:$40 sps:$4 sm:$0xff]  }
 0x235   :  { %4256 = vmatprep.subr.bf16.mxu1 %v13437_v13  ;;  %v13485_v12 = vld [vmem:[#allocation5 + $0x1154] ss:$40 sps:$4 sm:$0xff]   ;;  %v13480_v13 = vld [vmem:[#allocation5 + $0xc50] ss:$40 sps:$4 sm:$0xff]  }
 0x236   :  { %v3905_v25 = vpop.f32.mrf.mxu0 }
 0x237   :  { %v3946_v26 = vpop.f32.mrf.mxu1  ;;  %v3906_v30 = vadd.f32 %v3905_v25, %v712_v20  ;;  %4216 = vmatpush2.bf16.msra.mxu0 %v13432_v14  ;;  %v13483_v14 = vld [vmem:[#allocation5 + $0x1150] ss:$40 sps:$4 sm:$0xff]   ;;  %v13489_v20 = vld [vmem:[#allocation5 + $0x1100] ss:$40 sps:$4 sm:$0xff]  }
 0x238   :  { %4257 = vmatpush2.bf16.msra.mxu1 %v13435_v15  ;;  %v3907_v31 = vpop.f32.mrf.mxu0  ;;  %4217 = vmatprep.subr.bf16.mxu0 %v13440_v17  ;;  %v13488_v15 = vld [vmem:[#allocation5 + $0xc04] ss:$40 sps:$4 sm:$0xff]  }
 0x239   :  { %v3948_v63 = vpop.f32.mrf.mxu1  ;;  %4258 = vmatprep.subr.bf16.mxu1 %v13443_v19  ;;  %v3908_v33 = vadd.f32 %v3907_v31, %v716_v22  ;;  %v15187_v35 = vadd.f32 %v3946_v26, %v3906_v30  ;;  %v13491_v17 = vld [vmem:[#allocation5 + $0x1104] ss:$40 sps:$4 sm:$0xff]   ;;  %v13486_v19 = vld [vmem:[#allocation5 + $0xc00] ss:$40 sps:$4 sm:$0xff]   ;;  %v13494_v22 = vld [vmem:[#allocation5 + $0xbb4] ss:$40 sps:$4 sm:$0xff]  }
 0x23a   :  { %v3909_v36 = vpop.f32.mrf.mxu0  ;;  %v13492_v26 = vld [vmem:[#allocation5 + $0xbb0] ss:$40 sps:$4 sm:$0xff]   ;;  %v13498_v31 = vld [vmem:[#allocation5 + $0xb60] ss:$40 sps:$4 sm:$0xff]  }
 0x23b   :  { %v3950_v45 = vpop.f32.mrf.mxu1  ;;  %v15189_v42 = vadd.f32 %v3948_v63, %v3908_v33  ;;  %4218 = vmatpush2.bf16.msra.mxu0 %v13438_v23  ;;  %v13497_v23 = vld [vmem:[#allocation5 + $0x10b4] ss:$40 sps:$4 sm:$0xff]   ;;  %v13501_v63 = vld [vmem:[#allocation5 + $0x1060] ss:$40 sps:$4 sm:$0xff]  }
 0x23c   :  { %4259 = vmatpush2.bf16.msra.mxu1 %v13441_v24  ;;  %v3910_v44 = vpop.f32.mrf.mxu0  ;;  %4219 = vmatprep.subr.bf16.mxu0 %v13446_v27  ;;  %v13495_v27 = vld [vmem:[#allocation5 + $0x10b0] ss:$40 sps:$4 sm:$0xff]   ;;  %v13506_v33 = vld [vmem:[#allocation5 + $0xb14] ss:$40 sps:$4 sm:$0xff]   ;;  %v13510_v45 = vld [vmem:[#allocation5 + $0xac0] ss:$40 sps:$4 sm:$0xff]  }
 0x23d   :  { %4260 = vmatprep.subr.bf16.mxu1 %v13449_v28  ;;  %v3951_v50 = vpop.f32.mrf.mxu1  ;;  %v13500_v28 = vld [vmem:[#allocation5 + $0xb64] ss:$40 sps:$4 sm:$0xff]   ;;  %v13509_v36 = vld [vmem:[#allocation5 + $0x1014] ss:$40 sps:$4 sm:$0xff]   ;;  %v13513_v44 = vld [vmem:[#allocation5 + $0xfc0] ss:$40 sps:$4 sm:$0xff]  }
 0x23e   :  { %v13516_v50 = vld [vmem:[#allocation5 + $0xa70] ss:$40 sps:$4 sm:$0xff]  }
 0x23f   :  { %4220 = vmatpush2.bf16.msra.mxu0 %v13444_v38  ;;  %v13512_v38 = vld [vmem:[#allocation5 + $0xac4] ss:$40 sps:$4 sm:$0xff]  }
 0x240   :  { %4261 = vmatpush2.bf16.msra.mxu1 %v13447_v41  ;;  %4221 = vmatprep.subr.bf16.mxu0 %v13452_v46  ;;  %v13515_v41 = vld [vmem:[#allocation5 + $0xfc4] ss:$40 sps:$4 sm:$0xff]   ;;  %v13518_v46 = vld [vmem:[#allocation5 + $0xa74] ss:$40 sps:$4 sm:$0xff]  }
 0x241   :  { %4262 = vmatprep.subr.bf16.mxu1 %v13455_v49  ;;  %v13521_v49 = vld [vmem:[#allocation5 + $0xf74] ss:$40 sps:$4 sm:$0xff]  }
 0x243   :  { %4222 = vmatpush2.bf16.msra.mxu0 %v13450_v51  ;;  %v13519_v51 = vld [vmem:[#allocation5 + $0xf70] ss:$40 sps:$4 sm:$0xff]  }
 0x244   :  { %4263 = vmatpush2.bf16.msra.mxu1 %v13453_v53  ;;  %4223 = vmatprep.subr.bf16.mxu0 %v13458_v54  ;;  %v13524_v53 = vld [vmem:[#allocation5 + $0xa24] ss:$40 sps:$4 sm:$0xff]  }
 0x245   :  { %4264 = vmatprep.subr.bf16.mxu1 %v13461_v55  ;;  %v13527_v54 = vld [vmem:[#allocation5 + $0xf24] ss:$40 sps:$4 sm:$0xff]   ;;  %v13522_v55 = vld [vmem:[#allocation5 + $0xa20] ss:$40 sps:$4 sm:$0xff]  }
 0x247   :  { %4224 = vmatpush2.bf16.msra.mxu0 %v13456_v56  ;;  %v13525_v56 = vld [vmem:[#allocation5 + $0xf20] ss:$40 sps:$4 sm:$0xff]  }
 0x248   :  { %4265 = vmatpush2.bf16.msra.mxu1 %v13459_v48  ;;  %4225 = vmatprep.subr.bf16.mxu0 %v13464_v52  ;;  %v13530_v48 = vld [vmem:[#allocation5 + $0xed4] ss:$40 sps:$4 sm:$0xff]  }
 0x249   :  { %4266 = vmatprep.subr.bf16.mxu1 %v13467_v57  ;;  %v13533_v52 = vld [vmem:[#allocation8 + $0x234] ss:$40 sps:$4 sm:$0xff]   ;;  %v13528_v57 = vld [vmem:[#allocation5 + $0xed0] ss:$40 sps:$4 sm:$0xff]  }
 0x24b   :  { %4226 = vmatpush2.bf16.msra.mxu0 %v13462_v59  ;;  %v13531_v59 = vld [vmem:[#allocation8 + $0x230] ss:$40 sps:$4 sm:$0xff]  }
 0x24c   :  { %4267 = vmatpush2.bf16.msra.mxu1 %v13465_v61  ;;  %4227 = vmatprep.subr.bf16.mxu0 %v13470_v62  ;;  %v4364_v61 = vmax.f32 %v15141_v32, 0.0  ;;  %v13536_v62 = vld [vmem:[#allocation5 + $0xe84] ss:$40 sps:$4 sm:$0xff]  }
 0x24d   :  { %4268 = vmatprep.subr.bf16.mxu1 %v13473_v0  ;;  %v13539_v0 = vld [vmem:[#allocation8 + $0x1e4] ss:$40 sps:$4 sm:$0xff]  }
 0x24f   :  { %4228 = vmatpush2.bf16.msra.mxu0 %v13468_v1  ;;  %v13534_v1 = vld [vmem:[#allocation5 + $0xe80] ss:$40 sps:$4 sm:$0xff]  }
 0x250   :  { %4269 = vmatpush2.bf16.msra.mxu1 %v13471_v2  ;;  %4229 = vmatprep.subr.bf16.mxu0 %v13476_v5  ;;  %v15200_v2 = vpack.c.bf16 %v4364_v61, %v4364_v61 }
 0x251   :  { %4270 = vmatprep.subr.bf16.mxu1 %v13479_v60  ;;  %v13537_v60 = vld [vmem:[#allocation8 + $0x1e0] ss:$40 sps:$4 sm:$0xff]  }
 0x253   :  { %4230 = vmatpush2.bf16.msra.mxu0 %v13474_v7 }
 0x254   :  { %4271 = vmatpush2.bf16.msra.mxu1 %v13477_v9  ;;  %4281 = vmatprep.subr.bf16.mxu0 %v13482_v3  ;;  %v13542_v9 = vld [vmem:[#allocation5 + $0xe34] ss:$40 sps:$4 sm:$0xff]  }
 0x255   :  { %4322 = vmatprep.subr.bf16.mxu1 %v13485_v12  ;;  %v13545_v3 = vld [vmem:[#allocation8 + $0x194] ss:$40 sps:$4 sm:$0xff]  }
 0x256   :  { %4232 = vmatmul.mubr.bf16.vlgmr.msra.gmra.mxu0 %v15085_v8  ;;  %v13503_v8 = vld [vmem:[#allocation5 + $0x1064] ss:$40 sps:$4 sm:$0xff]  }
 0x257   :  { %4273 = vmatmul.mubr.bf16.vlgmr.msra.gmra.mxu1 %v15087_v11  ;;  %v15193_v24 = vpop.f32.mrf.mxu1  ;;  %4282 = vmatpush1.bf16.msra.mxu0 %v13480_v13 }
 0x258   :  { %4323 = vmatpush1.bf16.msra.mxu1 %v13483_v14  ;;  %4283 = vmatprep.subr.bf16.mxu0 %v13488_v15  ;;  %v13540_v14 = vld [vmem:[#allocation5 + $0xe30] ss:$40 sps:$4 sm:$0xff]  }
 0x259   :  { %4324 = vmatprep.subr.bf16.mxu1 %v13491_v17  ;;  %v15195_v25 = vpop.f32.mrf.mxu1  ;;  %4354 = vmatprep.mubr.bf16.mxu1 %v15016_v18  ;;  %v13504_v18 = vld [vmem:[#allocation5 + $0xb10] ss:$40 sps:$4 sm:$0xff]  }
 0x25a   :  { %4313 = vmatprep.mubr.bf16.mxu0 %v15092_v39  ;;  %v13507_v39 = vld [vmem:[#allocation5 + $0x1010] ss:$40 sps:$4 sm:$0xff]  }
 0x25b   :  { %v4032_v30 = vpop.f32.mrf.mxu1  ;;  %4284 = vmatpush1.bf16.msra.mxu0 %v13486_v19  ;;  %v13543_v15 = vld [vmem:[#allocation8 + $0x190] ss:$40 sps:$4 sm:$0xff]   ;;  %v13551_v19 = vld [vmem:[#allocation8 + $0x144] ss:$40 sps:$4 sm:$0xff]  }
 0x25c   :  { %4325 = vmatpush1.bf16.msra.mxu1 %v13489_v20  ;;  %4285 = vmatprep.subr.bf16.mxu0 %v13494_v22  ;;  %v13546_v22 = vld [vmem:[#allocation5 + $0xde0] ss:$40 sps:$4 sm:$0xff]  }
 0x25d   :  { %4326 = vmatprep.subr.bf16.mxu1 %v13497_v23  ;;  %v4033_v11 = vpop.f32.mrf.mxu1  ;;  %v13549_v23 = vld [vmem:[#allocation8 + $0x140] ss:$40 sps:$4 sm:$0xff]  }
 0x25e   :  { %v13561_v30 = vld [vmem:[#allocation8 + $0xa0] ss:$40 sps:$4 sm:$0xff]  }
 0x25f   :  { %4286 = vmatpush1.bf16.msra.mxu0 %v13492_v26  ;;  %v13552_v26 = vld [vmem:[#allocation5 + $0xd90] ss:$40 sps:$4 sm:$0xff]   ;;  %v13566_v11 = vld [vmem:[#allocation5 + $0xcf4] ss:$40 sps:$4 sm:$0xff]  }
 0x260   :  { %4327 = vmatpush1.bf16.msra.mxu1 %v13495_v27  ;;  %4287 = vmatprep.subr.bf16.mxu0 %v13500_v28  ;;  %v13555_v27 = vld [vmem:[#allocation8 + $0xf0] ss:$40 sps:$4 sm:$0xff]   ;;  %v13563_v28 = vld [vmem:[#allocation8 + $0xa4] ss:$40 sps:$4 sm:$0xff]  }
 0x261   :  { %4328 = vmatprep.subr.bf16.mxu1 %v13503_v8  ;;  %v13558_v8 = vld [vmem:[#allocation5 + $0xd40] ss:$40 sps:$4 sm:$0xff]  }
 0x263   :  { %4288 = vmatpush1.bf16.msra.mxu0 %v13498_v31  ;;  %v13569_v31 = vld [vmem:[#allocation8 + $0x54] ss:$40 sps:$4 sm:$0xff]  }
 0x264   :  { %4329 = vmatpush1.bf16.msra.mxu1 %v13501_v63  ;;  %4289 = vmatprep.subr.bf16.mxu0 %v13506_v33  ;;  %v13564_v63 = vld [vmem:[#allocation5 + $0xcf0] ss:$40 sps:$4 sm:$0xff]  }
 0x265   :  { %4330 = vmatprep.subr.bf16.mxu1 %v13509_v36  ;;  %v13567_v33 = vld [vmem:[#allocation8 + $0x50] ss:$40 sps:$4 sm:$0xff]  }
 0x266   :  { %v13572_v36 = vld [vmem:[#allocation5 + $0xca4] ss:$40 sps:$4 sm:$0xff]  }
 0x267   :  { %4290 = vmatpush1.bf16.msra.mxu0 %v13504_v18  ;;  %v13575_v18 = vld [vmem:[#allocation8 + $0x4] ss:$40 sps:$4 sm:$0xff]  }
 0x268   :  { %4331 = vmatpush1.bf16.msra.mxu1 %v13507_v39  ;;  %4291 = vmatprep.subr.bf16.mxu0 %v13512_v38  ;;  %v13570_v39 = vld [vmem:[#allocation5 + $0xca0] ss:$40 sps:$4 sm:$0xff]  }
 0x269   :  { %4332 = vmatprep.subr.bf16.mxu1 %v13515_v41  ;;  %v13573_v38 = vld [vmem:[#allocation8] ss:$40 sps:$4 sm:$0xff]   ;;  %v13578_v41 = vld [vmem:[#allocation8 + $0x4b4] ss:$40 sps:$4 sm:$0xff]  }
 0x26b   :  { %4292 = vmatpush1.bf16.msra.mxu0 %v13510_v45  ;;  %v13581_v45 = vld [vmem:[#allocation8 + $0x734] ss:$40 sps:$4 sm:$0xff]  }
 0x26c   :  { %4333 = vmatpush1.bf16.msra.mxu1 %v13513_v44  ;;  %4293 = vmatprep.subr.bf16.mxu0 %v13518_v46  ;;  %v13576_v44 = vld [vmem:[#allocation8 + $0x4b0] ss:$40 sps:$4 sm:$0xff]  }
 0x26d   :  { %4334 = vmatprep.subr.bf16.mxu1 %v13521_v49  ;;  %v13579_v46 = vld [vmem:[#allocation8 + $0x730] ss:$40 sps:$4 sm:$0xff]   ;;  %v4366_v49 = vmax.f32 %v15173_v6, 0.0 }
 0x26f   :  { %4294 = vmatpush1.bf16.msra.mxu0 %v13516_v50  ;;  %v13584_v50 = vld [vmem:[#allocation8 + $0x464] ss:$40 sps:$4 sm:$0xff]  }
 0x270   :  { %4335 = vmatpush1.bf16.msra.mxu1 %v13519_v51  ;;  %4295 = vmatprep.subr.bf16.mxu0 %v13524_v53  ;;  %v13582_v51 = vld [vmem:[#allocation8 + $0x460] ss:$40 sps:$4 sm:$0xff]  }
 0x271   :  { %4336 = vmatprep.subr.bf16.mxu1 %v13527_v54  ;;  %v13585_v53 = vld [vmem:[#allocation8 + $0x6e0] ss:$40 sps:$4 sm:$0xff]   ;;  %v13587_v54 = vld [vmem:[#allocation8 + $0x6e4] ss:$40 sps:$4 sm:$0xff]  }
 0x273   :  { %4296 = vmatpush1.bf16.msra.mxu0 %v13522_v55  ;;  %v15213_v55 = vpack.c.bf16 %v4366_v49, %v4366_v49  ;;  %v13641_v49 = vld [vmem:[#allocation8 + $0xb94] ss:$40 sps:$4 sm:$0xff]  }
 0x274   :  { %4337 = vmatpush1.bf16.msra.mxu1 %v13525_v56  ;;  %4297 = vmatprep.subr.bf16.mxu0 %v13530_v48  ;;  %v13590_v56 = vld [vmem:[#allocation8 + $0x414] ss:$40 sps:$4 sm:$0xff]  }
 0x275   :  { %9237 = vmatprep.subr.bf16.mxu1 %v13533_v52  ;;  %v13593_v48 = vld [vmem:[#allocation8 + $0x694] ss:$40 sps:$4 sm:$0xff]  }
 0x276   :  { %v3987_v5 = vpop.f32.mrf.mxu0 }
 0x277   :  { %4355 = vmatmul.mubr.bf16.vlgmr.msra.gmra.mxu1 %v15095_v47  ;;  %v3988_v7 = vadd.f32 %v3987_v5, %v15187_v35  ;;  %4298 = vmatpush2.bf16.msra.mxu0 %v13528_v57  ;;  %v13548_v35 = vld [vmem:[#allocation5 + $0xde4] ss:$40 sps:$4 sm:$0xff]  }
 0x278   :  { %9238 = vmatpush1.bf16.msra.mxu1 %v13531_v59  ;;  %9269 = vmatprep.mubr.bf16.mxu1 %v15200_v2  ;;  %v3989_v32 = vpop.f32.mrf.mxu0  ;;  %v13588_v57 = vld [vmem:[#allocation8 + $0x410] ss:$40 sps:$4 sm:$0xff]   ;;  %v13597_v5 = vld [vmem:[#allocation8 + $0x640] ss:$40 sps:$4 sm:$0xff]  }
 0x279   :  { %4299 = vmatprep.subr.bf16.mxu0 %v13536_v62  ;;  %v15206_v12 = vadd.f32 %v15193_v24, %v3988_v7  ;;  %v3990_v13 = vadd.f32 %v3989_v32, %v15189_v42  ;;  %9239 = vmatprep.subr.bf16.mxu1 %v13539_v0  ;;  %v13554_v24 = vld [vmem:[#allocation5 + $0xd94] ss:$40 sps:$4 sm:$0xff]  }
 0x27a   :  { %v3991_v47 = vpop.f32.mrf.mxu0  ;;  %v13557_v42 = vld [vmem:[#allocation8 + $0xf4] ss:$40 sps:$4 sm:$0xff]   ;;  %v13591_v59 = vld [vmem:[#allocation8 + $0x690] ss:$40 sps:$4 sm:$0xff]   ;;  %v13596_v62 = vld [vmem:[#allocation8 + $0x3c4] ss:$40 sps:$4 sm:$0xff]  }
 0x27b   :  { %v15210_v17 = vadd.f32 %v15195_v25, %v3990_v13  ;;  %4300 = vmatpush2.bf16.msra.mxu0 %v13534_v1  ;;  %v13560_v25 = vld [vmem:[#allocation5 + $0xd44] ss:$40 sps:$4 sm:$0xff]  }
 0x27c   :  { %9240 = vmatpush1.bf16.msra.mxu1 %v13537_v60  ;;  %v3992_v20 = vpop.f32.mrf.mxu0  ;;  %4301 = vmatprep.subr.bf16.mxu0 %v13542_v9  ;;  %v13594_v1 = vld [vmem:[#allocation8 + $0x3c0] ss:$40 sps:$4 sm:$0xff]   ;;  %v13602_v60 = vld [vmem:[#allocation8 + $0x374] ss:$40 sps:$4 sm:$0xff]   ;;  %v13600_v9 = vld [vmem:[#allocation8 + $0x370] ss:$40 sps:$4 sm:$0xff]  }
 0x27d   :  { %9241 = vmatprep.subr.bf16.mxu1 %v13545_v3  ;;  %v13605_v7 = vld [vmem:[#allocation8 + $0x5f4] ss:$40 sps:$4 sm:$0xff]   ;;  %v13603_v3 = vld [vmem:[#allocation8 + $0x5f0] ss:$40 sps:$4 sm:$0xff]   ;;  %v13608_v32 = vld [vmem:[#allocation8 + $0x324] ss:$40 sps:$4 sm:$0xff]  }
 0x27e   :  { %v13611_v13 = vld [vmem:[#allocation8 + $0x5a4] ss:$40 sps:$4 sm:$0xff]   ;;  %v13614_v47 = vld [vmem:[#allocation8 + $0x2d4] ss:$40 sps:$4 sm:$0xff]   ;;  %v13615_v20 = vld [vmem:[#allocation8 + $0x550] ss:$40 sps:$4 sm:$0xff]  }
 0x27f   :  { %4302 = vmatpush2.bf16.msra.mxu0 %v13540_v14  ;;  %v13606_v14 = vld [vmem:[#allocation8 + $0x320] ss:$40 sps:$4 sm:$0xff]  }
 0x280   :  { %9242 = vmatpush1.bf16.msra.mxu1 %v13543_v15  ;;  %4303 = vmatprep.subr.bf16.mxu0 %v13548_v35  ;;  %v13609_v15 = vld [vmem:[#allocation8 + $0x5a0] ss:$40 sps:$4 sm:$0xff]   ;;  %v13617_v35 = vld [vmem:[#allocation8 + $0x554] ss:$40 sps:$4 sm:$0xff]  }
 0x281   :  { %9243 = vmatprep.subr.bf16.mxu1 %v13551_v19  ;;  %v13612_v19 = vld [vmem:[#allocation8 + $0x2d0] ss:$40 sps:$4 sm:$0xff]  }
 0x283   :  { %4304 = vmatpush2.bf16.msra.mxu0 %v13546_v22  ;;  %v13620_v22 = vld [vmem:[#allocation8 + $0x284] ss:$40 sps:$4 sm:$0xff]  }
 0x284   :  { %9244 = vmatpush1.bf16.msra.mxu1 %v13549_v23  ;;  %4305 = vmatprep.subr.bf16.mxu0 %v13554_v24  ;;  %v719_v23 = vsub.s32 6, %v15111_v34  ;;  %v13623_v24 = vld [vmem:[#allocation8 + $0x504] ss:$40 sps:$4 sm:$0xff]  }
 0x285   :  { %9245 = vmatprep.subr.bf16.mxu1 %v13557_v42  ;;  %v13618_v42 = vld [vmem:[#allocation8 + $0x280] ss:$40 sps:$4 sm:$0xff]  }
 0x287   :  { %4306 = vmatpush2.bf16.msra.mxu0 %v13552_v26  ;;  %v13621_v26 = vld [vmem:[#allocation8 + $0x500] ss:$40 sps:$4 sm:$0xff]  }
 0x288   :  { %9246 = vmatpush1.bf16.msra.mxu1 %v13555_v27  ;;  %4307 = vmatprep.subr.bf16.mxu0 %v13560_v25  ;;  %v15220_v27 = vld [vmem:[#allocation7] sm:$0xff] }
 0x289   :  { %9247 = vmatprep.subr.bf16.mxu1 %v13563_v28  ;;  %v720_v25 = vrot.slane %v15220_v27, %v719_v23  ;;  %v13626_v28 = vld [vmem:[#allocation8 + $0x9b4] ss:$40 sps:$4 sm:$0xff]  }
 0x28b   :  { %4308 = vmatpush2.bf16.msra.mxu0 %v13558_v8  ;;  %v4363_v8 = vmax.f32 %v15136_v29, 0.0 }
 0x28c   :  { %9248 = vmatpush1.bf16.msra.mxu1 %v13561_v30  ;;  %4309 = vmatprep.subr.bf16.mxu0 %v13566_v11  ;;  %v13629_v30 = vld [vmem:[#allocation8 + $0xc34] ss:$40 sps:$4 sm:$0xff]   ;;  %v4368_v11 = vmax.f32 %v15210_v17, 0.0  ;;  %v13630_v17 = vld [vmem:[#allocation8 + $0x960] ss:$40 sps:$4 sm:$0xff]  }
 0x28d   :  { %9249 = vmatprep.subr.bf16.mxu1 %v13569_v31 }
 0x28f   :  { %4310 = vmatpush2.bf16.msra.mxu0 %v13564_v63  ;;  %v13624_v63 = vld [vmem:[#allocation8 + $0x9b0] ss:$40 sps:$4 sm:$0xff]  }
 0x290   :  { %9250 = vmatpush1.bf16.msra.mxu1 %v13567_v33  ;;  %4311 = vmatprep.subr.bf16.mxu0 %v13572_v36  ;;  %v13627_v33 = vld [vmem:[#allocation8 + $0xc30] ss:$40 sps:$4 sm:$0xff]   ;;  %v13632_v36 = vld [vmem:[#allocation8 + $0x964] ss:$40 sps:$4 sm:$0xff]  }
 0x291   :  { %9251 = vmatprep.subr.bf16.mxu1 %v13575_v18  ;;  %v15227_v18 = vpack.c.bf16 %v4363_v8, %v4363_v8  ;;  %v13683_v8 = vld [vmem:[#allocation8 + $0x10e4] ss:$40 sps:$4 sm:$0xff]  }
 0x293   :  { %4312 = vmatpush2.bf16.msra.mxu0 %v13570_v39  ;;  %v13635_v39 = vld [vmem:[#allocation8 + $0xbe4] ss:$40 sps:$4 sm:$0xff]  }
 0x294   :  { %9252 = vmatpush1.bf16.msra.mxu1 %v13573_v38  ;;  %9278 = vmatprep.subr.bf16.mxu0 %v13581_v45  ;;  %v15229_v38 = vpack.c.bf16 %v4368_v11, %v4368_v11  ;;  %v13633_v45 = vld [vmem:[#allocation8 + $0xbe0] ss:$40 sps:$4 sm:$0xff]  }
 0x295   :  { %9253 = vmatprep.subr.bf16.mxu1 %v13578_v41  ;;  %v13681_v11 = vld [vmem:[#allocation8 + $0x10e0] ss:$40 sps:$4 sm:$0xff]  }
 0x296   :  { %4314 = vmatmul.mubr.bf16.vlgmr.msra.gmra.mxu0 %v15099_v21  ;;  %v13599_v21 = vld [vmem:[#allocation8 + $0x644] ss:$40 sps:$4 sm:$0xff]  }
 0x297   :  { %v4069_v52 = vpop.f32.mrf.mxu1  ;;  %9279 = vmatpush1.bf16.msra.mxu0 %v13579_v46  ;;  %9310 = vmatprep.mubr.bf16.mxu0 %v15213_v55 }
 0x298   :  { %9254 = vmatpush2.bf16.msra.mxu1 %v13576_v44  ;;  %9280 = vmatprep.subr.bf16.mxu0 %v13587_v54  ;;  %v4070_v31 = vadd.f32 %v4069_v52, %v720_v25  ;;  %v13638_v44 = vld [vmem:[#allocation8 + $0x914] ss:$40 sps:$4 sm:$0xff]   ;;  %v13644_v54 = vld [vmem:[#allocation8 + $0x8c4] ss:$40 sps:$4 sm:$0xff]   ;;  %v13642_v52 = vld [vmem:[#allocation8 + $0x8c0] ss:$40 sps:$4 sm:$0xff]  }
 0x299   :  { %9255 = vmatprep.subr.bf16.mxu1 %v13584_v50  ;;  %v15217_v6 = vpop.f32.mrf.mxu1 }
 0x29b   :  { %v4073_v61 = vpop.f32.mrf.mxu1  ;;  %9281 = vmatpush1.bf16.msra.mxu0 %v13585_v53  ;;  %v13639_v53 = vld [vmem:[#allocation8 + $0xb90] ss:$40 sps:$4 sm:$0xff]  }
 0x29c   :  { %9256 = vmatpush2.bf16.msra.mxu1 %v13582_v51  ;;  %9282 = vmatprep.subr.bf16.mxu0 %v13593_v48  ;;  %v13636_v51 = vld [vmem:[#allocation8 + $0x910] ss:$40 sps:$4 sm:$0xff]   ;;  %v13647_v48 = vld [vmem:[#allocation8 + $0xb44] ss:$40 sps:$4 sm:$0xff]   ;;  %v13653_v61 = vld [vmem:[#allocation8 + $0xaf4] ss:$40 sps:$4 sm:$0xff]  }
 0x29d   :  { %9257 = vmatprep.subr.bf16.mxu1 %v13590_v56  ;;  %v4074_v0 = vpop.f32.mrf.mxu1 }
 0x29e   :  { %v13656_v0 = vld [vmem:[#allocation8 + $0x824] ss:$40 sps:$4 sm:$0xff]  }
 0x29f   :  { %9283 = vmatpush1.bf16.msra.mxu0 %v13591_v59  ;;  %v13650_v59 = vld [vmem:[#allocation8 + $0x874] ss:$40 sps:$4 sm:$0xff]  }
 0x2a0   :  { %9258 = vmatpush2.bf16.msra.mxu1 %v13588_v57  ;;  %9284 = vmatprep.subr.bf16.mxu0 %v13599_v21  ;;  %v13645_v57 = vld [vmem:[#allocation8 + $0xb40] ss:$40 sps:$4 sm:$0xff]   ;;  %v13651_v21 = vld [vmem:[#allocation8 + $0xaf0] ss:$40 sps:$4 sm:$0xff]  }
 0x2a1   :  { %9259 = vmatprep.subr.bf16.mxu1 %v13596_v62  ;;  %v13648_v62 = vld [vmem:[#allocation8 + $0x870] ss:$40 sps:$4 sm:$0xff]  }
 0x2a3   :  { %9285 = vmatpush1.bf16.msra.mxu0 %v13597_v5  ;;  %v13654_v5 = vld [vmem:[#allocation8 + $0x820] ss:$40 sps:$4 sm:$0xff]  }
 0x2a4   :  { %9260 = vmatpush2.bf16.msra.mxu1 %v13594_v1  ;;  %9286 = vmatprep.subr.bf16.mxu0 %v13605_v7  ;;  %v13659_v1 = vld [vmem:[#allocation8 + $0xaa4] ss:$40 sps:$4 sm:$0xff]   ;;  %v13662_v7 = vld [vmem:[#allocation8 + $0x7d4] ss:$40 sps:$4 sm:$0xff]  }
 0x2a5   :  { %9261 = vmatprep.subr.bf16.mxu1 %v13602_v60  ;;  %v13657_v60 = vld [vmem:[#allocation8 + $0xaa0] ss:$40 sps:$4 sm:$0xff]  }
 0x2a7   :  { %9287 = vmatpush1.bf16.msra.mxu0 %v13603_v3  ;;  %v723_v3 = vsub.s32 7, %v15111_v34  ;;  %v14715_v34 = vld [vmem:[#allocation8 + $0x1600] ss:$40 sps:$4 sm:$0xff]  }
 0x2a8   :  { %9262 = vmatpush2.bf16.msra.mxu1 %v13600_v9  ;;  %9288 = vmatprep.subr.bf16.mxu0 %v13611_v13  ;;  %v13665_v9 = vld [vmem:[#allocation8 + $0xa54] ss:$40 sps:$4 sm:$0xff]   ;;  %v13663_v13 = vld [vmem:[#allocation8 + $0xa50] ss:$40 sps:$4 sm:$0xff]  }
 0x2a9   :  { %9263 = vmatprep.subr.bf16.mxu1 %v13608_v32  ;;  %v13660_v32 = vld [vmem:[#allocation8 + $0x7d0] ss:$40 sps:$4 sm:$0xff]  }
 0x2ab   :  { %9289 = vmatpush1.bf16.msra.mxu0 %v13609_v15  ;;  %v13671_v15 = vld [vmem:[#allocation8 + $0xa04] ss:$40 sps:$4 sm:$0xff]  }
 0x2ac   :  { %9264 = vmatpush2.bf16.msra.mxu1 %v13606_v14  ;;  %9290 = vmatprep.subr.bf16.mxu0 %v13617_v35  ;;  %v13668_v14 = vld [vmem:[#allocation8 + $0x784] ss:$40 sps:$4 sm:$0xff]   ;;  %v13666_v35 = vld [vmem:[#allocation8 + $0x780] ss:$40 sps:$4 sm:$0xff]  }
 0x2ad   :  { %9265 = vmatprep.subr.bf16.mxu1 %v13614_v47  ;;  %v724_v47 = vrot.slane %v15220_v27, %v723_v3  ;;  %v13678_v27 = vld [vmem:[#allocation8 + $0xe60] ss:$40 sps:$4 sm:$0xff]  }
 0x2af   :  { %9291 = vmatpush1.bf16.msra.mxu0 %v13615_v20  ;;  %v13674_v20 = vld [vmem:[#allocation8 + $0xeb4] ss:$40 sps:$4 sm:$0xff]   ;;  %v4072_v25 = vadd.f32 %v15217_v6, %v724_v47  ;;  %v13714_v47 = vld [vmem:[#allocation8 + $0xc80] ss:$40 sps:$4 sm:$0xff]  }
 0x2b0   :  { %9266 = vmatpush2.bf16.msra.mxu1 %v13612_v19  ;;  %9292 = vmatprep.subr.bf16.mxu0 %v13623_v24  ;;  %v13669_v19 = vld [vmem:[#allocation8 + $0xa00] ss:$40 sps:$4 sm:$0xff]   ;;  %v13677_v24 = vld [vmem:[#allocation8 + $0x1134] ss:$40 sps:$4 sm:$0xff]  }
 0x2b1   :  { %9267 = vmatprep.subr.bf16.mxu1 %v13620_v22  ;;  %v4365_v22 = vmax.f32 %v15169_v58, 0.0 }
 0x2b3   :  { %9293 = vmatpush1.bf16.msra.mxu0 %v13621_v26  ;;  %v13675_v26 = vld [vmem:[#allocation8 + $0x1130] ss:$40 sps:$4 sm:$0xff]  }
 0x2b4   :  { %9268 = vmatpush2.bf16.msra.mxu1 %v13618_v42  ;;  %9294 = vmatprep.subr.bf16.mxu0 %v13626_v28  ;;  %v13672_v42 = vld [vmem:[#allocation8 + $0xeb0] ss:$40 sps:$4 sm:$0xff]   ;;  %v13680_v28 = vld [vmem:[#allocation8 + $0xe64] ss:$40 sps:$4 sm:$0xff]  }
 0x2b5   :  { %9319 = vmatprep.subr.bf16.mxu1 %v13629_v30  ;;  %v15243_v30 = vpack.c.bf16 %v4365_v22, %v4365_v22  ;;  %v13755_v22 = vld [vmem:[#allocation8 + $0x1634] ss:$40 sps:$4 sm:$0xff]  }
 0x2b6   :  { %v4110_v41 = vpop.f32.mrf.mxu0 }
 0x2b7   :  { %9270 = vmatmul.mubr.bf16.vlgmr.msra.gmra.mxu1 %v15227_v18  ;;  %v15232_v29 = vadd.f32 %v4110_v41, %v4070_v31  ;;  %9295 = vmatpush2.bf16.msra.mxu0 %v13624_v63  ;;  %v13686_v63 = vld [vmem:[#allocation8 + $0xe14] ss:$40 sps:$4 sm:$0xff]  }
 0x2b8   :  { %9320 = vmatpush1.bf16.msra.mxu1 %v13627_v33  ;;  %9351 = vmatprep.mubr.bf16.mxu1 %v15229_v38  ;;  %v15235_v46 = vpop.f32.mrf.mxu0 }
 0x2b9   :  { %9296 = vmatprep.subr.bf16.mxu0 %v13632_v36  ;;  %9321 = vmatprep.subr.bf16.mxu1 %v13635_v39  ;;  %v4113_v33 = vadd.f32 %v15235_v46, %v4072_v25  ;;  %v13689_v39 = vld [vmem:[#allocation8 + $0x1094] ss:$40 sps:$4 sm:$0xff]   ;;  %v13695_v46 = vld [vmem:[#allocation8 + $0x1044] ss:$40 sps:$4 sm:$0xff]  }
 0x2ba   :  { %v4114_v50 = vpop.f32.mrf.mxu0  ;;  %v13725_v25 = vld [vmem:[#allocation8 + $0x1364] ss:$40 sps:$4 sm:$0xff]  }
 0x2bb   :  { %9297 = vmatpush2.bf16.msra.mxu0 %v13630_v17  ;;  %v13684_v17 = vld [vmem:[#allocation8 + $0xe10] ss:$40 sps:$4 sm:$0xff]  }
 0x2bc   :  { %9322 = vmatpush1.bf16.msra.mxu1 %v13633_v45  ;;  %v4115_v56 = vpop.f32.mrf.mxu0  ;;  %9298 = vmatprep.subr.bf16.mxu0 %v13638_v44  ;;  %v13687_v45 = vld [vmem:[#allocation8 + $0x1090] ss:$40 sps:$4 sm:$0xff]  }
 0x2bd   :  { %9323 = vmatprep.subr.bf16.mxu1 %v13641_v49  ;;  %v13692_v49 = vld [vmem:[#allocation8 + $0xdc4] ss:$40 sps:$4 sm:$0xff]  }
 0x2bf   :  { %9299 = vmatpush2.bf16.msra.mxu0 %v13636_v51 }
 0x2c0   :  { %9324 = vmatpush1.bf16.msra.mxu1 %v13639_v53  ;;  %9300 = vmatprep.subr.bf16.mxu0 %v13644_v54 }
 0x2c1   :  { %9325 = vmatprep.subr.bf16.mxu1 %v13647_v48  ;;  %v13690_v48 = vld [vmem:[#allocation8 + $0xdc0] ss:$40 sps:$4 sm:$0xff]  }
 0x2c3   :  { %9301 = vmatpush2.bf16.msra.mxu0 %v13642_v52  ;;  %v13693_v52 = vld [vmem:[#allocation8 + $0x1040] ss:$40 sps:$4 sm:$0xff]  }
 0x2c4   :  { %9326 = vmatpush1.bf16.msra.mxu1 %v13645_v57  ;;  %9302 = vmatprep.subr.bf16.mxu0 %v13650_v59  ;;  %v13698_v57 = vld [vmem:[#allocation8 + $0xd74] ss:$40 sps:$4 sm:$0xff]  }
 0x2c5   :  { %9327 = vmatprep.subr.bf16.mxu1 %v13653_v61  ;;  %v13701_v61 = vld [vmem:[#allocation8 + $0xff4] ss:$40 sps:$4 sm:$0xff]  }
 0x2c7   :  { %9303 = vmatpush2.bf16.msra.mxu0 %v13648_v62  ;;  %v13696_v62 = vld [vmem:[#allocation8 + $0xd70] ss:$40 sps:$4 sm:$0xff]  }
 0x2c8   :  { %9328 = vmatpush1.bf16.msra.mxu1 %v13651_v21  ;;  %9304 = vmatprep.subr.bf16.mxu0 %v13656_v0  ;;  %v13699_v21 = vld [vmem:[#allocation8 + $0xff0] ss:$40 sps:$4 sm:$0xff]   ;;  %v13704_v0 = vld [vmem:[#allocation8 + $0xd24] ss:$40 sps:$4 sm:$0xff]  }
 0x2c9   :  { %9329 = vmatprep.subr.bf16.mxu1 %v13659_v1  ;;  %v13707_v1 = vld [vmem:[#allocation8 + $0xfa4] ss:$40 sps:$4 sm:$0xff]  }
 0x2cb   :  { %9305 = vmatpush2.bf16.msra.mxu0 %v13654_v5  ;;  %v13702_v5 = vld [vmem:[#allocation8 + $0xd20] ss:$40 sps:$4 sm:$0xff]  }
 0x2cc   :  { %9330 = vmatpush1.bf16.msra.mxu1 %v13657_v60  ;;  %9306 = vmatprep.subr.bf16.mxu0 %v13662_v7  ;;  %v13705_v60 = vld [vmem:[#allocation8 + $0xfa0] ss:$40 sps:$4 sm:$0xff]   ;;  %v13710_v7 = vld [vmem:[#allocation8 + $0xcd4] ss:$40 sps:$4 sm:$0xff]  }
 0x2cd   :  { %9331 = vmatprep.subr.bf16.mxu1 %v13665_v9  ;;  %v13713_v9 = vld [vmem:[#allocation8 + $0xf54] ss:$40 sps:$4 sm:$0xff]  }
 0x2cf   :  { %9307 = vmatpush2.bf16.msra.mxu0 %v13660_v32  ;;  %v13708_v32 = vld [vmem:[#allocation8 + $0xcd0] ss:$40 sps:$4 sm:$0xff]  }
 0x2d0   :  { %9332 = vmatpush1.bf16.msra.mxu1 %v13663_v13  ;;  %9308 = vmatprep.subr.bf16.mxu0 %v13668_v14  ;;  %v13711_v13 = vld [vmem:[#allocation8 + $0xf50] ss:$40 sps:$4 sm:$0xff]   ;;  %v13716_v14 = vld [vmem:[#allocation8 + $0xc84] ss:$40 sps:$4 sm:$0xff]  }
 0x2d1   :  { %9333 = vmatprep.subr.bf16.mxu1 %v13671_v15  ;;  %v13719_v15 = vld [vmem:[#allocation8 + $0xf04] ss:$40 sps:$4 sm:$0xff]  }
 0x2d3   :  { %9309 = vmatpush2.bf16.msra.mxu0 %v13666_v35  ;;  %v13717_v35 = vld [vmem:[#allocation8 + $0xf00] ss:$40 sps:$4 sm:$0xff]  }
 0x2d4   :  { %9334 = vmatpush1.bf16.msra.mxu1 %v13669_v19  ;;  %9360 = vmatprep.subr.bf16.mxu0 %v13677_v24  ;;  %v4367_v19 = vmax.f32 %v15206_v12, 0.0  ;;  %v13720_v24 = vld [vmem:[#allocation8 + $0x13b0] ss:$40 sps:$4 sm:$0xff]   ;;  %v13767_v12 = vld [vmem:[#allocation8 + $0x1594] ss:$40 sps:$4 sm:$0xff]  }
 0x2d5   :  { %9335 = vmatprep.subr.bf16.mxu1 %v13674_v20  ;;  %v13722_v20 = vld [vmem:[#allocation8 + $0x13b4] ss:$40 sps:$4 sm:$0xff]  }
 0x2d6   :  { %v15247_v58 = vpop.f32.mrf.mxu0  ;;  %9311 = vmatmul.mubr.bf16.vlgmr.msra.gmra.mxu0 %v15243_v30 }
 0x2d7   :  { %v15245_v31 = vpop.f32.mrf.mxu1  ;;  %9361 = vmatpush1.bf16.msra.mxu0 %v13675_v26  ;;  %v15255_v26 = vpack.c.bf16 %v4367_v19, %v4367_v19 }
 0x2d8   :  { %9336 = vmatpush2.bf16.msra.mxu1 %v13672_v42  ;;  %v4194_v36 = vpop.f32.mrf.mxu0  ;;  %9362 = vmatprep.subr.bf16.mxu0 %v13683_v8  ;;  %v13753_v42 = vld [vmem:[#allocation8 + $0x1630] ss:$40 sps:$4 sm:$0xff]   ;;  %v13723_v8 = vld [vmem:[#allocation8 + $0x1360] ss:$40 sps:$4 sm:$0xff]  }
 0x2d9   :  { %v4153_v6 = vpop.f32.mrf.mxu1  ;;  %9337 = vmatprep.subr.bf16.mxu1 %v13680_v28  ;;  %v13761_v28 = vld [vmem:[#allocation8 + $0x15e4] ss:$40 sps:$4 sm:$0xff]  }
 0x2da   :  { %v4154_v41 = vadd.f32 %v4153_v6, %v4113_v33  ;;  %v4196_v44 = vpop.f32.mrf.mxu0  ;;  %v13765_v33 = vld [vmem:[#allocation8 + $0x1590] ss:$40 sps:$4 sm:$0xff]   ;;  %v13731_v6 = vld [vmem:[#allocation8 + $0x12c4] ss:$40 sps:$4 sm:$0xff]  }
 0x2db   :  { %v4155_v50 = vpop.f32.mrf.mxu1  ;;  %9363 = vmatpush1.bf16.msra.mxu0 %v13681_v11  ;;  %v13759_v11 = vld [vmem:[#allocation8 + $0x15e0] ss:$40 sps:$4 sm:$0xff]   ;;  %v13732_v44 = vld [vmem:[#allocation8 + $0x1270] ss:$40 sps:$4 sm:$0xff]  }
 0x2dc   :  { %v4195_v51 = vadd.f32 %v4194_v36, %v4154_v41  ;;  %9338 = vmatpush2.bf16.msra.mxu1 %v13678_v27  ;;  %v4197_v53 = vpop.f32.mrf.mxu0  ;;  %9364 = vmatprep.subr.bf16.mxu0 %v13689_v39  ;;  %v13728_v27 = vld [vmem:[#allocation8 + $0x1314] ss:$40 sps:$4 sm:$0xff]   ;;  %v13773_v36 = vld [vmem:[#allocation8 + $0x1544] ss:$40 sps:$4 sm:$0xff]   ;;  %v13729_v39 = vld [vmem:[#allocation8 + $0x12c0] ss:$40 sps:$4 sm:$0xff]  }
 0x2dd   :  { %9339 = vmatprep.subr.bf16.mxu1 %v13686_v63  ;;  %v4156_v54 = vpop.f32.mrf.mxu1  ;;  %v13726_v63 = vld [vmem:[#allocation8 + $0x1310] ss:$40 sps:$4 sm:$0xff]   ;;  %v13771_v41 = vld [vmem:[#allocation8 + $0x1540] ss:$40 sps:$4 sm:$0xff]   ;;  %v13737_v50 = vld [vmem:[#allocation8 + $0x1224] ss:$40 sps:$4 sm:$0xff]  }
 0x2de   :  { %v4370_v56 = vmax.f32 %v4195_v51, 0.0  ;;  %v13785_v51 = vld [vmem:[#allocation8 + $0x14a4] ss:$40 sps:$4 sm:$0xff]   ;;  %v13735_v53 = vld [vmem:[#allocation8 + $0x1220] ss:$40 sps:$4 sm:$0xff]   ;;  %v4152_v54 = vadd.f32 %v15245_v31, %v15232_v29 }
 0x2df   :  { %9365 = vmatpush1.bf16.msra.mxu0 %v13687_v45  ;;  %v13779_v45 = vld [vmem:[#allocation8 + $0x14f4] ss:$40 sps:$4 sm:$0xff]  }
 0x2e0   :  { %v15251_v59 = vpack.c.bf16 %v4370_v56, %v4370_v56  ;;  %9340 = vmatpush2.bf16.msra.mxu1 %v13684_v17  ;;  %9366 = vmatprep.subr.bf16.mxu0 %v13695_v46  ;;  %v13734_v17 = vld [vmem:[#allocation8 + $0x1274] ss:$40 sps:$4 sm:$0xff]   ;;  %v13783_v46 = vld [vmem:[#allocation8 + $0x14a0] ss:$40 sps:$4 sm:$0xff]  }
 0x2e1   :  { %9341 = vmatprep.subr.bf16.mxu1 %v13692_v49  ;;  %v13777_v49 = vld [vmem:[#allocation8 + $0x14f0] ss:$40 sps:$4 sm:$0xff]   ;;  %v13740_v56 = vld [vmem:[#allocation8 + $0x11d4] ss:$40 sps:$4 sm:$0xff]  }
 0x2e2   :  { %9392 = vmatprep.mubr.bf16.mxu0 %v15251_v59  ;;  %v13746_v29 = vld [vmem:[#allocation8 + $0x23c] ss:$40 sps:$4 sm:$0xff]  }
 0x2e3   :  { %9367 = vmatpush1.bf16.msra.mxu0 %v13693_v52  ;;  %v13738_v52 = vld [vmem:[#allocation8 + $0x11d0] ss:$40 sps:$4 sm:$0xff]   ;;  %v13803_v31 = vld [vmem:[#allocation8 + $0x18b4] ss:$40 sps:$4 sm:$0xff]  }
 0x2e4   :  { %9342 = vmatpush2.bf16.msra.mxu1 %v13690_v48  ;;  %9368 = vmatprep.subr.bf16.mxu0 %v13701_v61  ;;  %v13791_v48 = vld [vmem:[#allocation8 + $0x1454] ss:$40 sps:$4 sm:$0xff]   ;;  %v4193_v61 = vadd.f32 %v15247_v58, %v4152_v54  ;;  %v13837_v54 = vld [vmem:[#allocation8 + $0x16d0] ss:$40 sps:$4 sm:$0xff]  }
 0x2e5   :  { %9343 = vmatprep.subr.bf16.mxu1 %v13698_v57  ;;  %v13789_v57 = vld [vmem:[#allocation8 + $0x1450] ss:$40 sps:$4 sm:$0xff]   ;;  %v13749_v58 = vld [vmem:[#allocation8 + $0x1ec] ss:$40 sps:$4 sm:$0xff]  }
 0x2e7   :  { %9369 = vmatpush1.bf16.msra.mxu0 %v13699_v21  ;;  %v13797_v21 = vld [vmem:[#allocation8 + $0x1404] ss:$40 sps:$4 sm:$0xff]  }
 0x2e8   :  { %9344 = vmatpush2.bf16.msra.mxu1 %v13696_v62  ;;  %9370 = vmatprep.subr.bf16.mxu0 %v13707_v1  ;;  %v13743_v62 = vld [vmem:[#allocation8 + $0x1184] ss:$40 sps:$4 sm:$0xff]   ;;  %v13795_v1 = vld [vmem:[#allocation8 + $0x1400] ss:$40 sps:$4 sm:$0xff]  }
 0x2e9   :  { %9345 = vmatprep.subr.bf16.mxu1 %v13704_v0  ;;  %v13741_v0 = vld [vmem:[#allocation8 + $0x1180] ss:$40 sps:$4 sm:$0xff]  }
 0x2eb   :  { %9371 = vmatpush1.bf16.msra.mxu0 %v13705_v60  ;;  %v13744_v60 = vld [vmem:[#allocation8 + $0x238] ss:$40 sps:$4 sm:$0xff]  }
 0x2ec   :  { %9346 = vmatpush2.bf16.msra.mxu1 %v13702_v5  ;;  %9372 = vmatprep.subr.bf16.mxu0 %v13713_v9  ;;  %v4369_v5 = vmax.f32 %v4193_v61, 0.0  ;;  %v13801_v9 = vld [vmem:[#allocation8 + $0x18b0] ss:$40 sps:$4 sm:$0xff]   ;;  %v13851_v61 = vld [vmem:[#allocation8 + $0x73c] ss:$40 sps:$4 sm:$0xff]  }
 0x2ed   :  { %9347 = vmatprep.subr.bf16.mxu1 %v13710_v7 }
 0x2ee   :  { %v15261_v7 = vpack.c.bf16 %v4369_v5, %v4369_v5  ;;  %v13800_v5 = vld [vmem:[#allocation8 + $0x41c] ss:$40 sps:$4 sm:$0xff]  }
 0x2ef   :  { %9373 = vmatpush1.bf16.msra.mxu0 %v13711_v13  ;;  %v13809_v13 = vld [vmem:[#allocation8 + $0x1864] ss:$40 sps:$4 sm:$0xff]  }
 0x2f0   :  { %9348 = vmatpush2.bf16.msra.mxu1 %v13708_v32  ;;  %9374 = vmatprep.subr.bf16.mxu0 %v13719_v15  ;;  %v13747_v32 = vld [vmem:[#allocation8 + $0x1e8] ss:$40 sps:$4 sm:$0xff]  }
 0x2f1   :  { %9349 = vmatprep.subr.bf16.mxu1 %v13716_v14 }
 0x2f3   :  { %9375 = vmatpush1.bf16.msra.mxu0 %v13717_v35 }
 0x2f4   :  { %9350 = vmatpush2.bf16.msra.mxu1 %v13714_v47  ;;  %9376 = vmatprep.subr.bf16.mxu0 %v13722_v20  ;;  %v13752_v47 = vld [vmem:[#allocation8 + $0x19c] ss:$40 sps:$4 sm:$0xff]   ;;  %v13807_v20 = vld [vmem:[#allocation8 + $0x1860] ss:$40 sps:$4 sm:$0xff]  }
 0x2f5   :  { %9401 = vmatprep.subr.bf16.mxu1 %v13755_v22  ;;  %v13815_v22 = vld [vmem:[#allocation8 + $0x1814] ss:$40 sps:$4 sm:$0xff]  }
 0x2f7   :  { %9352 = vmatmul.mubr.bf16.vlgmr.msra.gmra.mxu1 %v15255_v26  ;;  %9377 = vmatpush2.bf16.msra.mxu0 %v13720_v24 }
 0x2f8   :  { %9402 = vmatpush1.bf16.msra.mxu1 %v13753_v42  ;;  %9378 = vmatprep.subr.bf16.mxu0 %v13725_v25  ;;  %v13750_v42 = vld [vmem:[#allocation8 + $0x198] ss:$40 sps:$4 sm:$0xff]  }
 0x2f9   :  { %9403 = vmatprep.subr.bf16.mxu1 %v13761_v28 }
 0x2fb   :  { %9379 = vmatpush2.bf16.msra.mxu0 %v13723_v8  ;;  %v13758_v8 = vld [vmem:[#allocation8 + $0x14c] ss:$40 sps:$4 sm:$0xff]  }
 0x2fc   :  { %9404 = vmatpush1.bf16.msra.mxu1 %v13759_v11  ;;  %9380 = vmatprep.subr.bf16.mxu0 %v13728_v27  ;;  %v13813_v11 = vld [vmem:[#allocation8 + $0x1810] ss:$40 sps:$4 sm:$0xff]  }
 0x2fd   :  { %9405 = vmatprep.subr.bf16.mxu1 %v13767_v12  ;;  %v13756_v12 = vld [vmem:[#allocation8 + $0x148] ss:$40 sps:$4 sm:$0xff]  }
 0x2ff   :  { %9381 = vmatpush2.bf16.msra.mxu0 %v13726_v63  ;;  %v13821_v63 = vld [vmem:[#allocation8 + $0x17c4] ss:$40 sps:$4 sm:$0xff]  }
 0x300   :  { %9406 = vmatpush1.bf16.msra.mxu1 %v13765_v33  ;;  %9382 = vmatprep.subr.bf16.mxu0 %v13731_v6  ;;  %v13764_v33 = vld [vmem:[#allocation8 + $0xfc] ss:$40 sps:$4 sm:$0xff]   ;;  %v13819_v6 = vld [vmem:[#allocation8 + $0x17c0] ss:$40 sps:$4 sm:$0xff]  }
 0x301   :  { %9407 = vmatprep.subr.bf16.mxu1 %v13773_v36  ;;  %v13827_v36 = vld [vmem:[#allocation8 + $0x1774] ss:$40 sps:$4 sm:$0xff]  }
 0x303   :  { %9383 = vmatpush2.bf16.msra.mxu0 %v13729_v39  ;;  %v13762_v39 = vld [vmem:[#allocation8 + $0xf8] ss:$40 sps:$4 sm:$0xff]  }
 0x304   :  { %9408 = vmatpush1.bf16.msra.mxu1 %v13771_v41  ;;  %9384 = vmatprep.subr.bf16.mxu0 %v13734_v17  ;;  %v13770_v41 = vld [vmem:[#allocation8 + $0xac] ss:$40 sps:$4 sm:$0xff]   ;;  %v13825_v17 = vld [vmem:[#allocation8 + $0x1770] ss:$40 sps:$4 sm:$0xff]  }
 0x305   :  { %9409 = vmatprep.subr.bf16.mxu1 %v13779_v45  ;;  %v13833_v45 = vld [vmem:[#allocation8 + $0x1724] ss:$40 sps:$4 sm:$0xff]  }
 0x307   :  { %9385 = vmatpush2.bf16.msra.mxu0 %v13732_v44  ;;  %v13768_v44 = vld [vmem:[#allocation8 + $0xa8] ss:$40 sps:$4 sm:$0xff]  }
 0x308   :  { %9410 = vmatpush1.bf16.msra.mxu1 %v13777_v49  ;;  %9386 = vmatprep.subr.bf16.mxu0 %v13737_v50  ;;  %v13776_v49 = vld [vmem:[#allocation8 + $0x5c] ss:$40 sps:$4 sm:$0xff]   ;;  %v13831_v50 = vld [vmem:[#allocation8 + $0x1720] ss:$40 sps:$4 sm:$0xff]  }
 0x309   :  { %9411 = vmatprep.subr.bf16.mxu1 %v13785_v51  ;;  %v13839_v51 = vld [vmem:[#allocation8 + $0x16d4] ss:$40 sps:$4 sm:$0xff]  }
 0x30b   :  { %9387 = vmatpush2.bf16.msra.mxu0 %v13735_v53  ;;  %v13774_v53 = vld [vmem:[#allocation8 + $0x58] ss:$40 sps:$4 sm:$0xff]  }
 0x30c   :  { %9412 = vmatpush1.bf16.msra.mxu1 %v13783_v46  ;;  %9388 = vmatprep.subr.bf16.mxu0 %v13740_v56  ;;  %v13782_v46 = vld [vmem:[#allocation8 + $0xc] ss:$40 sps:$4 sm:$0xff]  }
 0x30d   :  { %9413 = vmatprep.subr.bf16.mxu1 %v13791_v48  ;;  %v13845_v56 = vld [vmem:[#allocation8 + $0x1684] ss:$40 sps:$4 sm:$0xff]   ;;  %v13780_v48 = vld [vmem:[#allocation8 + $0x8] ss:$40 sps:$4 sm:$0xff]  }
 0x30f   :  { %9389 = vmatpush2.bf16.msra.mxu0 %v13738_v52  ;;  %v13788_v52 = vld [vmem:[#allocation8 + $0x4bc] ss:$40 sps:$4 sm:$0xff]  }
 0x310   :  { %9414 = vmatpush1.bf16.msra.mxu1 %v13789_v57  ;;  %9390 = vmatprep.subr.bf16.mxu0 %v13743_v62  ;;  %v13843_v57 = vld [vmem:[#allocation8 + $0x1680] ss:$40 sps:$4 sm:$0xff]  }
 0x311   :  { %9415 = vmatprep.subr.bf16.mxu1 %v13797_v21  ;;  %v13786_v62 = vld [vmem:[#allocation8 + $0x4b8] ss:$40 sps:$4 sm:$0xff]   ;;  %v13794_v21 = vld [vmem:[#allocation8 + $0x46c] ss:$40 sps:$4 sm:$0xff]  }
 0x313   :  { %9391 = vmatpush2.bf16.msra.mxu0 %v13741_v0  ;;  %v13792_v0 = vld [vmem:[#allocation8 + $0x468] ss:$40 sps:$4 sm:$0xff]  }
 0x314   :  { %9416 = vmatpush1.bf16.msra.mxu1 %v13795_v1  ;;  %9442 = vmatprep.subr.bf16.mxu0 %v13746_v29 }
 0x315   :  { %9417 = vmatprep.subr.bf16.mxu1 %v13803_v31  ;;  %v13798_v31 = vld [vmem:[#allocation8 + $0x418] ss:$40 sps:$4 sm:$0xff]  }
 0x316   :  { %v15263_v14 = vpop.f32.mrf.mxu0  ;;  %9393 = vmatmul.mubr.bf16.vlgmr.msra.gmra.mxu0 %v15261_v7 }
 0x317   :  { %v15266_v15 = vpop.f32.mrf.mxu1  ;;  %9443 = vmatpush1.bf16.msra.mxu0 %v13744_v60  ;;  %9474 = vmatprep.mubr.bf16.mxu0 %v15200_v2 }
 0x318   :  { %v15269_v35 = vpop.f32.mrf.mxu0  ;;  %9444 = vmatprep.subr.bf16.mxu0 %v13749_v58  ;;  %9418 = vmatpush2.bf16.msra.mxu1 %v13801_v9  ;;  %v13806_v58 = vld [vmem:[#allocation8 + $0x3cc] ss:$40 sps:$4 sm:$0xff]  }
 0x319   :  { %v15271_v19 = vpop.f32.mrf.mxu1  ;;  %9419 = vmatprep.subr.bf16.mxu1 %v13809_v13  ;;  %v13812_v13 = vld [vmem:[#allocation8 + $0x37c] ss:$40 sps:$4 sm:$0xff]  }
 0x31a   :  { %v4237_v24 = vpop.f32.mrf.mxu0 }
 0x31b   :  { %v4278_v25 = vpop.f32.mrf.mxu1  ;;  %9445 = vmatpush1.bf16.msra.mxu0 %v13747_v32  ;;  %v13804_v32 = vld [vmem:[#allocation8 + $0x3c8] ss:$40 sps:$4 sm:$0xff]   ;;  %v13824_v24 = vld [vmem:[#allocation8 + $0x2dc] ss:$40 sps:$4 sm:$0xff]  }
 0x31c   :  { %v4238_v28 = vpop.f32.mrf.mxu0  ;;  %9446 = vmatprep.subr.bf16.mxu0 %v13752_v47  ;;  %9420 = vmatpush2.bf16.msra.mxu1 %v13807_v20  ;;  %v13810_v47 = vld [vmem:[#allocation8 + $0x378] ss:$40 sps:$4 sm:$0xff]   ;;  %v13818_v20 = vld [vmem:[#allocation8 + $0x32c] ss:$40 sps:$4 sm:$0xff]  }
 0x31d   :  { %v4279_v27 = vpop.f32.mrf.mxu1  ;;  %9421 = vmatprep.subr.bf16.mxu1 %v13815_v22  ;;  %v13816_v22 = vld [vmem:[#allocation8 + $0x328] ss:$40 sps:$4 sm:$0xff]   ;;  %v13822_v25 = vld [vmem:[#allocation8 + $0x2d8] ss:$40 sps:$4 sm:$0xff]   ;;  %v13830_v28 = vld [vmem:[#allocation8 + $0x28c] ss:$40 sps:$4 sm:$0xff]  }
 0x31e   :  { %v13828_v27 = vld [vmem:[#allocation8 + $0x288] ss:$40 sps:$4 sm:$0xff]  }
 0x31f   :  { %9447 = vmatpush1.bf16.msra.mxu0 %v13750_v42  ;;  %v690_v42 = vld [vmem:[#allocation7 + $0x8] sm:$0x3] }
 0x320   :  { %9448 = vmatprep.subr.bf16.mxu0 %v13758_v8  ;;  %9422 = vmatpush2.bf16.msra.mxu1 %v13813_v11  ;;  %v728_v8 = vrot.slane %v690_v42, %v15114_v40  ;;  %v732_v11 = vrot.slane %v690_v42, %v15117_v43  ;;  %v13881_v42 = vld [vmem:[#allocation8 + $0x5ac] ss:$40 sps:$4 sm:$0xff]  }
 0x321   :  { %9423 = vmatprep.subr.bf16.mxu1 %v13821_v63 }
 0x322   :  { %v4234_v63 = vadd.f32 %v15263_v14, %v728_v8  ;;  %v13848_v14 = vld [vmem:[#allocation8 + $0xb9c] ss:$40 sps:$4 sm:$0xff]   ;;  %v13882_v8 = vld [vmem:[#allocation8 + $0xeb8] ss:$40 sps:$4 sm:$0xff]  }
 0x323   :  { %9449 = vmatpush1.bf16.msra.mxu0 %v13756_v12  ;;  %v13836_v12 = vld [vmem:[#allocation8 + $0xc3c] ss:$40 sps:$4 sm:$0xff]  }
 0x324   :  { %9450 = vmatprep.subr.bf16.mxu0 %v13764_v33  ;;  %9424 = vmatpush2.bf16.msra.mxu1 %v13819_v6  ;;  %v13834_v33 = vld [vmem:[#allocation8 + $0xc38] ss:$40 sps:$4 sm:$0xff]   ;;  %v4236_v6 = vadd.f32 %v15269_v35, %v732_v11  ;;  %v13890_v11 = vld [vmem:[#allocation8 + $0xe6c] ss:$40 sps:$4 sm:$0xff]  }
 0x325   :  { %9425 = vmatprep.subr.bf16.mxu1 %v13827_v36  ;;  %v13842_v36 = vld [vmem:[#allocation8 + $0xbec] ss:$40 sps:$4 sm:$0xff]  }
 0x327   :  { %9451 = vmatpush1.bf16.msra.mxu0 %v13762_v39  ;;  %v4275_v39 = vadd.f32 %v15266_v15, %v4234_v63  ;;  %v13885_v63 = vld [vmem:[#allocation8 + $0x558] ss:$40 sps:$4 sm:$0xff]  }
 0x328   :  { %9452 = vmatprep.subr.bf16.mxu0 %v13770_v41  ;;  %9426 = vmatpush2.bf16.msra.mxu1 %v13825_v17  ;;  %v13840_v17 = vld [vmem:[#allocation8 + $0xbe8] ss:$40 sps:$4 sm:$0xff]  }
 0x329   :  { %9427 = vmatprep.subr.bf16.mxu1 %v13833_v45  ;;  %v4277_v45 = vadd.f32 %v15271_v19, %v4236_v6  ;;  %v13852_v19 = vld [vmem:[#allocation8 + $0xb48] ss:$40 sps:$4 sm:$0xff]  }
 0x32a   :  { %v13888_v6 = vld [vmem:[#allocation8 + $0xe68] ss:$40 sps:$4 sm:$0xff]  }
 0x32b   :  { %9453 = vmatpush1.bf16.msra.mxu0 %v13768_v44 }
 0x32c   :  { %9454 = vmatprep.subr.bf16.mxu0 %v13776_v49  ;;  %9428 = vmatpush2.bf16.msra.mxu1 %v13831_v50 }
 0x32d   :  { %9429 = vmatprep.subr.bf16.mxu1 %v13839_v51 }
 0x32f   :  { %9455 = vmatpush1.bf16.msra.mxu0 %v13774_v53 }
 0x330   :  { %9456 = vmatprep.subr.bf16.mxu0 %v13782_v46  ;;  %9430 = vmatpush2.bf16.msra.mxu1 %v13837_v54  ;;  %v13846_v46 = vld [vmem:[#allocation8 + $0xb98] ss:$40 sps:$4 sm:$0xff]  }
 0x331   :  { %9431 = vmatprep.subr.bf16.mxu1 %v13845_v56  ;;  %v13854_v56 = vld [vmem:[#allocation8 + $0xb4c] ss:$40 sps:$4 sm:$0xff]  }
 0x333   :  { %9457 = vmatpush1.bf16.msra.mxu0 %v13780_v48 }
 0x334   :  { %9458 = vmatprep.subr.bf16.mxu0 %v13788_v52  ;;  %9432 = vmatpush2.bf16.msra.mxu1 %v13843_v57  ;;  %v13849_v52 = vld [vmem:[#allocation8 + $0x738] ss:$40 sps:$4 sm:$0xff]  }
 0x335   :  { %9483 = vmatprep.subr.bf16.mxu1 %v13851_v61 }
 0x337   :  { %v4356_v1 = vpop.f32.mrf.mxu1  ;;  %9459 = vmatpush2.bf16.msra.mxu0 %v13786_v62  ;;  %v13857_v62 = vld [vmem:[#allocation8 + $0x6ec] ss:$40 sps:$4 sm:$0xff]  }
 0x338   :  { %9460 = vmatprep.subr.bf16.mxu0 %v13794_v21  ;;  %v13860_v21 = vld [vmem:[#allocation8 + $0xafc] ss:$40 sps:$4 sm:$0xff]  }
 0x339   :  { %v4358_v29 = vpop.f32.mrf.mxu1 }
 0x33b   :  { %v4360_v60 = vpop.f32.mrf.mxu1  ;;  %9461 = vmatpush2.bf16.msra.mxu0 %v13792_v0  ;;  %v13855_v0 = vld [vmem:[#allocation8 + $0x6e8] ss:$40 sps:$4 sm:$0xff]  }
 0x33c   :  { %9462 = vmatprep.subr.bf16.mxu0 %v13800_v5  ;;  %v13863_v5 = vld [vmem:[#allocation8 + $0x69c] ss:$40 sps:$4 sm:$0xff]   ;;  %v13864_v60 = vld [vmem:[#allocation8 + $0xaa8] ss:$40 sps:$4 sm:$0xff]  }
 0x33d   :  { %v4361_v9 = vpop.f32.mrf.mxu1 }
 0x33e   :  { %v13872_v9 = vld [vmem:[#allocation8 + $0xa5c] ss:$40 sps:$4 sm:$0xff]  }
 0x33f   :  { %9463 = vmatpush2.bf16.msra.mxu0 %v13798_v31  ;;  %v13861_v31 = vld [vmem:[#allocation8 + $0x698] ss:$40 sps:$4 sm:$0xff]  }
 0x340   :  { %9464 = vmatprep.subr.bf16.mxu0 %v13806_v58  ;;  %v13869_v58 = vld [vmem:[#allocation8 + $0x64c] ss:$40 sps:$4 sm:$0xff]  }
 0x343   :  { %9465 = vmatpush2.bf16.msra.mxu0 %v13804_v32  ;;  %v13867_v32 = vld [vmem:[#allocation8 + $0x648] ss:$40 sps:$4 sm:$0xff]  }
 0x344   :  { %9466 = vmatprep.subr.bf16.mxu0 %v13812_v13  ;;  %v13870_v13 = vld [vmem:[#allocation8 + $0xa58] ss:$40 sps:$4 sm:$0xff]  }
 0x347   :  { %9467 = vmatpush2.bf16.msra.mxu0 %v13810_v47  ;;  %v13875_v47 = vld [vmem:[#allocation8 + $0x5fc] ss:$40 sps:$4 sm:$0xff]  }
 0x348   :  { %9468 = vmatprep.subr.bf16.mxu0 %v13818_v20  ;;  %v13878_v20 = vld [vmem:[#allocation8 + $0xa0c] ss:$40 sps:$4 sm:$0xff]  }
 0x34b   :  { %9469 = vmatpush2.bf16.msra.mxu0 %v13816_v22  ;;  %v13873_v22 = vld [vmem:[#allocation8 + $0x5f8] ss:$40 sps:$4 sm:$0xff]  }
 0x34c   :  { %9470 = vmatprep.subr.bf16.mxu0 %v13824_v24  ;;  %v13876_v24 = vld [vmem:[#allocation8 + $0xa08] ss:$40 sps:$4 sm:$0xff]  }
 0x34f   :  { %9471 = vmatpush2.bf16.msra.mxu0 %v13822_v25  ;;  %v13884_v25 = vld [vmem:[#allocation8 + $0xebc] ss:$40 sps:$4 sm:$0xff]  }
 0x350   :  { %9472 = vmatprep.subr.bf16.mxu0 %v13830_v28  ;;  %v13879_v28 = vld [vmem:[#allocation8 + $0x5a8] ss:$40 sps:$4 sm:$0xff]  }
 0x353   :  { %9473 = vmatpush2.bf16.msra.mxu0 %v13828_v27  ;;  %v13887_v27 = vld [vmem:[#allocation8 + $0x55c] ss:$40 sps:$4 sm:$0xff]  }
 0x354   :  { %9524 = vmatprep.subr.bf16.mxu0 %v13836_v12 }
 0x356   :  { %v4315_v41 = vpop.f32.mrf.mxu0  ;;  %9475 = vmatmul.mubr.bf16.vlgmr.msra.gmra.mxu0 %v15227_v18 }
 0x357   :  { %v4316_v44 = vadd.f32 %v4315_v41, %v4275_v39  ;;  %9525 = vmatpush1.bf16.msra.mxu0 %v13834_v33  ;;  %9556 = vmatprep.mubr.bf16.mxu0 %v15229_v38  ;;  %v13896_v39 = vld [vmem:[#allocation8 + $0xe1c] ss:$40 sps:$4 sm:$0xff]  }
 0x358   :  { %v4317_v49 = vpop.f32.mrf.mxu0  ;;  %9526 = vmatprep.subr.bf16.mxu0 %v13842_v36  ;;  %v13893_v36 = vld [vmem:[#allocation8 + $0x50c] ss:$40 sps:$4 sm:$0xff]  }
 0x359   :  { %v4357_v50 = vadd.f32 %v4356_v1, %v4316_v44  ;;  %v4318_v35 = vadd.f32 %v4317_v49, %v4277_v45  ;;  %v13858_v1 = vld [vmem:[#allocation8 + $0xaf8] ss:$40 sps:$4 sm:$0xff]   ;;  %v13899_v49 = vld [vmem:[#allocation8 + $0x9bc] ss:$40 sps:$4 sm:$0xff]  }
 0x35a   :  { %v4319_v51 = vpop.f32.mrf.mxu0  ;;  %v13894_v44 = vld [vmem:[#allocation8 + $0xe18] ss:$40 sps:$4 sm:$0xff]  }
 0x35b   :  { %v4359_v53 = vadd.f32 %v4358_v29, %v4318_v35  ;;  %9527 = vmatpush1.bf16.msra.mxu0 %v13840_v17  ;;  %v4371_v15 = vmax.f32 %v4357_v50, 0.0  ;;  %v13866_v29 = vld [vmem:[#allocation8 + $0xaac] ss:$40 sps:$4 sm:$0xff]   ;;  %v13891_v17 = vld [vmem:[#allocation8 + $0x508] ss:$40 sps:$4 sm:$0xff]  }
 0x35c   :  { %v4320_v54 = vpop.f32.mrf.mxu0  ;;  %9528 = vmatprep.subr.bf16.mxu0 %v13848_v14  ;;  %v13902_v14 = vld [vmem:[#allocation8 + $0xdcc] ss:$40 sps:$4 sm:$0xff]   ;;  %v13897_v50 = vld [vmem:[#allocation8 + $0x9b8] ss:$40 sps:$4 sm:$0xff]   ;;  %v13900_v35 = vld [vmem:[#allocation8 + $0xdc8] ss:$40 sps:$4 sm:$0xff]  }
 0x35d   :  { %v4372_v48 = vmax.f32 %v4359_v53, 0.0  ;;  %v15283_v61 = vpack.c.bf16 %v4371_v15, %v4371_v15  ;;  %v13905_v51 = vld [vmem:[#allocation8 + $0x96c] ss:$40 sps:$4 sm:$0xff]   ;;  %v13908_v53 = vld [vmem:[#allocation8 + $0xd7c] ss:$40 sps:$4 sm:$0xff]  }
 0x35e   :  { %v13906_v15 = vld [vmem:[#allocation8 + $0xd78] ss:$40 sps:$4 sm:$0xff]   ;;  %v13911_v54 = vld [vmem:[#allocation8 + $0x91c] ss:$40 sps:$4 sm:$0xff]  }
 0x35f   :  { %v15281_v57 = vpack.c.bf16 %v4372_v48, %v4372_v48  ;;  %9529 = vmatpush1.bf16.msra.mxu0 %v13846_v46  ;;  %v13903_v46 = vld [vmem:[#allocation8 + $0x968] ss:$40 sps:$4 sm:$0xff]   ;;  %v13909_v48 = vld [vmem:[#allocation8 + $0x918] ss:$40 sps:$4 sm:$0xff]  }
 0x360   :  { %9530 = vmatprep.subr.bf16.mxu0 %v13854_v56  ;;  %v13914_v56 = vld [vmem:[#allocation8 + $0xd2c] ss:$40 sps:$4 sm:$0xff]  }
 0x361   :  { %9433 = vmatprep.mubr.bf16.mxu1 %v15281_v57 }
 0x362   :  { %9434 = vmatmul.mubr.bf16.vlgmr.msra.gmra.mxu1 %v15283_v61 }
 0x363   :  { %9484 = vmatpush1.bf16.msra.mxu1 %v13849_v52  ;;  %9515 = vmatprep.mubr.bf16.mxu1 %v15213_v55  ;;  %v13912_v52 = vld [vmem:[#allocation8 + $0xd28] ss:$40 sps:$4 sm:$0xff]  }
 0x364   :  { %9531 = vmatpush1.bf16.msra.mxu0 %v13852_v19  ;;  %9485 = vmatprep.subr.bf16.mxu1 %v13857_v62  ;;  %v13917_v19 = vld [vmem:[#allocation8 + $0x8cc] ss:$40 sps:$4 sm:$0xff]   ;;  %v13920_v62 = vld [vmem:[#allocation8 + $0xcdc] ss:$40 sps:$4 sm:$0xff]  }
 0x365   :  { %9532 = vmatprep.subr.bf16.mxu0 %v13860_v21  ;;  %v13915_v21 = vld [vmem:[#allocation8 + $0x8c8] ss:$40 sps:$4 sm:$0xff]  }
 0x367   :  { %9486 = vmatpush1.bf16.msra.mxu1 %v13855_v0  ;;  %v13918_v0 = vld [vmem:[#allocation8 + $0xcd8] ss:$40 sps:$4 sm:$0xff]  }
 0x368   :  { %9533 = vmatpush1.bf16.msra.mxu0 %v13858_v1  ;;  %9487 = vmatprep.subr.bf16.mxu1 %v13863_v5  ;;  %v13923_v1 = vld [vmem:[#allocation8 + $0x87c] ss:$40 sps:$4 sm:$0xff]   ;;  %v13926_v5 = vld [vmem:[#allocation8 + $0xc8c] ss:$40 sps:$4 sm:$0xff]  }
 0x369   :  { %9534 = vmatprep.subr.bf16.mxu0 %v13866_v29  ;;  %v15292_v29 = vld [vmem:[#allocation10] sm:$0xff] }
 0x36b   :  { %9488 = vmatpush1.bf16.msra.mxu1 %v13861_v31  ;;  %v13921_v31 = vld [vmem:[#allocation8 + $0x878] ss:$40 sps:$4 sm:$0xff]  }
 0x36c   :  { %9535 = vmatpush1.bf16.msra.mxu0 %v13864_v60  ;;  %9489 = vmatprep.subr.bf16.mxu1 %v13869_v58  ;;  %v13924_v60 = vld [vmem:[#allocation8 + $0xc88] ss:$40 sps:$4 sm:$0xff]   ;;  %v13929_v58 = vld [vmem:[#allocation8 + $0x82c] ss:$40 sps:$4 sm:$0xff]  }
 0x36d   :  { %9536 = vmatprep.subr.bf16.mxu0 %v13872_v9  ;;  %v5190_v9 = vrot.slane %v15292_v29, %v15114_v40 }
 0x36f   :  { %9490 = vmatpush1.bf16.msra.mxu1 %v13867_v32  ;;  %v13932_v32 = vld [vmem:[#allocation8 + $0x163c] ss:$40 sps:$4 sm:$0xff]  }
 0x370   :  { %9537 = vmatpush1.bf16.msra.mxu0 %v13870_v13  ;;  %9491 = vmatprep.subr.bf16.mxu1 %v13875_v47  ;;  %v5194_v13 = vrot.slane %v15292_v29, %v15117_v43  ;;  %v13927_v47 = vld [vmem:[#allocation8 + $0x828] ss:$40 sps:$4 sm:$0xff]  }
 0x371   :  { %9538 = vmatprep.subr.bf16.mxu0 %v13878_v20  ;;  %v13930_v20 = vld [vmem:[#allocation8 + $0x1638] ss:$40 sps:$4 sm:$0xff]  }
 0x373   :  { %9492 = vmatpush1.bf16.msra.mxu1 %v13873_v22 }
 0x374   :  { %9539 = vmatpush1.bf16.msra.mxu0 %v13876_v24  ;;  %9493 = vmatprep.subr.bf16.mxu1 %v13881_v42  ;;  %v13935_v24 = vld [vmem:[#allocation8 + $0x7dc] ss:$40 sps:$4 sm:$0xff]   ;;  %v13938_v42 = vld [vmem:[#allocation8 + $0x15ec] ss:$40 sps:$4 sm:$0xff]  }
 0x375   :  { %9540 = vmatprep.subr.bf16.mxu0 %v13884_v25 }
 0x377   :  { %v15288_v12 = vpop.f32.mrf.mxu1  ;;  %9494 = vmatpush1.bf16.msra.mxu1 %v13879_v28 }
 0x378   :  { %9541 = vmatpush2.bf16.msra.mxu0 %v13882_v8  ;;  %9495 = vmatprep.subr.bf16.mxu1 %v13887_v27  ;;  %v9272_v22 = vadd.f32 %v15288_v12, %v5190_v9  ;;  %v13933_v27 = vld [vmem:[#allocation8 + $0x7d8] ss:$40 sps:$4 sm:$0xff]   ;;  %v13944_v12 = vld [vmem:[#allocation8 + $0x159c] ss:$40 sps:$4 sm:$0xff]  }
 0x379   :  { %v15290_v33 = vpop.f32.mrf.mxu1  ;;  %9542 = vmatprep.subr.bf16.mxu0 %v13890_v11  ;;  %v13978_v9 = vld [vmem:[#allocation8 + $0x18b8] ss:$40 sps:$4 sm:$0xff]  }
 0x37a   :  { %v9274_v28 = vadd.f32 %v15290_v33, %v5194_v13  ;;  %v13939_v33 = vld [vmem:[#allocation8 + $0x788] ss:$40 sps:$4 sm:$0xff]   ;;  %v13986_v13 = vld [vmem:[#allocation8 + $0x186c] ss:$40 sps:$4 sm:$0xff]  }
 0x37b   :  { %v9275_v41 = vpop.f32.mrf.mxu1  ;;  %9496 = vmatpush1.bf16.msra.mxu1 %v13885_v63  ;;  %v13936_v63 = vld [vmem:[#allocation8 + $0x15e8] ss:$40 sps:$4 sm:$0xff]  }
 0x37c   :  { %9543 = vmatpush2.bf16.msra.mxu0 %v13888_v6  ;;  %9497 = vmatprep.subr.bf16.mxu1 %v13893_v36  ;;  %v13941_v6 = vld [vmem:[#allocation8 + $0x78c] ss:$40 sps:$4 sm:$0xff]  }
 0x37d   :  { %v9276_v45 = vpop.f32.mrf.mxu1  ;;  %9544 = vmatprep.subr.bf16.mxu0 %v13896_v39 }
 0x37e   :  { %v13947_v45 = vld [vmem:[#allocation8 + $0x113c] ss:$40 sps:$4 sm:$0xff]  }
 0x37f   :  { %9498 = vmatpush1.bf16.msra.mxu1 %v13891_v17  ;;  %v13942_v17 = vld [vmem:[#allocation8 + $0x1598] ss:$40 sps:$4 sm:$0xff]  }
 0x380   :  { %9545 = vmatpush2.bf16.msra.mxu0 %v13894_v44  ;;  %9499 = vmatprep.subr.bf16.mxu1 %v13899_v49  ;;  %v13950_v44 = vld [vmem:[#allocation8 + $0x154c] ss:$40 sps:$4 sm:$0xff]   ;;  %v13945_v49 = vld [vmem:[#allocation8 + $0x1138] ss:$40 sps:$4 sm:$0xff]  }
 0x381   :  { %9546 = vmatprep.subr.bf16.mxu0 %v13902_v14  ;;  %v13948_v14 = vld [vmem:[#allocation8 + $0x1548] ss:$40 sps:$4 sm:$0xff]  }
 0x383   :  { %9500 = vmatpush2.bf16.msra.mxu1 %v13897_v50  ;;  %v13953_v50 = vld [vmem:[#allocation8 + $0x10ec] ss:$40 sps:$4 sm:$0xff]  }
 0x384   :  { %9547 = vmatpush2.bf16.msra.mxu0 %v13900_v35  ;;  %9501 = vmatprep.subr.bf16.mxu1 %v13905_v51  ;;  %v13956_v35 = vld [vmem:[#allocation8 + $0x14fc] ss:$40 sps:$4 sm:$0xff]   ;;  %v13951_v51 = vld [vmem:[#allocation8 + $0x10e8] ss:$40 sps:$4 sm:$0xff]  }
 0x385   :  { %9548 = vmatprep.subr.bf16.mxu0 %v13908_v53  ;;  %v13954_v53 = vld [vmem:[#allocation8 + $0x14f8] ss:$40 sps:$4 sm:$0xff]  }
 0x387   :  { %9502 = vmatpush2.bf16.msra.mxu1 %v13903_v46  ;;  %v13959_v46 = vld [vmem:[#allocation8 + $0x109c] ss:$40 sps:$4 sm:$0xff]  }
 0x388   :  { %9549 = vmatpush2.bf16.msra.mxu0 %v13906_v15  ;;  %9503 = vmatprep.subr.bf16.mxu1 %v13911_v54  ;;  %v13962_v15 = vld [vmem:[#allocation8 + $0x14ac] ss:$40 sps:$4 sm:$0xff]   ;;  %v13957_v54 = vld [vmem:[#allocation8 + $0x1098] ss:$40 sps:$4 sm:$0xff]  }
 0x389   :  { %9550 = vmatprep.subr.bf16.mxu0 %v13914_v56  ;;  %v13960_v56 = vld [vmem:[#allocation8 + $0x14a8] ss:$40 sps:$4 sm:$0xff]  }
 0x38b   :  { %9504 = vmatpush2.bf16.msra.mxu1 %v13909_v48  ;;  %v13965_v48 = vld [vmem:[#allocation8 + $0x104c] ss:$40 sps:$4 sm:$0xff]  }
 0x38c   :  { %9551 = vmatpush2.bf16.msra.mxu0 %v13912_v52  ;;  %9505 = vmatprep.subr.bf16.mxu1 %v13917_v19  ;;  %v13968_v52 = vld [vmem:[#allocation8 + $0x145c] ss:$40 sps:$4 sm:$0xff]   ;;  %v13963_v19 = vld [vmem:[#allocation8 + $0x1048] ss:$40 sps:$4 sm:$0xff]  }
 0x38d   :  { %9552 = vmatprep.subr.bf16.mxu0 %v13920_v62  ;;  %v13966_v62 = vld [vmem:[#allocation8 + $0x1458] ss:$40 sps:$4 sm:$0xff]  }
 0x38f   :  { %9506 = vmatpush2.bf16.msra.mxu1 %v13915_v21  ;;  %v13971_v21 = vld [vmem:[#allocation8 + $0xffc] ss:$40 sps:$4 sm:$0xff]  }
 0x390   :  { %9553 = vmatpush2.bf16.msra.mxu0 %v13918_v0  ;;  %9507 = vmatprep.subr.bf16.mxu1 %v13923_v1  ;;  %v13974_v0 = vld [vmem:[#allocation8 + $0x140c] ss:$40 sps:$4 sm:$0xff]   ;;  %v13969_v1 = vld [vmem:[#allocation8 + $0xff8] ss:$40 sps:$4 sm:$0xff]  }
 0x391   :  { %9554 = vmatprep.subr.bf16.mxu0 %v13926_v5  ;;  %v13972_v5 = vld [vmem:[#allocation8 + $0x1408] ss:$40 sps:$4 sm:$0xff]  }
 0x393   :  { %9508 = vmatpush2.bf16.msra.mxu1 %v13921_v31  ;;  %v13977_v31 = vld [vmem:[#allocation8 + $0xfac] ss:$40 sps:$4 sm:$0xff]  }
 0x394   :  { %9555 = vmatpush2.bf16.msra.mxu0 %v13924_v60  ;;  %9509 = vmatprep.subr.bf16.mxu1 %v13929_v58  ;;  %v13980_v60 = vld [vmem:[#allocation8 + $0x18bc] ss:$40 sps:$4 sm:$0xff]   ;;  %v13975_v58 = vld [vmem:[#allocation8 + $0xfa8] ss:$40 sps:$4 sm:$0xff]  }
 0x395   :  { %9606 = vmatprep.subr.bf16.mxu0 %v13932_v32  ;;  %v13983_v32 = vld [vmem:[#allocation8 + $0xf5c] ss:$40 sps:$4 sm:$0xff]  }
 0x396   :  { %v9312_v25 = vpop.f32.mrf.mxu0 }
 0x397   :  { %v15300_v8 = vadd.f32 %v9312_v25, %v9272_v22  ;;  %9510 = vmatpush2.bf16.msra.mxu1 %v13927_v47  ;;  %9557 = vmatmul.mubr.bf16.vlgmr.msra.gmra.mxu0 %v15255_v26  ;;  %v13981_v22 = vld [vmem:[#allocation8 + $0xf58] ss:$40 sps:$4 sm:$0xff]   ;;  %v13989_v25 = vld [vmem:[#allocation8 + $0xf0c] ss:$40 sps:$4 sm:$0xff]  }
 0x398   :  { %9607 = vmatpush1.bf16.msra.mxu0 %v13930_v20  ;;  %9638 = vmatprep.mubr.bf16.mxu0 %v15281_v57  ;;  %v9314_v11 = vpop.f32.mrf.mxu0 }
 0x399   :  { %v15304_v36 = vadd.f32 %v9314_v11, %v9274_v28  ;;  %9511 = vmatprep.subr.bf16.mxu1 %v13935_v24  ;;  %9608 = vmatprep.subr.bf16.mxu0 %v13938_v42  ;;  %v13984_v42 = vld [vmem:[#allocation8 + $0x1868] ss:$40 sps:$4 sm:$0xff]  }
 0x39a   :  { %v9316_v39 = vpop.f32.mrf.mxu0 }
 0x39b   :  { %9512 = vmatpush2.bf16.msra.mxu1 %v13933_v27  ;;  %v13992_v27 = vld [vmem:[#allocation8 + $0x181c] ss:$40 sps:$4 sm:$0xff]   ;;  %v13998_v39 = vld [vmem:[#allocation8 + $0x17cc] ss:$40 sps:$4 sm:$0xff]  }
 0x39c   :  { %9609 = vmatpush1.bf16.msra.mxu0 %v13936_v63  ;;  %v9317_v41 = vpop.f32.mrf.mxu0  ;;  %9513 = vmatprep.subr.bf16.mxu1 %v13941_v6  ;;  %v13987_v63 = vld [vmem:[#allocation8 + $0xf08] ss:$40 sps:$4 sm:$0xff]  }
 0x39d   :  { %9610 = vmatprep.subr.bf16.mxu0 %v13944_v12  ;;  %v13995_v12 = vld [vmem:[#allocation8 + $0x13bc] ss:$40 sps:$4 sm:$0xff]   ;;  %v13996_v41 = vld [vmem:[#allocation8 + $0x17c8] ss:$40 sps:$4 sm:$0xff]  }
 0x39f   :  { %9514 = vmatpush2.bf16.msra.mxu1 %v13939_v33  ;;  %v13993_v33 = vld [vmem:[#allocation8 + $0x13b8] ss:$40 sps:$4 sm:$0xff]  }
 0x3a0   :  { %9611 = vmatpush1.bf16.msra.mxu0 %v13942_v17  ;;  %9565 = vmatprep.subr.bf16.mxu1 %v13947_v45  ;;  %v14001_v17 = vld [vmem:[#allocation8 + $0x136c] ss:$40 sps:$4 sm:$0xff]   ;;  %v13999_v45 = vld [vmem:[#allocation8 + $0x1368] ss:$40 sps:$4 sm:$0xff]  }
 0x3a1   :  { %9612 = vmatprep.subr.bf16.mxu0 %v13950_v44  ;;  %v14002_v44 = vld [vmem:[#allocation8 + $0x1778] ss:$40 sps:$4 sm:$0xff]  }
 0x3a2   :  { %9516 = vmatmul.mubr.bf16.vlgmr.msra.gmra.mxu1 %v15243_v30 }
 0x3a3   :  { %9566 = vmatpush1.bf16.msra.mxu1 %v13945_v49  ;;  %9597 = vmatprep.mubr.bf16.mxu1 %v15251_v59  ;;  %v14007_v49 = vld [vmem:[#allocation8 + $0x131c] ss:$40 sps:$4 sm:$0xff]  }
 0x3a4   :  { %9613 = vmatpush1.bf16.msra.mxu0 %v13948_v14  ;;  %9567 = vmatprep.subr.bf16.mxu1 %v13953_v50  ;;  %v14010_v14 = vld [vmem:[#allocation8 + $0x172c] ss:$40 sps:$4 sm:$0xff]   ;;  %v14005_v50 = vld [vmem:[#allocation8 + $0x1318] ss:$40 sps:$4 sm:$0xff]  }
 0x3a5   :  { %9614 = vmatprep.subr.bf16.mxu0 %v13956_v35  ;;  %v14008_v35 = vld [vmem:[#allocation8 + $0x1728] ss:$40 sps:$4 sm:$0xff]  }
 0x3a7   :  { %9568 = vmatpush1.bf16.msra.mxu1 %v13951_v51  ;;  %v14013_v51 = vld [vmem:[#allocation8 + $0x12cc] ss:$40 sps:$4 sm:$0xff]  }
 0x3a8   :  { %9615 = vmatpush1.bf16.msra.mxu0 %v13954_v53  ;;  %9569 = vmatprep.subr.bf16.mxu1 %v13959_v46  ;;  %v14016_v53 = vld [vmem:[#allocation8 + $0x16dc] ss:$40 sps:$4 sm:$0xff]   ;;  %v14011_v46 = vld [vmem:[#allocation8 + $0x12c8] ss:$40 sps:$4 sm:$0xff]  }
 0x3a9   :  { %9616 = vmatprep.subr.bf16.mxu0 %v13962_v15  ;;  %v14014_v15 = vld [vmem:[#allocation8 + $0x16d8] ss:$40 sps:$4 sm:$0xff]  }
 0x3ab   :  { %9570 = vmatpush1.bf16.msra.mxu1 %v13957_v54  ;;  %v14019_v54 = vld [vmem:[#allocation8 + $0x127c] ss:$40 sps:$4 sm:$0xff]  }
 0x3ac   :  { %9617 = vmatpush1.bf16.msra.mxu0 %v13960_v56  ;;  %9571 = vmatprep.subr.bf16.mxu1 %v13965_v48  ;;  %v14022_v56 = vld [vmem:[#allocation8 + $0x168c] ss:$40 sps:$4 sm:$0xff]   ;;  %v14017_v48 = vld [vmem:[#allocation8 + $0x1278] ss:$40 sps:$4 sm:$0xff]  }
 0x3ad   :  { %9618 = vmatprep.subr.bf16.mxu0 %v13968_v52  ;;  %v14020_v52 = vld [vmem:[#allocation8 + $0x1688] ss:$40 sps:$4 sm:$0xff]  }
 0x3af   :  { %9572 = vmatpush1.bf16.msra.mxu1 %v13963_v19  ;;  %v14025_v19 = vld [vmem:[#allocation8 + $0x122c] ss:$40 sps:$4 sm:$0xff]  }
 0x3b0   :  { %9619 = vmatpush1.bf16.msra.mxu0 %v13966_v62  ;;  %9573 = vmatprep.subr.bf16.mxu1 %v13971_v21  ;;  %v14028_v62 = vld [vmem:[#allocation8 + $0x744] ss:$40 sps:$4 sm:$0xff]   ;;  %v14023_v21 = vld [vmem:[#allocation8 + $0x1228] ss:$40 sps:$4 sm:$0xff]  }
 0x3b1   :  { %9620 = vmatprep.subr.bf16.mxu0 %v13974_v0  ;;  %v14026_v0 = vld [vmem:[#allocation8 + $0x740] ss:$40 sps:$4 sm:$0xff]  }
 0x3b3   :  { %9574 = vmatpush1.bf16.msra.mxu1 %v13969_v1  ;;  %v14031_v1 = vld [vmem:[#allocation8 + $0x11dc] ss:$40 sps:$4 sm:$0xff]  }
 0x3b4   :  { %9621 = vmatpush1.bf16.msra.mxu0 %v13972_v5  ;;  %9575 = vmatprep.subr.bf16.mxu1 %v13977_v31  ;;  %v14034_v5 = vld [vmem:[#allocation8 + $0x6f4] ss:$40 sps:$4 sm:$0xff]  }
 0x3b5   :  { %9622 = vmatprep.subr.bf16.mxu0 %v13980_v60 }
 0x3b7   :  { %v9353_v47 = vpop.f32.mrf.mxu1  ;;  %9576 = vmatpush1.bf16.msra.mxu1 %v13975_v58  ;;  %v14029_v58 = vld [vmem:[#allocation8 + $0x11d8] ss:$40 sps:$4 sm:$0xff]  }
 0x3b8   :  { %v15309_v20 = vadd.f32 %v9353_v47, %v15300_v8  ;;  %9623 = vmatpush2.bf16.msra.mxu0 %v13978_v9  ;;  %9577 = vmatprep.subr.bf16.mxu1 %v13983_v32  ;;  %v13990_v8 = vld [vmem:[#allocation8 + $0x1818] ss:$40 sps:$4 sm:$0xff]  }
 0x3b9   :  { %v9355_v24 = vpop.f32.mrf.mxu1  ;;  %9624 = vmatprep.subr.bf16.mxu0 %v13986_v13  ;;  %v14032_v32 = vld [vmem:[#allocation8 + $0x6f0] ss:$40 sps:$4 sm:$0xff]   ;;  %v14037_v13 = vld [vmem:[#allocation8 + $0x118c] ss:$40 sps:$4 sm:$0xff]  }
 0x3ba   :  { %v15312_v28 = vadd.f32 %v9355_v24, %v15304_v36  ;;  %v14004_v36 = vld [vmem:[#allocation8 + $0x177c] ss:$40 sps:$4 sm:$0xff]  }
 0x3bb   :  { %v9357_v11 = vpop.f32.mrf.mxu1  ;;  %9578 = vmatpush1.bf16.msra.mxu1 %v13981_v22  ;;  %v14040_v22 = vld [vmem:[#allocation8 + $0x6a4] ss:$40 sps:$4 sm:$0xff]  }
 0x3bc   :  { %9625 = vmatpush2.bf16.msra.mxu0 %v13984_v42  ;;  %9579 = vmatprep.subr.bf16.mxu1 %v13989_v25  ;;  %v14038_v25 = vld [vmem:[#allocation8 + $0x6a0] ss:$40 sps:$4 sm:$0xff]   ;;  %v14046_v11 = vld [vmem:[#allocation8 + $0x654] ss:$40 sps:$4 sm:$0xff]  }
 0x3bd   :  { %v9358_v6 = vpop.f32.mrf.mxu1  ;;  %9626 = vmatprep.subr.bf16.mxu0 %v13992_v27  ;;  %v14043_v27 = vld [vmem:[#allocation8 + $0x244] ss:$40 sps:$4 sm:$0xff]  }
 0x3be   :  { %v14044_v6 = vld [vmem:[#allocation8 + $0x650] ss:$40 sps:$4 sm:$0xff]  }
 0x3bf   :  { %9580 = vmatpush1.bf16.msra.mxu1 %v13987_v63  ;;  %v14041_v63 = vld [vmem:[#allocation8 + $0x240] ss:$40 sps:$4 sm:$0xff]  }
 0x3c0   :  { %9627 = vmatpush2.bf16.msra.mxu0 %v13990_v8  ;;  %9581 = vmatprep.subr.bf16.mxu1 %v13995_v12  ;;  %v14052_v8 = vld [vmem:[#allocation8 + $0x604] ss:$40 sps:$4 sm:$0xff]   ;;  %v14047_v12 = vld [vmem:[#allocation8 + $0x1f0] ss:$40 sps:$4 sm:$0xff]  }
 0x3c1   :  { %9628 = vmatprep.subr.bf16.mxu0 %v13998_v39  ;;  %v14050_v39 = vld [vmem:[#allocation8 + $0x600] ss:$40 sps:$4 sm:$0xff]  }
 0x3c3   :  { %9582 = vmatpush2.bf16.msra.mxu1 %v13993_v33  ;;  %v14055_v33 = vld [vmem:[#allocation8 + $0x1a4] ss:$40 sps:$4 sm:$0xff]  }
 0x3c4   :  { %9629 = vmatpush2.bf16.msra.mxu0 %v13996_v41  ;;  %9583 = vmatprep.subr.bf16.mxu1 %v14001_v17  ;;  %v14058_v41 = vld [vmem:[#allocation8 + $0x5b4] ss:$40 sps:$4 sm:$0xff]   ;;  %v14053_v17 = vld [vmem:[#allocation8 + $0x1a0] ss:$40 sps:$4 sm:$0xff]  }
 0x3c5   :  { %9630 = vmatprep.subr.bf16.mxu0 %v14004_v36  ;;  %v14056_v36 = vld [vmem:[#allocation8 + $0x5b0] ss:$40 sps:$4 sm:$0xff]  }
 0x3c7   :  { %9584 = vmatpush2.bf16.msra.mxu1 %v13999_v45  ;;  %v14061_v45 = vld [vmem:[#allocation8 + $0x154] ss:$40 sps:$4 sm:$0xff]  }
 0x3c8   :  { %9631 = vmatpush2.bf16.msra.mxu0 %v14002_v44  ;;  %9585 = vmatprep.subr.bf16.mxu1 %v14007_v49  ;;  %v14064_v44 = vld [vmem:[#allocation8 + $0x564] ss:$40 sps:$4 sm:$0xff]   ;;  %v14059_v49 = vld [vmem:[#allocation8 + $0x150] ss:$40 sps:$4 sm:$0xff]  }
 0x3c9   :  { %9632 = vmatprep.subr.bf16.mxu0 %v14010_v14  ;;  %v14062_v14 = vld [vmem:[#allocation8 + $0x560] ss:$40 sps:$4 sm:$0xff]  }
 0x3cb   :  { %9586 = vmatpush2.bf16.msra.mxu1 %v14005_v50  ;;  %v14067_v50 = vld [vmem:[#allocation8 + $0x104] ss:$40 sps:$4 sm:$0xff]  }
 0x3cc   :  { %9633 = vmatpush2.bf16.msra.mxu0 %v14008_v35  ;;  %9587 = vmatprep.subr.bf16.mxu1 %v14013_v51  ;;  %v14070_v35 = vld [vmem:[#allocation8 + $0x514] ss:$40 sps:$4 sm:$0xff]   ;;  %v14065_v51 = vld [vmem:[#allocation8 + $0x100] ss:$40 sps:$4 sm:$0xff]  }
 0x3cd   :  { %9634 = vmatprep.subr.bf16.mxu0 %v14016_v53  ;;  %v14068_v53 = vld [vmem:[#allocation8 + $0x510] ss:$40 sps:$4 sm:$0xff]  }
 0x3cf   :  { %9588 = vmatpush2.bf16.msra.mxu1 %v14011_v46  ;;  %v14073_v46 = vld [vmem:[#allocation8 + $0xb4] ss:$40 sps:$4 sm:$0xff]  }
 0x3d0   :  { %9635 = vmatpush2.bf16.msra.mxu0 %v14014_v15  ;;  %9589 = vmatprep.subr.bf16.mxu1 %v14019_v54  ;;  %v14076_v15 = vld [vmem:[#allocation8 + $0x9c4] ss:$40 sps:$4 sm:$0xff]   ;;  %v14071_v54 = vld [vmem:[#allocation8 + $0xb0] ss:$40 sps:$4 sm:$0xff]  }
 0x3d1   :  { %9636 = vmatprep.subr.bf16.mxu0 %v14022_v56  ;;  %v14074_v56 = vld [vmem:[#allocation8 + $0x9c0] ss:$40 sps:$4 sm:$0xff]  }
 0x3d3   :  { %9590 = vmatpush2.bf16.msra.mxu1 %v14017_v48  ;;  %v14079_v48 = vld [vmem:[#allocation8 + $0x64] ss:$40 sps:$4 sm:$0xff]  }
 0x3d4   :  { %9637 = vmatpush2.bf16.msra.mxu0 %v14020_v52  ;;  %9591 = vmatprep.subr.bf16.mxu1 %v14025_v19  ;;  %v14082_v52 = vld [vmem:[#allocation8 + $0x974] ss:$40 sps:$4 sm:$0xff]   ;;  %v14077_v19 = vld [vmem:[#allocation8 + $0x60] ss:$40 sps:$4 sm:$0xff]  }
 0x3d5   :  { %9688 = vmatprep.subr.bf16.mxu0 %v14028_v62  ;;  %v14080_v62 = vld [vmem:[#allocation8 + $0x970] ss:$40 sps:$4 sm:$0xff]  }
 0x3d6   :  { %v9394_v31 = vpop.f32.mrf.mxu0 }
 0x3d7   :  { %v15315_v60 = vadd.f32 %v9394_v31, %v15309_v20  ;;  %9592 = vmatpush2.bf16.msra.mxu1 %v14023_v21  ;;  %9639 = vmatmul.mubr.bf16.vlgmr.msra.gmra.mxu0 %v15283_v61  ;;  %v14035_v20 = vld [vmem:[#allocation8 + $0x1188] ss:$40 sps:$4 sm:$0xff]   ;;  %v14085_v21 = vld [vmem:[#allocation8 + $0x14] ss:$40 sps:$4 sm:$0xff]   ;;  %v14091_v31 = vld [vmem:[#allocation8 + $0x4c4] ss:$40 sps:$4 sm:$0xff]  }
 0x3d8   :  { %9689 = vmatpush1.bf16.msra.mxu0 %v14026_v0  ;;  %9720 = vmatprep.mubr.bf16.mxu0 %v15213_v55  ;;  %v9396_v9 = vpop.f32.mrf.mxu0  ;;  %v14088_v0 = vld [vmem:[#allocation8 + $0x924] ss:$40 sps:$4 sm:$0xff]  }
 0x3d9   :  { %v15320_v47 = vadd.f32 %v9396_v9, %v15312_v28  ;;  %9593 = vmatprep.subr.bf16.mxu1 %v14031_v1  ;;  %9690 = vmatprep.subr.bf16.mxu0 %v14034_v5  ;;  %v14049_v28 = vld [vmem:[#allocation8 + $0x1f4] ss:$40 sps:$4 sm:$0xff]   ;;  %v14083_v1 = vld [vmem:[#allocation8 + $0x10] ss:$40 sps:$4 sm:$0xff]   ;;  %v14086_v5 = vld [vmem:[#allocation8 + $0x920] ss:$40 sps:$4 sm:$0xff]  }
 0x3da   :  { %v9398_v24 = vpop.f32.mrf.mxu0  ;;  %v14089_v9 = vld [vmem:[#allocation8 + $0x4c0] ss:$40 sps:$4 sm:$0xff]  }
 0x3db   :  { %9594 = vmatpush2.bf16.msra.mxu1 %v14029_v58  ;;  %v14094_v58 = vld [vmem:[#allocation8 + $0x8d4] ss:$40 sps:$4 sm:$0xff]   ;;  %v14095_v24 = vld [vmem:[#allocation8 + $0x470] ss:$40 sps:$4 sm:$0xff]  }
 0x3dc   :  { %9691 = vmatpush1.bf16.msra.mxu0 %v14032_v32  ;;  %v9399_v42 = vpop.f32.mrf.mxu0  ;;  %9595 = vmatprep.subr.bf16.mxu1 %v14037_v13  ;;  %v14092_v32 = vld [vmem:[#allocation8 + $0x8d0] ss:$40 sps:$4 sm:$0xff]   ;;  %v14097_v13 = vld [vmem:[#allocation8 + $0x474] ss:$40 sps:$4 sm:$0xff]  }
 0x3dd   :  { %9692 = vmatprep.subr.bf16.mxu0 %v14040_v22  ;;  %v14100_v22 = vld [vmem:[#allocation8 + $0x884] ss:$40 sps:$4 sm:$0xff]  }
 0x3de   :  { %v14103_v42 = vld [vmem:[#allocation8 + $0x424] ss:$40 sps:$4 sm:$0xff]  }
 0x3df   :  { %9596 = vmatpush2.bf16.msra.mxu1 %v14035_v20  ;;  %v14098_v20 = vld [vmem:[#allocation8 + $0x880] ss:$40 sps:$4 sm:$0xff]  }
 0x3e0   :  { %9693 = vmatpush1.bf16.msra.mxu0 %v14038_v25  ;;  %9647 = vmatprep.subr.bf16.mxu1 %v14043_v27  ;;  %v14106_v25 = vld [vmem:[#allocation8 + $0x834] ss:$40 sps:$4 sm:$0xff]   ;;  %v14101_v27 = vld [vmem:[#allocation8 + $0x420] ss:$40 sps:$4 sm:$0xff]  }
 0x3e1   :  { %9694 = vmatprep.subr.bf16.mxu0 %v14046_v11  ;;  %v14104_v11 = vld [vmem:[#allocation8 + $0x830] ss:$40 sps:$4 sm:$0xff]  }
 0x3e2   :  { %9598 = vmatmul.mubr.bf16.vlgmr.msra.gmra.mxu1 %v15261_v7 }
 0x3e3   :  { %9648 = vmatpush1.bf16.msra.mxu1 %v14041_v63  ;;  %9679 = vmatprep.mubr.bf16.mxu1 %v15200_v2  ;;  %v14109_v63 = vld [vmem:[#allocation8 + $0x3d4] ss:$40 sps:$4 sm:$0xff]  }
 0x3e4   :  { %9695 = vmatpush1.bf16.msra.mxu0 %v14044_v6  ;;  %9649 = vmatprep.subr.bf16.mxu1 %v14049_v28  ;;  %v14112_v6 = vld [vmem:[#allocation8 + $0x7e4] ss:$40 sps:$4 sm:$0xff]   ;;  %v14107_v28 = vld [vmem:[#allocation8 + $0x3d0] ss:$40 sps:$4 sm:$0xff]  }
 0x3e5   :  { %9696 = vmatprep.subr.bf16.mxu0 %v14052_v8  ;;  %v14110_v8 = vld [vmem:[#allocation8 + $0x7e0] ss:$40 sps:$4 sm:$0xff]  }
 0x3e7   :  { %9650 = vmatpush1.bf16.msra.mxu1 %v14047_v12  ;;  %v14115_v12 = vld [vmem:[#allocation8 + $0x384] ss:$40 sps:$4 sm:$0xff]  }
 0x3e8   :  { %9697 = vmatpush1.bf16.msra.mxu0 %v14050_v39  ;;  %9651 = vmatprep.subr.bf16.mxu1 %v14055_v33  ;;  %v14118_v39 = vld [vmem:[#allocation8 + $0x794] ss:$40 sps:$4 sm:$0xff]   ;;  %v14113_v33 = vld [vmem:[#allocation8 + $0x380] ss:$40 sps:$4 sm:$0xff]  }
 0x3e9   :  { %9698 = vmatprep.subr.bf16.mxu0 %v14058_v41  ;;  %v14116_v41 = vld [vmem:[#allocation8 + $0x790] ss:$40 sps:$4 sm:$0xff]  }
 0x3eb   :  { %9652 = vmatpush1.bf16.msra.mxu1 %v14053_v17  ;;  %v14121_v17 = vld [vmem:[#allocation8 + $0x334] ss:$40 sps:$4 sm:$0xff]  }
 0x3ec   :  { %9699 = vmatpush1.bf16.msra.mxu0 %v14056_v36  ;;  %9653 = vmatprep.subr.bf16.mxu1 %v14061_v45  ;;  %v14124_v36 = vld [vmem:[#allocation8 + $0x1144] ss:$40 sps:$4 sm:$0xff]   ;;  %v14119_v45 = vld [vmem:[#allocation8 + $0x330] ss:$40 sps:$4 sm:$0xff]  }
 0x3ed   :  { %9700 = vmatprep.subr.bf16.mxu0 %v14064_v44  ;;  %v14122_v44 = vld [vmem:[#allocation8 + $0x1140] ss:$40 sps:$4 sm:$0xff]  }
 0x3ef   :  { %9654 = vmatpush1.bf16.msra.mxu1 %v14059_v49  ;;  %v14127_v49 = vld [vmem:[#allocation8 + $0x2e4] ss:$40 sps:$4 sm:$0xff]  }
 0x3f0   :  { %9701 = vmatpush1.bf16.msra.mxu0 %v14062_v14  ;;  %9655 = vmatprep.subr.bf16.mxu1 %v14067_v50  ;;  %v14130_v14 = vld [vmem:[#allocation8 + $0x10f4] ss:$40 sps:$4 sm:$0xff]  }
 0x3f1   :  { %9702 = vmatprep.subr.bf16.mxu0 %v14070_v35  ;;  %v14125_v35 = vld [vmem:[#allocation8 + $0x2e0] ss:$40 sps:$4 sm:$0xff]  }
 0x3f3   :  { %9656 = vmatpush1.bf16.msra.mxu1 %v14065_v51 }
 0x3f4   :  { %9703 = vmatpush1.bf16.msra.mxu0 %v14068_v53  ;;  %9657 = vmatprep.subr.bf16.mxu1 %v14073_v46  ;;  %v14128_v53 = vld [vmem:[#allocation8 + $0x10f0] ss:$40 sps:$4 sm:$0xff]   ;;  %v14133_v46 = vld [vmem:[#allocation8 + $0x294] ss:$40 sps:$4 sm:$0xff]  }
 0x3f5   :  { %9704 = vmatprep.subr.bf16.mxu0 %v14076_v15  ;;  %v14136_v15 = vld [vmem:[#allocation8 + $0x10a4] ss:$40 sps:$4 sm:$0xff]  }
 0x3f7   :  { %9658 = vmatpush1.bf16.msra.mxu1 %v14071_v54 }
 0x3f8   :  { %9705 = vmatpush2.bf16.msra.mxu0 %v14074_v56  ;;  %9659 = vmatprep.subr.bf16.mxu1 %v14079_v48  ;;  %v14131_v56 = vld [vmem:[#allocation8 + $0x290] ss:$40 sps:$4 sm:$0xff]  }
 0x3f9   :  { %9706 = vmatprep.subr.bf16.mxu0 %v14082_v52  ;;  %v14134_v52 = vld [vmem:[#allocation8 + $0x10a0] ss:$40 sps:$4 sm:$0xff]  }
 0x3fb   :  { %9660 = vmatpush1.bf16.msra.mxu1 %v14077_v19  ;;  %v14139_v19 = vld [vmem:[#allocation8 + $0xc44] ss:$40 sps:$4 sm:$0xff]  }
 0x3fc   :  { %9707 = vmatpush2.bf16.msra.mxu0 %v14080_v62  ;;  %9661 = vmatprep.subr.bf16.mxu1 %v14085_v21  ;;  %v14142_v62 = vld [vmem:[#allocation8 + $0x1054] ss:$40 sps:$4 sm:$0xff]   ;;  %v14137_v21 = vld [vmem:[#allocation8 + $0xc40] ss:$40 sps:$4 sm:$0xff]  }
 0x3fd   :  { %9708 = vmatprep.subr.bf16.mxu0 %v14088_v0  ;;  %v14140_v0 = vld [vmem:[#allocation8 + $0x1050] ss:$40 sps:$4 sm:$0xff]  }
 0x3ff   :  { %9662 = vmatpush1.bf16.msra.mxu1 %v14083_v1  ;;  %v14145_v1 = vld [vmem:[#allocation8 + $0xbf4] ss:$40 sps:$4 sm:$0xff]  }
 0x400   :  { %9709 = vmatpush2.bf16.msra.mxu0 %v14086_v5  ;;  %9663 = vmatprep.subr.bf16.mxu1 %v14091_v31  ;;  %v14148_v5 = vld [vmem:[#allocation8 + $0x1004] ss:$40 sps:$4 sm:$0xff]  }
 0x401   :  { %9710 = vmatprep.subr.bf16.mxu0 %v14094_v58 }
 0x403   :  { %9664 = vmatpush2.bf16.msra.mxu1 %v14089_v9  ;;  %v14143_v9 = vld [vmem:[#allocation8 + $0xbf0] ss:$40 sps:$4 sm:$0xff]  }
 0x404   :  { %9711 = vmatpush2.bf16.msra.mxu0 %v14092_v32  ;;  %9665 = vmatprep.subr.bf16.mxu1 %v14097_v13  ;;  %v14146_v13 = vld [vmem:[#allocation8 + $0x1000] ss:$40 sps:$4 sm:$0xff]  }
 0x405   :  { %9712 = vmatprep.subr.bf16.mxu0 %v14100_v22  ;;  %v14151_v22 = vld [vmem:[#allocation8 + $0xba4] ss:$40 sps:$4 sm:$0xff]  }
 0x407   :  { %9666 = vmatpush2.bf16.msra.mxu1 %v14095_v24 }
 0x408   :  { %9713 = vmatpush2.bf16.msra.mxu0 %v14098_v20  ;;  %9667 = vmatprep.subr.bf16.mxu1 %v14103_v42  ;;  %v14154_v20 = vld [vmem:[#allocation8 + $0xfb4] ss:$40 sps:$4 sm:$0xff]  }
 0x409   :  { %9714 = vmatprep.subr.bf16.mxu0 %v14106_v25  ;;  %v14149_v25 = vld [vmem:[#allocation8 + $0xba0] ss:$40 sps:$4 sm:$0xff]  }
 0x40b   :  { %9668 = vmatpush2.bf16.msra.mxu1 %v14101_v27  ;;  %v14152_v27 = vld [vmem:[#allocation8 + $0xfb0] ss:$40 sps:$4 sm:$0xff]  }
 0x40c   :  { %9715 = vmatpush2.bf16.msra.mxu0 %v14104_v11  ;;  %9669 = vmatprep.subr.bf16.mxu1 %v14109_v63  ;;  %v14157_v11 = vld [vmem:[#allocation8 + $0xb54] ss:$40 sps:$4 sm:$0xff]   ;;  %v14160_v63 = vld [vmem:[#allocation8 + $0xf64] ss:$40 sps:$4 sm:$0xff]  }
 0x40d   :  { %9716 = vmatprep.subr.bf16.mxu0 %v14112_v6  ;;  %v14155_v6 = vld [vmem:[#allocation8 + $0xb50] ss:$40 sps:$4 sm:$0xff]  }
 0x40f   :  { %9670 = vmatpush2.bf16.msra.mxu1 %v14107_v28  ;;  %v14158_v28 = vld [vmem:[#allocation8 + $0xf60] ss:$40 sps:$4 sm:$0xff]  }
 0x410   :  { %9717 = vmatpush2.bf16.msra.mxu0 %v14110_v8  ;;  %9671 = vmatprep.subr.bf16.mxu1 %v14115_v12  ;;  %v14163_v8 = vld [vmem:[#allocation8 + $0xb04] ss:$40 sps:$4 sm:$0xff]   ;;  %v14161_v12 = vld [vmem:[#allocation8 + $0xb00] ss:$40 sps:$4 sm:$0xff]  }
 0x411   :  { %9718 = vmatprep.subr.bf16.mxu0 %v14118_v39  ;;  %v14164_v39 = vld [vmem:[#allocation8 + $0xf10] ss:$40 sps:$4 sm:$0xff]  }
 0x413   :  { %9672 = vmatpush2.bf16.msra.mxu1 %v14113_v33  ;;  %v14169_v33 = vld [vmem:[#allocation8 + $0xab4] ss:$40 sps:$4 sm:$0xff]  }
 0x414   :  { %9719 = vmatpush2.bf16.msra.mxu0 %v14116_v41  ;;  %9673 = vmatprep.subr.bf16.mxu1 %v14121_v17  ;;  %v14172_v41 = vld [vmem:[#allocation8 + $0x13c4] ss:$40 sps:$4 sm:$0xff]   ;;  %v14167_v17 = vld [vmem:[#allocation8 + $0xab0] ss:$40 sps:$4 sm:$0xff]  }
 0x415   :  { %9770 = vmatprep.subr.bf16.mxu0 %v14124_v36  ;;  %v14170_v36 = vld [vmem:[#allocation8 + $0x13c0] ss:$40 sps:$4 sm:$0xff]  }
 0x416   :  { %v15324_v50 = vpop.f32.mrf.mxu0 }
 0x417   :  { %9674 = vmatpush2.bf16.msra.mxu1 %v14119_v45  ;;  %9721 = vmatmul.mubr.bf16.vlgmr.msra.gmra.mxu0 %v15243_v30  ;;  %v14175_v45 = vld [vmem:[#allocation8 + $0xa64] ss:$40 sps:$4 sm:$0xff]  }
 0x418   :  { %9771 = vmatpush1.bf16.msra.mxu0 %v14122_v44  ;;  %9802 = vmatprep.mubr.bf16.mxu0 %v15251_v59  ;;  %v15328_v51 = vpop.f32.mrf.mxu0  ;;  %v14178_v44 = vld [vmem:[#allocation8 + $0x1374] ss:$40 sps:$4 sm:$0xff]  }
 0x419   :  { %9675 = vmatprep.subr.bf16.mxu1 %v14127_v49  ;;  %9772 = vmatprep.subr.bf16.mxu0 %v14130_v14  ;;  %v14173_v49 = vld [vmem:[#allocation8 + $0xa60] ss:$40 sps:$4 sm:$0xff]   ;;  %v14176_v14 = vld [vmem:[#allocation8 + $0x1370] ss:$40 sps:$4 sm:$0xff]  }
 0x41a   :  { %v9480_v54 = vpop.f32.mrf.mxu0 }
 0x41b   :  { %9676 = vmatpush2.bf16.msra.mxu1 %v14125_v35  ;;  %v14181_v35 = vld [vmem:[#allocation8 + $0xa14] ss:$40 sps:$4 sm:$0xff]   ;;  %v14187_v54 = vld [vmem:[#allocation8 + $0xec4] ss:$40 sps:$4 sm:$0xff]  }
 0x41c   :  { %9773 = vmatpush1.bf16.msra.mxu0 %v14128_v53  ;;  %v9481_v48 = vpop.f32.mrf.mxu0  ;;  %9677 = vmatprep.subr.bf16.mxu1 %v14133_v46  ;;  %v14184_v53 = vld [vmem:[#allocation8 + $0x1324] ss:$40 sps:$4 sm:$0xff]   ;;  %v14179_v46 = vld [vmem:[#allocation8 + $0xa10] ss:$40 sps:$4 sm:$0xff]  }
 0x41d   :  { %9774 = vmatprep.subr.bf16.mxu0 %v14136_v15  ;;  %v14182_v15 = vld [vmem:[#allocation8 + $0x1320] ss:$40 sps:$4 sm:$0xff]  }
 0x41e   :  { %v14185_v48 = vld [vmem:[#allocation8 + $0xec0] ss:$40 sps:$4 sm:$0xff]  }
 0x41f   :  { %9678 = vmatpush2.bf16.msra.mxu1 %v14131_v56  ;;  %v14190_v56 = vld [vmem:[#allocation8 + $0x12d4] ss:$40 sps:$4 sm:$0xff]  }
 0x420   :  { %9775 = vmatpush1.bf16.msra.mxu0 %v14134_v52  ;;  %9729 = vmatprep.subr.bf16.mxu1 %v14139_v19  ;;  %v14188_v52 = vld [vmem:[#allocation8 + $0x12d0] ss:$40 sps:$4 sm:$0xff]   ;;  %v14193_v19 = vld [vmem:[#allocation8 + $0xe74] ss:$40 sps:$4 sm:$0xff]  }
 0x421   :  { %9776 = vmatprep.subr.bf16.mxu0 %v14142_v62  ;;  %v14196_v62 = vld [vmem:[#allocation8 + $0x1284] ss:$40 sps:$4 sm:$0xff]  }
 0x422   :  { %9680 = vmatmul.mubr.bf16.vlgmr.msra.gmra.mxu1 %v15227_v18  ;;  %v9435_v31 = vpop.f32.mrf.mxu1 }
 0x423   :  { %v15332_v58 = vadd.f32 %v9435_v31, %v15315_v60  ;;  %9730 = vmatpush1.bf16.msra.mxu1 %v14137_v21  ;;  %9761 = vmatprep.mubr.bf16.mxu1 %v15229_v38  ;;  %v14191_v21 = vld [vmem:[#allocation8 + $0xe70] ss:$40 sps:$4 sm:$0xff]   ;;  %v14197_v31 = vld [vmem:[#allocation8 + $0xe20] ss:$40 sps:$4 sm:$0xff]  }
 0x424   :  { %9777 = vmatpush1.bf16.msra.mxu0 %v14140_v0  ;;  %v9437_v32 = vpop.f32.mrf.mxu1  ;;  %9731 = vmatprep.subr.bf16.mxu1 %v14145_v1  ;;  %v14194_v0 = vld [vmem:[#allocation8 + $0x1280] ss:$40 sps:$4 sm:$0xff]   ;;  %v14199_v1 = vld [vmem:[#allocation8 + $0xe24] ss:$40 sps:$4 sm:$0xff]  }
 0x425   :  { %v15336_v24 = vadd.f32 %v9437_v32, %v15320_v47  ;;  %9778 = vmatprep.subr.bf16.mxu0 %v14148_v5  ;;  %v14166_v47 = vld [vmem:[#allocation8 + $0xf14] ss:$40 sps:$4 sm:$0xff]  }
 0x426   :  { %v9439_v42 = vpop.f32.mrf.mxu1  ;;  %v14202_v5 = vld [vmem:[#allocation8 + $0x1234] ss:$40 sps:$4 sm:$0xff]  }
 0x427   :  { %9732 = vmatpush1.bf16.msra.mxu1 %v14143_v9  ;;  %v14200_v9 = vld [vmem:[#allocation8 + $0x1230] ss:$40 sps:$4 sm:$0xff]   ;;  %v14205_v32 = vld [vmem:[#allocation8 + $0xdd4] ss:$40 sps:$4 sm:$0xff]   ;;  %v14211_v42 = vld [vmem:[#allocation8 + $0xd84] ss:$40 sps:$4 sm:$0xff]  }
 0x428   :  { %9779 = vmatpush1.bf16.msra.mxu0 %v14146_v13  ;;  %v9440_v60 = vpop.f32.mrf.mxu1  ;;  %9733 = vmatprep.subr.bf16.mxu1 %v14151_v22  ;;  %v14208_v13 = vld [vmem:[#allocation8 + $0x11e4] ss:$40 sps:$4 sm:$0xff]   ;;  %v14203_v22 = vld [vmem:[#allocation8 + $0xdd0] ss:$40 sps:$4 sm:$0xff]  }
 0x429   :  { %9780 = vmatprep.subr.bf16.mxu0 %v14154_v20  ;;  %v14206_v20 = vld [vmem:[#allocation8 + $0x11e0] ss:$40 sps:$4 sm:$0xff]  }
 0x42a   :  { %v14209_v60 = vld [vmem:[#allocation8 + $0xd80] ss:$40 sps:$4 sm:$0xff]  }
 0x42b   :  { %9734 = vmatpush1.bf16.msra.mxu1 %v14149_v25  ;;  %v14214_v25 = vld [vmem:[#allocation8 + $0x1194] ss:$40 sps:$4 sm:$0xff]  }
 0x42c   :  { %9781 = vmatpush1.bf16.msra.mxu0 %v14152_v27  ;;  %9735 = vmatprep.subr.bf16.mxu1 %v14157_v11  ;;  %v14212_v27 = vld [vmem:[#allocation8 + $0x1190] ss:$40 sps:$4 sm:$0xff]   ;;  %v14217_v11 = vld [vmem:[#allocation8 + $0xd34] ss:$40 sps:$4 sm:$0xff]  }
 0x42d   :  { %9782 = vmatprep.subr.bf16.mxu0 %v14160_v63  ;;  %v14220_v63 = vld [vmem:[#allocation8 + $0x24c] ss:$40 sps:$4 sm:$0xff]  }
 0x42f   :  { %9736 = vmatpush1.bf16.msra.mxu1 %v14155_v6  ;;  %v14215_v6 = vld [vmem:[#allocation8 + $0xd30] ss:$40 sps:$4 sm:$0xff]  }
 0x430   :  { %9783 = vmatpush1.bf16.msra.mxu0 %v14158_v28  ;;  %9737 = vmatprep.subr.bf16.mxu1 %v14163_v8  ;;  %v14218_v28 = vld [vmem:[#allocation8 + $0x248] ss:$40 sps:$4 sm:$0xff]   ;;  %v14223_v8 = vld [vmem:[#allocation8 + $0xce4] ss:$40 sps:$4 sm:$0xff]  }
 0x431   :  { %9784 = vmatprep.subr.bf16.mxu0 %v14166_v47  ;;  %v14226_v47 = vld [vmem:[#allocation8 + $0x1fc] ss:$40 sps:$4 sm:$0xff]  }
 0x433   :  { %9738 = vmatpush1.bf16.msra.mxu1 %v14161_v12 }
 0x434   :  { %9785 = vmatpush1.bf16.msra.mxu0 %v14164_v39  ;;  %9739 = vmatprep.subr.bf16.mxu1 %v14169_v33  ;;  %v14221_v39 = vld [vmem:[#allocation8 + $0xce0] ss:$40 sps:$4 sm:$0xff]  }
 0x435   :  { %9786 = vmatprep.subr.bf16.mxu0 %v14172_v41  ;;  %v14224_v33 = vld [vmem:[#allocation8 + $0x1f8] ss:$40 sps:$4 sm:$0xff]   ;;  %v14229_v41 = vld [vmem:[#allocation8 + $0xc94] ss:$40 sps:$4 sm:$0xff]  }
 0x437   :  { %9740 = vmatpush1.bf16.msra.mxu1 %v14167_v17 }
 0x438   :  { %9787 = vmatpush2.bf16.msra.mxu0 %v14170_v36  ;;  %9741 = vmatprep.subr.bf16.mxu1 %v14175_v45  ;;  %v14232_v36 = vld [vmem:[#allocation8 + $0x1ac] ss:$40 sps:$4 sm:$0xff]  }
 0x439   :  { %9788 = vmatprep.subr.bf16.mxu0 %v14178_v44  ;;  %v14227_v44 = vld [vmem:[#allocation8 + $0xc90] ss:$40 sps:$4 sm:$0xff]  }
 0x43b   :  { %9742 = vmatpush1.bf16.msra.mxu1 %v14173_v49  ;;  %v14230_v49 = vld [vmem:[#allocation8 + $0x1a8] ss:$40 sps:$4 sm:$0xff]  }
 0x43c   :  { %9789 = vmatpush2.bf16.msra.mxu0 %v14176_v14  ;;  %9743 = vmatprep.subr.bf16.mxu1 %v14181_v35  ;;  %v14235_v14 = vld [vmem:[#allocation8 + $0x1644] ss:$40 sps:$4 sm:$0xff]   ;;  %v5198_v35 = vrot.slane %v15292_v29, %v703_v37 }
 0x43d   :  { %9790 = vmatprep.subr.bf16.mxu0 %v14184_v53 }
 0x43f   :  { %9744 = vmatpush1.bf16.msra.mxu1 %v14179_v46  ;;  %v14238_v46 = vld [vmem:[#allocation8 + $0x15c] ss:$40 sps:$4 sm:$0xff]  }
 0x440   :  { %9791 = vmatpush2.bf16.msra.mxu0 %v14182_v15  ;;  %9745 = vmatprep.subr.bf16.mxu1 %v14187_v54  ;;  %v5202_v15 = vrot.slane %v15292_v29, %v707_v4  ;;  %v14233_v54 = vld [vmem:[#allocation8 + $0x1640] ss:$40 sps:$4 sm:$0xff]   ;;  %v14239_v4 = vld [vmem:[#allocation8 + $0x15f0] ss:$40 sps:$4 sm:$0xff]  }
 0x441   :  { %9792 = vmatprep.subr.bf16.mxu0 %v14190_v56  ;;  %v14236_v56 = vld [vmem:[#allocation8 + $0x158] ss:$40 sps:$4 sm:$0xff]  }
 0x442   :  { %v9479_v37 = vadd.f32 %v15328_v51, %v5202_v15  ;;  %v14289_v15 = vld [vmem:[#allocation8 + $0x1874] ss:$40 sps:$4 sm:$0xff]  }
 0x443   :  { %9746 = vmatpush2.bf16.msra.mxu1 %v14185_v48  ;;  %v14241_v48 = vld [vmem:[#allocation8 + $0x15f4] ss:$40 sps:$4 sm:$0xff]  }
 0x444   :  { %9793 = vmatpush2.bf16.msra.mxu0 %v14188_v52  ;;  %9747 = vmatprep.subr.bf16.mxu1 %v14193_v19  ;;  %v9477_v52 = vadd.f32 %v15324_v50, %v5198_v35  ;;  %v14244_v19 = vld [vmem:[#allocation8 + $0x10c] ss:$40 sps:$4 sm:$0xff]   ;;  %v14250_v50 = vld [vmem:[#allocation8 + $0xbc] ss:$40 sps:$4 sm:$0xff]  }
 0x445   :  { %9794 = vmatprep.subr.bf16.mxu0 %v14196_v62  ;;  %v14286_v35 = vld [vmem:[#allocation8 + $0x3dc] ss:$40 sps:$4 sm:$0xff]  }
 0x447   :  { %9748 = vmatpush2.bf16.msra.mxu1 %v14191_v21 }
 0x448   :  { %9795 = vmatpush2.bf16.msra.mxu0 %v14194_v0  ;;  %9749 = vmatprep.subr.bf16.mxu1 %v14199_v1  ;;  %v14242_v0 = vld [vmem:[#allocation8 + $0x108] ss:$40 sps:$4 sm:$0xff]   ;;  %v14247_v1 = vld [vmem:[#allocation8 + $0x15a4] ss:$40 sps:$4 sm:$0xff]  }
 0x449   :  { %9796 = vmatprep.subr.bf16.mxu0 %v14202_v5 }
 0x44b   :  { %9750 = vmatpush2.bf16.msra.mxu1 %v14197_v31 }
 0x44c   :  { %9797 = vmatpush2.bf16.msra.mxu0 %v14200_v9  ;;  %9751 = vmatprep.subr.bf16.mxu1 %v14205_v32  ;;  %v14245_v32 = vld [vmem:[#allocation8 + $0x15a0] ss:$40 sps:$4 sm:$0xff]  }
 0x44d   :  { %9798 = vmatprep.subr.bf16.mxu0 %v14208_v13 }
 0x44f   :  { %9752 = vmatpush2.bf16.msra.mxu1 %v14203_v22  ;;  %v14248_v22 = vld [vmem:[#allocation8 + $0xb8] ss:$40 sps:$4 sm:$0xff]  }
 0x450   :  { %9799 = vmatpush2.bf16.msra.mxu0 %v14206_v20  ;;  %9753 = vmatprep.subr.bf16.mxu1 %v14211_v42  ;;  %v14253_v20 = vld [vmem:[#allocation8 + $0x1554] ss:$40 sps:$4 sm:$0xff]  }
 0x451   :  { %9800 = vmatprep.subr.bf16.mxu0 %v14214_v25  ;;  %v14256_v42 = vld [vmem:[#allocation8 + $0x6c] ss:$40 sps:$4 sm:$0xff]   ;;  %v14251_v25 = vld [vmem:[#allocation8 + $0x1550] ss:$40 sps:$4 sm:$0xff]  }
 0x453   :  { %9754 = vmatpush2.bf16.msra.mxu1 %v14209_v60  ;;  %v14254_v60 = vld [vmem:[#allocation8 + $0x68] ss:$40 sps:$4 sm:$0xff]  }
 0x454   :  { %9801 = vmatpush2.bf16.msra.mxu0 %v14212_v27  ;;  %9755 = vmatprep.subr.bf16.mxu1 %v14217_v11  ;;  %v14259_v27 = vld [vmem:[#allocation8 + $0x1504] ss:$40 sps:$4 sm:$0xff]  }
 0x455   :  { %9852 = vmatprep.subr.bf16.mxu0 %v14220_v63  ;;  %v14262_v11 = vld [vmem:[#allocation8 + $0x1c] ss:$40 sps:$4 sm:$0xff]   ;;  %v14257_v63 = vld [vmem:[#allocation8 + $0x1500] ss:$40 sps:$4 sm:$0xff]  }
 0x457   :  { %v9558_v12 = vpop.f32.mrf.mxu0  ;;  %9756 = vmatpush2.bf16.msra.mxu1 %v14215_v6  ;;  %9803 = vmatmul.mubr.bf16.vlgmr.msra.gmra.mxu0 %v15261_v7  ;;  %v14260_v6 = vld [vmem:[#allocation8 + $0x18] ss:$40 sps:$4 sm:$0xff]  }
 0x458   :  { %9853 = vmatpush1.bf16.msra.mxu0 %v14218_v28  ;;  %9884 = vmatprep.mubr.bf16.mxu0 %v15200_v2  ;;  %v14265_v28 = vld [vmem:[#allocation8 + $0x14b4] ss:$40 sps:$4 sm:$0xff]  }
 0x459   :  { %v9560_v17 = vpop.f32.mrf.mxu0  ;;  %9757 = vmatprep.subr.bf16.mxu1 %v14223_v8  ;;  %9854 = vmatprep.subr.bf16.mxu0 %v14226_v47  ;;  %v14268_v8 = vld [vmem:[#allocation8 + $0x4cc] ss:$40 sps:$4 sm:$0xff]   ;;  %v14263_v47 = vld [vmem:[#allocation8 + $0x14b0] ss:$40 sps:$4 sm:$0xff]  }
 0x45b   :  { %v9562_v45 = vpop.f32.mrf.mxu0  ;;  %9758 = vmatpush2.bf16.msra.mxu1 %v14221_v39  ;;  %v14271_v39 = vld [vmem:[#allocation8 + $0x1464] ss:$40 sps:$4 sm:$0xff]  }
 0x45c   :  { %9855 = vmatpush1.bf16.msra.mxu0 %v14224_v33  ;;  %9759 = vmatprep.subr.bf16.mxu1 %v14229_v41  ;;  %v14274_v33 = vld [vmem:[#allocation8 + $0x47c] ss:$40 sps:$4 sm:$0xff]   ;;  %v14269_v41 = vld [vmem:[#allocation8 + $0x1460] ss:$40 sps:$4 sm:$0xff]   ;;  %v14280_v45 = vld [vmem:[#allocation8 + $0x42c] ss:$40 sps:$4 sm:$0xff]  }
 0x45d   :  { %v9563_v53 = vpop.f32.mrf.mxu0  ;;  %9856 = vmatprep.subr.bf16.mxu0 %v14232_v36  ;;  %v14277_v36 = vld [vmem:[#allocation8 + $0x1414] ss:$40 sps:$4 sm:$0xff]  }
 0x45e   :  { %v14281_v53 = vld [vmem:[#allocation8 + $0x18c0] ss:$40 sps:$4 sm:$0xff]  }
 0x45f   :  { %9760 = vmatpush2.bf16.msra.mxu1 %v14227_v44  ;;  %v14275_v44 = vld [vmem:[#allocation8 + $0x1410] ss:$40 sps:$4 sm:$0xff]  }
 0x460   :  { %9857 = vmatpush1.bf16.msra.mxu0 %v14230_v49  ;;  %9811 = vmatprep.subr.bf16.mxu1 %v14235_v14  ;;  %v14278_v49 = vld [vmem:[#allocation8 + $0x428] ss:$40 sps:$4 sm:$0xff]   ;;  %v14283_v14 = vld [vmem:[#allocation8 + $0x18c4] ss:$40 sps:$4 sm:$0xff]  }
 0x461   :  { %9858 = vmatprep.subr.bf16.mxu0 %v14238_v46  ;;  %v14284_v46 = vld [vmem:[#allocation8 + $0x3d8] ss:$40 sps:$4 sm:$0xff]  }
 0x462   :  { %v9517_v62 = vpop.f32.mrf.mxu1  ;;  %9762 = vmatmul.mubr.bf16.vlgmr.msra.gmra.mxu1 %v15255_v26 }
 0x463   :  { %v9518_v21 = vadd.f32 %v9517_v62, %v9477_v52  ;;  %9812 = vmatpush1.bf16.msra.mxu1 %v14233_v54  ;;  %9843 = vmatprep.mubr.bf16.mxu1 %v15281_v57  ;;  %v14292_v54 = vld [vmem:[#allocation8 + $0x38c] ss:$40 sps:$4 sm:$0xff]   ;;  %v14293_v62 = vld [vmem:[#allocation8 + $0x1820] ss:$40 sps:$4 sm:$0xff]  }
 0x464   :  { %v9519_v29 = vpop.f32.mrf.mxu1  ;;  %9859 = vmatpush1.bf16.msra.mxu0 %v14236_v56  ;;  %9813 = vmatprep.subr.bf16.mxu1 %v14241_v48  ;;  %v14287_v56 = vld [vmem:[#allocation8 + $0x1870] ss:$40 sps:$4 sm:$0xff]   ;;  %v14295_v52 = vld [vmem:[#allocation8 + $0x1824] ss:$40 sps:$4 sm:$0xff]  }
 0x465   :  { %v9520_v5 = vadd.f32 %v9519_v29, %v9479_v37  ;;  %9860 = vmatprep.subr.bf16.mxu0 %v14244_v19  ;;  %v15350_v31 = vadd.f32 %v9558_v12, %v9518_v21  ;;  %v14266_v12 = vld [vmem:[#allocation8 + $0x4c8] ss:$40 sps:$4 sm:$0xff]   ;;  %v14298_v19 = vld [vmem:[#allocation8 + $0x33c] ss:$40 sps:$4 sm:$0xff]   ;;  %v14296_v37 = vld [vmem:[#allocation8 + $0x338] ss:$40 sps:$4 sm:$0xff]  }
 0x466   :  { %v9521_v9 = vpop.f32.mrf.mxu1  ;;  %v14290_v48 = vld [vmem:[#allocation8 + $0x388] ss:$40 sps:$4 sm:$0xff]   ;;  %v14301_v21 = vld [vmem:[#allocation8 + $0x17d4] ss:$40 sps:$4 sm:$0xff]  }
 0x467   :  { %9814 = vmatpush1.bf16.msra.mxu1 %v14239_v4  ;;  %v15352_v13 = vadd.f32 %v9560_v17, %v9520_v5  ;;  %v14272_v17 = vld [vmem:[#allocation8 + $0x478] ss:$40 sps:$4 sm:$0xff]   ;;  %v14304_v4 = vld [vmem:[#allocation8 + $0x2ec] ss:$40 sps:$4 sm:$0xff]   ;;  %v14310_v5 = vld [vmem:[#allocation8 + $0x29c] ss:$40 sps:$4 sm:$0xff]  }
 0x468   :  { %v9522_v51 = vpop.f32.mrf.mxu1  ;;  %9861 = vmatpush1.bf16.msra.mxu0 %v14242_v0  ;;  %9815 = vmatprep.subr.bf16.mxu1 %v14247_v1  ;;  %v14299_v29 = vld [vmem:[#allocation8 + $0x17d0] ss:$40 sps:$4 sm:$0xff]   ;;  %v14307_v1 = vld [vmem:[#allocation8 + $0x1784] ss:$40 sps:$4 sm:$0xff]  }
 0x469   :  { %9862 = vmatprep.subr.bf16.mxu0 %v14250_v50  ;;  %v14302_v0 = vld [vmem:[#allocation8 + $0x2e8] ss:$40 sps:$4 sm:$0xff]   ;;  %v14308_v9 = vld [vmem:[#allocation8 + $0x298] ss:$40 sps:$4 sm:$0xff]   ;;  %v14316_v51 = vld [vmem:[#allocation8 + $0xc4c] ss:$40 sps:$4 sm:$0xff]  }
 0x46a   :  { %v14305_v50 = vld [vmem:[#allocation8 + $0x1780] ss:$40 sps:$4 sm:$0xff]  }
 0x46b   :  { %9816 = vmatpush1.bf16.msra.mxu1 %v14245_v32  ;;  %v14313_v32 = vld [vmem:[#allocation8 + $0x1734] ss:$40 sps:$4 sm:$0xff]  }
 0x46c   :  { %9863 = vmatpush1.bf16.msra.mxu0 %v14248_v22  ;;  %9817 = vmatprep.subr.bf16.mxu1 %v14253_v20  ;;  %v14311_v22 = vld [vmem:[#allocation8 + $0x1730] ss:$40 sps:$4 sm:$0xff]  }
 0x46d   :  { %9864 = vmatprep.subr.bf16.mxu0 %v14256_v42  ;;  %v14314_v20 = vld [vmem:[#allocation8 + $0xc48] ss:$40 sps:$4 sm:$0xff]   ;;  %v14319_v42 = vld [vmem:[#allocation8 + $0x16e4] ss:$40 sps:$4 sm:$0xff]  }
 0x46f   :  { %9818 = vmatpush1.bf16.msra.mxu1 %v14251_v25  ;;  %v14322_v25 = vld [vmem:[#allocation8 + $0xbfc] ss:$40 sps:$4 sm:$0xff]  }
 0x470   :  { %9865 = vmatpush1.bf16.msra.mxu0 %v14254_v60  ;;  %9819 = vmatprep.subr.bf16.mxu1 %v14259_v27  ;;  %v14317_v27 = vld [vmem:[#allocation8 + $0x16e0] ss:$40 sps:$4 sm:$0xff]  }
 0x471   :  { %9866 = vmatprep.subr.bf16.mxu0 %v14262_v11  ;;  %v14320_v11 = vld [vmem:[#allocation8 + $0xbf8] ss:$40 sps:$4 sm:$0xff]  }
 0x473   :  { %9820 = vmatpush1.bf16.msra.mxu1 %v14257_v63  ;;  %v14325_v63 = vld [vmem:[#allocation8 + $0x1694] ss:$40 sps:$4 sm:$0xff]  }
 0x474   :  { %9867 = vmatpush1.bf16.msra.mxu0 %v14260_v6  ;;  %9821 = vmatprep.subr.bf16.mxu1 %v14265_v28  ;;  %v14328_v28 = vld [vmem:[#allocation8 + $0xbac] ss:$40 sps:$4 sm:$0xff]  }
 0x475   :  { %9868 = vmatprep.subr.bf16.mxu0 %v14268_v8 }
 0x477   :  { %9822 = vmatpush1.bf16.msra.mxu1 %v14263_v47  ;;  %v14323_v47 = vld [vmem:[#allocation8 + $0x1690] ss:$40 sps:$4 sm:$0xff]  }
 0x478   :  { %9869 = vmatpush2.bf16.msra.mxu0 %v14266_v12  ;;  %9823 = vmatprep.subr.bf16.mxu1 %v14271_v39  ;;  %v14326_v12 = vld [vmem:[#allocation8 + $0xba8] ss:$40 sps:$4 sm:$0xff]   ;;  %v14331_v39 = vld [vmem:[#allocation8 + $0x74c] ss:$40 sps:$4 sm:$0xff]  }
 0x479   :  { %9870 = vmatprep.subr.bf16.mxu0 %v14274_v33 }
 0x47b   :  { %9824 = vmatpush1.bf16.msra.mxu1 %v14269_v41  ;;  %v14334_v41 = vld [vmem:[#allocation8 + $0xb5c] ss:$40 sps:$4 sm:$0xff]  }
 0x47c   :  { %9871 = vmatpush2.bf16.msra.mxu0 %v14272_v17  ;;  %9825 = vmatprep.subr.bf16.mxu1 %v14277_v36  ;;  %v14329_v17 = vld [vmem:[#allocation8 + $0x748] ss:$40 sps:$4 sm:$0xff]   ;;  %v14332_v36 = vld [vmem:[#allocation8 + $0xb58] ss:$40 sps:$4 sm:$0xff]  }
 0x47d   :  { %9872 = vmatprep.subr.bf16.mxu0 %v14280_v45  ;;  %v14337_v45 = vld [vmem:[#allocation8 + $0x6fc] ss:$40 sps:$4 sm:$0xff]  }
 0x47f   :  { %9826 = vmatpush1.bf16.msra.mxu1 %v14275_v44  ;;  %v14340_v44 = vld [vmem:[#allocation8 + $0xb0c] ss:$40 sps:$4 sm:$0xff]  }
 0x480   :  { %9873 = vmatpush2.bf16.msra.mxu0 %v14278_v49  ;;  %9827 = vmatprep.subr.bf16.mxu1 %v14283_v14 }
 0x481   :  { %9874 = vmatprep.subr.bf16.mxu0 %v14286_v35  ;;  %v14335_v35 = vld [vmem:[#allocation8 + $0x6f8] ss:$40 sps:$4 sm:$0xff]  }
 0x483   :  { %9828 = vmatpush2.bf16.msra.mxu1 %v14281_v53 }
 0x484   :  { %9875 = vmatpush2.bf16.msra.mxu0 %v14284_v46  ;;  %9829 = vmatprep.subr.bf16.mxu1 %v14289_v15  ;;  %v14338_v46 = vld [vmem:[#allocation8 + $0xb08] ss:$40 sps:$4 sm:$0xff]   ;;  %v14343_v15 = vld [vmem:[#allocation8 + $0x6ac] ss:$40 sps:$4 sm:$0xff]  }
 0x485   :  { %9876 = vmatprep.subr.bf16.mxu0 %v14292_v54 }
 0x487   :  { %9830 = vmatpush2.bf16.msra.mxu1 %v14287_v56 }
 0x488   :  { %9877 = vmatpush2.bf16.msra.mxu0 %v14290_v48  ;;  %9831 = vmatprep.subr.bf16.mxu1 %v14295_v52  ;;  %v14346_v48 = vld [vmem:[#allocation8 + $0xabc] ss:$40 sps:$4 sm:$0xff]  }
 0x489   :  { %9878 = vmatprep.subr.bf16.mxu0 %v14298_v19 }
 0x48b   :  { %9832 = vmatpush2.bf16.msra.mxu1 %v14293_v62 }
 0x48c   :  { %9879 = vmatpush2.bf16.msra.mxu0 %v14296_v37  ;;  %9833 = vmatprep.subr.bf16.mxu1 %v14301_v21  ;;  %v14344_v37 = vld [vmem:[#allocation8 + $0xab8] ss:$40 sps:$4 sm:$0xff]   ;;  %v14349_v21 = vld [vmem:[#allocation8 + $0x65c] ss:$40 sps:$4 sm:$0xff]  }
 0x48d   :  { %9880 = vmatprep.subr.bf16.mxu0 %v14304_v4  ;;  %v14352_v4 = vld [vmem:[#allocation8 + $0xa6c] ss:$40 sps:$4 sm:$0xff]  }
 0x48f   :  { %9834 = vmatpush2.bf16.msra.mxu1 %v14299_v29  ;;  %v14347_v29 = vld [vmem:[#allocation8 + $0x658] ss:$40 sps:$4 sm:$0xff]  }
 0x490   :  { %9881 = vmatpush2.bf16.msra.mxu0 %v14302_v0  ;;  %9835 = vmatprep.subr.bf16.mxu1 %v14307_v1  ;;  %v14350_v0 = vld [vmem:[#allocation8 + $0xa68] ss:$40 sps:$4 sm:$0xff]   ;;  %v14358_v1 = vld [vmem:[#allocation8 + $0xa1c] ss:$40 sps:$4 sm:$0xff]  }
 0x491   :  { %9882 = vmatprep.subr.bf16.mxu0 %v14310_v5  ;;  %v14353_v5 = vld [vmem:[#allocation8 + $0x608] ss:$40 sps:$4 sm:$0xff]  }
 0x493   :  { %9836 = vmatpush2.bf16.msra.mxu1 %v14305_v50  ;;  %v14356_v50 = vld [vmem:[#allocation8 + $0xa18] ss:$40 sps:$4 sm:$0xff]  }
 0x494   :  { %9883 = vmatpush2.bf16.msra.mxu0 %v14308_v9  ;;  %9837 = vmatprep.subr.bf16.mxu1 %v14313_v32  ;;  %v14361_v9 = vld [vmem:[#allocation8 + $0x5bc] ss:$40 sps:$4 sm:$0xff]   ;;  %v14364_v32 = vld [vmem:[#allocation8 + $0xecc] ss:$40 sps:$4 sm:$0xff]  }
 0x495   :  { %9934 = vmatprep.subr.bf16.mxu0 %v14316_v51  ;;  %v14359_v51 = vld [vmem:[#allocation8 + $0x5b8] ss:$40 sps:$4 sm:$0xff]  }
 0x497   :  { %v9640_v60 = vpop.f32.mrf.mxu0  ;;  %9838 = vmatpush2.bf16.msra.mxu1 %v14311_v22  ;;  %9885 = vmatmul.mubr.bf16.vlgmr.msra.gmra.mxu0 %v15227_v18  ;;  %v14362_v22 = vld [vmem:[#allocation8 + $0xec8] ss:$40 sps:$4 sm:$0xff]  }
 0x498   :  { %9935 = vmatpush1.bf16.msra.mxu0 %v14314_v20  ;;  %9966 = vmatprep.mubr.bf16.mxu0 %v15229_v38  ;;  %v14367_v20 = vld [vmem:[#allocation8 + $0x56c] ss:$40 sps:$4 sm:$0xff]  }
 0x499   :  { %v9642_v6 = vpop.f32.mrf.mxu0  ;;  %9839 = vmatprep.subr.bf16.mxu1 %v14319_v42  ;;  %9936 = vmatprep.subr.bf16.mxu0 %v14322_v25  ;;  %v14370_v42 = vld [vmem:[#allocation8 + $0xe7c] ss:$40 sps:$4 sm:$0xff]   ;;  %v14365_v25 = vld [vmem:[#allocation8 + $0x568] ss:$40 sps:$4 sm:$0xff]  }
 0x49b   :  { %v9644_v8 = vpop.f32.mrf.mxu0  ;;  %9840 = vmatpush2.bf16.msra.mxu1 %v14317_v27  ;;  %v14373_v27 = vld [vmem:[#allocation8 + $0x51c] ss:$40 sps:$4 sm:$0xff]  }
 0x49c   :  { %9937 = vmatpush1.bf16.msra.mxu0 %v14320_v11  ;;  %9841 = vmatprep.subr.bf16.mxu1 %v14325_v63  ;;  %v14376_v11 = vld [vmem:[#allocation8 + $0xe2c] ss:$40 sps:$4 sm:$0xff]   ;;  %v14371_v63 = vld [vmem:[#allocation8 + $0x518] ss:$40 sps:$4 sm:$0xff]   ;;  %v14382_v8 = vld [vmem:[#allocation8 + $0xddc] ss:$40 sps:$4 sm:$0xff]  }
 0x49d   :  { %v9645_v33 = vpop.f32.mrf.mxu0  ;;  %9938 = vmatprep.subr.bf16.mxu0 %v14328_v28  ;;  %v14379_v28 = vld [vmem:[#allocation8 + $0x9cc] ss:$40 sps:$4 sm:$0xff]  }
 0x49e   :  { %v14388_v33 = vld [vmem:[#allocation8 + $0xd8c] ss:$40 sps:$4 sm:$0xff]  }
 0x49f   :  { %9842 = vmatpush2.bf16.msra.mxu1 %v14323_v47  ;;  %v14377_v47 = vld [vmem:[#allocation8 + $0x9c8] ss:$40 sps:$4 sm:$0xff]  }
 0x4a0   :  { %9939 = vmatpush1.bf16.msra.mxu0 %v14326_v12  ;;  %9893 = vmatprep.subr.bf16.mxu1 %v14331_v39  ;;  %v14380_v12 = vld [vmem:[#allocation8 + $0xdd8] ss:$40 sps:$4 sm:$0xff]   ;;  %v14385_v39 = vld [vmem:[#allocation8 + $0x97c] ss:$40 sps:$4 sm:$0xff]  }
 0x4a1   :  { %9940 = vmatprep.subr.bf16.mxu0 %v14334_v41  ;;  %v14383_v41 = vld [vmem:[#allocation8 + $0x978] ss:$40 sps:$4 sm:$0xff]  }
 0x4a2   :  { %v9599_v49 = vpop.f32.mrf.mxu1  ;;  %9844 = vmatmul.mubr.bf16.vlgmr.msra.gmra.mxu1 %v15283_v61 }
 0x4a3   :  { %v9600_v14 = vadd.f32 %v9599_v49, %v15350_v31  ;;  %9894 = vmatpush1.bf16.msra.mxu1 %v14329_v17  ;;  %9925 = vmatprep.mubr.bf16.mxu1 %v15213_v55  ;;  %v14341_v31 = vld [vmem:[#allocation8 + $0x6a8] ss:$40 sps:$4 sm:$0xff]   ;;  %v14392_v49 = vld [vmem:[#allocation8 + $0xd38] ss:$40 sps:$4 sm:$0xff]  }
 0x4a4   :  { %v9601_v53 = vpop.f32.mrf.mxu1  ;;  %9941 = vmatpush1.bf16.msra.mxu0 %v14332_v36  ;;  %9895 = vmatprep.subr.bf16.mxu1 %v14337_v45  ;;  %v14386_v17 = vld [vmem:[#allocation8 + $0xd88] ss:$40 sps:$4 sm:$0xff]   ;;  %v14391_v36 = vld [vmem:[#allocation8 + $0x92c] ss:$40 sps:$4 sm:$0xff]   ;;  %v14394_v45 = vld [vmem:[#allocation8 + $0xd3c] ss:$40 sps:$4 sm:$0xff]  }
 0x4a5   :  { %v15359_v54 = vadd.f32 %v9640_v60, %v9600_v14  ;;  %v9602_v56 = vadd.f32 %v9601_v53, %v15352_v13  ;;  %9942 = vmatprep.subr.bf16.mxu0 %v14340_v44  ;;  %v14355_v13 = vld [vmem:[#allocation8 + $0x60c] ss:$40 sps:$4 sm:$0xff]   ;;  %v14368_v60 = vld [vmem:[#allocation8 + $0xe78] ss:$40 sps:$4 sm:$0xff]   ;;  %v14389_v44 = vld [vmem:[#allocation8 + $0x928] ss:$40 sps:$4 sm:$0xff]  }
 0x4a6   :  { %v9603_v52 = vpop.f32.mrf.mxu1  ;;  %v14397_v14 = vld [vmem:[#allocation8 + $0x8dc] ss:$40 sps:$4 sm:$0xff]   ;;  %v14395_v53 = vld [vmem:[#allocation8 + $0x8d8] ss:$40 sps:$4 sm:$0xff]  }
 0x4a7   :  { %v15362_v19 = vadd.f32 %v9642_v6, %v9602_v56  ;;  %9896 = vmatpush1.bf16.msra.mxu1 %v14335_v35  ;;  %v14374_v6 = vld [vmem:[#allocation8 + $0xe28] ss:$40 sps:$4 sm:$0xff]   ;;  %v14400_v35 = vld [vmem:[#allocation8 + $0xcec] ss:$40 sps:$4 sm:$0xff]   ;;  %v14406_v56 = vld [vmem:[#allocation8 + $0xc9c] ss:$40 sps:$4 sm:$0xff]  }
 0x4a8   :  { %v9604_v62 = vpop.f32.mrf.mxu1  ;;  %9943 = vmatpush1.bf16.msra.mxu0 %v14338_v46  ;;  %9897 = vmatprep.subr.bf16.mxu1 %v14343_v15  ;;  %v14398_v46 = vld [vmem:[#allocation8 + $0xce8] ss:$40 sps:$4 sm:$0xff]   ;;  %v14403_v15 = vld [vmem:[#allocation8 + $0x88c] ss:$40 sps:$4 sm:$0xff]   ;;  %v14404_v52 = vld [vmem:[#allocation8 + $0xc98] ss:$40 sps:$4 sm:$0xff]  }
 0x4a9   :  { %9944 = vmatprep.subr.bf16.mxu0 %v14346_v48  ;;  %v14401_v48 = vld [vmem:[#allocation8 + $0x888] ss:$40 sps:$4 sm:$0xff]   ;;  %v14412_v62 = vld [vmem:[#allocation8 + $0x164c] ss:$40 sps:$4 sm:$0xff]  }
 0x4ab   :  { %9898 = vmatpush1.bf16.msra.mxu1 %v14341_v31  ;;  %v14409_v31 = vld [vmem:[#allocation8 + $0x83c] ss:$40 sps:$4 sm:$0xff]  }
 0x4ac   :  { %9945 = vmatpush1.bf16.msra.mxu0 %v14344_v37  ;;  %9899 = vmatprep.subr.bf16.mxu1 %v14349_v21  ;;  %v14407_v37 = vld [vmem:[#allocation8 + $0x838] ss:$40 sps:$4 sm:$0xff]   ;;  %v14410_v21 = vld [vmem:[#allocation8 + $0x1648] ss:$40 sps:$4 sm:$0xff]  }
 0x4ad   :  { %9946 = vmatprep.subr.bf16.mxu0 %v14352_v4  ;;  %v14415_v4 = vld [vmem:[#allocation8 + $0x7ec] ss:$40 sps:$4 sm:$0xff]  }
 0x4af   :  { %9900 = vmatpush1.bf16.msra.mxu1 %v14347_v29  ;;  %v14418_v29 = vld [vmem:[#allocation8 + $0x15fc] ss:$40 sps:$4 sm:$0xff]  }
 0x4b0   :  { %9947 = vmatpush1.bf16.msra.mxu0 %v14350_v0  ;;  %9901 = vmatprep.subr.bf16.mxu1 %v14355_v13  ;;  %v14413_v13 = vld [vmem:[#allocation8 + $0x7e8] ss:$40 sps:$4 sm:$0xff]  }
 0x4b1   :  { %9948 = vmatprep.subr.bf16.mxu0 %v14358_v1  ;;  %v14416_v1 = vld [vmem:[#allocation8 + $0x15f8] ss:$40 sps:$4 sm:$0xff]  }
 0x4b3   :  { %9902 = vmatpush1.bf16.msra.mxu1 %v14353_v5  ;;  %v14421_v5 = vld [vmem:[#allocation8 + $0x79c] ss:$40 sps:$4 sm:$0xff]  }
 0x4b4   :  { %9949 = vmatpush1.bf16.msra.mxu0 %v14356_v50  ;;  %9903 = vmatprep.subr.bf16.mxu1 %v14361_v9  ;;  %v14424_v9 = vld [vmem:[#allocation8 + $0x15ac] ss:$40 sps:$4 sm:$0xff]  }
 0x4b5   :  { %9950 = vmatprep.subr.bf16.mxu0 %v14364_v32 }
 0x4b7   :  { %9904 = vmatpush1.bf16.msra.mxu1 %v14359_v51  ;;  %v14419_v51 = vld [vmem:[#allocation8 + $0x798] ss:$40 sps:$4 sm:$0xff]  }
 0x4b8   :  { %9951 = vmatpush2.bf16.msra.mxu0 %v14362_v22  ;;  %9905 = vmatprep.subr.bf16.mxu1 %v14367_v20  ;;  %v14422_v22 = vld [vmem:[#allocation8 + $0x15a8] ss:$40 sps:$4 sm:$0xff]   ;;  %v14427_v20 = vld [vmem:[#allocation8 + $0x114c] ss:$40 sps:$4 sm:$0xff]  }
 0x4b9   :  { %9952 = vmatprep.subr.bf16.mxu0 %v14370_v42 }
 0x4bb   :  { %9906 = vmatpush1.bf16.msra.mxu1 %v14365_v25  ;;  %v14430_v25 = vld [vmem:[#allocation8 + $0x155c] ss:$40 sps:$4 sm:$0xff]  }
 0x4bc   :  { %9953 = vmatpush2.bf16.msra.mxu0 %v14368_v60  ;;  %9907 = vmatprep.subr.bf16.mxu1 %v14373_v27  ;;  %v15366_v60 = vld [vmem:[#allocation10] sm:$0xff] }
 0x4bd   :  { %9954 = vmatprep.subr.bf16.mxu0 %v14376_v11  ;;  %v5206_v27 = vrot.slane %v15366_v60, %v711_v10  ;;  %v14425_v11 = vld [vmem:[#allocation8 + $0x1148] ss:$40 sps:$4 sm:$0xff]  }
 0x4bf   :  { %9908 = vmatpush1.bf16.msra.mxu1 %v14371_v63  ;;  %v14428_v63 = vld [vmem:[#allocation8 + $0x1558] ss:$40 sps:$4 sm:$0xff]  }
 0x4c0   :  { %9955 = vmatpush2.bf16.msra.mxu0 %v14374_v6  ;;  %9909 = vmatprep.subr.bf16.mxu1 %v14379_v28  ;;  %v14433_v6 = vld [vmem:[#allocation8 + $0x10fc] ss:$40 sps:$4 sm:$0xff]   ;;  %v5210_v28 = vrot.slane %v15366_v60, %v715_v16 }
 0x4c1   :  { %9956 = vmatprep.subr.bf16.mxu0 %v14382_v8  ;;  %v14436_v8 = vld [vmem:[#allocation8 + $0x150c] ss:$40 sps:$4 sm:$0xff]  }
 0x4c3   :  { %9910 = vmatpush2.bf16.msra.mxu1 %v14377_v47 }
 0x4c4   :  { %9957 = vmatpush2.bf16.msra.mxu0 %v14380_v12  ;;  %9911 = vmatprep.subr.bf16.mxu1 %v14385_v39  ;;  %v14431_v39 = vld [vmem:[#allocation8 + $0x10f8] ss:$40 sps:$4 sm:$0xff]  }
 0x4c5   :  { %9958 = vmatprep.subr.bf16.mxu0 %v14388_v33  ;;  %v14434_v33 = vld [vmem:[#allocation8 + $0x1508] ss:$40 sps:$4 sm:$0xff]  }
 0x4c7   :  { %9912 = vmatpush2.bf16.msra.mxu1 %v14383_v41  ;;  %v14439_v41 = vld [vmem:[#allocation8 + $0x10ac] ss:$40 sps:$4 sm:$0xff]  }
 0x4c8   :  { %9959 = vmatpush2.bf16.msra.mxu0 %v14386_v17  ;;  %9913 = vmatprep.subr.bf16.mxu1 %v14391_v36  ;;  %v14442_v36 = vld [vmem:[#allocation8 + $0x14bc] ss:$40 sps:$4 sm:$0xff]  }
 0x4c9   :  { %9960 = vmatprep.subr.bf16.mxu0 %v14394_v45 }
 0x4cb   :  { %9914 = vmatpush2.bf16.msra.mxu1 %v14389_v44  ;;  %v14437_v44 = vld [vmem:[#allocation8 + $0x10a8] ss:$40 sps:$4 sm:$0xff]  }
 0x4cc   :  { %9961 = vmatpush2.bf16.msra.mxu0 %v14392_v49  ;;  %9915 = vmatprep.subr.bf16.mxu1 %v14397_v14 }
 0x4cd   :  { %9962 = vmatprep.subr.bf16.mxu0 %v14400_v35  ;;  %v14440_v35 = vld [vmem:[#allocation8 + $0x14b8] ss:$40 sps:$4 sm:$0xff]  }
 0x4cf   :  { %9916 = vmatpush2.bf16.msra.mxu1 %v14395_v53  ;;  %v14445_v53 = vld [vmem:[#allocation8 + $0x105c] ss:$40 sps:$4 sm:$0xff]  }
 0x4d0   :  { %9963 = vmatpush2.bf16.msra.mxu0 %v14398_v46  ;;  %9917 = vmatprep.subr.bf16.mxu1 %v14403_v15  ;;  %v14448_v46 = vld [vmem:[#allocation8 + $0x146c] ss:$40 sps:$4 sm:$0xff]   ;;  %v14443_v15 = vld [vmem:[#allocation8 + $0x1058] ss:$40 sps:$4 sm:$0xff]  }
 0x4d1   :  { %9964 = vmatprep.subr.bf16.mxu0 %v14406_v56  ;;  %v14446_v56 = vld [vmem:[#allocation8 + $0x1468] ss:$40 sps:$4 sm:$0xff]  }
 0x4d3   :  { %9918 = vmatpush2.bf16.msra.mxu1 %v14401_v48  ;;  %v14451_v48 = vld [vmem:[#allocation8 + $0x100c] ss:$40 sps:$4 sm:$0xff]  }
 0x4d4   :  { %9965 = vmatpush2.bf16.msra.mxu0 %v14404_v52  ;;  %9919 = vmatprep.subr.bf16.mxu1 %v14409_v31  ;;  %v14454_v52 = vld [vmem:[#allocation8 + $0x141c] ss:$40 sps:$4 sm:$0xff]   ;;  %v14449_v31 = vld [vmem:[#allocation8 + $0x1008] ss:$40 sps:$4 sm:$0xff]  }
 0x4d5   :  { %10016 = vmatprep.subr.bf16.mxu0 %v14412_v62  ;;  %v14452_v62 = vld [vmem:[#allocation8 + $0x1418] ss:$40 sps:$4 sm:$0xff]  }
 0x4d7   :  { %v9722_v0 = vpop.f32.mrf.mxu0  ;;  %9920 = vmatpush2.bf16.msra.mxu1 %v14407_v37  ;;  %9967 = vmatmul.mubr.bf16.vlgmr.msra.gmra.mxu0 %v15255_v26  ;;  %v14457_v37 = vld [vmem:[#allocation8 + $0xfbc] ss:$40 sps:$4 sm:$0xff]  }
 0x4d8   :  { %10017 = vmatpush1.bf16.msra.mxu0 %v14410_v21  ;;  %10048 = vmatprep.mubr.bf16.mxu0 %v15281_v57  ;;  %v14460_v21 = vld [vmem:[#allocation8 + $0x18cc] ss:$40 sps:$4 sm:$0xff]  }
 0x4d9   :  { %v9724_v50 = vpop.f32.mrf.mxu0  ;;  %9921 = vmatprep.subr.bf16.mxu1 %v14415_v4  ;;  %10018 = vmatprep.subr.bf16.mxu0 %v14418_v29  ;;  %v14455_v4 = vld [vmem:[#allocation8 + $0xfb8] ss:$40 sps:$4 sm:$0xff]   ;;  %v14458_v29 = vld [vmem:[#allocation8 + $0x18c8] ss:$40 sps:$4 sm:$0xff]  }
 0x4db   :  { %v9726_v32 = vpop.f32.mrf.mxu0  ;;  %9922 = vmatpush2.bf16.msra.mxu1 %v14413_v13  ;;  %v14466_v13 = vld [vmem:[#allocation8 + $0x187c] ss:$40 sps:$4 sm:$0xff]  }
 0x4dc   :  { %10019 = vmatpush1.bf16.msra.mxu0 %v14416_v1  ;;  %9923 = vmatprep.subr.bf16.mxu1 %v14421_v5  ;;  %v14461_v1 = vld [vmem:[#allocation8 + $0xf68] ss:$40 sps:$4 sm:$0xff]   ;;  %v14464_v5 = vld [vmem:[#allocation8 + $0x1878] ss:$40 sps:$4 sm:$0xff]  }
 0x4dd   :  { %v9727_v42 = vpop.f32.mrf.mxu0  ;;  %10020 = vmatprep.subr.bf16.mxu0 %v14424_v9  ;;  %v14472_v9 = vld [vmem:[#allocation8 + $0x182c] ss:$40 sps:$4 sm:$0xff]   ;;  %v14467_v32 = vld [vmem:[#allocation8 + $0xf18] ss:$40 sps:$4 sm:$0xff]  }
 0x4de   :  { %v14473_v42 = vld [vmem:[#allocation8 + $0x13c8] ss:$40 sps:$4 sm:$0xff]  }
 0x4df   :  { %9924 = vmatpush2.bf16.msra.mxu1 %v14419_v51  ;;  %v14470_v51 = vld [vmem:[#allocation8 + $0x1828] ss:$40 sps:$4 sm:$0xff]  }
 0x4e0   :  { %10021 = vmatpush1.bf16.msra.mxu0 %v14422_v22  ;;  %9975 = vmatprep.subr.bf16.mxu1 %v14427_v20  ;;  %v14475_v22 = vld [vmem:[#allocation8 + $0x13cc] ss:$40 sps:$4 sm:$0xff]   ;;  %v14478_v20 = vld [vmem:[#allocation8 + $0x17dc] ss:$40 sps:$4 sm:$0xff]  }
 0x4e1   :  { %10022 = vmatprep.subr.bf16.mxu0 %v14430_v25  ;;  %v14476_v25 = vld [vmem:[#allocation8 + $0x17d8] ss:$40 sps:$4 sm:$0xff]  }
 0x4e2   :  { %v9681_v47 = vpop.f32.mrf.mxu1  ;;  %9926 = vmatmul.mubr.bf16.vlgmr.msra.gmra.mxu1 %v15243_v30 }
 0x4e3   :  { %v9682_v12 = vadd.f32 %v9681_v47, %v5206_v27  ;;  %9976 = vmatpush1.bf16.msra.mxu1 %v14425_v11  ;;  %10007 = vmatprep.mubr.bf16.mxu1 %v15251_v59  ;;  %v14481_v27 = vld [vmem:[#allocation8 + $0x137c] ss:$40 sps:$4 sm:$0xff]   ;;  %v14484_v11 = vld [vmem:[#allocation8 + $0x178c] ss:$40 sps:$4 sm:$0xff]   ;;  %v14485_v47 = vld [vmem:[#allocation8 + $0x1328] ss:$40 sps:$4 sm:$0xff]  }
 0x4e4   :  { %v9683_v10 = vpop.f32.mrf.mxu1  ;;  %10023 = vmatpush1.bf16.msra.mxu0 %v14428_v63  ;;  %9977 = vmatprep.subr.bf16.mxu1 %v14433_v6  ;;  %v14479_v63 = vld [vmem:[#allocation8 + $0x1378] ss:$40 sps:$4 sm:$0xff]   ;;  %v14482_v6 = vld [vmem:[#allocation8 + $0x1788] ss:$40 sps:$4 sm:$0xff]  }
 0x4e5   :  { %v9684_v17 = vadd.f32 %v9683_v10, %v5210_v28  ;;  %10024 = vmatprep.subr.bf16.mxu0 %v14436_v8  ;;  %v15376_v45 = vadd.f32 %v9722_v0, %v9682_v12  ;;  %v14463_v0 = vld [vmem:[#allocation8 + $0xf6c] ss:$40 sps:$4 sm:$0xff]   ;;  %v14490_v8 = vld [vmem:[#allocation8 + $0x173c] ss:$40 sps:$4 sm:$0xff]   ;;  %v14488_v12 = vld [vmem:[#allocation8 + $0x1738] ss:$40 sps:$4 sm:$0xff]  }
 0x4e6   :  { %v9685_v16 = vpop.f32.mrf.mxu1  ;;  %v14487_v28 = vld [vmem:[#allocation8 + $0x132c] ss:$40 sps:$4 sm:$0xff]  }
 0x4e7   :  { %9978 = vmatpush1.bf16.msra.mxu1 %v14431_v39  ;;  %v15378_v49 = vadd.f32 %v9724_v50, %v9684_v17  ;;  %v14469_v50 = vld [vmem:[#allocation8 + $0xf1c] ss:$40 sps:$4 sm:$0xff]   ;;  %v14496_v10 = vld [vmem:[#allocation8 + $0x16ec] ss:$40 sps:$4 sm:$0xff]   ;;  %v14497_v16 = vld [vmem:[#allocation8 + $0x1288] ss:$40 sps:$4 sm:$0xff]  }
 0x4e8   :  { %v9686_v14 = vpop.f32.mrf.mxu1  ;;  %10025 = vmatpush1.bf16.msra.mxu0 %v14434_v33  ;;  %9979 = vmatprep.subr.bf16.mxu1 %v14439_v41  ;;  %v14493_v39 = vld [vmem:[#allocation8 + $0x12dc] ss:$40 sps:$4 sm:$0xff]   ;;  %v14491_v33 = vld [vmem:[#allocation8 + $0x12d8] ss:$40 sps:$4 sm:$0xff]   ;;  %v14494_v41 = vld [vmem:[#allocation8 + $0x16e8] ss:$40 sps:$4 sm:$0xff]  }
 0x4e9   :  { %10026 = vmatprep.subr.bf16.mxu0 %v14442_v36  ;;  %v14499_v17 = vld [vmem:[#allocation8 + $0x128c] ss:$40 sps:$4 sm:$0xff]   ;;  %v14502_v36 = vld [vmem:[#allocation8 + $0x169c] ss:$40 sps:$4 sm:$0xff]  }
 0x4ea   :  { %v14505_v14 = vld [vmem:[#allocation8 + $0x123c] ss:$40 sps:$4 sm:$0xff]  }
 0x4eb   :  { %9980 = vmatpush1.bf16.msra.mxu1 %v14437_v44  ;;  %v14500_v44 = vld [vmem:[#allocation8 + $0x1698] ss:$40 sps:$4 sm:$0xff]  }
 0x4ec   :  { %10027 = vmatpush1.bf16.msra.mxu0 %v14440_v35  ;;  %9981 = vmatprep.subr.bf16.mxu1 %v14445_v53  ;;  %v14508_v35 = vld [vmem:[#allocation8 + $0x754] ss:$40 sps:$4 sm:$0xff]   ;;  %v14503_v53 = vld [vmem:[#allocation8 + $0x1238] ss:$40 sps:$4 sm:$0xff]  }
 0x4ed   :  { %10028 = vmatprep.subr.bf16.mxu0 %v14448_v46  ;;  %v14506_v46 = vld [vmem:[#allocation8 + $0x750] ss:$40 sps:$4 sm:$0xff]  }
 0x4ef   :  { %9982 = vmatpush1.bf16.msra.mxu1 %v14443_v15  ;;  %v14511_v15 = vld [vmem:[#allocation8 + $0x11ec] ss:$40 sps:$4 sm:$0xff]  }
 0x4f0   :  { %10029 = vmatpush1.bf16.msra.mxu0 %v14446_v56  ;;  %9983 = vmatprep.subr.bf16.mxu1 %v14451_v48  ;;  %v14514_v56 = vld [vmem:[#allocation8 + $0x704] ss:$40 sps:$4 sm:$0xff]  }
 0x4f1   :  { %10030 = vmatprep.subr.bf16.mxu0 %v14454_v52  ;;  %v14509_v52 = vld [vmem:[#allocation8 + $0x11e8] ss:$40 sps:$4 sm:$0xff]  }
 0x4f3   :  { %9984 = vmatpush1.bf16.msra.mxu1 %v14449_v31  ;;  %v14512_v31 = vld [vmem:[#allocation8 + $0x700] ss:$40 sps:$4 sm:$0xff]  }
 0x4f4   :  { %10031 = vmatpush1.bf16.msra.mxu0 %v14452_v62  ;;  %9985 = vmatprep.subr.bf16.mxu1 %v14457_v37  ;;  %v14517_v62 = vld [vmem:[#allocation8 + $0x119c] ss:$40 sps:$4 sm:$0xff]  }
 0x4f5   :  { %10032 = vmatprep.subr.bf16.mxu0 %v14460_v21  ;;  %v14520_v21 = vld [vmem:[#allocation8 + $0x6b4] ss:$40 sps:$4 sm:$0xff]  }
 0x4f7   :  { %9986 = vmatpush1.bf16.msra.mxu1 %v14455_v4 }
 0x4f8   :  { %10033 = vmatpush2.bf16.msra.mxu0 %v14458_v29  ;;  %9987 = vmatprep.subr.bf16.mxu1 %v14463_v0  ;;  %v14515_v29 = vld [vmem:[#allocation8 + $0x1198] ss:$40 sps:$4 sm:$0xff]  }
 0x4f9   :  { %10034 = vmatprep.subr.bf16.mxu0 %v14466_v13  ;;  %v14518_v0 = vld [vmem:[#allocation8 + $0x6b0] ss:$40 sps:$4 sm:$0xff]   ;;  %v14523_v13 = vld [vmem:[#allocation8 + $0x254] ss:$40 sps:$4 sm:$0xff]  }
 0x4fb   :  { %9988 = vmatpush1.bf16.msra.mxu1 %v14461_v1 }
 0x4fc   :  { %10035 = vmatpush2.bf16.msra.mxu0 %v14464_v5  ;;  %9989 = vmatprep.subr.bf16.mxu1 %v14469_v50  ;;  %v14526_v5 = vld [vmem:[#allocation8 + $0x664] ss:$40 sps:$4 sm:$0xff]   ;;  %v14521_v50 = vld [vmem:[#allocation8 + $0x250] ss:$40 sps:$4 sm:$0xff]  }
 0x4fd   :  { %10036 = vmatprep.subr.bf16.mxu0 %v14472_v9  ;;  %v14529_v9 = vld [vmem:[#allocation8 + $0x204] ss:$40 sps:$4 sm:$0xff]  }
 0x4ff   :  { %9990 = vmatpush1.bf16.msra.mxu1 %v14467_v32  ;;  %v14532_v32 = vld [vmem:[#allocation8 + $0x614] ss:$40 sps:$4 sm:$0xff]  }
 0x500   :  { %10037 = vmatpush2.bf16.msra.mxu0 %v14470_v51  ;;  %9991 = vmatprep.subr.bf16.mxu1 %v14475_v22 }
 0x501   :  { %10038 = vmatprep.subr.bf16.mxu0 %v14478_v20  ;;  %v14527_v20 = vld [vmem:[#allocation8 + $0x200] ss:$40 sps:$4 sm:$0xff]  }
 0x503   :  { %9992 = vmatpush2.bf16.msra.mxu1 %v14473_v42 }
 0x504   :  { %10039 = vmatpush2.bf16.msra.mxu0 %v14476_v25  ;;  %9993 = vmatprep.subr.bf16.mxu1 %v14481_v27  ;;  %v14530_v25 = vld [vmem:[#allocation8 + $0x610] ss:$40 sps:$4 sm:$0xff]   ;;  %v14535_v27 = vld [vmem:[#allocation8 + $0x1b4] ss:$40 sps:$4 sm:$0xff]  }
 0x505   :  { %10040 = vmatprep.subr.bf16.mxu0 %v14484_v11 }
 0x507   :  { %9994 = vmatpush2.bf16.msra.mxu1 %v14479_v63  ;;  %v14538_v63 = vld [vmem:[#allocation8 + $0x5c4] ss:$40 sps:$4 sm:$0xff]  }
 0x508   :  { %10041 = vmatpush2.bf16.msra.mxu0 %v14482_v6  ;;  %9995 = vmatprep.subr.bf16.mxu1 %v14487_v28 }
 0x509   :  { %10042 = vmatprep.subr.bf16.mxu0 %v14490_v8  ;;  %v14533_v8 = vld [vmem:[#allocation8 + $0x1b0] ss:$40 sps:$4 sm:$0xff]  }
 0x50b   :  { %9996 = vmatpush2.bf16.msra.mxu1 %v14485_v47 }
 0x50c   :  { %10043 = vmatpush2.bf16.msra.mxu0 %v14488_v12  ;;  %9997 = vmatprep.subr.bf16.mxu1 %v14493_v39  ;;  %v14541_v12 = vld [vmem:[#allocation8 + $0x164] ss:$40 sps:$4 sm:$0xff]   ;;  %v14544_v39 = vld [vmem:[#allocation8 + $0x574] ss:$40 sps:$4 sm:$0xff]  }
 0x50d   :  { %10044 = vmatprep.subr.bf16.mxu0 %v14496_v10  ;;  %v14539_v10 = vld [vmem:[#allocation8 + $0x160] ss:$40 sps:$4 sm:$0xff]  }
 0x50f   :  { %9998 = vmatpush2.bf16.msra.mxu1 %v14491_v33  ;;  %v14547_v33 = vld [vmem:[#allocation8 + $0x114] ss:$40 sps:$4 sm:$0xff]  }
 0x510   :  { %10045 = vmatpush2.bf16.msra.mxu0 %v14494_v41  ;;  %9999 = vmatprep.subr.bf16.mxu1 %v14499_v17  ;;  %v14550_v41 = vld [vmem:[#allocation8 + $0x524] ss:$40 sps:$4 sm:$0xff]   ;;  %v14545_v17 = vld [vmem:[#allocation8 + $0x110] ss:$40 sps:$4 sm:$0xff]  }
 0x511   :  { %10046 = vmatprep.subr.bf16.mxu0 %v14502_v36  ;;  %v14548_v36 = vld [vmem:[#allocation8 + $0x520] ss:$40 sps:$4 sm:$0xff]  }
 0x513   :  { %10000 = vmatpush2.bf16.msra.mxu1 %v14497_v16  ;;  %v14553_v16 = vld [vmem:[#allocation8 + $0xc4] ss:$40 sps:$4 sm:$0xff]  }
 0x514   :  { %10047 = vmatpush2.bf16.msra.mxu0 %v14500_v44  ;;  %10001 = vmatprep.subr.bf16.mxu1 %v14505_v14  ;;  %v14556_v44 = vld [vmem:[#allocation8 + $0x9d4] ss:$40 sps:$4 sm:$0xff]   ;;  %v14551_v14 = vld [vmem:[#allocation8 + $0xc0] ss:$40 sps:$4 sm:$0xff]  }
 0x515   :  { %10098 = vmatprep.subr.bf16.mxu0 %v14508_v35  ;;  %v14554_v35 = vld [vmem:[#allocation8 + $0x9d0] ss:$40 sps:$4 sm:$0xff]  }
 0x517   :  { %v9804_v48 = vpop.f32.mrf.mxu0  ;;  %10002 = vmatpush2.bf16.msra.mxu1 %v14503_v53  ;;  %10049 = vmatmul.mubr.bf16.vlgmr.msra.gmra.mxu0 %v15283_v61  ;;  %v14559_v53 = vld [vmem:[#allocation8 + $0x74] ss:$40 sps:$4 sm:$0xff]  }
 0x518   :  { %10099 = vmatpush1.bf16.msra.mxu0 %v14506_v46  ;;  %10130 = vmatprep.mubr.bf16.mxu0 %v15213_v55  ;;  %v14524_v55 = vld [vmem:[#allocation8 + $0x660] ss:$40 sps:$4 sm:$0xff]   ;;  %v14562_v46 = vld [vmem:[#allocation8 + $0x984] ss:$40 sps:$4 sm:$0xff]  }
 0x519   :  { %v9806_v37 = vpop.f32.mrf.mxu0  ;;  %10003 = vmatprep.subr.bf16.mxu1 %v14511_v15  ;;  %10100 = vmatprep.subr.bf16.mxu0 %v14514_v56  ;;  %v14557_v15 = vld [vmem:[#allocation8 + $0x70] ss:$40 sps:$4 sm:$0xff]   ;;  %v14560_v56 = vld [vmem:[#allocation8 + $0x980] ss:$40 sps:$4 sm:$0xff]  }
 0x51b   :  { %v9808_v4 = vpop.f32.mrf.mxu0  ;;  %10004 = vmatpush2.bf16.msra.mxu1 %v14509_v52  ;;  %v14568_v52 = vld [vmem:[#allocation8 + $0x934] ss:$40 sps:$4 sm:$0xff]  }
 0x51c   :  { %10101 = vmatpush1.bf16.msra.mxu0 %v14512_v31  ;;  %10005 = vmatprep.subr.bf16.mxu1 %v14517_v62  ;;  %v14563_v31 = vld [vmem:[#allocation8 + $0x20] ss:$40 sps:$4 sm:$0xff]   ;;  %v14566_v62 = vld [vmem:[#allocation8 + $0x930] ss:$40 sps:$4 sm:$0xff]  }
 0x51d   :  { %v9809_v1 = vpop.f32.mrf.mxu0  ;;  %10102 = vmatprep.subr.bf16.mxu0 %v14520_v21  ;;  %v14574_v21 = vld [vmem:[#allocation8 + $0x8e4] ss:$40 sps:$4 sm:$0xff]   ;;  %v14569_v4 = vld [vmem:[#allocation8 + $0x4d0] ss:$40 sps:$4 sm:$0xff]  }
 0x51e   :  { %v14575_v1 = vld [vmem:[#allocation8 + $0x480] ss:$40 sps:$4 sm:$0xff]  }
 0x51f   :  { %10006 = vmatpush2.bf16.msra.mxu1 %v14515_v29  ;;  %v14572_v29 = vld [vmem:[#allocation8 + $0x8e0] ss:$40 sps:$4 sm:$0xff]  }
 0x520   :  { %10103 = vmatpush1.bf16.msra.mxu0 %v14518_v0  ;;  %10057 = vmatprep.subr.bf16.mxu1 %v14523_v13  ;;  %v14577_v0 = vld [vmem:[#allocation8 + $0x484] ss:$40 sps:$4 sm:$0xff]   ;;  %v14580_v13 = vld [vmem:[#allocation8 + $0x894] ss:$40 sps:$4 sm:$0xff]  }
 0x521   :  { %10104 = vmatprep.subr.bf16.mxu0 %v14526_v5  ;;  %v14578_v5 = vld [vmem:[#allocation8 + $0x890] ss:$40 sps:$4 sm:$0xff]  }
 0x522   :  { %v9763_v51 = vpop.f32.mrf.mxu1  ;;  %10008 = vmatmul.mubr.bf16.vlgmr.msra.gmra.mxu1 %v15261_v7 }
 0x523   :  { %v9764_v22 = vadd.f32 %v9763_v51, %v15376_v45  ;;  %10058 = vmatpush1.bf16.msra.mxu1 %v14521_v50  ;;  %10089 = vmatprep.mubr.bf16.mxu1 %v15200_v2  ;;  %v14536_v2 = vld [vmem:[#allocation8 + $0x5c0] ss:$40 sps:$4 sm:$0xff]   ;;  %v14583_v50 = vld [vmem:[#allocation8 + $0x434] ss:$40 sps:$4 sm:$0xff]   ;;  %v14589_v51 = vld [vmem:[#allocation8 + $0x3e4] ss:$40 sps:$4 sm:$0xff]  }
 0x524   :  { %v9765_v42 = vpop.f32.mrf.mxu1  ;;  %10105 = vmatpush1.bf16.msra.mxu0 %v14524_v55  ;;  %10059 = vmatprep.subr.bf16.mxu1 %v14529_v9  ;;  %v14586_v55 = vld [vmem:[#allocation8 + $0x844] ss:$40 sps:$4 sm:$0xff]   ;;  %v14581_v9 = vld [vmem:[#allocation8 + $0x430] ss:$40 sps:$4 sm:$0xff]  }
 0x525   :  { %v9766_v11 = vadd.f32 %v9765_v42, %v15378_v49  ;;  %10106 = vmatprep.subr.bf16.mxu0 %v14532_v32  ;;  %v15386_v6 = vadd.f32 %v9804_v48, %v9764_v22  ;;  %v14542_v49 = vld [vmem:[#allocation8 + $0x570] ss:$40 sps:$4 sm:$0xff]   ;;  %v14565_v48 = vld [vmem:[#allocation8 + $0x24] ss:$40 sps:$4 sm:$0xff]   ;;  %v14584_v32 = vld [vmem:[#allocation8 + $0x840] ss:$40 sps:$4 sm:$0xff]  }
 0x526   :  { %v9767_v28 = vpop.f32.mrf.mxu1  ;;  %v14592_v22 = vld [vmem:[#allocation8 + $0x7f4] ss:$40 sps:$4 sm:$0xff]   ;;  %v14590_v42 = vld [vmem:[#allocation8 + $0x7f0] ss:$40 sps:$4 sm:$0xff]  }
 0x527   :  { %10060 = vmatpush1.bf16.msra.mxu1 %v14527_v20  ;;  %v15388_v47 = vadd.f32 %v9806_v37, %v9766_v11  ;;  %v14571_v37 = vld [vmem:[#allocation8 + $0x4d4] ss:$40 sps:$4 sm:$0xff]   ;;  %v14587_v20 = vld [vmem:[#allocation8 + $0x3e0] ss:$40 sps:$4 sm:$0xff]   ;;  %v14593_v11 = vld [vmem:[#allocation8 + $0x390] ss:$40 sps:$4 sm:$0xff]  }
 0x528   :  { %v9768_v45 = vpop.f32.mrf.mxu1  ;;  %10107 = vmatpush1.bf16.msra.mxu0 %v14530_v25  ;;  %10061 = vmatprep.subr.bf16.mxu1 %v14535_v27  ;;  %v14595_v25 = vld [vmem:[#allocation8 + $0x394] ss:$40 sps:$4 sm:$0xff]   ;;  %v14598_v27 = vld [vmem:[#allocation8 + $0x7a4] ss:$40 sps:$4 sm:$0xff]  }
 0x529   :  { %10108 = vmatprep.subr.bf16.mxu0 %v14538_v63  ;;  %v14596_v63 = vld [vmem:[#allocation8 + $0x7a0] ss:$40 sps:$4 sm:$0xff]   ;;  %v14601_v28 = vld [vmem:[#allocation8 + $0x344] ss:$40 sps:$4 sm:$0xff]  }
 0x52a   :  { %v14599_v45 = vld [vmem:[#allocation8 + $0x340] ss:$40 sps:$4 sm:$0xff]  }
 0x52b   :  { %10062 = vmatpush1.bf16.msra.mxu1 %v14533_v8  ;;  %v14604_v8 = vld [vmem:[#allocation8 + $0x1154] ss:$40 sps:$4 sm:$0xff]  }
 0x52c   :  { %10109 = vmatpush1.bf16.msra.mxu0 %v14536_v2  ;;  %10063 = vmatprep.subr.bf16.mxu1 %v14541_v12  ;;  %v14602_v2 = vld [vmem:[#allocation8 + $0x1150] ss:$40 sps:$4 sm:$0xff]   ;;  %v14607_v12 = vld [vmem:[#allocation8 + $0x2f4] ss:$40 sps:$4 sm:$0xff]  }
 0x52d   :  { %10110 = vmatprep.subr.bf16.mxu0 %v14544_v39  ;;  %v14610_v39 = vld [vmem:[#allocation8 + $0x1104] ss:$40 sps:$4 sm:$0xff]  }
 0x52f   :  { %10064 = vmatpush1.bf16.msra.mxu1 %v14539_v10 }
 0x530   :  { %10111 = vmatpush1.bf16.msra.mxu0 %v14542_v49  ;;  %10065 = vmatprep.subr.bf16.mxu1 %v14547_v33  ;;  %v14605_v49 = vld [vmem:[#allocation8 + $0x2f0] ss:$40 sps:$4 sm:$0xff]   ;;  %v14608_v33 = vld [vmem:[#allocation8 + $0x1100] ss:$40 sps:$4 sm:$0xff]  }
 0x531   :  { %10112 = vmatprep.subr.bf16.mxu0 %v14550_v41  ;;  %v14613_v41 = vld [vmem:[#allocation8 + $0x2a4] ss:$40 sps:$4 sm:$0xff]  }
 0x533   :  { %10066 = vmatpush1.bf16.msra.mxu1 %v14545_v17 }
 0x534   :  { %10113 = vmatpush1.bf16.msra.mxu0 %v14548_v36  ;;  %10067 = vmatprep.subr.bf16.mxu1 %v14553_v16  ;;  %v14616_v36 = vld [vmem:[#allocation8 + $0x10b4] ss:$40 sps:$4 sm:$0xff]  }
 0x535   :  { %10114 = vmatprep.subr.bf16.mxu0 %v14556_v44  ;;  %v14611_v44 = vld [vmem:[#allocation8 + $0x2a0] ss:$40 sps:$4 sm:$0xff]  }
 0x537   :  { %10068 = vmatpush1.bf16.msra.mxu1 %v14551_v14  ;;  %v14614_v14 = vld [vmem:[#allocation8 + $0x10b0] ss:$40 sps:$4 sm:$0xff]  }
 0x538   :  { %10115 = vmatpush2.bf16.msra.mxu0 %v14554_v35  ;;  %10069 = vmatprep.subr.bf16.mxu1 %v14559_v53  ;;  %v14619_v35 = vld [vmem:[#allocation8 + $0xc54] ss:$40 sps:$4 sm:$0xff]  }
 0x539   :  { %10116 = vmatprep.subr.bf16.mxu0 %v14562_v46  ;;  %v14617_v46 = vld [vmem:[#allocation8 + $0xc50] ss:$40 sps:$4 sm:$0xff]  }
 0x53b   :  { %10070 = vmatpush1.bf16.msra.mxu1 %v14557_v15  ;;  %v14625_v15 = vld [vmem:[#allocation8 + $0xc04] ss:$40 sps:$4 sm:$0xff]  }
 0x53c   :  { %10117 = vmatpush2.bf16.msra.mxu0 %v14560_v56  ;;  %10071 = vmatprep.subr.bf16.mxu1 %v14565_v48  ;;  %v14628_v56 = vld [vmem:[#allocation8 + $0x1014] ss:$40 sps:$4 sm:$0xff]  }
 0x53d   :  { %10118 = vmatprep.subr.bf16.mxu0 %v14568_v52 }
 0x53f   :  { %10072 = vmatpush1.bf16.msra.mxu1 %v14563_v31  ;;  %v14623_v31 = vld [vmem:[#allocation8 + $0xc00] ss:$40 sps:$4 sm:$0xff]  }
 0x540   :  { %10119 = vmatpush2.bf16.msra.mxu0 %v14566_v62  ;;  %10073 = vmatprep.subr.bf16.mxu1 %v14571_v37  ;;  %v14626_v37 = vld [vmem:[#allocation8 + $0x1010] ss:$40 sps:$4 sm:$0xff]  }
 0x541   :  { %10120 = vmatprep.subr.bf16.mxu0 %v14574_v21  ;;  %v14631_v21 = vld [vmem:[#allocation8 + $0xbb4] ss:$40 sps:$4 sm:$0xff]  }
 0x543   :  { %10074 = vmatpush2.bf16.msra.mxu1 %v14569_v4 }
 0x544   :  { %10121 = vmatpush2.bf16.msra.mxu0 %v14572_v29  ;;  %10075 = vmatprep.subr.bf16.mxu1 %v14577_v0  ;;  %v14634_v29 = vld [vmem:[#allocation8 + $0xfc4] ss:$40 sps:$4 sm:$0xff]  }
 0x545   :  { %10122 = vmatprep.subr.bf16.mxu0 %v14580_v13 }
 0x547   :  { %10076 = vmatpush2.bf16.msra.mxu1 %v14575_v1  ;;  %v14637_v1 = vld [vmem:[#allocation8 + $0xb64] ss:$40 sps:$4 sm:$0xff]  }
 0x548   :  { %10123 = vmatpush2.bf16.msra.mxu0 %v14578_v5  ;;  %10077 = vmatprep.subr.bf16.mxu1 %v14583_v50  ;;  %v14635_v5 = vld [vmem:[#allocation8 + $0xb60] ss:$40 sps:$4 sm:$0xff]   ;;  %v14638_v50 = vld [vmem:[#allocation8 + $0xf70] ss:$40 sps:$4 sm:$0xff]  }
 0x549   :  { %10124 = vmatprep.subr.bf16.mxu0 %v14586_v55  ;;  %v14643_v55 = vld [vmem:[#allocation8 + $0xb14] ss:$40 sps:$4 sm:$0xff]  }
 0x54b   :  { %10078 = vmatpush2.bf16.msra.mxu1 %v14581_v9  ;;  %v14641_v9 = vld [vmem:[#allocation8 + $0xb10] ss:$40 sps:$4 sm:$0xff]  }
 0x54c   :  { %10125 = vmatpush2.bf16.msra.mxu0 %v14584_v32  ;;  %10079 = vmatprep.subr.bf16.mxu1 %v14589_v51  ;;  %v14644_v32 = vld [vmem:[#allocation8 + $0xf20] ss:$40 sps:$4 sm:$0xff]   ;;  %v14649_v51 = vld [vmem:[#allocation8 + $0xac4] ss:$40 sps:$4 sm:$0xff]  }
 0x54d   :  { %10126 = vmatprep.subr.bf16.mxu0 %v14592_v22  ;;  %v14652_v22 = vld [vmem:[#allocation8 + $0x13d4] ss:$40 sps:$4 sm:$0xff]  }
 0x54f   :  { %10080 = vmatpush2.bf16.msra.mxu1 %v14587_v20  ;;  %v14647_v20 = vld [vmem:[#allocation8 + $0xac0] ss:$40 sps:$4 sm:$0xff]  }
 0x550   :  { %10127 = vmatpush2.bf16.msra.mxu0 %v14590_v42  ;;  %10081 = vmatprep.subr.bf16.mxu1 %v14595_v25  ;;  %v14650_v42 = vld [vmem:[#allocation8 + $0x13d0] ss:$40 sps:$4 sm:$0xff]   ;;  %v14655_v25 = vld [vmem:[#allocation8 + $0xa74] ss:$40 sps:$4 sm:$0xff]  }
 0x551   :  { %10128 = vmatprep.subr.bf16.mxu0 %v14598_v27  ;;  %v14658_v27 = vld [vmem:[#allocation8 + $0x1384] ss:$40 sps:$4 sm:$0xff]  }
 0x553   :  { %10082 = vmatpush2.bf16.msra.mxu1 %v14593_v11  ;;  %v14653_v11 = vld [vmem:[#allocation8 + $0xa70] ss:$40 sps:$4 sm:$0xff]  }
 0x554   :  { %10129 = vmatpush2.bf16.msra.mxu0 %v14596_v63  ;;  %10083 = vmatprep.subr.bf16.mxu1 %v14601_v28  ;;  %v14656_v63 = vld [vmem:[#allocation8 + $0x1380] ss:$40 sps:$4 sm:$0xff]   ;;  %v14661_v28 = vld [vmem:[#allocation8 + $0xa24] ss:$40 sps:$4 sm:$0xff]  }
 0x555   :  { %10180 = vmatprep.subr.bf16.mxu0 %v14604_v8  ;;  %v14664_v8 = vld [vmem:[#allocation8 + $0x1334] ss:$40 sps:$4 sm:$0xff]  }
 0x557   :  { %v15390_v10 = vpop.f32.mrf.mxu0  ;;  %10084 = vmatpush2.bf16.msra.mxu1 %v14599_v45  ;;  %10131 = vmatmul.mubr.bf16.vlgmr.msra.gmra.mxu0 %v15243_v30  ;;  %v14622_v30 = vld [vmem:[#allocation8 + $0x1064] ss:$40 sps:$4 sm:$0xff]   ;;  %v14659_v45 = vld [vmem:[#allocation8 + $0xa20] ss:$40 sps:$4 sm:$0xff]  }
 0x558   :  { %10181 = vmatpush1.bf16.msra.mxu0 %v14602_v2  ;;  %10212 = vmatprep.mubr.bf16.mxu0 %v15251_v59  ;;  %v14620_v59 = vld [vmem:[#allocation8 + $0x1060] ss:$40 sps:$4 sm:$0xff]   ;;  %v14662_v2 = vld [vmem:[#allocation8 + $0x1330] ss:$40 sps:$4 sm:$0xff]  }
 0x559   :  { %v15394_v17 = vpop.f32.mrf.mxu0  ;;  %10085 = vmatprep.subr.bf16.mxu1 %v14607_v12  ;;  %10182 = vmatprep.subr.bf16.mxu0 %v14610_v39  ;;  %v14667_v12 = vld [vmem:[#allocation8 + $0xed4] ss:$40 sps:$4 sm:$0xff]   ;;  %v14670_v39 = vld [vmem:[#allocation8 + $0x12e4] ss:$40 sps:$4 sm:$0xff]  }
 0x55b   :  { %v9890_v16 = vpop.f32.mrf.mxu0  ;;  %10086 = vmatpush2.bf16.msra.mxu1 %v14605_v49  ;;  %v14665_v49 = vld [vmem:[#allocation8 + $0xed0] ss:$40 sps:$4 sm:$0xff]  }
 0x55c   :  { %10183 = vmatpush1.bf16.msra.mxu0 %v14608_v33  ;;  %10087 = vmatprep.subr.bf16.mxu1 %v14613_v41  ;;  %v14668_v33 = vld [vmem:[#allocation8 + $0x12e0] ss:$40 sps:$4 sm:$0xff]   ;;  %v14673_v41 = vld [vmem:[#allocation8 + $0xe84] ss:$40 sps:$4 sm:$0xff]  }
 0x55d   :  { %v9891_v53 = vpop.f32.mrf.mxu0  ;;  %10184 = vmatprep.subr.bf16.mxu0 %v14616_v36  ;;  %v14676_v36 = vld [vmem:[#allocation8 + $0x1294] ss:$40 sps:$4 sm:$0xff]   ;;  %v14671_v16 = vld [vmem:[#allocation8 + $0xe80] ss:$40 sps:$4 sm:$0xff]  }
 0x55e   :  { %v14677_v53 = vld [vmem:[#allocation8 + $0xe30] ss:$40 sps:$4 sm:$0xff]  }
 0x55f   :  { %10088 = vmatpush2.bf16.msra.mxu1 %v14611_v44  ;;  %v14674_v44 = vld [vmem:[#allocation8 + $0x1290] ss:$40 sps:$4 sm:$0xff]  }
 0x560   :  { %10185 = vmatpush1.bf16.msra.mxu0 %v14614_v14  ;;  %10139 = vmatprep.subr.bf16.mxu1 %v14619_v35  ;;  %v14679_v14 = vld [vmem:[#allocation8 + $0xe34] ss:$40 sps:$4 sm:$0xff]   ;;  %v14682_v35 = vld [vmem:[#allocation8 + $0x1244] ss:$40 sps:$4 sm:$0xff]  }
 0x561   :  { %10186 = vmatprep.subr.bf16.mxu0 %v14622_v30  ;;  %v14680_v30 = vld [vmem:[#allocation8 + $0x1240] ss:$40 sps:$4 sm:$0xff]  }
 0x562   :  { %v9845_v48 = vpop.f32.mrf.mxu1  ;;  %10090 = vmatmul.mubr.bf16.vlgmr.msra.gmra.mxu1 %v15227_v18  ;;  %v14629_v18 = vld [vmem:[#allocation8 + $0xbb0] ss:$40 sps:$4 sm:$0xff]  }
 0x563   :  { %v15398_v52 = vadd.f32 %v9845_v48, %v15386_v6  ;;  %10140 = vmatpush1.bf16.msra.mxu1 %v14617_v46  ;;  %10171 = vmatprep.mubr.bf16.mxu1 %v15229_v38  ;;  %v14632_v6 = vld [vmem:[#allocation8 + $0xfc0] ss:$40 sps:$4 sm:$0xff]   ;;  %v14640_v38 = vld [vmem:[#allocation8 + $0xf74] ss:$40 sps:$4 sm:$0xff]   ;;  %v14685_v46 = vld [vmem:[#allocation8 + $0xde4] ss:$40 sps:$4 sm:$0xff]  }
 0x564   :  { %v9847_v62 = vpop.f32.mrf.mxu1  ;;  %10187 = vmatpush1.bf16.msra.mxu0 %v14620_v59  ;;  %10141 = vmatprep.subr.bf16.mxu1 %v14625_v15  ;;  %v14688_v59 = vld [vmem:[#allocation8 + $0x11f4] ss:$40 sps:$4 sm:$0xff]   ;;  %v14683_v15 = vld [vmem:[#allocation8 + $0xde0] ss:$40 sps:$4 sm:$0xff]  }
 0x565   :  { %v15402_v4 = vadd.f32 %v9847_v62, %v15388_v47  ;;  %10188 = vmatprep.subr.bf16.mxu0 %v14628_v56  ;;  %v14646_v47 = vld [vmem:[#allocation8 + $0xf24] ss:$40 sps:$4 sm:$0xff]   ;;  %v14686_v56 = vld [vmem:[#allocation8 + $0x11f0] ss:$40 sps:$4 sm:$0xff]   ;;  %v14691_v48 = vld [vmem:[#allocation8 + $0xd94] ss:$40 sps:$4 sm:$0xff]  }
 0x566   :  { %v9849_v0 = vpop.f32.mrf.mxu1  ;;  %v14689_v62 = vld [vmem:[#allocation8 + $0xd90] ss:$40 sps:$4 sm:$0xff]  }
 0x567   :  { %10142 = vmatpush1.bf16.msra.mxu1 %v14623_v31  ;;  %v14694_v31 = vld [vmem:[#allocation8 + $0x11a4] ss:$40 sps:$4 sm:$0xff]   ;;  %v10263_v0 = vmax.f32 %v15336_v24, 0.0  ;;  %v14708_v24 = vld [vmem:[#allocation11 + $0x68] sm:$0xff]  }
 0x568   :  { %v9850_v13 = vpop.f32.mrf.mxu1  ;;  %10189 = vmatpush1.bf16.msra.mxu0 %v14626_v37  ;;  %10143 = vmatprep.subr.bf16.mxu1 %v14631_v21  ;;  %v14692_v37 = vld [vmem:[#allocation8 + $0x11a0] ss:$40 sps:$4 sm:$0xff]   ;;  %v14697_v21 = vld [vmem:[#allocation8 + $0xd44] ss:$40 sps:$4 sm:$0xff]  }
 0x569   :  { %10190 = vmatprep.subr.bf16.mxu0 %v14634_v29  ;;  %v14698_v29 = vld [vmem:[#allocation11 + $0x78] sm:$0xff]  }
 0x56a   :  { %v14699_v13 = vld [vmem:[#allocation11 + $0x38] sm:$0xff]  }
 0x56b   :  { %10144 = vmatpush1.bf16.msra.mxu1 %v14629_v18  ;;  %v14695_v18 = vld [vmem:[#allocation8 + $0xd40] ss:$40 sps:$4 sm:$0xff]  }
 0x56c   :  { %10191 = vmatpush1.bf16.msra.mxu0 %v14632_v6  ;;  %10145 = vmatprep.subr.bf16.mxu1 %v14637_v1  ;;  %v14702_v6 = vld [vmem:[#allocation8 + $0xcf4] ss:$40 sps:$4 sm:$0xff]  }
 0x56d   :  { %10192 = vmatprep.subr.bf16.mxu0 %v14640_v38  ;;  %v14703_v1 = vld [vmem:[#allocation11 + $0x70] sm:$0xff]   ;;  %v10273_v38 = vpack.c.bf16 %v10263_v0, %v10263_v0 }
 0x56e   :  { %v14743_v0 = vld [vmem:[#allocation11 + $0xf0] sm:$0xff]  }
 0x56f   :  { %10146 = vmatpush1.bf16.msra.mxu1 %v14635_v5 }
 0x570   :  { %10193 = vmatpush1.bf16.msra.mxu0 %v14638_v50  ;;  %10147 = vmatprep.subr.bf16.mxu1 %v14643_v55  ;;  %v14700_v50 = vld [vmem:[#allocation8 + $0xcf0] ss:$40 sps:$4 sm:$0xff]  }
 0x571   :  { %10194 = vmatprep.subr.bf16.mxu0 %v14646_v47  ;;  %v14704_v55 = vld [vmem:[#allocation11 + $0x30] sm:$0xff]   ;;  %v14707_v47 = vld [vmem:[#allocation8 + $0xca4] ss:$40 sps:$4 sm:$0xff]  }
 0x573   :  { %10148 = vmatpush1.bf16.msra.mxu1 %v14641_v9 }
 0x574   :  { %10195 = vmatpush1.bf16.msra.mxu0 %v14644_v32  ;;  %10149 = vmatprep.subr.bf16.mxu1 %v14649_v51  ;;  %v14705_v51 = vld [vmem:[#allocation8 + $0xca0] ss:$40 sps:$4 sm:$0xff]  }
 0x575   :  { %10196 = vmatprep.subr.bf16.mxu0 %v14652_v22  ;;  %v14709_v22 = vld [vmem:[#allocation11 + $0x28] sm:$0xff]  }
 0x577   :  { %10150 = vmatpush1.bf16.msra.mxu1 %v14647_v20  ;;  %v14712_v20 = vld [vmem:[#allocation8 + $0x1654] ss:$40 sps:$4 sm:$0xff]  }
 0x578   :  { %10197 = vmatpush2.bf16.msra.mxu0 %v14650_v42  ;;  %10151 = vmatprep.subr.bf16.mxu1 %v14655_v25  ;;  %v14713_v25 = vld [vmem:[#allocation11 + $0x60] sm:$0xff]  }
 0x579   :  { %10198 = vmatprep.subr.bf16.mxu0 %v14658_v27  ;;  %v5218_v27 = vrot.slane %v15366_v60, %v723_v3 }
 0x57b   :  { %10152 = vmatpush1.bf16.msra.mxu1 %v14653_v11  ;;  %v14710_v11 = vld [vmem:[#allocation8 + $0x1650] ss:$40 sps:$4 sm:$0xff]  }
 0x57c   :  { %10199 = vmatpush2.bf16.msra.mxu0 %v14656_v63  ;;  %10153 = vmatprep.subr.bf16.mxu1 %v14661_v28  ;;  %v14714_v63 = vld [vmem:[#allocation11 + $0x20] sm:$0xff]  }
 0x57d   :  { %10200 = vmatprep.subr.bf16.mxu0 %v14664_v8  ;;  %v14717_v28 = vld [vmem:[#allocation8 + $0x1604] ss:$40 sps:$4 sm:$0xff]  }
 0x57f   :  { %10154 = vmatpush1.bf16.msra.mxu1 %v14659_v45  ;;  %v14718_v45 = vld [vmem:[#allocation11 + $0x58] sm:$0xff]  }
 0x580   :  { %10201 = vmatpush2.bf16.msra.mxu0 %v14662_v2  ;;  %10155 = vmatprep.subr.bf16.mxu1 %v14667_v12 }
 0x581   :  { %10202 = vmatprep.subr.bf16.mxu0 %v14670_v39  ;;  %v14722_v39 = vld [vmem:[#allocation8 + $0x15b4] ss:$40 sps:$4 sm:$0xff]  }
 0x583   :  { %10156 = vmatpush2.bf16.msra.mxu1 %v14665_v49 }
 0x584   :  { %10203 = vmatpush2.bf16.msra.mxu0 %v14668_v33  ;;  %10157 = vmatprep.subr.bf16.mxu1 %v14673_v41 }
 0x585   :  { %10204 = vmatprep.subr.bf16.mxu0 %v14676_v36 }
 0x587   :  { %10158 = vmatpush2.bf16.msra.mxu1 %v14671_v16  ;;  %v14727_v16 = vld [vmem:[#allocation8 + $0x1564] ss:$40 sps:$4 sm:$0xff]  }
 0x588   :  { %10205 = vmatpush2.bf16.msra.mxu0 %v14674_v44  ;;  %10159 = vmatprep.subr.bf16.mxu1 %v14679_v14  ;;  %v14728_v44 = vld [vmem:[#allocation11 + $0x48] sm:$0xff]   ;;  %v14725_v14 = vld [vmem:[#allocation8 + $0x1560] ss:$40 sps:$4 sm:$0xff]  }
 0x589   :  { %10206 = vmatprep.subr.bf16.mxu0 %v14682_v35  ;;  %v14729_v35 = vld [vmem:[#allocation11 + $0x8] sm:$0xff]  }
 0x58b   :  { %10160 = vmatpush2.bf16.msra.mxu1 %v14677_v53  ;;  %v14732_v53 = vld [vmem:[#allocation8 + $0x1514] ss:$40 sps:$4 sm:$0xff]  }
 0x58c   :  { %10207 = vmatpush2.bf16.msra.mxu0 %v14680_v30  ;;  %10161 = vmatprep.subr.bf16.mxu1 %v14685_v46  ;;  %v14733_v30 = vld [vmem:[#allocation11 + $0x40] sm:$0xff]  }
 0x58d   :  { %10208 = vmatprep.subr.bf16.mxu0 %v14688_v59  ;;  %v14730_v46 = vld [vmem:[#allocation8 + $0x1510] ss:$40 sps:$4 sm:$0xff]  }
 0x58e   :  { %v14734_v59 = vld [vmem:[#allocation11] sm:$0xff]  }
 0x58f   :  { %10162 = vmatpush2.bf16.msra.mxu1 %v14683_v15  ;;  %v14737_v15 = vld [vmem:[#allocation8 + $0x14c4] ss:$40 sps:$4 sm:$0xff]  }
 0x590   :  { %10209 = vmatpush2.bf16.msra.mxu0 %v14686_v56  ;;  %10163 = vmatprep.subr.bf16.mxu1 %v14691_v48  ;;  %v10262_v56 = vmax.f32 %v15332_v58, 0.0  ;;  %v14738_v48 = vld [vmem:[#allocation11 + $0xf8] sm:$0xff]   ;;  %v14744_v58 = vld [vmem:[#allocation11 + $0xb0] sm:$0xff]  }
 0x591   :  { %10210 = vmatprep.subr.bf16.mxu0 %v14694_v31  ;;  %v10265_v31 = vmax.f32 %v15362_v19, 0.0  ;;  %v14748_v19 = vld [vmem:[#allocation11 + $0xe8] sm:$0xff]  }
 0x593   :  { %10164 = vmatpush2.bf16.msra.mxu1 %v14689_v62  ;;  %v14735_v62 = vld [vmem:[#allocation8 + $0x14c0] ss:$40 sps:$4 sm:$0xff]  }
 0x594   :  { %10211 = vmatpush2.bf16.msra.mxu0 %v14692_v37  ;;  %10165 = vmatprep.subr.bf16.mxu1 %v14697_v21  ;;  %v14739_v37 = vld [vmem:[#allocation11 + $0xb8] sm:$0xff]   ;;  %v10272_v21 = vpack.c.bf16 %v10262_v56, %v10262_v56  ;;  %v14793_v56 = vld [vmem:[#allocation11 + $0x1a0] sm:$0xff]  }
 0x595   :  { %12589 = vmatprep.subr.bf16.mxu0 %v14698_v29  ;;  %v14742_v29 = vld [vmem:[#allocation8 + $0x1474] ss:$40 sps:$4 sm:$0xff]  }
 0x597   :  { %v9968_v5 = vpop.f32.mrf.mxu0  ;;  %10166 = vmatpush2.bf16.msra.mxu1 %v14695_v18  ;;  %10213 = vmatmul.mubr.bf16.vlgmr.msra.gmra.mxu0 %v15261_v7  ;;  %v5214_v7 = vrot.slane %v15366_v60, %v719_v23  ;;  %v9889_v23 = vadd.f32 %v15394_v17, %v5218_v27  ;;  %v14719_v60 = vld [vmem:[#allocation11 + $0x18] sm:$0xff]   ;;  %v10275_v18 = vpack.c.bf16 %v10265_v31, %v10265_v31  ;;  %v14768_v27 = vld [vmem:[#allocation11 + $0xc8] sm:$0xff]  }
 0x598   :  { %12590 = vmatpush3.bf16.msra.mxu0 %v14699_v13  ;;  %10961 = vmatprep.mubr.bf16.mxu0 %v10273_v38  ;;  %v14740_v13 = vld [vmem:[#allocation8 + $0x1470] ss:$40 sps:$4 sm:$0xff]  }
 0x599   :  { %v9970_v9 = vpop.f32.mrf.mxu0  ;;  %10167 = vmatprep.subr.bf16.mxu1 %v14702_v6  ;;  %12591 = vmatprep.subr.bf16.mxu0 %v14703_v1  ;;  %v9887_v8 = vadd.f32 %v15390_v10, %v5214_v7  ;;  %v14723_v10 = vld [vmem:[#allocation11 + $0x50] sm:$0xff]   ;;  %v14747_v6 = vld [vmem:[#allocation8 + $0x1424] ss:$40 sps:$4 sm:$0xff]   ;;  %v14749_v38 = vld [vmem:[#allocation11 + $0xa8] sm:$0xff]  }
 0x59a   :  { %v14745_v1 = vld [vmem:[#allocation8 + $0x1420] ss:$40 sps:$4 sm:$0xff]   ;;  %v14760_v7 = vld [vmem:[#allocation8 + $0x1830] ss:$40 sps:$4 sm:$0xff]  }
 0x59b   :  { %v9972_v32 = vpop.f32.mrf.mxu0  ;;  %10168 = vmatpush2.bf16.msra.mxu1 %v14700_v50  ;;  %v14753_v50 = vld [vmem:[#allocation11 + $0xe0] sm:$0xff]  }
 0x59c   :  { %12592 = vmatpush3.bf16.msra.mxu0 %v14704_v55  ;;  %10169 = vmatprep.subr.bf16.mxu1 %v14707_v47  ;;  %v14750_v55 = vld [vmem:[#allocation8 + $0x18d0] ss:$40 sps:$4 sm:$0xff]   ;;  %v14755_v32 = vld [vmem:[#allocation8 + $0x1880] ss:$40 sps:$4 sm:$0xff]  }
 0x59d   :  { %v9973_v42 = vpop.f32.mrf.mxu0  ;;  %12593 = vmatprep.subr.bf16.mxu0 %v14708_v24  ;;  %v14754_v47 = vld [vmem:[#allocation11 + $0xa0] sm:$0xff]   ;;  %v14758_v24 = vld [vmem:[#allocation11 + $0xd8] sm:$0xff]  }
 0x59e   :  { %v14764_v42 = vld [vmem:[#allocation11 + $0x90] sm:$0xff]  }
 0x59f   :  { %10170 = vmatpush2.bf16.msra.mxu1 %v14705_v51  ;;  %v14759_v51 = vld [vmem:[#allocation11 + $0x98] sm:$0xff]  }
 0x5a0   :  { %12594 = vmatpush3.bf16.msra.mxu0 %v14709_v22  ;;  %10221 = vmatprep.subr.bf16.mxu1 %v14712_v20  ;;  %v14762_v22 = vld [vmem:[#allocation8 + $0x1834] ss:$40 sps:$4 sm:$0xff]  }
 0x5a1   :  { %12595 = vmatprep.subr.bf16.mxu0 %v14713_v25  ;;  %v14763_v20 = vld [vmem:[#allocation11 + $0xd0] sm:$0xff]   ;;  %v14767_v25 = vld [vmem:[#allocation8 + $0x17e4] ss:$40 sps:$4 sm:$0xff]  }
 0x5a2   :  { %v9927_v2 = vpop.f32.mrf.mxu1  ;;  %10172 = vmatmul.mubr.bf16.vlgmr.msra.gmra.mxu1 %v15255_v26  ;;  %v14720_v26 = vld [vmem:[#allocation8 + $0x15b0] ss:$40 sps:$4 sm:$0xff]  }
 0x5a3   :  { %v9928_v12 = vadd.f32 %v9927_v2, %v9887_v8  ;;  %10222 = vmatpush1.bf16.msra.mxu1 %v14710_v11  ;;  %10253 = vmatprep.mubr.bf16.mxu1 %v15281_v57  ;;  %v14724_v57 = vld [vmem:[#allocation11 + $0x10] sm:$0xff]   ;;  %v14773_v8 = vld [vmem:[#allocation11 + $0xc0] sm:$0xff]  }
 0x5a4   :  { %v9929_v3 = vpop.f32.mrf.mxu1  ;;  %12596 = vmatpush3.bf16.msra.mxu0 %v14714_v63  ;;  %10223 = vmatprep.subr.bf16.mxu1 %v14717_v28  ;;  %v14765_v11 = vld [vmem:[#allocation8 + $0x17e0] ss:$40 sps:$4 sm:$0xff]   ;;  %v14769_v63 = vld [vmem:[#allocation11 + $0x88] sm:$0xff]  }
 0x5a5   :  { %v9930_v49 = vadd.f32 %v9929_v3, %v9889_v23  ;;  %12597 = vmatprep.subr.bf16.mxu0 %v14718_v45  ;;  %v15416_v33 = vadd.f32 %v9968_v5, %v9928_v12  ;;  %v14752_v5 = vld [vmem:[#allocation8 + $0x18d4] ss:$40 sps:$4 sm:$0xff]   ;;  %v14770_v45 = vld [vmem:[#allocation8 + $0x1790] ss:$40 sps:$4 sm:$0xff]   ;;  %v14777_v23 = vld [vmem:[#allocation8 + $0x1744] ss:$40 sps:$4 sm:$0xff]  }
 0x5a6   :  { %v9931_v41 = vpop.f32.mrf.mxu1  ;;  %v14772_v28 = vld [vmem:[#allocation8 + $0x1794] ss:$40 sps:$4 sm:$0xff]   ;;  %v14774_v2 = vld [vmem:[#allocation11 + $0x80] sm:$0xff]   ;;  %v10264_v12 = vmax.f32 %v15359_v54, 0.0 }
 0x5a7   :  { %10224 = vmatpush1.bf16.msra.mxu1 %v14715_v34  ;;  %v15418_v36 = vadd.f32 %v9970_v9, %v9930_v49  ;;  %v14757_v9 = vld [vmem:[#allocation8 + $0x1884] ss:$40 sps:$4 sm:$0xff]   ;;  %v14775_v3 = vld [vmem:[#allocation8 + $0x1740] ss:$40 sps:$4 sm:$0xff]  }
 0x5a8   :  { %v9932_v17 = vpop.f32.mrf.mxu1  ;;  %12598 = vmatpush3.bf16.msra.mxu0 %v14719_v60  ;;  %10225 = vmatprep.subr.bf16.mxu1 %v14722_v39  ;;  %v14778_v34 = vld [vmem:[#allocation11 + $0x1f8] sm:$0xff]   ;;  %v14782_v39 = vld [vmem:[#allocation8 + $0x16f4] ss:$40 sps:$4 sm:$0xff]   ;;  %v10274_v49 = vpack.c.bf16 %v10264_v12, %v10264_v12 }
 0x5a9   :  { %12599 = vmatprep.subr.bf16.mxu0 %v14723_v10  ;;  %v14779_v60 = vld [vmem:[#allocation11 + $0x1b8] sm:$0xff]   ;;  %v14783_v10 = vld [vmem:[#allocation11 + $0x1f0] sm:$0xff]  }
 0x5aa   :  { %v14784_v17 = vld [vmem:[#allocation11 + $0x1b0] sm:$0xff]   ;;  %v14787_v54 = vld [vmem:[#allocation8 + $0x16a4] ss:$40 sps:$4 sm:$0xff]  }
 0x5ab   :  { %10226 = vmatpush1.bf16.msra.mxu1 %v14720_v26  ;;  %v14780_v26 = vld [vmem:[#allocation8 + $0x16f0] ss:$40 sps:$4 sm:$0xff]  }
 0x5ac   :  { %12600 = vmatpush3.bf16.msra.mxu0 %v14724_v57  ;;  %10227 = vmatprep.subr.bf16.mxu1 %v14727_v16  ;;  %v14788_v16 = vld [vmem:[#allocation11 + $0x1e8] sm:$0xff]   ;;  %v14818_v12 = vld [vmem:[#allocation11 + $0x270] sm:$0xff]  }
 0x5ad   :  { %12601 = vmatprep.subr.bf16.mxu0 %v14728_v44 }
 0x5af   :  { %10228 = vmatpush1.bf16.msra.mxu1 %v14725_v14  ;;  %v14785_v14 = vld [vmem:[#allocation8 + $0x16a0] ss:$40 sps:$4 sm:$0xff]  }
 0x5b0   :  { %12602 = vmatpush3.bf16.msra.mxu0 %v14729_v35  ;;  %10229 = vmatprep.subr.bf16.mxu1 %v14732_v53  ;;  %v14789_v35 = vld [vmem:[#allocation11 + $0x1a8] sm:$0xff]   ;;  %v14790_v53 = vld [vmem:[#allocation11 + $0x178] sm:$0xff]  }
 0x5b1   :  { %12603 = vmatprep.subr.bf16.mxu0 %v14733_v30  ;;  %v10267_v30 = vmax.f32 %v15402_v4, 0.0  ;;  %v14797_v4 = vld [vmem:[#allocation11 + $0x198] sm:$0xff]  }
 0x5b3   :  { %10230 = vmatpush1.bf16.msra.mxu1 %v14730_v46  ;;  %v10277_v31 = vpack.c.bf16 %v10267_v30, %v10267_v30  ;;  %v14828_v30 = vld [vmem:[#allocation11 + $0x248] sm:$0xff]  }
 0x5b4   :  { %12604 = vmatpush3.bf16.msra.mxu0 %v14734_v59  ;;  %10231 = vmatprep.subr.bf16.mxu1 %v14737_v15  ;;  %v14792_v59 = vld [vmem:[#allocation11 + $0x1e0] sm:$0xff]   ;;  %v14791_v15 = vld [vmem:[#allocation11 + $0x138] sm:$0xff]  }
 0x5b5   :  { %12611 = vmatprep.subr.bf16.mxu0 %v14738_v48  ;;  %v14794_v48 = vld [vmem:[#allocation11 + $0x170] sm:$0xff]  }
 0x5b7   :  { %10232 = vmatpush1.bf16.msra.mxu1 %v14735_v62  ;;  %10962 = vmatmul.mubr.bf16.vlgmr.msra.gmra.mxu0 %v10272_v21  ;;  %v14796_v62 = vld [vmem:[#allocation11 + $0x1d8] sm:$0xff]   ;;  %v14795_v21 = vld [vmem:[#allocation11 + $0x130] sm:$0xff]  }
 0x5b8   :  { %12612 = vmatpush3.bf16.msra.mxu0 %v14739_v37  ;;  %11001 = vmatprep.mubr.bf16.mxu0 %v10275_v18 }
 0x5b9   :  { %10233 = vmatprep.subr.bf16.mxu1 %v14742_v29  ;;  %12613 = vmatprep.subr.bf16.mxu0 %v14743_v0  ;;  %v14798_v0 = vld [vmem:[#allocation11 + $0x168] sm:$0xff]  }
 0x5bb   :  { %10234 = vmatpush1.bf16.msra.mxu1 %v14740_v13  ;;  %v14800_v13 = vld [vmem:[#allocation11 + $0x1d0] sm:$0xff]  }
 0x5bc   :  { %12614 = vmatpush3.bf16.msra.mxu0 %v14744_v58  ;;  %10235 = vmatprep.subr.bf16.mxu1 %v14747_v6 }
 0x5bd   :  { %12615 = vmatprep.subr.bf16.mxu0 %v14748_v19  ;;  %v14799_v19 = vld [vmem:[#allocation11 + $0x128] sm:$0xff]  }
 0x5bf   :  { %10236 = vmatpush1.bf16.msra.mxu1 %v14745_v1 }
 0x5c0   :  { %12616 = vmatpush3.bf16.msra.mxu0 %v14749_v38  ;;  %10237 = vmatprep.subr.bf16.mxu1 %v14752_v5  ;;  %v14802_v38 = vld [vmem:[#allocation11 + $0x160] sm:$0xff]  }
 0x5c1   :  { %12617 = vmatprep.subr.bf16.mxu0 %v14753_v50 }
 0x5c3   :  { %10238 = vmatpush2.bf16.msra.mxu1 %v14750_v55  ;;  %v14804_v55 = vld [vmem:[#allocation11 + $0x1c8] sm:$0xff]  }
 0x5c4   :  { %12618 = vmatpush3.bf16.msra.mxu0 %v14754_v47  ;;  %10239 = vmatprep.subr.bf16.mxu1 %v14757_v9  ;;  %v14803_v9 = vld [vmem:[#allocation11 + $0x120] sm:$0xff]  }
 0x5c5   :  { %12619 = vmatprep.subr.bf16.mxu0 %v14758_v24  ;;  %v14806_v24 = vld [vmem:[#allocation11 + $0x158] sm:$0xff]  }
 0x5c7   :  { %10240 = vmatpush2.bf16.msra.mxu1 %v14755_v32 }
 0x5c8   :  { %12620 = vmatpush3.bf16.msra.mxu0 %v14759_v51  ;;  %10241 = vmatprep.subr.bf16.mxu1 %v14762_v22  ;;  %v14808_v51 = vld [vmem:[#allocation11 + $0x1c0] sm:$0xff]   ;;  %v14807_v22 = vld [vmem:[#allocation11 + $0x118] sm:$0xff]  }
 0x5c9   :  { %12621 = vmatprep.subr.bf16.mxu0 %v14763_v20  ;;  %v14810_v20 = vld [vmem:[#allocation11 + $0x150] sm:$0xff]  }
 0x5cb   :  { %10242 = vmatpush2.bf16.msra.mxu1 %v14760_v7 }
 0x5cc   :  { %12622 = vmatpush3.bf16.msra.mxu0 %v14764_v42  ;;  %10243 = vmatprep.subr.bf16.mxu1 %v14767_v25  ;;  %v14811_v42 = vld [vmem:[#allocation11 + $0x110] sm:$0xff]   ;;  %v14812_v25 = vld [vmem:[#allocation11 + $0x148] sm:$0xff]  }
 0x5cd   :  { %12623 = vmatprep.subr.bf16.mxu0 %v14768_v27 }
 0x5cf   :  { %10244 = vmatpush2.bf16.msra.mxu1 %v14765_v11  ;;  %v14813_v11 = vld [vmem:[#allocation11 + $0x108] sm:$0xff]  }
 0x5d0   :  { %12624 = vmatpush3.bf16.msra.mxu0 %v14769_v63  ;;  %10245 = vmatprep.subr.bf16.mxu1 %v14772_v28  ;;  %v14814_v63 = vld [vmem:[#allocation11 + $0x140] sm:$0xff]  }
 0x5d1   :  { %12625 = vmatprep.subr.bf16.mxu0 %v14773_v8  ;;  %v14815_v28 = vld [vmem:[#allocation11 + $0x100] sm:$0xff]   ;;  %v10266_v8 = vmax.f32 %v15398_v52, 0.0 }
 0x5d3   :  { %10246 = vmatpush2.bf16.msra.mxu1 %v14770_v45  ;;  %v14816_v45 = vld [vmem:[#allocation11 + $0x278] sm:$0xff]  }
 0x5d4   :  { %12626 = vmatpush3.bf16.msra.mxu0 %v14774_v2  ;;  %10247 = vmatprep.subr.bf16.mxu1 %v14777_v23  ;;  %v14817_v2 = vld [vmem:[#allocation11 + $0x238] sm:$0xff]   ;;  %v10276_v23 = vpack.c.bf16 %v10266_v8, %v10266_v8 }
 0x5d5   :  { %12655 = vmatprep.subr.bf16.mxu0 %v14778_v34  ;;  %v14819_v34 = vld [vmem:[#allocation11 + $0x230] sm:$0xff]  }
 0x5d7   :  { %v15423_v41 = vpop.f32.mrf.mxu0  ;;  %10248 = vmatpush2.bf16.msra.mxu1 %v14775_v3  ;;  %11002 = vmatmul.mubr.bf16.vlgmr.msra.gmra.mxu0 %v10274_v49  ;;  %v14820_v3 = vld [vmem:[#allocation11 + $0x268] sm:$0xff]  }
 0x5d8   :  { %12656 = vmatpush3.bf16.msra.mxu0 %v14779_v60  ;;  %10249 = vmatprep.subr.bf16.mxu1 %v14782_v39  ;;  %v14821_v60 = vld [vmem:[#allocation11 + $0x228] sm:$0xff]   ;;  %v14822_v39 = vld [vmem:[#allocation11 + $0x260] sm:$0xff]  }
 0x5d9   :  { %v10052_v57 = vpop.f32.mrf.mxu0  ;;  %12657 = vmatprep.subr.bf16.mxu0 %v14783_v10  ;;  %v14823_v10 = vld [vmem:[#allocation11 + $0x220] sm:$0xff]  }
 0x5db   :  { %v10054_v44 = vpop.f32.mrf.mxu0  ;;  %10250 = vmatpush2.bf16.msra.mxu1 %v14780_v26 }
 0x5dc   :  { %12658 = vmatpush3.bf16.msra.mxu0 %v14784_v17  ;;  %10251 = vmatprep.subr.bf16.mxu1 %v14787_v54  ;;  %v14825_v17 = vld [vmem:[#allocation11 + $0x218] sm:$0xff]   ;;  %v14827_v44 = vld [vmem:[#allocation11 + $0x210] sm:$0xff]  }
 0x5dd   :  { %v10055_v46 = vpop.f32.mrf.mxu0  ;;  %12659 = vmatprep.subr.bf16.mxu0 %v14788_v16  ;;  %v5184_v54 = vld [vmem:[#allocation10 + $0x8] sm:$0x3]  ;;  %v14826_v16 = vld [vmem:[#allocation11 + $0x250] sm:$0xff]  }
 0x5df   :  { %10252 = vmatpush2.bf16.msra.mxu1 %v14785_v14  ;;  %v5222_v14 = vrot.slane %v5184_v54, %v15114_v40 }
 0x5e0   :  { %12660 = vmatpush3.bf16.msra.mxu0 %v14789_v35  ;;  %12633 = vmatprep.subr.bf16.mxu1 %v14790_v53  ;;  %v5226_v35 = vrot.slane %v5184_v54, %v15117_v43 }
 0x5e1   :  { %12661 = vmatprep.subr.bf16.mxu0 %v14792_v59  ;;  %v14829_v59 = vld [vmem:[#allocation11 + $0x208] sm:$0xff]  }
 0x5e2   :  { %v10009_v37 = vpop.f32.mrf.mxu1  ;;  %10254 = vmatmul.mubr.bf16.vlgmr.msra.gmra.mxu1 %v15283_v61  ;;  %v14801_v61 = vld [vmem:[#allocation11 + $0x190] sm:$0xff]  }
 0x5e3   :  { %12634 = vmatpush3.bf16.msra.mxu1 %v14791_v15  ;;  %11041 = vmatprep.mubr.bf16.mxu1 %v10277_v31  ;;  %v10010_v5 = vadd.f32 %v10009_v37, %v15416_v33  ;;  %v14809_v33 = vld [vmem:[#allocation11 + $0x180] sm:$0xff]  }
 0x5e4   :  { %v10011_v29 = vpop.f32.mrf.mxu1  ;;  %12662 = vmatpush3.bf16.msra.mxu0 %v14793_v56  ;;  %12635 = vmatprep.subr.bf16.mxu1 %v14794_v48 }
 0x5e5   :  { %v10012_v18 = vadd.f32 %v10011_v29, %v15418_v36  ;;  %12663 = vmatprep.subr.bf16.mxu0 %v14796_v62  ;;  %v14805_v36 = vld [vmem:[#allocation11 + $0x188] sm:$0xff]   ;;  %v10051_v32 = vadd.f32 %v15423_v41, %v10010_v5  ;;  %v14824_v41 = vld [vmem:[#allocation11 + $0x258] sm:$0xff]   ;;  %v14830_v62 = vld [vmem:[#allocation11 + $0x240] sm:$0xff]  }
 0x5e6   :  { %v10013_v58 = vpop.f32.mrf.mxu1 }
 0x5e7   :  { %v10053_v6 = vadd.f32 %v10052_v57, %v10012_v18  ;;  %12636 = vmatpush3.bf16.msra.mxu1 %v14795_v21  ;;  %v10268_v7 = vmax.f32 %v10051_v32, 0.0  ;;  %v14831_v21 = vld [vmem:[#allocation11 + $0x200] sm:$0xff]  }
 0x5e8   :  { %v10014_v1 = vpop.f32.mrf.mxu1  ;;  %12664 = vmatpush3.bf16.msra.mxu0 %v14797_v4  ;;  %12637 = vmatprep.subr.bf16.mxu1 %v14798_v0 }
 0x5e9   :  { %v10269_v50 = vmax.f32 %v10053_v6, 0.0  ;;  %12665 = vmatprep.subr.bf16.mxu0 %v14800_v13  ;;  %v10278_v27 = vpack.c.bf16 %v10268_v7, %v10268_v7 }
 0x5eb   :  { %v10279_v47 = vpack.c.bf16 %v10269_v50, %v10269_v50  ;;  %12638 = vmatpush3.bf16.msra.mxu1 %v14799_v19 }
 0x5ec   :  { %12666 = vmatpush3.bf16.msra.mxu0 %v14801_v61  ;;  %12639 = vmatprep.subr.bf16.mxu1 %v14802_v38 }
 0x5ed   :  { %11081 = vmatprep.mubr.bf16.mxu0 %v10279_v47  ;;  %12667 = vmatprep.subr.bf16.mxu0 %v14804_v55 }
 0x5ef   :  { %12640 = vmatpush3.bf16.msra.mxu1 %v14803_v9 }
 0x5f0   :  { %12668 = vmatpush3.bf16.msra.mxu0 %v14805_v36  ;;  %12641 = vmatprep.subr.bf16.mxu1 %v14806_v24  ;;  %v12508_v36 = vld [vmem:[#allocation13] ss:$0 sm:$0xff] }
 0x5f1   :  { %12669 = vmatprep.subr.bf16.mxu0 %v14808_v51 }
 0x5f3   :  { %12642 = vmatpush3.bf16.msra.mxu1 %v14807_v22 }
 0x5f4   :  { %12670 = vmatpush3.bf16.msra.mxu0 %v14809_v33  ;;  %12643 = vmatprep.subr.bf16.mxu1 %v14810_v20 }
 0x5f7   :  { %12644 = vmatpush3.bf16.msra.mxu1 %v14811_v42  ;;  %11082 = vmatmul.mubr.bf16.vlgmr.msra.gmra.mxu0 %v10278_v27 }
 0x5f8   :  { %12645 = vmatprep.subr.bf16.mxu1 %v14812_v25 }
 0x5fb   :  { %12646 = vmatpush3.bf16.msra.mxu1 %v14813_v11 }
 0x5fc   :  { %12647 = vmatprep.subr.bf16.mxu1 %v14814_v63 }
 0x5ff   :  { %12648 = vmatpush3.bf16.msra.mxu1 %v14815_v28 }
 0x600   :  { %12677 = vmatprep.subr.bf16.mxu1 %v14816_v45 }
 0x602   :  { %11042 = vmatmul.mubr.bf16.vlgmr.msra.gmra.mxu1 %v10276_v23 }
 0x603   :  { %12678 = vmatpush3.bf16.msra.mxu1 %v14817_v2 }
 0x604   :  { %12679 = vmatprep.subr.bf16.mxu1 %v14818_v12 }
 0x607   :  { %12680 = vmatpush3.bf16.msra.mxu1 %v14819_v34 }
 0x608   :  { %12681 = vmatprep.subr.bf16.mxu1 %v14820_v3 }
 0x60b   :  { %12682 = vmatpush3.bf16.msra.mxu1 %v14821_v60 }
 0x60c   :  { %12683 = vmatprep.subr.bf16.mxu1 %v14822_v39 }
 0x60f   :  { %12684 = vmatpush3.bf16.msra.mxu1 %v14823_v10 }
 0x610   :  { %12685 = vmatprep.subr.bf16.mxu1 %v14824_v41 }
 0x613   :  { %12686 = vmatpush3.bf16.msra.mxu1 %v14825_v17 }
 0x614   :  { %12687 = vmatprep.subr.bf16.mxu1 %v14826_v16 }
 0x617   :  { %v10132_v49 = vpop.f32.mrf.mxu0  ;;  %12688 = vmatpush3.bf16.msra.mxu1 %v14827_v44 }
 0x618   :  { %12689 = vmatprep.subr.bf16.mxu1 %v14828_v30 }
 0x619   :  { %v10134_v52 = vpop.f32.mrf.mxu0 }
 0x61b   :  { %v10136_v26 = vpop.f32.mrf.mxu0  ;;  %12690 = vmatpush3.bf16.msra.mxu1 %v14829_v59 }
 0x61c   :  { %12691 = vmatprep.subr.bf16.mxu1 %v14830_v62 }
 0x61d   :  { %v10137_v57 = vpop.f32.mrf.mxu0 }
 0x61f   :  { %12692 = vmatpush3.bf16.msra.mxu1 %v14831_v21 }
 0x622   :  { %v10091_v53 = vpop.f32.mrf.mxu1 }
 0x623   :  { %v10092_v46 = vadd.f32 %v10091_v53, %v5222_v14 }
 0x624   :  { %v10093_v15 = vpop.f32.mrf.mxu1 }
 0x625   :  { %v10094_v56 = vadd.f32 %v10093_v15, %v5226_v35  ;;  %v10133_v48 = vadd.f32 %v10132_v49, %v10092_v46 }
 0x626   :  { %v10095_v31 = vpop.f32.mrf.mxu1 }
 0x627   :  { %v10135_v37 = vadd.f32 %v10134_v52, %v10094_v56 }
 0x628   :  { %v10096_v29 = vpop.f32.mrf.mxu1 }
 0x657   :  { %v10214_v40 = vpop.f32.mrf.mxu0 }
 0x659   :  { %v10216_v4 = vpop.f32.mrf.mxu0 }
 0x65b   :  { %v10218_v43 = vpop.f32.mrf.mxu0 }
 0x65d   :  { %v10219_v0 = vpop.f32.mrf.mxu0 }
 0x662   :  { %v10173_v18 = vpop.f32.mrf.mxu1 }
 0x663   :  { %v10174_v13 = vadd.f32 %v10173_v18, %v10133_v48 }
 0x664   :  { %v10175_v58 = vpop.f32.mrf.mxu1 }
 0x665   :  { %v10176_v6 = vadd.f32 %v10175_v58, %v10135_v37  ;;  %v10215_v19 = vadd.f32 %v10214_v40, %v10174_v13 }
 0x666   :  { %v10177_v1 = vpop.f32.mrf.mxu1 }
 0x667   :  { %v10217_v61 = vadd.f32 %v10216_v4, %v10176_v6 }
 0x668   :  { %v10178_v38 = vpop.f32.mrf.mxu1 }
 0x677   :  { %v12605_v5 = vpop.f32.mrf.mxu0 }
 0x679   :  { %v12606_v50 = vpop.f32.mrf.mxu0 }
 0x67a   :  { %v12607_v55 = vadd.f32 %v12606_v50, %v12605_v5 }
 0x67b   :  { %v12608_v47 = vpop.f32.mrf.mxu0 }
 0x67c   :  { %v10964_v51 = vadd.f32 %v12607_v55, %v12508_v36 }
 0x67d   :  { %v12609_v9 = vpop.f32.mrf.mxu0 }
 0x697   :  { %v12627_v24 = vpop.f32.mrf.mxu0 }
 0x699   :  { %v12628_v32 = vpop.f32.mrf.mxu0 }
 0x69a   :  { %v12629_v22 = vadd.f32 %v12628_v32, %v12627_v24 }
 0x69b   :  { %v12630_v33 = vpop.f32.mrf.mxu0 }
 0x69c   :  { %v11004_v20 = vadd.f32 %v12629_v22, %v10964_v51 }
 0x69d   :  { %v12631_v7 = vpop.f32.mrf.mxu0 }
 0x6a2   :  { %v10255_v42 = vpop.f32.mrf.mxu1 }
 0x6a3   :  { %v10256_v25 = vadd.f32 %v10255_v42, %v10215_v19 }
 0x6a4   :  { %v10257_v27 = vpop.f32.mrf.mxu1 }
 0x6a5   :  { %v10258_v11 = vadd.f32 %v10257_v27, %v10217_v61  ;;  %v10270_v63 = vmax.f32 %v10256_v25, 0.0 }
 0x6a6   :  { %v10259_v28 = vpop.f32.mrf.mxu1 }
 0x6a7   :  { %v10271_v8 = vmax.f32 %v10258_v11, 0.0  ;;  %v10280_v23 = vpack.c.bf16 %v10270_v63, %v10270_v63 }
 0x6a8   :  { %v10260_v45 = vpop.f32.mrf.mxu1 }
 0x6a9   :  { %v10281_v2 = vpack.c.bf16 %v10271_v8, %v10271_v8 }
 0x6ab   :  { %11121 = vmatprep.mubr.bf16.mxu1 %v10281_v2 }
 0x6ac   :  { %11122 = vmatmul.mubr.bf16.vlgmr.msra.gmra.mxu1 %v10280_v23 }
 0x6b7   :  { %v12671_v12 = vpop.f32.mrf.mxu0 }
 0x6b9   :  { %v12672_v34 = vpop.f32.mrf.mxu0 }
 0x6ba   :  { %v12673_v3 = vadd.f32 %v12672_v34, %v12671_v12 }
 0x6bb   :  { %v12674_v60 = vpop.f32.mrf.mxu0 }
 0x6bd   :  { %v12675_v39 = vpop.f32.mrf.mxu0 }
 0x6c2   :  { %v12649_v49 = vpop.f32.mrf.mxu1 }
 0x6c4   :  { %v12650_v10 = vpop.f32.mrf.mxu1 }
 0x6c5   :  { %v12651_v52 = vadd.f32 %v12650_v10, %v12649_v49 }
 0x6c6   :  { %v12652_v41 = vpop.f32.mrf.mxu1 }
 0x6c7   :  { %v11044_v26 = vadd.f32 %v12651_v52, %v11004_v20 }
 0x6c8   :  { %v12653_v17 = vpop.f32.mrf.mxu1 }
 0x6c9   :  { %v11084_v54 = vadd.f32 %v12673_v3, %v11044_v26 }
 0x76c   :  { %v12693_v57 = vpop.f32.mrf.mxu1 }
 0x76e   :  { %v12694_v16 = vpop.f32.mrf.mxu1 }
 0x76f   :  { %v12695_v44 = vadd.f32 %v12694_v16, %v12693_v57 }
 0x770   :  { %v12696_v14 = vpop.f32.mrf.mxu1 }
 0x771   :  { %v11124_v35 = vadd.f32 %v12695_v44, %v11084_v54 }
 0x772   :  { %v12697_v53 = vpop.f32.mrf.mxu1 }
 0x773   :  { %11129 = vst [vmem:[#allocation14] sm:$0xff] %v11124_v35 }
 0x774   :  { %14986 = shalt.err (!%p14983_p11)
}
 0x775   :  { %11139 = dma.vmem_to_hbm [thread:$0]  %s11137_s6, 128, %s15443_s7, [#allocation4]  }
 0x776   :  { %15003 = dma.done.wait [#allocation4], 128  }
 0x777   :  { %15004 = vsyncadd [#allocation4], 4294967168 }
 0x778   :  { %11143 = vsyncpa [#allocation3], 1 }
 0x779   :  { %11144 = vsyncpa [#allocation6], 1 }
 0x77a   :  { %11145 = vsyncpa [#allocation9], 1 }
 0x77b   :  { %11146 = vsyncpa [#allocation12], 1 }
 0x77c   :  { %11147 = vsyncpa [#allocation4], 1 }

</bundles_post_ra>
